<compile_context>
chip_gen: v6e
topology: v6e:2x2x1
jax: 0.10.0
libtpu: 0.0.40
codegen_flags: <defaults>
</compile_context>

<pallas_src>
import functools
import math

import jax
import jax.numpy as jnp
from jax.experimental import pallas as pl
from jax.experimental.pallas import tpu as pltpu


def creat_real_dictionary(T, rr, theta):
    """Standard DYAN real dictionary, shape (T, 4N+1)."""
    i = jnp.arange(T, dtype=jnp.float32)[:, None]               # (T, 1)
    sign = jnp.where(jnp.mod(i, 2.0) == 0.0, 1.0, -1.0)          # (-1)^i (integer exponent)
    rr_pow = jnp.power(rr[None, :], i)                           # rr > 0 by construction
    c = jnp.cos(i * theta[None, :])
    s = jnp.sin(i * theta[None, :])
    W1 = rr_pow * c
    W2 = sign * rr_pow * c
    W3 = rr_pow * s
    W4 = sign * rr_pow * s
    ones = jnp.ones((T, 1), dtype=jnp.float32)
    return jnp.concatenate([ones, W1, W2, W3, W4], axis=1)


def _fista_momentum_coeffs(max_iter):
    # Data-independent t/tt sequence (matches the Python-scalar math in fista()).
    t = 1.0
    tts = []
    for _ in range(max_iter):
        t_new = (1.0 + math.sqrt(1.0 + 4.0 * t * t)) / 2.0
        tts.append((t - 1.0) / t_new)
        t = t_new
    return tuple(tts)


def _sc2_kernel(lam_ref, A_ref, Dt_ref, D2_ref, x_ref, out_ref, *, tts, n_frames):
    # x_ref: (T, tile_p) slab of independent per-pixel columns (lanes = pixels).
    x = x_ref[...]

    # mean / unbiased std over time, std==0 -> 1 (matches torch.std default + masking).
    mean = jnp.mean(x, axis=0, keepdims=True)                    # (1, tp)
    xc = x - mean
    var = jnp.sum(xc * xc, axis=0, keepdims=True) / float(n_frames - 1)
    std = jnp.sqrt(var)
    std = jnp.where(std == 0.0, 1.0, std)
    inv_std = 1.0 / std                                          # single-row reciprocal
    y = xc * inv_std                                             # (T, tp)

    lam = lam_ref[0]                                             # gamma * linv (scalar)
    A = A_ref[...]                                               # (Kp, Kp) = pad(I - DtD*linv)
    # Dt_ref is already scaled by linv -> DtY * linv, padded to Kp rows.
    DtY = jnp.dot(Dt_ref[...], y, preferred_element_type=jnp.float32)   # (Kp, tp)

    x_old = jnp.zeros_like(DtY)
    y_old = x_old
    for tt in tts:                                               # statically unrolled FISTA
        x_new = jnp.dot(A, y_old, preferred_element_type=jnp.float32) + DtY
        # soft-threshold: sign(x)*max(|x|-lam, 0) == x - clip(x, -lam, lam)
        x_new = x_new - jnp.clip(x_new, -lam, lam)
        # momentum: x_new*(1+tt) - x_old*tt == x_new + tt*(x_new - x_old)
        y_old = x_new + tt * (x_new - x_old)
        x_old = x_new

    # invSClayer: dic(T+PRE) @ sparsecode, then un-normalize.
    rec = jnp.dot(D2_ref[...], x_old, preferred_element_type=jnp.float32)  # (T+PRE, tp)
    out_ref[...] = rec * std + mean


def _pick_tile_p(P, max_tile=4096):
    """Largest lane tile: full P if it fits, else the biggest 128-multiple divisor."""
    if P <= max_tile:
        return P
    for t in range(max_tile - (max_tile % 128), 127, -128):
        if P % t == 0:
            return t
    return P  # fall back to whole-row blocks (full-dim exception)


def sc2_forward(x, Drr, Dtheta, *, T, PRE, gamma=0.05, max_iter=40, max_tile_p=4096):
    """x: (B, T, P) float32 -> (B, T+PRE, P) float32."""
    B, Tx, P = x.shape
    assert Tx == T
    N = Drr.shape[0]
    K = 4 * N + 1
    Kp = ((K + 7) // 8) * 8                          # sublane-aligned padded atom count

    # Parameter-derived small matrices (glue, plain JAX).
    dic = creat_real_dictionary(T, Drr, Dtheta)                  # (T, K)
    dic2 = creat_real_dictionary(T + PRE, Drr, Dtheta)           # (T+PRE, K)
    DtD = dic.T @ dic                                            # (K, K)
    L = jnp.sqrt(jnp.sum(DtD * DtD))                             # torch.norm(DtD, p=2) == Frobenius
    linv = jnp.where(L == 0.0, 0.0, 1.0 / L)
    A = jnp.eye(K, dtype=jnp.float32) - DtD * linv               # (K, K)
    Dt_scaled = dic.T * linv                                     # (K, T), folds DtY * linv

    # Zero-pad K -> Kp so the FISTA state / matmul sublane dims are multiples of 8.
    # Padded rows of Dt/A are zero => padded sparse-code rows stay zero throughout.
    A_p = jnp.zeros((Kp, Kp), jnp.float32).at[:K, :K].set(A)
    Dt_p = jnp.zeros((Kp, T), jnp.float32).at[:K, :].set(Dt_scaled)
    dic2_p = jnp.zeros((T + PRE, Kp), jnp.float32).at[:, :K].set(dic2)
    lam = jnp.reshape(gamma * linv, (1,)).astype(jnp.float32)

    x = x.astype(jnp.float32)
    tile_p = _pick_tile_p(P, max_tile_p)
    assert P % tile_p == 0
    grid = (B, P // tile_p)                          # >= B tiles: megacore-friendly on v7x

    tts = _fista_momentum_coeffs(max_iter)
    kernel = functools.partial(_sc2_kernel, tts=tts, n_frames=T)

    # Advisory cost estimate: compute-heavy relative to tiny I/O.
    n_tiles = B * (P // tile_p)
    flops = n_tiles * tile_p * 2 * (Kp * T + max_iter * Kp * Kp + (T + PRE) * Kp)
    bytes_accessed = 4 * (B * T * P + B * (T + PRE) * P
                          + n_tiles * (Kp * Kp + Kp * T + (T + PRE) * Kp))
    cost = pl.CostEstimate(flops=int(flops), transcendentals=0,
                           bytes_accessed=int(bytes_accessed))

    out = pl.pallas_call(
        kernel,
        out_shape=jax.ShapeDtypeStruct((B, T + PRE, P), jnp.float32),
        grid=grid,
        in_specs=[
            pl.BlockSpec(memory_space=pltpu.MemorySpace.SMEM),                 # lam (1,)
            pl.BlockSpec((Kp, Kp), lambda b, p: (0, 0)),                        # A (padded)
            pl.BlockSpec((Kp, T), lambda b, p: (0, 0)),                         # linv * D^T (padded)
            pl.BlockSpec((T + PRE, Kp), lambda b, p: (0, 0)),                   # dic(T+PRE) (padded)
            pl.BlockSpec((pl.Squeezed(), T, tile_p), lambda b, p: (b, 0, p)),   # x slab (native layout)
        ],
        out_specs=pl.BlockSpec((pl.Squeezed(), T + PRE, tile_p),
                               lambda b, p: (b, 0, p)),
        compiler_params=pltpu.CompilerParams(
            dimension_semantics=("parallel", "parallel")),
        cost_estimate=cost,
    )(lam, A_p, Dt_p, dic2_p, x)

    return out


if __name__ == "__main__":
    key = jax.random.PRNGKey(0)
    N = 8            # dictionary poles -> K = 4N+1 = 33 atoms (padded to 40 in-kernel)
    T = 8            # observed frames
    PRE = 2          # predicted frames
    B = 2
    P = 256          # pixels per batch element

    k1, k2, k3 = jax.random.split(key, 3)
    # Deterministic synthetic parameters (Drr positive, Dtheta in (0, pi)).
    Drr = jax.random.uniform(k1, (N,), jnp.float32, minval=0.8, maxval=1.1)
    Dtheta = jax.random.uniform(k2, (N,), jnp.float32, minval=0.0, maxval=float(jnp.pi))
    # Gamma parameter exists in the PyTorch module but fista() is called with the scalar 0.05.
    x = jax.random.normal(k3, (B, T, P), dtype=jnp.float32)

    out = sc2_forward(x, Drr, Dtheta, T=T, PRE=PRE, gamma=0.05, max_iter=40)
    out = jax.block_until_ready(out)

    assert out.shape == (B, T + PRE, P)
    assert bool(jnp.all(jnp.isfinite(out)))
    print("KERNEL_OK")
</pallas_src>

<mosaic_0001>
module attributes {stable_mosaic.version = 11 : i64} {
  func.func @_sc2_kernel(%arg0: i32, %arg1: i32, %arg2: memref<1xf32, #tpu.memory_space<smem>>, %arg3: memref<40x40xf32, #tpu.memory_space<vmem>>, %arg4: memref<40x8xf32, #tpu.memory_space<vmem>>, %arg5: memref<10x40xf32, #tpu.memory_space<vmem>>, %arg6: memref<1x8x256xf32, #tpu.memory_space<vmem>>, %arg7: memref<1x10x256xf32, #tpu.memory_space<vmem>>) attributes {dimension_semantics = [#tpu.dimension_semantics<parallel>, #tpu.dimension_semantics<parallel>], iteration_bounds = array<i64: 2, 1>, scalar_prefetch = 0 : i64, scratch_operands = 0 : i64, tpu.core_type = #tpu.core_type<tc>, window_params = [{transform_indices = @transform_0, window_bounds = array<i64: 1>}, {pipeline_mode = #tpu.pipeline_mode<synchronous>, transform_indices = @transform_1, window_bounds = array<i64: 40, 40>}, {pipeline_mode = #tpu.pipeline_mode<synchronous>, transform_indices = @transform_2, window_bounds = array<i64: 40, 8>}, {pipeline_mode = #tpu.pipeline_mode<synchronous>, transform_indices = @transform_3, window_bounds = array<i64: 10, 40>}, {transform_indices = @transform_4, window_bounds = array<i64: 1, 8, 256>}, {transform_indices = @transform_5, window_bounds = array<i64: 1, 10, 256>}]} {
    %c0 = arith.constant 0 : index
    %c0_0 = arith.constant 0 : index
    %c0_1 = arith.constant 0 : index
    %0 = vector.load %arg6[%c0, %c0_0, %c0_1] : memref<1x8x256xf32, #tpu.memory_space<vmem>>, vector<1x8x256xf32>
    %1 = vector.shape_cast %0 : vector<1x8x256xf32> to vector<8x256xf32>
    %cst = arith.constant dense<0.000000e+00> : vector<256xf32>
    %2 = vector.multi_reduction <add>, %1, %cst [0] : vector<8x256xf32> to vector<256xf32>
    %3 = vector.shape_cast %2 : vector<256xf32> to vector<1x256xf32>
    %cst_2 = arith.constant 8.000000e+00 : f32
    %4 = vector.broadcast %cst_2 : f32 to vector<1x256xf32>
    %5 = arith.divf %3, %4 : vector<1x256xf32>
    %6 = vector.broadcast %5 : vector<1x256xf32> to vector<8x256xf32>
    %7 = arith.subf %1, %6 : vector<8x256xf32>
    %8 = arith.mulf %7, %7 : vector<8x256xf32>
    %cst_3 = arith.constant dense<0.000000e+00> : vector<256xf32>
    %9 = vector.multi_reduction <add>, %8, %cst_3 [0] : vector<8x256xf32> to vector<256xf32>
    %10 = vector.shape_cast %9 : vector<256xf32> to vector<1x256xf32>
    %cst_4 = arith.constant 7.000000e+00 : f32
    %11 = vector.broadcast %cst_4 : f32 to vector<1x256xf32>
    %12 = arith.divf %10, %11 : vector<1x256xf32>
    %13 = math.sqrt %12 : vector<1x256xf32>
    %cst_5 = arith.constant 0.000000e+00 : f32
    %14 = vector.broadcast %cst_5 : f32 to vector<1x256xf32>
    %15 = arith.cmpf oeq, %13, %14 : vector<1x256xf32>
    %cst_6 = arith.constant 1.000000e+00 : f32
    %16 = vector.broadcast %cst_6 : f32 to vector<1x256xf32>
    %17 = arith.select %15, %16, %13 : vector<1x256xi1>, vector<1x256xf32>
    %cst_7 = arith.constant 1.000000e+00 : f32
    %18 = vector.broadcast %cst_7 : f32 to vector<1x256xf32>
    %19 = arith.divf %18, %17 : vector<1x256xf32>
    %20 = vector.broadcast %19 : vector<1x256xf32> to vector<8x256xf32>
    %21 = arith.mulf %7, %20 : vector<8x256xf32>
    %c0_8 = arith.constant 0 : index
    %22 = memref.load %arg2[%c0_8] : memref<1xf32, #tpu.memory_space<smem>>
    %c0_9 = arith.constant 0 : index
    %c0_10 = arith.constant 0 : index
    %23 = vector.load %arg3[%c0_9, %c0_10] : memref<40x40xf32, #tpu.memory_space<vmem>>, vector<40x40xf32>
    %c0_11 = arith.constant 0 : index
    %c0_12 = arith.constant 0 : index
    %24 = vector.load %arg4[%c0_11, %c0_12] : memref<40x8xf32, #tpu.memory_space<vmem>>, vector<40x8xf32>
    %cst_13 = arith.constant dense<0.000000e+00> : vector<40x256xf32>
    %25 = tpu.matmul %24, %21, %cst_13 {dimension_numbers = #tpu.dot_dimension_numbers<[1], [0], [0], [1], [0, 0, 1, 1], [], []>} : vector<40x8xf32>, vector<8x256xf32>, vector<40x256xf32> -> vector<40x256xf32>
    %cst_14 = arith.constant 0.000000e+00 : f32
    %26 = vector.broadcast %cst_14 : f32 to vector<40x256xf32>
    %cst_15 = arith.constant dense<0.000000e+00> : vector<40x256xf32>
    %27 = tpu.matmul %23, %26, %cst_15 {dimension_numbers = #tpu.dot_dimension_numbers<[1], [0], [0], [1], [0, 0, 1, 1], [], []>} : vector<40x40xf32>, vector<40x256xf32>, vector<40x256xf32> -> vector<40x256xf32>
    %28 = arith.addf %27, %25 : vector<40x256xf32>
    %cst_16 = arith.constant 0.000000e+00 : f32
    %29 = arith.subf %cst_16, %22 : f32
    %30 = vector.broadcast %29 : f32 to vector<40x256xf32>
    %31 = arith.maximumf %30, %28 : vector<40x256xf32>
    %32 = vector.broadcast %22 : f32 to vector<40x256xf32>
    %33 = arith.minimumf %32, %31 : vector<40x256xf32>
    %34 = arith.subf %28, %33 : vector<40x256xf32>
    %35 = arith.subf %34, %26 : vector<40x256xf32>
    %cst_17 = arith.constant 0.000000e+00 : f32
    %36 = vector.broadcast %cst_17 : f32 to vector<40x256xf32>
    %37 = arith.mulf %36, %35 : vector<40x256xf32>
    %38 = arith.addf %34, %37 : vector<40x256xf32>
    %cst_18 = arith.constant dense<0.000000e+00> : vector<40x256xf32>
    %39 = tpu.matmul %23, %38, %cst_18 {dimension_numbers = #tpu.dot_dimension_numbers<[1], [0], [0], [1], [0, 0, 1, 1], [], []>} : vector<40x40xf32>, vector<40x256xf32>, vector<40x256xf32> -> vector<40x256xf32>
    %40 = arith.addf %39, %25 : vector<40x256xf32>
    %cst_19 = arith.constant 0.000000e+00 : f32
    %41 = arith.subf %cst_19, %22 : f32
    %42 = vector.broadcast %41 : f32 to vector<40x256xf32>
    %43 = arith.maximumf %42, %40 : vector<40x256xf32>
    %44 = vector.broadcast %22 : f32 to vector<40x256xf32>
    %45 = arith.minimumf %44, %43 : vector<40x256xf32>
    %46 = arith.subf %40, %45 : vector<40x256xf32>
    %47 = arith.subf %46, %34 : vector<40x256xf32>
    %cst_20 = arith.constant 0.28175351 : f32
    %48 = vector.broadcast %cst_20 : f32 to vector<40x256xf32>
    %49 = arith.mulf %48, %47 : vector<40x256xf32>
    %50 = arith.addf %46, %49 : vector<40x256xf32>
    %cst_21 = arith.constant dense<0.000000e+00> : vector<40x256xf32>
    %51 = tpu.matmul %23, %50, %cst_21 {dimension_numbers = #tpu.dot_dimension_numbers<[1], [0], [0], [1], [0, 0, 1, 1], [], []>} : vector<40x40xf32>, vector<40x256xf32>, vector<40x256xf32> -> vector<40x256xf32>
    %52 = arith.addf %51, %25 : vector<40x256xf32>
    %cst_22 = arith.constant 0.000000e+00 : f32
    %53 = arith.subf %cst_22, %22 : f32
    %54 = vector.broadcast %53 : f32 to vector<40x256xf32>
    %55 = arith.maximumf %54, %52 : vector<40x256xf32>
    %56 = vector.broadcast %22 : f32 to vector<40x256xf32>
    %57 = arith.minimumf %56, %55 : vector<40x256xf32>
    %58 = arith.subf %52, %57 : vector<40x256xf32>
    %59 = arith.subf %58, %46 : vector<40x256xf32>
    %cst_23 = arith.constant 0.434042782 : f32
    %60 = vector.broadcast %cst_23 : f32 to vector<40x256xf32>
    %61 = arith.mulf %60, %59 : vector<40x256xf32>
    %62 = arith.addf %58, %61 : vector<40x256xf32>
    %cst_24 = arith.constant dense<0.000000e+00> : vector<40x256xf32>
    %63 = tpu.matmul %23, %62, %cst_24 {dimension_numbers = #tpu.dot_dimension_numbers<[1], [0], [0], [1], [0, 0, 1, 1], [], []>} : vector<40x40xf32>, vector<40x256xf32>, vector<40x256xf32> -> vector<40x256xf32>
    %64 = arith.addf %63, %25 : vector<40x256xf32>
    %cst_25 = arith.constant 0.000000e+00 : f32
    %65 = arith.subf %cst_25, %22 : f32
    %66 = vector.broadcast %65 : f32 to vector<40x256xf32>
    %67 = arith.maximumf %66, %64 : vector<40x256xf32>
    %68 = vector.broadcast %22 : f32 to vector<40x256xf32>
    %69 = arith.minimumf %68, %67 : vector<40x256xf32>
    %70 = arith.subf %64, %69 : vector<40x256xf32>
    %71 = arith.subf %70, %58 : vector<40x256xf32>
    %cst_26 = arith.constant 0.531063795 : f32
    %72 = vector.broadcast %cst_26 : f32 to vector<40x256xf32>
    %73 = arith.mulf %72, %71 : vector<40x256xf32>
    %74 = arith.addf %70, %73 : vector<40x256xf32>
    %cst_27 = arith.constant dense<0.000000e+00> : vector<40x256xf32>
    %75 = tpu.matmul %23, %74, %cst_27 {dimension_numbers = #tpu.dot_dimension_numbers<[1], [0], [0], [1], [0, 0, 1, 1], [], []>} : vector<40x40xf32>, vector<40x256xf32>, vector<40x256xf32> -> vector<40x256xf32>
    %76 = arith.addf %75, %25 : vector<40x256xf32>
    %cst_28 = arith.constant 0.000000e+00 : f32
    %77 = arith.subf %cst_28, %22 : f32
    %78 = vector.broadcast %77 : f32 to vector<40x256xf32>
    %79 = arith.maximumf %78, %76 : vector<40x256xf32>
    %80 = vector.broadcast %22 : f32 to vector<40x256xf32>
    %81 = arith.minimumf %80, %79 : vector<40x256xf32>
    %82 = arith.subf %76, %81 : vector<40x256xf32>
    %83 = arith.subf %82, %70 : vector<40x256xf32>
    %cst_29 = arith.constant 0.598778605 : f32
    %84 = vector.broadcast %cst_29 : f32 to vector<40x256xf32>
    %85 = arith.mulf %84, %83 : vector<40x256xf32>
    %86 = arith.addf %82, %85 : vector<40x256xf32>
    %cst_30 = arith.constant dense<0.000000e+00> : vector<40x256xf32>
    %87 = tpu.matmul %23, %86, %cst_30 {dimension_numbers = #tpu.dot_dimension_numbers<[1], [0], [0], [1], [0, 0, 1, 1], [], []>} : vector<40x40xf32>, vector<40x256xf32>, vector<40x256xf32> -> vector<40x256xf32>
    %88 = arith.addf %87, %25 : vector<40x256xf32>
    %cst_31 = arith.constant 0.000000e+00 : f32
    %89 = arith.subf %cst_31, %22 : f32
    %90 = vector.broadcast %89 : f32 to vector<40x256xf32>
    %91 = arith.maximumf %90, %88 : vector<40x256xf32>
    %92 = vector.broadcast %22 : f32 to vector<40x256xf32>
    %93 = arith.minimumf %92, %91 : vector<40x256xf32>
    %94 = arith.subf %88, %93 : vector<40x256xf32>
    %95 = arith.subf %94, %82 : vector<40x256xf32>
    %cst_32 = arith.constant 0.648923337 : f32
    %96 = vector.broadcast %cst_32 : f32 to vector<40x256xf32>
    %97 = arith.mulf %96, %95 : vector<40x256xf32>
    %98 = arith.addf %94, %97 : vector<40x256xf32>
    %cst_33 = arith.constant dense<0.000000e+00> : vector<40x256xf32>
    %99 = tpu.matmul %23, %98, %cst_33 {dimension_numbers = #tpu.dot_dimension_numbers<[1], [0], [0], [1], [0, 0, 1, 1], [], []>} : vector<40x40xf32>, vector<40x256xf32>, vector<40x256xf32> -> vector<40x256xf32>
    %100 = arith.addf %99, %25 : vector<40x256xf32>
    %cst_34 = arith.constant 0.000000e+00 : f32
    %101 = arith.subf %cst_34, %22 : f32
    %102 = vector.broadcast %101 : f32 to vector<40x256xf32>
    %103 = arith.maximumf %102, %100 : vector<40x256xf32>
    %104 = vector.broadcast %22 : f32 to vector<40x256xf32>
    %105 = arith.minimumf %104, %103 : vector<40x256xf32>
    %106 = arith.subf %100, %105 : vector<40x256xf32>
    %107 = arith.subf %106, %94 : vector<40x256xf32>
    %cst_35 = arith.constant 0.687645852 : f32
    %108 = vector.broadcast %cst_35 : f32 to vector<40x256xf32>
    %109 = arith.mulf %108, %107 : vector<40x256xf32>
    %110 = arith.addf %106, %109 : vector<40x256xf32>
    %cst_36 = arith.constant dense<0.000000e+00> : vector<40x256xf32>
    %111 = tpu.matmul %23, %110, %cst_36 {dimension_numbers = #tpu.dot_dimension_numbers<[1], [0], [0], [1], [0, 0, 1, 1], [], []>} : vector<40x40xf32>, vector<40x256xf32>, vector<40x256xf32> -> vector<40x256xf32>
    %112 = arith.addf %111, %25 : vector<40x256xf32>
    %cst_37 = arith.constant 0.000000e+00 : f32
    %113 = arith.subf %cst_37, %22 : f32
    %114 = vector.broadcast %113 : f32 to vector<40x256xf32>
    %115 = arith.maximumf %114, %112 : vector<40x256xf32>
    %116 = vector.broadcast %22 : f32 to vector<40x256xf32>
    %117 = arith.minimumf %116, %115 : vector<40x256xf32>
    %118 = arith.subf %112, %117 : vector<40x256xf32>
    %119 = arith.subf %118, %106 : vector<40x256xf32>
    %cst_38 = arith.constant 0.718499839 : f32
    %120 = vector.broadcast %cst_38 : f32 to vector<40x256xf32>
    %121 = arith.mulf %120, %119 : vector<40x256xf32>
    %122 = arith.addf %118, %121 : vector<40x256xf32>
    %cst_39 = arith.constant dense<0.000000e+00> : vector<40x256xf32>
    %123 = tpu.matmul %23, %122, %cst_39 {dimension_numbers = #tpu.dot_dimension_numbers<[1], [0], [0], [1], [0, 0, 1, 1], [], []>} : vector<40x40xf32>, vector<40x256xf32>, vector<40x256xf32> -> vector<40x256xf32>
    %124 = arith.addf %123, %25 : vector<40x256xf32>
    %cst_40 = arith.constant 0.000000e+00 : f32
    %125 = arith.subf %cst_40, %22 : f32
    %126 = vector.broadcast %125 : f32 to vector<40x256xf32>
    %127 = arith.maximumf %126, %124 : vector<40x256xf32>
    %128 = vector.broadcast %22 : f32 to vector<40x256xf32>
    %129 = arith.minimumf %128, %127 : vector<40x256xf32>
    %130 = arith.subf %124, %129 : vector<40x256xf32>
    %131 = arith.subf %130, %118 : vector<40x256xf32>
    %cst_41 = arith.constant 7.436910e-01 : f32
    %132 = vector.broadcast %cst_41 : f32 to vector<40x256xf32>
    %133 = arith.mulf %132, %131 : vector<40x256xf32>
    %134 = arith.addf %130, %133 : vector<40x256xf32>
    %cst_42 = arith.constant dense<0.000000e+00> : vector<40x256xf32>
    %135 = tpu.matmul %23, %134, %cst_42 {dimension_numbers = #tpu.dot_dimension_numbers<[1], [0], [0], [1], [0, 0, 1, 1], [], []>} : vector<40x40xf32>, vector<40x256xf32>, vector<40x256xf32> -> vector<40x256xf32>
    %136 = arith.addf %135, %25 : vector<40x256xf32>
    %cst_43 = arith.constant 0.000000e+00 : f32
    %137 = arith.subf %cst_43, %22 : f32
    %138 = vector.broadcast %137 : f32 to vector<40x256xf32>
    %139 = arith.maximumf %138, %136 : vector<40x256xf32>
    %140 = vector.broadcast %22 : f32 to vector<40x256xf32>
    %141 = arith.minimumf %140, %139 : vector<40x256xf32>
    %142 = arith.subf %136, %141 : vector<40x256xf32>
    %143 = arith.subf %142, %130 : vector<40x256xf32>
    %cst_44 = arith.constant 0.764664709 : f32
    %144 = vector.broadcast %cst_44 : f32 to vector<40x256xf32>
    %145 = arith.mulf %144, %143 : vector<40x256xf32>
    %146 = arith.addf %142, %145 : vector<40x256xf32>
    %cst_45 = arith.constant dense<0.000000e+00> : vector<40x256xf32>
    %147 = tpu.matmul %23, %146, %cst_45 {dimension_numbers = #tpu.dot_dimension_numbers<[1], [0], [0], [1], [0, 0, 1, 1], [], []>} : vector<40x40xf32>, vector<40x256xf32>, vector<40x256xf32> -> vector<40x256xf32>
    %148 = arith.addf %147, %25 : vector<40x256xf32>
    %cst_46 = arith.constant 0.000000e+00 : f32
    %149 = arith.subf %cst_46, %22 : f32
    %150 = vector.broadcast %149 : f32 to vector<40x256xf32>
    %151 = arith.maximumf %150, %148 : vector<40x256xf32>
    %152 = vector.broadcast %22 : f32 to vector<40x256xf32>
    %153 = arith.minimumf %152, %151 : vector<40x256xf32>
    %154 = arith.subf %148, %153 : vector<40x256xf32>
    %155 = arith.subf %154, %142 : vector<40x256xf32>
    %cst_47 = arith.constant 0.78240925 : f32
    %156 = vector.broadcast %cst_47 : f32 to vector<40x256xf32>
    %157 = arith.mulf %156, %155 : vector<40x256xf32>
    %158 = arith.addf %154, %157 : vector<40x256xf32>
    %cst_48 = arith.constant dense<0.000000e+00> : vector<40x256xf32>
    %159 = tpu.matmul %23, %158, %cst_48 {dimension_numbers = #tpu.dot_dimension_numbers<[1], [0], [0], [1], [0, 0, 1, 1], [], []>} : vector<40x40xf32>, vector<40x256xf32>, vector<40x256xf32> -> vector<40x256xf32>
    %160 = arith.addf %159, %25 : vector<40x256xf32>
    %cst_49 = arith.constant 0.000000e+00 : f32
    %161 = arith.subf %cst_49, %22 : f32
    %162 = vector.broadcast %161 : f32 to vector<40x256xf32>
    %163 = arith.maximumf %162, %160 : vector<40x256xf32>
    %164 = vector.broadcast %22 : f32 to vector<40x256xf32>
    %165 = arith.minimumf %164, %163 : vector<40x256xf32>
    %166 = arith.subf %160, %165 : vector<40x256xf32>
    %167 = arith.subf %166, %154 : vector<40x256xf32>
    %cst_50 = arith.constant 0.797624409 : f32
    %168 = vector.broadcast %cst_50 : f32 to vector<40x256xf32>
    %169 = arith.mulf %168, %167 : vector<40x256xf32>
    %170 = arith.addf %166, %169 : vector<40x256xf32>
    %cst_51 = arith.constant dense<0.000000e+00> : vector<40x256xf32>
    %171 = tpu.matmul %23, %170, %cst_51 {dimension_numbers = #tpu.dot_dimension_numbers<[1], [0], [0], [1], [0, 0, 1, 1], [], []>} : vector<40x40xf32>, vector<40x256xf32>, vector<40x256xf32> -> vector<40x256xf32>
    %172 = arith.addf %171, %25 : vector<40x256xf32>
    %cst_52 = arith.constant 0.000000e+00 : f32
    %173 = arith.subf %cst_52, %22 : f32
    %174 = vector.broadcast %173 : f32 to vector<40x256xf32>
    %175 = arith.maximumf %174, %172 : vector<40x256xf32>
    %176 = vector.broadcast %22 : f32 to vector<40x256xf32>
    %177 = arith.minimumf %176, %175 : vector<40x256xf32>
    %178 = arith.subf %172, %177 : vector<40x256xf32>
    %179 = arith.subf %178, %166 : vector<40x256xf32>
    %cst_53 = arith.constant 0.810819983 : f32
    %180 = vector.broadcast %cst_53 : f32 to vector<40x256xf32>
    %181 = arith.mulf %180, %179 : vector<40x256xf32>
    %182 = arith.addf %178, %181 : vector<40x256xf32>
    %cst_54 = arith.constant dense<0.000000e+00> : vector<40x256xf32>
    %183 = tpu.matmul %23, %182, %cst_54 {dimension_numbers = #tpu.dot_dimension_numbers<[1], [0], [0], [1], [0, 0, 1, 1], [], []>} : vector<40x40xf32>, vector<40x256xf32>, vector<40x256xf32> -> vector<40x256xf32>
    %184 = arith.addf %183, %25 : vector<40x256xf32>
    %cst_55 = arith.constant 0.000000e+00 : f32
    %185 = arith.subf %cst_55, %22 : f32
    %186 = vector.broadcast %185 : f32 to vector<40x256xf32>
    %187 = arith.maximumf %186, %184 : vector<40x256xf32>
    %188 = vector.broadcast %22 : f32 to vector<40x256xf32>
    %189 = arith.minimumf %188, %187 : vector<40x256xf32>
    %190 = arith.subf %184, %189 : vector<40x256xf32>
    %191 = arith.subf %190, %178 : vector<40x256xf32>
    %cst_56 = arith.constant 0.822376668 : f32
    %192 = vector.broadcast %cst_56 : f32 to vector<40x256xf32>
    %193 = arith.mulf %192, %191 : vector<40x256xf32>
    %194 = arith.addf %190, %193 : vector<40x256xf32>
    %cst_57 = arith.constant dense<0.000000e+00> : vector<40x256xf32>
    %195 = tpu.matmul %23, %194, %cst_57 {dimension_numbers = #tpu.dot_dimension_numbers<[1], [0], [0], [1], [0, 0, 1, 1], [], []>} : vector<40x40xf32>, vector<40x256xf32>, vector<40x256xf32> -> vector<40x256xf32>
    %196 = arith.addf %195, %25 : vector<40x256xf32>
    %cst_58 = arith.constant 0.000000e+00 : f32
    %197 = arith.subf %cst_58, %22 : f32
    %198 = vector.broadcast %197 : f32 to vector<40x256xf32>
    %199 = arith.maximumf %198, %196 : vector<40x256xf32>
    %200 = vector.broadcast %22 : f32 to vector<40x256xf32>
    %201 = arith.minimumf %200, %199 : vector<40x256xf32>
    %202 = arith.subf %196, %201 : vector<40x256xf32>
    %203 = arith.subf %202, %190 : vector<40x256xf32>
    %cst_59 = arith.constant 0.832584381 : f32
    %204 = vector.broadcast %cst_59 : f32 to vector<40x256xf32>
    %205 = arith.mulf %204, %203 : vector<40x256xf32>
    %206 = arith.addf %202, %205 : vector<40x256xf32>
    %cst_60 = arith.constant dense<0.000000e+00> : vector<40x256xf32>
    %207 = tpu.matmul %23, %206, %cst_60 {dimension_numbers = #tpu.dot_dimension_numbers<[1], [0], [0], [1], [0, 0, 1, 1], [], []>} : vector<40x40xf32>, vector<40x256xf32>, vector<40x256xf32> -> vector<40x256xf32>
    %208 = arith.addf %207, %25 : vector<40x256xf32>
    %cst_61 = arith.constant 0.000000e+00 : f32
    %209 = arith.subf %cst_61, %22 : f32
    %210 = vector.broadcast %209 : f32 to vector<40x256xf32>
    %211 = arith.maximumf %210, %208 : vector<40x256xf32>
    %212 = vector.broadcast %22 : f32 to vector<40x256xf32>
    %213 = arith.minimumf %212, %211 : vector<40x256xf32>
    %214 = arith.subf %208, %213 : vector<40x256xf32>
    %215 = arith.subf %214, %202 : vector<40x256xf32>
    %cst_62 = arith.constant 0.841668248 : f32
    %216 = vector.broadcast %cst_62 : f32 to vector<40x256xf32>
    %217 = arith.mulf %216, %215 : vector<40x256xf32>
    %218 = arith.addf %214, %217 : vector<40x256xf32>
    %cst_63 = arith.constant dense<0.000000e+00> : vector<40x256xf32>
    %219 = tpu.matmul %23, %218, %cst_63 {dimension_numbers = #tpu.dot_dimension_numbers<[1], [0], [0], [1], [0, 0, 1, 1], [], []>} : vector<40x40xf32>, vector<40x256xf32>, vector<40x256xf32> -> vector<40x256xf32>
    %220 = arith.addf %219, %25 : vector<40x256xf32>
    %cst_64 = arith.constant 0.000000e+00 : f32
    %221 = arith.subf %cst_64, %22 : f32
    %222 = vector.broadcast %221 : f32 to vector<40x256xf32>
    %223 = arith.maximumf %222, %220 : vector<40x256xf32>
    %224 = vector.broadcast %22 : f32 to vector<40x256xf32>
    %225 = arith.minimumf %224, %223 : vector<40x256xf32>
    %226 = arith.subf %220, %225 : vector<40x256xf32>
    %227 = arith.subf %226, %214 : vector<40x256xf32>
    %cst_65 = arith.constant 0.849805533 : f32
    %228 = vector.broadcast %cst_65 : f32 to vector<40x256xf32>
    %229 = arith.mulf %228, %227 : vector<40x256xf32>
    %230 = arith.addf %226, %229 : vector<40x256xf32>
    %cst_66 = arith.constant dense<0.000000e+00> : vector<40x256xf32>
    %231 = tpu.matmul %23, %230, %cst_66 {dimension_numbers = #tpu.dot_dimension_numbers<[1], [0], [0], [1], [0, 0, 1, 1], [], []>} : vector<40x40xf32>, vector<40x256xf32>, vector<40x256xf32> -> vector<40x256xf32>
    %232 = arith.addf %231, %25 : vector<40x256xf32>
    %cst_67 = arith.constant 0.000000e+00 : f32
    %233 = arith.subf %cst_67, %22 : f32
    %234 = vector.broadcast %233 : f32 to vector<40x256xf32>
    %235 = arith.maximumf %234, %232 : vector<40x256xf32>
    %236 = vector.broadcast %22 : f32 to vector<40x256xf32>
    %237 = arith.minimumf %236, %235 : vector<40x256xf32>
    %238 = arith.subf %232, %237 : vector<40x256xf32>
    %239 = arith.subf %238, %226 : vector<40x256xf32>
    %cst_68 = arith.constant 0.857137918 : f32
    %240 = vector.broadcast %cst_68 : f32 to vector<40x256xf32>
    %241 = arith.mulf %240, %239 : vector<40x256xf32>
    %242 = arith.addf %238, %241 : vector<40x256xf32>
    %cst_69 = arith.constant dense<0.000000e+00> : vector<40x256xf32>
    %243 = tpu.matmul %23, %242, %cst_69 {dimension_numbers = #tpu.dot_dimension_numbers<[1], [0], [0], [1], [0, 0, 1, 1], [], []>} : vector<40x40xf32>, vector<40x256xf32>, vector<40x256xf32> -> vector<40x256xf32>
    %244 = arith.addf %243, %25 : vector<40x256xf32>
    %cst_70 = arith.constant 0.000000e+00 : f32
    %245 = arith.subf %cst_70, %22 : f32
    %246 = vector.broadcast %245 : f32 to vector<40x256xf32>
    %247 = arith.maximumf %246, %244 : vector<40x256xf32>
    %248 = vector.broadcast %22 : f32 to vector<40x256xf32>
    %249 = arith.minimumf %248, %247 : vector<40x256xf32>
    %250 = arith.subf %244, %249 : vector<40x256xf32>
    %251 = arith.subf %250, %238 : vector<40x256xf32>
    %cst_71 = arith.constant 0.86378014 : f32
    %252 = vector.broadcast %cst_71 : f32 to vector<40x256xf32>
    %253 = arith.mulf %252, %251 : vector<40x256xf32>
    %254 = arith.addf %250, %253 : vector<40x256xf32>
    %cst_72 = arith.constant dense<0.000000e+00> : vector<40x256xf32>
    %255 = tpu.matmul %23, %254, %cst_72 {dimension_numbers = #tpu.dot_dimension_numbers<[1], [0], [0], [1], [0, 0, 1, 1], [], []>} : vector<40x40xf32>, vector<40x256xf32>, vector<40x256xf32> -> vector<40x256xf32>
    %256 = arith.addf %255, %25 : vector<40x256xf32>
    %cst_73 = arith.constant 0.000000e+00 : f32
    %257 = arith.subf %cst_73, %22 : f32
    %258 = vector.broadcast %257 : f32 to vector<40x256xf32>
    %259 = arith.maximumf %258, %256 : vector<40x256xf32>
    %260 = vector.broadcast %22 : f32 to vector<40x256xf32>
    %261 = arith.minimumf %260, %259 : vector<40x256xf32>
    %262 = arith.subf %256, %261 : vector<40x256xf32>
    %263 = arith.subf %262, %250 : vector<40x256xf32>
    %cst_74 = arith.constant 0.86982578 : f32
    %264 = vector.broadcast %cst_74 : f32 to vector<40x256xf32>
    %265 = arith.mulf %264, %263 : vector<40x256xf32>
    %266 = arith.addf %262, %265 : vector<40x256xf32>
    %cst_75 = arith.constant dense<0.000000e+00> : vector<40x256xf32>
    %267 = tpu.matmul %23, %266, %cst_75 {dimension_numbers = #tpu.dot_dimension_numbers<[1], [0], [0], [1], [0, 0, 1, 1], [], []>} : vector<40x40xf32>, vector<40x256xf32>, vector<40x256xf32> -> vector<40x256xf32>
    %268 = arith.addf %267, %25 : vector<40x256xf32>
    %cst_76 = arith.constant 0.000000e+00 : f32
    %269 = arith.subf %cst_76, %22 : f32
    %270 = vector.broadcast %269 : f32 to vector<40x256xf32>
    %271 = arith.maximumf %270, %268 : vector<40x256xf32>
    %272 = vector.broadcast %22 : f32 to vector<40x256xf32>
    %273 = arith.minimumf %272, %271 : vector<40x256xf32>
    %274 = arith.subf %268, %273 : vector<40x256xf32>
    %275 = arith.subf %274, %262 : vector<40x256xf32>
    %cst_77 = arith.constant 0.875352323 : f32
    %276 = vector.broadcast %cst_77 : f32 to vector<40x256xf32>
    %277 = arith.mulf %276, %275 : vector<40x256xf32>
    %278 = arith.addf %274, %277 : vector<40x256xf32>
    %cst_78 = arith.constant dense<0.000000e+00> : vector<40x256xf32>
    %279 = tpu.matmul %23, %278, %cst_78 {dimension_numbers = #tpu.dot_dimension_numbers<[1], [0], [0], [1], [0, 0, 1, 1], [], []>} : vector<40x40xf32>, vector<40x256xf32>, vector<40x256xf32> -> vector<40x256xf32>
    %280 = arith.addf %279, %25 : vector<40x256xf32>
    %cst_79 = arith.constant 0.000000e+00 : f32
    %281 = arith.subf %cst_79, %22 : f32
    %282 = vector.broadcast %281 : f32 to vector<40x256xf32>
    %283 = arith.maximumf %282, %280 : vector<40x256xf32>
    %284 = vector.broadcast %22 : f32 to vector<40x256xf32>
    %285 = arith.minimumf %284, %283 : vector<40x256xf32>
    %286 = arith.subf %280, %285 : vector<40x256xf32>
    %287 = arith.subf %286, %274 : vector<40x256xf32>
    %cst_80 = arith.constant 0.88042432 : f32
    %288 = vector.broadcast %cst_80 : f32 to vector<40x256xf32>
    %289 = arith.mulf %288, %287 : vector<40x256xf32>
    %290 = arith.addf %286, %289 : vector<40x256xf32>
    %cst_81 = arith.constant dense<0.000000e+00> : vector<40x256xf32>
    %291 = tpu.matmul %23, %290, %cst_81 {dimension_numbers = #tpu.dot_dimension_numbers<[1], [0], [0], [1], [0, 0, 1, 1], [], []>} : vector<40x40xf32>, vector<40x256xf32>, vector<40x256xf32> -> vector<40x256xf32>
    %292 = arith.addf %291, %25 : vector<40x256xf32>
    %cst_82 = arith.constant 0.000000e+00 : f32
    %293 = arith.subf %cst_82, %22 : f32
    %294 = vector.broadcast %293 : f32 to vector<40x256xf32>
    %295 = arith.maximumf %294, %292 : vector<40x256xf32>
    %296 = vector.broadcast %22 : f32 to vector<40x256xf32>
    %297 = arith.minimumf %296, %295 : vector<40x256xf32>
    %298 = arith.subf %292, %297 : vector<40x256xf32>
    %299 = arith.subf %298, %286 : vector<40x256xf32>
    %cst_83 = arith.constant 0.885095894 : f32
    %300 = vector.broadcast %cst_83 : f32 to vector<40x256xf32>
    %301 = arith.mulf %300, %299 : vector<40x256xf32>
    %302 = arith.addf %298, %301 : vector<40x256xf32>
    %cst_84 = arith.constant dense<0.000000e+00> : vector<40x256xf32>
    %303 = tpu.matmul %23, %302, %cst_84 {dimension_numbers = #tpu.dot_dimension_numbers<[1], [0], [0], [1], [0, 0, 1, 1], [], []>} : vector<40x40xf32>, vector<40x256xf32>, vector<40x256xf32> -> vector<40x256xf32>
    %304 = arith.addf %303, %25 : vector<40x256xf32>
    %cst_85 = arith.constant 0.000000e+00 : f32
    %305 = arith.subf %cst_85, %22 : f32
    %306 = vector.broadcast %305 : f32 to vector<40x256xf32>
    %307 = arith.maximumf %306, %304 : vector<40x256xf32>
    %308 = vector.broadcast %22 : f32 to vector<40x256xf32>
    %309 = arith.minimumf %308, %307 : vector<40x256xf32>
    %310 = arith.subf %304, %309 : vector<40x256xf32>
    %311 = arith.subf %310, %298 : vector<40x256xf32>
    %cst_86 = arith.constant 0.889412999 : f32
    %312 = vector.broadcast %cst_86 : f32 to vector<40x256xf32>
    %313 = arith.mulf %312, %311 : vector<40x256xf32>
    %314 = arith.addf %310, %313 : vector<40x256xf32>
    %cst_87 = arith.constant dense<0.000000e+00> : vector<40x256xf32>
    %315 = tpu.matmul %23, %314, %cst_87 {dimension_numbers = #tpu.dot_dimension_numbers<[1], [0], [0], [1], [0, 0, 1, 1], [], []>} : vector<40x40xf32>, vector<40x256xf32>, vector<40x256xf32> -> vector<40x256xf32>
    %316 = arith.addf %315, %25 : vector<40x256xf32>
    %cst_88 = arith.constant 0.000000e+00 : f32
    %317 = arith.subf %cst_88, %22 : f32
    %318 = vector.broadcast %317 : f32 to vector<40x256xf32>
    %319 = arith.maximumf %318, %316 : vector<40x256xf32>
    %320 = vector.broadcast %22 : f32 to vector<40x256xf32>
    %321 = arith.minimumf %320, %319 : vector<40x256xf32>
    %322 = arith.subf %316, %321 : vector<40x256xf32>
    %323 = arith.subf %322, %310 : vector<40x256xf32>
    %cst_89 = arith.constant 0.893414736 : f32
    %324 = vector.broadcast %cst_89 : f32 to vector<40x256xf32>
    %325 = arith.mulf %324, %323 : vector<40x256xf32>
    %326 = arith.addf %322, %325 : vector<40x256xf32>
    %cst_90 = arith.constant dense<0.000000e+00> : vector<40x256xf32>
    %327 = tpu.matmul %23, %326, %cst_90 {dimension_numbers = #tpu.dot_dimension_numbers<[1], [0], [0], [1], [0, 0, 1, 1], [], []>} : vector<40x40xf32>, vector<40x256xf32>, vector<40x256xf32> -> vector<40x256xf32>
    %328 = arith.addf %327, %25 : vector<40x256xf32>
    %cst_91 = arith.constant 0.000000e+00 : f32
    %329 = arith.subf %cst_91, %22 : f32
    %330 = vector.broadcast %329 : f32 to vector<40x256xf32>
    %331 = arith.maximumf %330, %328 : vector<40x256xf32>
    %332 = vector.broadcast %22 : f32 to vector<40x256xf32>
    %333 = arith.minimumf %332, %331 : vector<40x256xf32>
    %334 = arith.subf %328, %333 : vector<40x256xf32>
    %335 = arith.subf %334, %322 : vector<40x256xf32>
    %cst_92 = arith.constant 0.897134542 : f32
    %336 = vector.broadcast %cst_92 : f32 to vector<40x256xf32>
    %337 = arith.mulf %336, %335 : vector<40x256xf32>
    %338 = arith.addf %334, %337 : vector<40x256xf32>
    %cst_93 = arith.constant dense<0.000000e+00> : vector<40x256xf32>
    %339 = tpu.matmul %23, %338, %cst_93 {dimension_numbers = #tpu.dot_dimension_numbers<[1], [0], [0], [1], [0, 0, 1, 1], [], []>} : vector<40x40xf32>, vector<40x256xf32>, vector<40x256xf32> -> vector<40x256xf32>
    %340 = arith.addf %339, %25 : vector<40x256xf32>
    %cst_94 = arith.constant 0.000000e+00 : f32
    %341 = arith.subf %cst_94, %22 : f32
    %342 = vector.broadcast %341 : f32 to vector<40x256xf32>
    %343 = arith.maximumf %342, %340 : vector<40x256xf32>
    %344 = vector.broadcast %22 : f32 to vector<40x256xf32>
    %345 = arith.minimumf %344, %343 : vector<40x256xf32>
    %346 = arith.subf %340, %345 : vector<40x256xf32>
    %347 = arith.subf %346, %334 : vector<40x256xf32>
    %cst_95 = arith.constant 0.900601446 : f32
    %348 = vector.broadcast %cst_95 : f32 to vector<40x256xf32>
    %349 = arith.mulf %348, %347 : vector<40x256xf32>
    %350 = arith.addf %346, %349 : vector<40x256xf32>
    %cst_96 = arith.constant dense<0.000000e+00> : vector<40x256xf32>
    %351 = tpu.matmul %23, %350, %cst_96 {dimension_numbers = #tpu.dot_dimension_numbers<[1], [0], [0], [1], [0, 0, 1, 1], [], []>} : vector<40x40xf32>, vector<40x256xf32>, vector<40x256xf32> -> vector<40x256xf32>
    %352 = arith.addf %351, %25 : vector<40x256xf32>
    %cst_97 = arith.constant 0.000000e+00 : f32
    %353 = arith.subf %cst_97, %22 : f32
    %354 = vector.broadcast %353 : f32 to vector<40x256xf32>
    %355 = arith.maximumf %354, %352 : vector<40x256xf32>
    %356 = vector.broadcast %22 : f32 to vector<40x256xf32>
    %357 = arith.minimumf %356, %355 : vector<40x256xf32>
    %358 = arith.subf %352, %357 : vector<40x256xf32>
    %359 = arith.subf %358, %346 : vector<40x256xf32>
    %cst_98 = arith.constant 0.903840422 : f32
    %360 = vector.broadcast %cst_98 : f32 to vector<40x256xf32>
    %361 = arith.mulf %360, %359 : vector<40x256xf32>
    %362 = arith.addf %358, %361 : vector<40x256xf32>
    %cst_99 = arith.constant dense<0.000000e+00> : vector<40x256xf32>
    %363 = tpu.matmul %23, %362, %cst_99 {dimension_numbers = #tpu.dot_dimension_numbers<[1], [0], [0], [1], [0, 0, 1, 1], [], []>} : vector<40x40xf32>, vector<40x256xf32>, vector<40x256xf32> -> vector<40x256xf32>
    %364 = arith.addf %363, %25 : vector<40x256xf32>
    %cst_100 = arith.constant 0.000000e+00 : f32
    %365 = arith.subf %cst_100, %22 : f32
    %366 = vector.broadcast %365 : f32 to vector<40x256xf32>
    %367 = arith.maximumf %366, %364 : vector<40x256xf32>
    %368 = vector.broadcast %22 : f32 to vector<40x256xf32>
    %369 = arith.minimumf %368, %367 : vector<40x256xf32>
    %370 = arith.subf %364, %369 : vector<40x256xf32>
    %371 = arith.subf %370, %358 : vector<40x256xf32>
    %cst_101 = arith.constant 0.906873465 : f32
    %372 = vector.broadcast %cst_101 : f32 to vector<40x256xf32>
    %373 = arith.mulf %372, %371 : vector<40x256xf32>
    %374 = arith.addf %370, %373 : vector<40x256xf32>
    %cst_102 = arith.constant dense<0.000000e+00> : vector<40x256xf32>
    %375 = tpu.matmul %23, %374, %cst_102 {dimension_numbers = #tpu.dot_dimension_numbers<[1], [0], [0], [1], [0, 0, 1, 1], [], []>} : vector<40x40xf32>, vector<40x256xf32>, vector<40x256xf32> -> vector<40x256xf32>
    %376 = arith.addf %375, %25 : vector<40x256xf32>
    %cst_103 = arith.constant 0.000000e+00 : f32
    %377 = arith.subf %cst_103, %22 : f32
    %378 = vector.broadcast %377 : f32 to vector<40x256xf32>
    %379 = arith.maximumf %378, %376 : vector<40x256xf32>
    %380 = vector.broadcast %22 : f32 to vector<40x256xf32>
    %381 = arith.minimumf %380, %379 : vector<40x256xf32>
    %382 = arith.subf %376, %381 : vector<40x256xf32>
    %383 = arith.subf %382, %370 : vector<40x256xf32>
    %cst_104 = arith.constant 0.909719586 : f32
    %384 = vector.broadcast %cst_104 : f32 to vector<40x256xf32>
    %385 = arith.mulf %384, %383 : vector<40x256xf32>
    %386 = arith.addf %382, %385 : vector<40x256xf32>
    %cst_105 = arith.constant dense<0.000000e+00> : vector<40x256xf32>
    %387 = tpu.matmul %23, %386, %cst_105 {dimension_numbers = #tpu.dot_dimension_numbers<[1], [0], [0], [1], [0, 0, 1, 1], [], []>} : vector<40x40xf32>, vector<40x256xf32>, vector<40x256xf32> -> vector<40x256xf32>
    %388 = arith.addf %387, %25 : vector<40x256xf32>
    %cst_106 = arith.constant 0.000000e+00 : f32
    %389 = arith.subf %cst_106, %22 : f32
    %390 = vector.broadcast %389 : f32 to vector<40x256xf32>
    %391 = arith.maximumf %390, %388 : vector<40x256xf32>
    %392 = vector.broadcast %22 : f32 to vector<40x256xf32>
    %393 = arith.minimumf %392, %391 : vector<40x256xf32>
    %394 = arith.subf %388, %393 : vector<40x256xf32>
    %395 = arith.subf %394, %382 : vector<40x256xf32>
    %cst_107 = arith.constant 0.912395716 : f32
    %396 = vector.broadcast %cst_107 : f32 to vector<40x256xf32>
    %397 = arith.mulf %396, %395 : vector<40x256xf32>
    %398 = arith.addf %394, %397 : vector<40x256xf32>
    %cst_108 = arith.constant dense<0.000000e+00> : vector<40x256xf32>
    %399 = tpu.matmul %23, %398, %cst_108 {dimension_numbers = #tpu.dot_dimension_numbers<[1], [0], [0], [1], [0, 0, 1, 1], [], []>} : vector<40x40xf32>, vector<40x256xf32>, vector<40x256xf32> -> vector<40x256xf32>
    %400 = arith.addf %399, %25 : vector<40x256xf32>
    %cst_109 = arith.constant 0.000000e+00 : f32
    %401 = arith.subf %cst_109, %22 : f32
    %402 = vector.broadcast %401 : f32 to vector<40x256xf32>
    %403 = arith.maximumf %402, %400 : vector<40x256xf32>
    %404 = vector.broadcast %22 : f32 to vector<40x256xf32>
    %405 = arith.minimumf %404, %403 : vector<40x256xf32>
    %406 = arith.subf %400, %405 : vector<40x256xf32>
    %407 = arith.subf %406, %394 : vector<40x256xf32>
    %cst_110 = arith.constant 0.914916694 : f32
    %408 = vector.broadcast %cst_110 : f32 to vector<40x256xf32>
    %409 = arith.mulf %408, %407 : vector<40x256xf32>
    %410 = arith.addf %406, %409 : vector<40x256xf32>
    %cst_111 = arith.constant dense<0.000000e+00> : vector<40x256xf32>
    %411 = tpu.matmul %23, %410, %cst_111 {dimension_numbers = #tpu.dot_dimension_numbers<[1], [0], [0], [1], [0, 0, 1, 1], [], []>} : vector<40x40xf32>, vector<40x256xf32>, vector<40x256xf32> -> vector<40x256xf32>
    %412 = arith.addf %411, %25 : vector<40x256xf32>
    %cst_112 = arith.constant 0.000000e+00 : f32
    %413 = arith.subf %cst_112, %22 : f32
    %414 = vector.broadcast %413 : f32 to vector<40x256xf32>
    %415 = arith.maximumf %414, %412 : vector<40x256xf32>
    %416 = vector.broadcast %22 : f32 to vector<40x256xf32>
    %417 = arith.minimumf %416, %415 : vector<40x256xf32>
    %418 = arith.subf %412, %417 : vector<40x256xf32>
    %419 = arith.subf %418, %406 : vector<40x256xf32>
    %cst_113 = arith.constant 0.917295634 : f32
    %420 = vector.broadcast %cst_113 : f32 to vector<40x256xf32>
    %421 = arith.mulf %420, %419 : vector<40x256xf32>
    %422 = arith.addf %418, %421 : vector<40x256xf32>
    %cst_114 = arith.constant dense<0.000000e+00> : vector<40x256xf32>
    %423 = tpu.matmul %23, %422, %cst_114 {dimension_numbers = #tpu.dot_dimension_numbers<[1], [0], [0], [1], [0, 0, 1, 1], [], []>} : vector<40x40xf32>, vector<40x256xf32>, vector<40x256xf32> -> vector<40x256xf32>
    %424 = arith.addf %423, %25 : vector<40x256xf32>
    %cst_115 = arith.constant 0.000000e+00 : f32
    %425 = arith.subf %cst_115, %22 : f32
    %426 = vector.broadcast %425 : f32 to vector<40x256xf32>
    %427 = arith.maximumf %426, %424 : vector<40x256xf32>
    %428 = vector.broadcast %22 : f32 to vector<40x256xf32>
    %429 = arith.minimumf %428, %427 : vector<40x256xf32>
    %430 = arith.subf %424, %429 : vector<40x256xf32>
    %431 = arith.subf %430, %418 : vector<40x256xf32>
    %cst_116 = arith.constant 0.919544339 : f32
    %432 = vector.broadcast %cst_116 : f32 to vector<40x256xf32>
    %433 = arith.mulf %432, %431 : vector<40x256xf32>
    %434 = arith.addf %430, %433 : vector<40x256xf32>
    %cst_117 = arith.constant dense<0.000000e+00> : vector<40x256xf32>
    %435 = tpu.matmul %23, %434, %cst_117 {dimension_numbers = #tpu.dot_dimension_numbers<[1], [0], [0], [1], [0, 0, 1, 1], [], []>} : vector<40x40xf32>, vector<40x256xf32>, vector<40x256xf32> -> vector<40x256xf32>
    %436 = arith.addf %435, %25 : vector<40x256xf32>
    %cst_118 = arith.constant 0.000000e+00 : f32
    %437 = arith.subf %cst_118, %22 : f32
    %438 = vector.broadcast %437 : f32 to vector<40x256xf32>
    %439 = arith.maximumf %438, %436 : vector<40x256xf32>
    %440 = vector.broadcast %22 : f32 to vector<40x256xf32>
    %441 = arith.minimumf %440, %439 : vector<40x256xf32>
    %442 = arith.subf %436, %441 : vector<40x256xf32>
    %443 = arith.subf %442, %430 : vector<40x256xf32>
    %cst_119 = arith.constant 0.921673178 : f32
    %444 = vector.broadcast %cst_119 : f32 to vector<40x256xf32>
    %445 = arith.mulf %444, %443 : vector<40x256xf32>
    %446 = arith.addf %442, %445 : vector<40x256xf32>
    %cst_120 = arith.constant dense<0.000000e+00> : vector<40x256xf32>
    %447 = tpu.matmul %23, %446, %cst_120 {dimension_numbers = #tpu.dot_dimension_numbers<[1], [0], [0], [1], [0, 0, 1, 1], [], []>} : vector<40x40xf32>, vector<40x256xf32>, vector<40x256xf32> -> vector<40x256xf32>
    %448 = arith.addf %447, %25 : vector<40x256xf32>
    %cst_121 = arith.constant 0.000000e+00 : f32
    %449 = arith.subf %cst_121, %22 : f32
    %450 = vector.broadcast %449 : f32 to vector<40x256xf32>
    %451 = arith.maximumf %450, %448 : vector<40x256xf32>
    %452 = vector.broadcast %22 : f32 to vector<40x256xf32>
    %453 = arith.minimumf %452, %451 : vector<40x256xf32>
    %454 = arith.subf %448, %453 : vector<40x256xf32>
    %455 = arith.subf %454, %442 : vector<40x256xf32>
    %cst_122 = arith.constant 0.92369157 : f32
    %456 = vector.broadcast %cst_122 : f32 to vector<40x256xf32>
    %457 = arith.mulf %456, %455 : vector<40x256xf32>
    %458 = arith.addf %454, %457 : vector<40x256xf32>
    %cst_123 = arith.constant dense<0.000000e+00> : vector<40x256xf32>
    %459 = tpu.matmul %23, %458, %cst_123 {dimension_numbers = #tpu.dot_dimension_numbers<[1], [0], [0], [1], [0, 0, 1, 1], [], []>} : vector<40x40xf32>, vector<40x256xf32>, vector<40x256xf32> -> vector<40x256xf32>
    %460 = arith.addf %459, %25 : vector<40x256xf32>
    %cst_124 = arith.constant 0.000000e+00 : f32
    %461 = arith.subf %cst_124, %22 : f32
    %462 = vector.broadcast %461 : f32 to vector<40x256xf32>
    %463 = arith.maximumf %462, %460 : vector<40x256xf32>
    %464 = vector.broadcast %22 : f32 to vector<40x256xf32>
    %465 = arith.minimumf %464, %463 : vector<40x256xf32>
    %466 = arith.subf %460, %465 : vector<40x256xf32>
    %467 = arith.subf %466, %454 : vector<40x256xf32>
    %cst_125 = arith.constant 0.925607979 : f32
    %468 = vector.broadcast %cst_125 : f32 to vector<40x256xf32>
    %469 = arith.mulf %468, %467 : vector<40x256xf32>
    %470 = arith.addf %466, %469 : vector<40x256xf32>
    %cst_126 = arith.constant dense<0.000000e+00> : vector<40x256xf32>
    %471 = tpu.matmul %23, %470, %cst_126 {dimension_numbers = #tpu.dot_dimension_numbers<[1], [0], [0], [1], [0, 0, 1, 1], [], []>} : vector<40x40xf32>, vector<40x256xf32>, vector<40x256xf32> -> vector<40x256xf32>
    %472 = arith.addf %471, %25 : vector<40x256xf32>
    %cst_127 = arith.constant 0.000000e+00 : f32
    %473 = arith.subf %cst_127, %22 : f32
    %474 = vector.broadcast %473 : f32 to vector<40x256xf32>
    %475 = arith.maximumf %474, %472 : vector<40x256xf32>
    %476 = vector.broadcast %22 : f32 to vector<40x256xf32>
    %477 = arith.minimumf %476, %475 : vector<40x256xf32>
    %478 = arith.subf %472, %477 : vector<40x256xf32>
    %479 = arith.subf %478, %466 : vector<40x256xf32>
    %cst_128 = arith.constant 0.927429914 : f32
    %480 = vector.broadcast %cst_128 : f32 to vector<40x256xf32>
    %481 = arith.mulf %480, %479 : vector<40x256xf32>
    %482 = arith.addf %478, %481 : vector<40x256xf32>
    %cst_129 = arith.constant dense<0.000000e+00> : vector<40x256xf32>
    %483 = tpu.matmul %23, %482, %cst_129 {dimension_numbers = #tpu.dot_dimension_numbers<[1], [0], [0], [1], [0, 0, 1, 1], [], []>} : vector<40x40xf32>, vector<40x256xf32>, vector<40x256xf32> -> vector<40x256xf32>
    %484 = arith.addf %483, %25 : vector<40x256xf32>
    %cst_130 = arith.constant 0.000000e+00 : f32
    %485 = arith.subf %cst_130, %22 : f32
    %486 = vector.broadcast %485 : f32 to vector<40x256xf32>
    %487 = arith.maximumf %486, %484 : vector<40x256xf32>
    %488 = vector.broadcast %22 : f32 to vector<40x256xf32>
    %489 = arith.minimumf %488, %487 : vector<40x256xf32>
    %490 = arith.subf %484, %489 : vector<40x256xf32>
    %491 = arith.subf %490, %478 : vector<40x256xf32>
    %cst_131 = arith.constant 0.929164171 : f32
    %492 = vector.broadcast %cst_131 : f32 to vector<40x256xf32>
    %493 = arith.mulf %492, %491 : vector<40x256xf32>
    %494 = arith.addf %490, %493 : vector<40x256xf32>
    %cst_132 = arith.constant dense<0.000000e+00> : vector<40x256xf32>
    %495 = tpu.matmul %23, %494, %cst_132 {dimension_numbers = #tpu.dot_dimension_numbers<[1], [0], [0], [1], [0, 0, 1, 1], [], []>} : vector<40x40xf32>, vector<40x256xf32>, vector<40x256xf32> -> vector<40x256xf32>
    %496 = arith.addf %495, %25 : vector<40x256xf32>
    %cst_133 = arith.constant 0.000000e+00 : f32
    %497 = arith.subf %cst_133, %22 : f32
    %498 = vector.broadcast %497 : f32 to vector<40x256xf32>
    %499 = arith.maximumf %498, %496 : vector<40x256xf32>
    %500 = vector.broadcast %22 : f32 to vector<40x256xf32>
    %501 = arith.minimumf %500, %499 : vector<40x256xf32>
    %502 = arith.subf %496, %501 : vector<40x256xf32>
    %c0_134 = arith.constant 0 : index
    %c0_135 = arith.constant 0 : index
    %503 = vector.load %arg5[%c0_134, %c0_135] : memref<10x40xf32, #tpu.memory_space<vmem>>, vector<10x40xf32>
    %cst_136 = arith.constant dense<0.000000e+00> : vector<10x256xf32>
    %504 = tpu.matmul %503, %502, %cst_136 {dimension_numbers = #tpu.dot_dimension_numbers<[1], [0], [0], [1], [0, 0, 1, 1], [], []>} : vector<10x40xf32>, vector<40x256xf32>, vector<10x256xf32> -> vector<10x256xf32>
    %505 = vector.broadcast %17 : vector<1x256xf32> to vector<10x256xf32>
    %506 = arith.mulf %504, %505 : vector<10x256xf32>
    %507 = vector.broadcast %5 : vector<1x256xf32> to vector<10x256xf32>
    %508 = arith.addf %506, %507 : vector<10x256xf32>
    %c0_137 = arith.constant 0 : index
    %c0_138 = arith.constant 0 : index
    %c0_139 = arith.constant 0 : index
    %509 = vector.load %arg7[%c0_137, %c0_138, %c0_139] : memref<1x10x256xf32, #tpu.memory_space<vmem>>, vector<1x10x256xf32>
    %510 = vector.shape_cast %509 : vector<1x10x256xf32> to vector<10x256xf32>
    %511 = vector.shape_cast %508 : vector<10x256xf32> to vector<1x10x256xf32>
    tpu.vector_store %arg7[%c0_137, %c0_138, %c0_139], %511 {strides = array<i32>} : memref<1x10x256xf32, #tpu.memory_space<vmem>>, vector<1x10x256xf32>,
    return
  }
  func.func @transform_0(%arg0: i32, %arg1: i32) -> i32 {
    %c0_i32 = arith.constant 0 : i32
    %c0_i32_0 = arith.constant 0 : i32
    return %c0_i32 : i32
  }
  func.func @transform_1(%arg0: i32, %arg1: i32) -> (i32, i32) {
    %c0_i32 = arith.constant 0 : i32
    %c0_i32_0 = arith.constant 0 : i32
    %c0_i32_1 = arith.constant 0 : i32
    return %c0_i32, %c0_i32_0 : i32, i32
  }
  func.func @transform_2(%arg0: i32, %arg1: i32) -> (i32, i32) {
    %c0_i32 = arith.constant 0 : i32
    %c0_i32_0 = arith.constant 0 : i32
    %c0_i32_1 = arith.constant 0 : i32
    return %c0_i32, %c0_i32_0 : i32, i32
  }
  func.func @transform_3(%arg0: i32, %arg1: i32) -> (i32, i32) {
    %c0_i32 = arith.constant 0 : i32
    %c0_i32_0 = arith.constant 0 : i32
    %c0_i32_1 = arith.constant 0 : i32
    return %c0_i32, %c0_i32_0 : i32, i32
  }
  func.func @transform_4(%arg0: i32, %arg1: i32) -> (i32, i32, i32) {
    %c0_i32 = arith.constant 0 : i32
    %c0_i32_0 = arith.constant 0 : i32
    return %arg0, %c0_i32, %arg1 : i32, i32, i32
  }
  func.func @transform_5(%arg0: i32, %arg1: i32) -> (i32, i32, i32) {
    %c0_i32 = arith.constant 0 : i32
    %c0_i32_0 = arith.constant 0 : i32
    return %arg0, %c0_i32, %arg1 : i32, i32, i32
  }
}

</mosaic_0001>

<bundles_post_ra>
// kernel: tpu_custom_call.1
= control target key start
LH: loop header
LB: loop body
LE: loop exit
PB: predicated region body
PF: predicated region fallthrough
CT: control target
= control target key end

     0   :  { %s11439_s0 = inlined_call_operand.<no memory space> [shape: f32[1], index: 0, kind: input, shape index: {}]   ;;  %s11440_s1 = inlined_call_operand.vmem [shape: f32[40,40], index: 1, kind: input, shape index: {}]   ;;  %s11441_s2 = inlined_call_operand.vmem [shape: f32[40,8], index: 2, kind: input, shape index: {}]   ;;  %s11442_s3 = inlined_call_operand.hbm [shape: f32[10,40], index: 3, kind: input, shape index: {}]   ;;  %s11443_s4 = inlined_call_operand.hbm [shape: f32[2,8,256], index: 4, kind: input, shape index: {}]   ;;  %s11444_s5 = inlined_call_operand.vmem [shape: f32[2,10,256], index: 5, kind: output, shape index: {}]  }
   0x1   :  { %10 = sst [smem:[#allocation2]] %s11439_s0 }
   0x2   :  { %11 = vsyncpa [#allocation4], 0 }
   0x3   :  { %12 = vsyncpa [#allocation6], 0 }
   0x4   :  { %14 = vsyncpa [#allocation6 + $0x1], 0  ;;  %s7358_s20 = smov 0   ;;  %s7360_s21 = smov 0  }
   0x5   :  { %s7362_s22 = smov 0   ;;  %s7364_s23 = smov 0  }
   0x6   :  { %s7366_s24 = smov 0   ;;  %s7368_s25 = smov 0  }
   0x7 LB: > { %s6852_s0 = sadd.s32 4294967295, %s7317_s25   ;;  %p138_p0 = scmp.ne.s32.totalorder %s7301_s21, %s7297_s20  ;;  %s7317_s25 = sphi %s7368_s25, %s20_s25   ;;  %s7313_s24 = sphi %s7366_s24, %s11457_s24   ;;  %s7309_s23 = sphi %s7364_s23, %s11456_s23   ;;  %s7305_s22 = sphi %s7362_s22, %s11455_s22   ;;  %s7301_s21 = sphi %s7360_s21, %s11454_s21   ;;  %s7297_s20 = sphi %s7358_s20, %s11453_s20  }
   0x8   : > { %p7388_p1 = scmp.eq.s32.totalorder %s6852_s0, 0  ;;  %p6854_p2 = scmp.ge.s32.totalorder %s7317_s25, 1 }
   0x9   : > { %p177_p3 = scmp.lt.s32.totalorder %s7317_s25, 3  ;;  %s7319_s29 = smov [#allocation3]  }
   0xa   : > { %p7396_p4 = por %p7388_p1, %p138_p0  ;;  %s198_s30 = sshll.u32 %s7319_s29, 4  ;;  %s199_s30 = int_to_ptr.vmem [resolvable:$true] %s198_s30 }
   0xb   : > { %p7400_p5 = pnand %p6854_p2, %p177_p3  ;;  %s32_s7 = sadd.s32 1, %s7313_s24 }
   0xc   : > { %s7220_s8 = scalar_lea.vmem %s199_s30, 256  ;;  %p7228_p12 = scmp.lt.s32.totalorder %s199_s30, %s199_s30 }
   0xd   : > { %p7107_p6 = pneg %p7400_p5  ;;  %p7221_p9 = scmp.ne.s32.totalorder %s199_s30, %s7220_s8 }
   0xe   : > { %p7229_p13 = scmp.lt.s32.totalorder %s7220_s8, %s7220_s8 }
   0xf   : > { %p7408_p7 = pnand %p7107_p6, %p7388_p1 }
  0x10   : > { %p7230_p0 = por %p7229_p13, %p7228_p12 }
  0x11   : > { %p7211_p8 = pneg %p7408_p7 }
  0x13   : > { %p7223_p10 = pnand %p7221_p9, %p7211_p8 }
  0x15   : > { %p7224_p11 = pneg %p7223_p10 }
  0x17   : > { %p7231_p2 = pnand %p7230_p0, %p7224_p11 }
  0x19   : > { %7234 = shalt.err (!%p7231_p2)
}
  0x1a   : > { %s7320_s9 = smov 128   ;;  %s7321_s10 = smov 8  }
  0x1b   : > { %7110 = dma.hbm_to_vmem [thread:$0]  (!%p7408_p7), %s11442_s3, 256, %s199_s30, [#allocation4], %s7320_s9, %s7320_s9, %s7321_s10  }
  0x1c   : > { %p34_p3 = scmp.ge.s32.totalorder %s32_s7, 2  ;;  %s125_s13 = sadd.s32 1, %s7305_s22 }
  0x1d   : > { %p132_p6 = scmp.ne.s32.totalorder %s7305_s22, %s7301_s21  ;;  %p133_p8 = scmp.eq.s32.totalorder %s7317_s25, 0 }
  0x1e   : > { %s11459_s7 = smov (%p34_p3, %s32_s7), 0  ;;  %p7116_p10 = scmp.lt.s32.totalorder %s7317_s25, 2 }
  0x1f   : > { %p134_p9 = por %p133_p8, %p132_p6  ;;  %s120_s14 = ssub.s32 %s7313_s24, %s11459_s7 }
  0x20   : > { %s212_s15 = sand.u32 1, %s7305_s22   ;;  %p123_p11 = scmp.eq.s32.totalorder %s120_s14, 0 }
  0x21   : > { %s6857_s16 = sshll.u32 %s212_s15, 4  ;;  %s7074_s17 = sshll.u32 %s7313_s24, 8 }
  0x22   : > { %s7432_s18 = scalar_select %p123_p11, %s7305_s22, %s125_s13  }
  0x23   : > { %s224_s0 = scalar_lea.hbm %s11443_s4, %s7074_s17  ;;  %s216_s29 = scalar_lea.vmem [#allocation5], %s6857_s16 }
  0x24   : > { %s226_s30 = sshll.u32 %s216_s29, 4  ;;  %p7437_p7 = pnand %p7116_p10, %p134_p9  ;;  %s227_s30 = int_to_ptr.vmem [resolvable:$true] %s226_s30 }
  0x25   : > { %s213_s8 = scalar_lea.sflag [#allocation6], %s212_s15  ;;  %s7248_s9 = scalar_lea.vmem %s227_s30, 256 }
  0x26   : > { %p7237_p12 = pneg %p7437_p7  ;;  %p7249_p13 = scmp.ne.s32.totalorder %s227_s30, %s7248_s9 }
  0x27   : > { %s7322_s10 = smov [#allocation5]  }
  0x28   : > { %p7251_p0 = pnand %p7249_p13, %p7237_p12  ;;  %s7253_s11 = sshll.u32 %s7322_s10, 4  ;;  %s7254_s11 = int_to_ptr.vmem [resolvable:$false] %s7253_s11 }
  0x29   : > { %s7255_s12 = scalar_lea.vmem %s7254_s11, 512  ;;  %p7256_p3 = scmp.lt.s32.totalorder %s227_s30, %s7254_s11 }
  0x2a   : > { %p7252_p2 = pneg %p7251_p0  ;;  %p7257_p6 = scmp.lt.s32.totalorder %s7255_s12, %s7248_s9 }
  0x2c   : > { %p7258_p8 = por %p7257_p6, %p7256_p3 }
  0x2e   : > { %p7259_p9 = pnand %p7258_p8, %p7252_p2 }
  0x30   : > { %7262 = shalt.err (!%p7259_p9)
}
  0x31   : > { %7114 = dma.hbm_to_vmem [thread:$0]  (!%p7437_p7), %s224_s0, 256, %s227_s30, %s213_s8  }
  0x32   : > { %235 = sbr.rel (%p7400_p5) target bundleno = 9732 (0x2604), region = 40 }
  0x37   : > { %7288 = dma.done.wait (%p7388_p1), [#allocation4], 256  }
  0x38   : > { %7290 = vsyncadd (%p7388_p1), [#allocation4], 4294967040  ;;  %s241_s13 = sand.u32 1, %s7301_s21  }
  0x39   : > { %s6862_s14 = sshll.u32 %s241_s13, 4  ;;  %s242_s15 = scalar_lea.sflag [#allocation6], %s241_s13 }
  0x3a   : > { %s245_s16 = scalar_lea.vmem [#allocation5], %s6862_s14 }
  0x3b   : > { %7292 = dma.done.wait (%p7396_p4), %s242_s15, 256  }
  0x3c   : > { %7294 = vsyncadd (%p7396_p4), %s242_s15, 4294967040  ;;  %v11445_v0 = vmov 0.0   ;;  %v288_v1 = vld [vmem:[%s245_s16 + $0x8] sm:$0xff]  ;;  %v287_v2 = vld [vmem:[%s245_s16] sm:$0xff]  ;;  %vm358_vm6 = vcmask 64512   ;;  %vm7324_vm7 = vmmov 0  }
  0x3d   : > { %456 = vmatprep.mubr.f32.mxu1 %v11445_v0  ;;  %438 = vmatprep.mubr.f32.mxu0 %v11445_v0  ;;  %v295_v3 = vrot.slane %v288_v1, 4  ;;  %v289_v4 = vrot.slane %v287_v2, 4  ;;  %v356_v51 = vld [vmem:[%s11441_s2 + $0x18] sm:$0xff]  ;;  %v353_v52 = vld [vmem:[%s11441_s2] sm:$0xff]  ;;  %v354_v54 = vld [vmem:[%s11441_s2 + $0x8] sm:$0xff]  ;;  %vm469_vm8 = vcmask 326656  }
  0x3e   : > { %v357_v53 = vld [vmem:[%s11441_s2 + $0x20] sm:$0xff]  ;;  %v355_v56 = vld [vmem:[%s11441_s2 + $0x10] sm:$0xff]  ;;  %v7508_v57 = vld [vmem:[%s11440_s1 + $0x8] sm:$0xff]  ;;  %s347_s27 = sld [smem:[#allocation2]]  ;;  %p278_p1 = scmp.lt.s32.totalorder %s7309_s23, 1 }
  0x3f   : > { %v296_v5 = vadd.f32 %v295_v3, %v288_v1  ;;  %v290_v6 = vadd.f32 %v289_v4, %v287_v2  ;;  %v7494_v55 = vld [vmem:[%s11440_s1] sm:$0xff]  ;;  %v7519_v58 = vld [vmem:[%s11440_s1 + $0x10] sm:$0xff]  ;;  %v7528_v59 = vld [vmem:[%s11440_s1 + $0x18] sm:$0xff] }
  0x40   : > { %v7537_v60 = vld [vmem:[%s11440_s1 + $0x20] sm:$0xff]  ;;  %s11461_s23 = smov (!%p278_p1, %s7309_s23), 1 }
  0x41   : > { %v297_v7 = vrot.slane %v296_v5, 2  ;;  %v291_v8 = vrot.slane %v290_v6, 2  ;;  %s7075_s0 = sshll.u32 %s11461_s23, 5 }
  0x42   : > { %s285_s6 = scalar_lea.vmem %s11444_s5, %s7075_s0 }
  0x43   : > { %v298_v9 = vadd.f32 %v297_v7, %v296_v5  ;;  %v292_v10 = vadd.f32 %v291_v8, %v290_v6 }
  0x44   : > { %s580_s28 = ssub.f32 0.0, %s347_s27  ;;  %v7558_v6 = vstv %s347_s27 }
  0x45   : > { %v299_v11 = vrot.slane %v298_v9, 1  ;;  %v293_v12 = vrot.slane %v292_v10, 1 }
  0x46   : > { %v7552_v3 = vstv %s580_s28 }
  0x47   : > { %v300_v13 = vadd.f32 %v299_v11, %v298_v9  ;;  %v294_v14 = vadd.f32 %v293_v12, %v292_v10 }
  0x49   : > { %v7458_v15 = vmul.f32 0.125, %v300_v13  ;;  %v7460_v16 = vmul.f32 0.125, %v294_v14 }
  0x4b   : > { %v305_v17 = vsub.f32 %v288_v1, %v7458_v15  ;;  %v304_v18 = vsub.f32 %v287_v2, %v7460_v16 }
  0x4d   : > { %v307_v19 = vmul.f32 %v305_v17, %v305_v17  ;;  %v306_v20 = vmul.f32 %v304_v18, %v304_v18 }
  0x4f   : > { %v314_v21 = vrot.slane %v307_v19, 4  ;;  %v308_v22 = vrot.slane %v306_v20, 4 }
  0x51   : > { %v315_v23 = vadd.f32 %v314_v21, %v307_v19  ;;  %v309_v24 = vadd.f32 %v308_v22, %v306_v20 }
  0x53   : > { %v316_v25 = vrot.slane %v315_v23, 2  ;;  %v310_v26 = vrot.slane %v309_v24, 2 }
  0x55   : > { %v317_v27 = vadd.f32 %v316_v25, %v315_v23  ;;  %v311_v28 = vadd.f32 %v310_v26, %v309_v24 }
  0x57   : > { %v318_v29 = vrot.slane %v317_v27, 1  ;;  %v312_v30 = vrot.slane %v311_v28, 1 }
  0x59   : > { %v319_v31 = vadd.f32 %v318_v29, %v317_v27  ;;  %v313_v32 = vadd.f32 %v312_v30, %v311_v28 }
  0x5b   : > { %v322_v33 = vmul.f32 0.14285715, %v319_v31  ;;  %v321_v34 = vmul.f32 0.14285715, %v313_v32 }
  0x5d   : > { %7171 = vrsqrt.f32 %v322_v33  ;;  %vm332_vm0 = vcmp.eq.f32.partialorder %v322_v33, inf  ;;  %v335_v36 = vand.u32 2147483648, %v322_v33  ;;  %vm334_vm1 = vcmp.eq.f32.partialorder %v322_v33, 0.0 }
  0x5e   : > { %7173 = vrsqrt.f32 %v321_v34  ;;  %vm325_vm2 = vcmp.eq.f32.partialorder %v321_v34, inf  ;;  %v328_v39 = vand.u32 2147483648, %v321_v34  ;;  %vm327_vm3 = vcmp.eq.f32.partialorder %v321_v34, 0.0 }
  0x6a   : > { %v7172_v35 = vpop.eup %7171 }
  0x6b   : > { %v7174_v37 = vpop.eup %7173  ;;  %v331_v38 = vmul.f32 %v7172_v35, %v322_v33 }
  0x6c   : > { %v324_v40 = vmul.f32 %v7174_v37, %v321_v34 }
  0x6d   : > { %v333_v41 = vsel %vm332_vm0, %v322_v33, %v331_v38 }
  0x6e   : > { %v336_v42 = vsel %vm334_vm1, %v335_v36, %v333_v41  ;;  %v326_v43 = vsel %vm325_vm2, %v321_v34, %v324_v40 }
  0x6f   : > { %vm338_vm4 = vcmp.eq.f32.partialorder %v336_v42, 0.0  ;;  %v329_v44 = vsel %vm327_vm3, %v328_v39, %v326_v43 }
  0x70   : > { %v7464_v45 = vsel %vm338_vm4, 1.0, %v336_v42  ;;  %vm337_vm5 = vcmp.eq.f32.partialorder %v329_v44, 0.0 }
  0x71   : > { %7175 = vrcp.f32 %v7464_v45  ;;  %v7467_v46 = vsel %vm337_vm5, 1.0, %v329_v44 }
  0x72   : > { %7177 = vrcp.f32 %v7467_v46 }
  0x7e   : > { %v7176_v47 = vpop.eup %7175 }
  0x7f   : > { %v7178_v48 = vpop.eup %7177  ;;  %v346_v49 = vmul.f32 %v7176_v47, %v305_v17 }
  0x80   : > { %v345_v50 = vmul.f32 %v7178_v48, %v304_v18 }
  0x81   : > { %7099 = vmatprep.subr.mxu1 %v346_v49  ;;  %404 = vmatprep.subr.mxu0 %v346_v49 }
  0x82   : > { %7100 = vmatpush1.msra.mxu1 %v345_v50  ;;  %405 = vmatpush1.msra.mxu0 %v345_v50 }
  0x83   : > { %6868 = vmatmul.mubr.msk.f32.vlgmr.msra.gmra.mxu1 %vm358_vm6, %v356_v51  ;;  %7082 = vmatprep.subr.mxu1 %v11445_v0 }
  0x84   : > { %462 = vmatprep.mubr.f32.mxu1 %v11445_v0  ;;  %7083 = vmatpush3.msra.mxu1 %v11445_v0 }
  0x85   : > { %6865 = vmatmul.mubr.msk.f32.vlgmr.msra.gmra.mxu0 %vm358_vm6, %v353_v52 }
  0x86   : > { %444 = vmatprep.mubr.f32.mxu0 %v11445_v0 }
  0x87   : > { %6869 = vmatmul.mubr.msk.f32.gmra.mxu1 %vm358_vm6, %v357_v53 }
  0x88   : > { %7084 = vmatprep.mubr.msk.f32.mxu1 %vm7324_vm7, %v11445_v0 }
  0x89   : > { %6866 = vmatmul.mubr.msk.f32.gmra.mxu0 %vm358_vm6, %v354_v54 }
  0x8a   : > { %450 = vmatprep.mubr.f32.mxu0 %v11445_v0 }
  0x8b   : > { %7085 = vmatmul.mubr.msk.f32.vlgmr.msra.gmra.mxu1 %vm469_vm8, %v7494_v55 }
  0x8c   : > { %7087 = vmatprep.mubr.msk.f32.mxu1 %vm7324_vm7, %v11445_v0 }
  0x8d   : > { %6867 = vmatmul.mubr.msk.f32.gmra.mxu0 %vm358_vm6, %v355_v56 }
  0x8e   : > { %697 = vmatprep.mubr.f32.mxu0 %v11445_v0 }
  0x8f   : > { %7088 = vmatmul.mubr.msk.f32.gmra.mxu1 %vm469_vm8, %v7508_v57 }
  0x90   : > { %7090 = vmatprep.mubr.msk.f32.mxu1 %vm7324_vm7, %v11445_v0 }
  0x93   : > { %7091 = vmatmul.mubr.msk.f32.gmra.mxu1 %vm469_vm8, %v7519_v58 }
  0x94   : > { %7093 = vmatprep.mubr.msk.f32.mxu1 %vm7324_vm7, %v11445_v0 }
  0x97   : > { %7094 = vmatmul.mubr.msk.f32.gmra.mxu1 %vm469_vm8, %v7528_v59 }
  0x98   : > { %7096 = vmatprep.mubr.msk.f32.mxu1 %vm7324_vm7, %v11445_v0 }
  0x9b   : > { %7097 = vmatmul.mubr.msk.f32.gmra.mxu1 %vm469_vm8, %v7537_v60 }
  0x9c   : > { %852 = vmatprep.mubr.f32.mxu1 %v11445_v0 }
 0x143   : > { %v7542_v61 = vpop.f32.mrf.mxu1 }
 0x145   : > { %v7544_v62 = vpop.f32.mrf.mxu1  ;;  %v7546_v63 = vpop.f32.mrf.mxu0 }
 0x146   : > { %v589_v25 = vmax.f32 %v7552_v3, %v7544_v62 }
 0x147   : > { %v7548_v1 = vpop.f32.mrf.mxu1  ;;  %v7550_v2 = vpop.f32.mrf.mxu0 }
 0x148   : > { %v600_v34 = vmin.f32 %v7558_v6, %v589_v25  ;;  %v583_v41 = vmax.f32 %v7552_v3, %v7550_v2 }
 0x149   : > { %v7554_v4 = vpop.f32.mrf.mxu1  ;;  %v7560_v8 = vpop.f32.mrf.mxu0 }
 0x14a   : > { %v591_v5 = vmax.f32 %v7552_v3, %v7554_v4  ;;  %v7597_v47 = vsub.f32 %v7544_v62, %v600_v34  ;;  %v594_v53 = vmin.f32 %v7558_v6, %v583_v41 }
 0x14b   : > { %v551_v7 = vpop.f32.mrf.mxu1  ;;  %v7566_v13 = vpop.f32.mrf.mxu0 }
 0x14c   : > { %v602_v9 = vmin.f32 %v7558_v6, %v591_v5  ;;  %v552_v30 = vadd.f32 %v551_v7, %v7546_v63  ;;  %v585_v35 = vmax.f32 %v7552_v3, %v7566_v13  ;;  %v620_v7 = vmul.f32 0.0, %v7597_v47 }
 0x14d   : > { %v7086_v10 = vpop.f32.mrf.mxu1  ;;  %v7570_v19 = vpop.f32.mrf.mxu0 }
 0x14e   : > { %v7564_v11 = vsub.f32 %v7554_v4, %v602_v9  ;;  %v582_v42 = vmax.f32 %v7552_v3, %v552_v30  ;;  %v596_v48 = vmin.f32 %v7558_v6, %v585_v35 }
 0x14f   : > { %v557_v12 = vpop.f32.mrf.mxu1  ;;  %v7573_v23 = vpop.f32.mrf.mxu0 }
 0x150   : > { %v622_v14 = vmul.f32 0.0, %v7564_v11  ;;  %v558_v26 = vadd.f32 %v557_v12, %v7560_v8  ;;  %v587_v29 = vmax.f32 %v7552_v3, %v7573_v23  ;;  %v593_v54 = vmin.f32 %v7558_v6, %v582_v42 }
 0x151   : > { %v7089_v17 = vpop.f32.mrf.mxu1  ;;  %v7615_v9 = vsub.f32 %v7566_v13, %v596_v48 }
 0x152   : > { %v632_v18 = vadd.f32 %v622_v14, %v7564_v11  ;;  %v584_v36 = vmax.f32 %v7552_v3, %v558_v26  ;;  %v598_v40 = vmin.f32 %v7558_v6, %v587_v29 }
 0x153   : > { %v563_v20 = vpop.f32.mrf.mxu1  ;;  %v616_v25 = vmul.f32 0.0, %v7615_v9 }
 0x154   : > { %655 = vmatprep.subr.mxu0 %v632_v18  ;;  %v564_v22 = vadd.f32 %v563_v20, %v7570_v19  ;;  %v595_v49 = vmin.f32 %v7558_v6, %v584_v36  ;;  %v7605_v52 = vsub.f32 %v7573_v23, %v598_v40  ;;  %v7623_v18 = vsub.f32 %v7550_v2, %v594_v53 }
 0x155   : > { %v7092_v21 = vpop.f32.mrf.mxu1  ;;  %v7625_v20 = vsub.f32 %v552_v30, %v593_v54 }
 0x156   : > { %v586_v31 = vmax.f32 %v7552_v3, %v564_v22  ;;  %v7617_v10 = vsub.f32 %v558_v26, %v595_v49  ;;  %v618_v17 = vmul.f32 0.0, %v7605_v52  ;;  %v614_v29 = vmul.f32 0.0, %v7623_v18 }
 0x157   : > { %v569_v24 = vpop.f32.mrf.mxu1  ;;  %v613_v30 = vmul.f32 0.0, %v7625_v20 }
 0x158   : > { %v570_v27 = vadd.f32 %v569_v24, %v7542_v61  ;;  %v597_v43 = vmin.f32 %v7558_v6, %v586_v31  ;;  %v630_v24 = vadd.f32 %v620_v7, %v7597_v47  ;;  %v615_v26 = vmul.f32 0.0, %v7617_v10 }
 0x159   : > { %v7095_v28 = vpop.f32.mrf.mxu1  ;;  %v624_v34 = vadd.f32 %v614_v29, %v7623_v18  ;;  %v623_v35 = vadd.f32 %v613_v30, %v7625_v20 }
 0x15a   : > { %v588_v32 = vmax.f32 %v7552_v3, %v570_v27  ;;  %v7609_v56 = vsub.f32 %v564_v22, %v597_v43  ;;  %v628_v28 = vadd.f32 %v618_v17, %v7605_v52 }
 0x15b   : > { %v575_v33 = vpop.f32.mrf.mxu1 }
 0x15c   : > { %v599_v37 = vmin.f32 %v7558_v6, %v588_v32  ;;  %v576_v38 = vadd.f32 %v575_v33, %v7548_v1  ;;  %v617_v21 = vmul.f32 0.0, %v7609_v56  ;;  %v626_v32 = vadd.f32 %v616_v25, %v7615_v9 }
 0x15d   : > { %v7098_v39 = vpop.f32.mrf.mxu1  ;;  %v625_v33 = vadd.f32 %v615_v26, %v7617_v10 }
 0x15e   : > { %v590_v44 = vmax.f32 %v7552_v3, %v576_v38  ;;  %v7601_v50 = vsub.f32 %v570_v27, %v599_v37  ;;  %v627_v31 = vadd.f32 %v617_v21, %v7609_v56 }
 0x160   : > { %v601_v51 = vmin.f32 %v7558_v6, %v590_v44  ;;  %v619_v12 = vmul.f32 0.0, %v7601_v50 }
 0x162   : > { %v7611_v5 = vsub.f32 %v576_v38, %v601_v51  ;;  %v629_v27 = vadd.f32 %v619_v12, %v7601_v50 }
 0x164   : > { %v621_v14 = vmul.f32 0.0, %v7611_v5 }
 0x166   : > { %v631_v22 = vadd.f32 %v621_v14, %v7611_v5 }
 0x168   : > { %656 = vmatpush1.msra.mxu0 %v631_v22 }
 0x169   : > { %657 = vmatprep.subr.mxu0 %v630_v24 }
 0x16a   : > { %658 = vmatpush1.msra.mxu0 %v629_v27 }
 0x16b   : > { %659 = vmatprep.subr.mxu0 %v628_v28 }
 0x16c   : > { %660 = vmatpush1.msra.mxu0 %v627_v31 }
 0x16d   : > { %661 = vmatprep.subr.mxu0 %v626_v32 }
 0x16e   : > { %662 = vmatpush1.msra.mxu0 %v625_v33 }
 0x16f   : > { %663 = vmatprep.subr.mxu0 %v624_v34 }
 0x170   : > { %664 = vmatpush1.msra.mxu0 %v623_v35 }
 0x171   : > { %6875 = vmatmul.mubr.msk.f32.vlgmr.msra.gmra.mxu0 %vm469_vm8, %v7494_v55 }
 0x172   : > { %703 = vmatprep.mubr.f32.mxu0 %v11445_v0 }
 0x175   : > { %6876 = vmatmul.mubr.msk.f32.gmra.mxu0 %vm469_vm8, %v7508_v57 }
 0x176   : > { %709 = vmatprep.mubr.f32.mxu0 %v11445_v0 }
 0x179   : > { %6877 = vmatmul.mubr.msk.f32.gmra.mxu0 %vm469_vm8, %v7519_v58 }
 0x17a   : > { %715 = vmatprep.mubr.f32.mxu0 %v11445_v0 }
 0x17d   : > { %6878 = vmatmul.mubr.msk.f32.gmra.mxu0 %vm469_vm8, %v7528_v59 }
 0x17e   : > { %721 = vmatprep.mubr.f32.mxu0 %v11445_v0 }
 0x181   : > { %6879 = vmatmul.mubr.msk.f32.gmra.mxu0 %vm469_vm8, %v7537_v60 }
 0x182   : > { %1007 = vmatprep.mubr.f32.mxu0 %v11445_v0 }
 0x231   : > { %v699_v36 = vpop.f32.mrf.mxu0 }
 0x232   : > { %v700_v14 = vadd.f32 %v699_v36, %v7546_v63 }
 0x233   : > { %v701_v37 = vpop.f32.mrf.mxu0 }
 0x234   : > { %v702_v49 = vadd.f32 %v701_v37, %v7550_v2  ;;  %v728_v35 = vmax.f32 %v7552_v3, %v700_v14 }
 0x235   : > { %v705_v38 = vpop.f32.mrf.mxu0 }
 0x236   : > { %v706_v51 = vadd.f32 %v705_v38, %v7560_v8  ;;  %v729_v27 = vmax.f32 %v7552_v3, %v702_v49 }
 0x237   : > { %v707_v39 = vpop.f32.mrf.mxu0 }
 0x238   : > { %v708_v48 = vadd.f32 %v707_v39, %v7566_v13  ;;  %v730_v28 = vmax.f32 %v7552_v3, %v706_v51 }
 0x239   : > { %v711_v40 = vpop.f32.mrf.mxu0 }
 0x23a   : > { %v712_v43 = vadd.f32 %v711_v40, %v7570_v19  ;;  %v731_v24 = vmax.f32 %v7552_v3, %v708_v48 }
 0x23b   : > { %v713_v41 = vpop.f32.mrf.mxu0 }
 0x23c   : > { %v714_v42 = vadd.f32 %v713_v41, %v7573_v23  ;;  %v732_v17 = vmax.f32 %v7552_v3, %v712_v43  ;;  %v741_v37 = vmin.f32 %v7558_v6, %v731_v24  ;;  %v740_v41 = vmin.f32 %v7558_v6, %v730_v28 }
 0x23d   : > { %v717_v44 = vpop.f32.mrf.mxu0 }
 0x23e   : > { %v718_v53 = vadd.f32 %v717_v44, %v7542_v61  ;;  %v733_v7 = vmax.f32 %v7552_v3, %v714_v42  ;;  %v742_v36 = vmin.f32 %v7558_v6, %v732_v17  ;;  %v7696_v24 = vsub.f32 %v708_v48, %v741_v37 }
 0x23f   : > { %v719_v54 = vpop.f32.mrf.mxu0 }
 0x240   : > { %v720_v12 = vadd.f32 %v719_v54, %v7544_v62  ;;  %v734_v21 = vmax.f32 %v7552_v3, %v718_v53  ;;  %v743_v31 = vmin.f32 %v7558_v6, %v733_v7  ;;  %v739_v54 = vmin.f32 %v7558_v6, %v729_v27 }
 0x241   : > { %v723_v22 = vpop.f32.mrf.mxu0 }
 0x242   : > { %v735_v25 = vmax.f32 %v7552_v3, %v720_v12  ;;  %v724_v26 = vadd.f32 %v723_v22, %v7548_v1  ;;  %v744_v29 = vmin.f32 %v7558_v6, %v734_v21  ;;  %v7688_v7 = vsub.f32 %v714_v42, %v743_v31 }
 0x243   : > { %v725_v30 = vpop.f32.mrf.mxu0  ;;  %v738_v22 = vmin.f32 %v7558_v6, %v728_v35  ;;  %v7704_v42 = vsub.f32 %v706_v51, %v740_v41  ;;  %v7708_v27 = vsub.f32 %v702_v49, %v739_v54  ;;  %v761_v31 = vsub.f32 %v7696_v24, %v7615_v9 }
 0x244   : > { %v745_v32 = vmin.f32 %v7558_v6, %v735_v25  ;;  %v736_v33 = vmax.f32 %v7552_v3, %v724_v26  ;;  %v726_v34 = vadd.f32 %v725_v30, %v7554_v4  ;;  %v7685_v44 = vsub.f32 %v718_v53, %v744_v29 }
 0x245   : > { %v763_v48 = vsub.f32 %v7688_v7, %v7605_v52  ;;  %v7714_v29 = vsub.f32 %v700_v14, %v738_v22  ;;  %v759_v52 = vsub.f32 %v7708_v27, %v7623_v18  ;;  %v771_v9 = vmul.f32 0.2817535, %v761_v31 }
 0x246   : > { %v7680_v38 = vsub.f32 %v720_v12, %v745_v32  ;;  %v746_v39 = vmin.f32 %v7558_v6, %v736_v33  ;;  %v737_v40 = vmax.f32 %v7552_v3, %v726_v34  ;;  %v7694_v12 = vsub.f32 %v712_v43, %v742_v36 }
 0x247   : > { %v773_v32 = vmul.f32 0.2817535, %v763_v48  ;;  %v758_v14 = vsub.f32 %v7714_v29, %v7625_v20  ;;  %v769_v37 = vmul.f32 0.2817535, %v759_v52  ;;  %v781_v20 = vadd.f32 %v771_v9, %v7696_v24 }
 0x248   : > { %v7690_v21 = vsub.f32 %v724_v26, %v746_v39  ;;  %v747_v17 = vmin.f32 %v7558_v6, %v737_v40  ;;  %v765_v53 = vsub.f32 %v7680_v38, %v7597_v47  ;;  %v764_v26 = vsub.f32 %v7685_v44, %v7601_v50 }
 0x249   : > { %v760_v50 = vsub.f32 %v7704_v42, %v7617_v10  ;;  %v783_v36 = vadd.f32 %v773_v32, %v7688_v7  ;;  %v768_v39 = vmul.f32 0.2817535, %v758_v14  ;;  %v779_v41 = vadd.f32 %v769_v37, %v7708_v27 }
 0x24a   : > { %v766_v25 = vsub.f32 %v7690_v21, %v7611_v5  ;;  %v7700_v28 = vsub.f32 %v726_v34, %v747_v17  ;;  %v762_v5 = vsub.f32 %v7694_v12, %v7609_v56  ;;  %v775_v51 = vmul.f32 0.2817535, %v765_v53 }
 0x24b   : > { %v774_v49 = vmul.f32 0.2817535, %v764_v26  ;;  %v770_v35 = vmul.f32 0.2817535, %v760_v50  ;;  %v778_v54 = vadd.f32 %v768_v39, %v7714_v29 }
 0x24c   : > { %v767_v43 = vsub.f32 %v7700_v28, %v7564_v11  ;;  %v776_v30 = vmul.f32 0.2817535, %v766_v25  ;;  %v772_v56 = vmul.f32 0.2817535, %v762_v5  ;;  %v785_v34 = vadd.f32 %v775_v51, %v7680_v38 }
 0x24d   : > { %v784_v10 = vadd.f32 %v774_v49, %v7685_v44  ;;  %v780_v40 = vadd.f32 %v770_v35, %v7704_v42 }
 0x24e   : > { %v777_v47 = vmul.f32 0.2817535, %v767_v43  ;;  %v786_v33 = vadd.f32 %v776_v30, %v7690_v21  ;;  %v782_v18 = vadd.f32 %v772_v56, %v7694_v12 }
 0x250   : > { %v787_v11 = vadd.f32 %v777_v47, %v7700_v28 }
 0x252   : > { %810 = vmatprep.subr.mxu1 %v787_v11 }
 0x253   : > { %811 = vmatpush1.msra.mxu1 %v786_v33 }
 0x254   : > { %812 = vmatprep.subr.mxu1 %v785_v34 }
 0x255   : > { %813 = vmatpush1.msra.mxu1 %v784_v10 }
 0x256   : > { %814 = vmatprep.subr.mxu1 %v783_v36 }
 0x257   : > { %815 = vmatpush1.msra.mxu1 %v782_v18 }
 0x258   : > { %816 = vmatprep.subr.mxu1 %v781_v20 }
 0x259   : > { %817 = vmatpush1.msra.mxu1 %v780_v40 }
 0x25a   : > { %818 = vmatprep.subr.mxu1 %v779_v41 }
 0x25b   : > { %819 = vmatpush1.msra.mxu1 %v778_v54 }
 0x25c   : > { %6880 = vmatmul.mubr.msk.f32.vlgmr.msra.gmra.mxu1 %vm469_vm8, %v7494_v55 }
 0x25d   : > { %858 = vmatprep.mubr.f32.mxu1 %v11445_v0 }
 0x260   : > { %6881 = vmatmul.mubr.msk.f32.gmra.mxu1 %vm469_vm8, %v7508_v57 }
 0x261   : > { %864 = vmatprep.mubr.f32.mxu1 %v11445_v0 }
 0x264   : > { %6882 = vmatmul.mubr.msk.f32.gmra.mxu1 %vm469_vm8, %v7519_v58 }
 0x265   : > { %870 = vmatprep.mubr.f32.mxu1 %v11445_v0 }
 0x268   : > { %6883 = vmatmul.mubr.msk.f32.gmra.mxu1 %vm469_vm8, %v7528_v59 }
 0x269   : > { %876 = vmatprep.mubr.f32.mxu1 %v11445_v0 }
 0x26c   : > { %6884 = vmatmul.mubr.msk.f32.gmra.mxu1 %vm469_vm8, %v7537_v60 }
 0x26d   : > { %1162 = vmatprep.mubr.f32.mxu1 %v11445_v0 }
 0x31c   : > { %v854_v17 = vpop.f32.mrf.mxu1 }
 0x31d   : > { %v855_v52 = vadd.f32 %v854_v17, %v7546_v63 }
 0x31e   : > { %v856_v22 = vpop.f32.mrf.mxu1 }
 0x31f   : > { %v857_v51 = vadd.f32 %v856_v22, %v7550_v2  ;;  %v883_v54 = vmax.f32 %v7552_v3, %v855_v52 }
 0x320   : > { %v860_v25 = vpop.f32.mrf.mxu1 }
 0x321   : > { %v861_v31 = vadd.f32 %v860_v25, %v7560_v8  ;;  %v884_v10 = vmax.f32 %v7552_v3, %v857_v51 }
 0x322   : > { %v862_v53 = vpop.f32.mrf.mxu1 }
 0x323   : > { %v863_v47 = vadd.f32 %v862_v53, %v7566_v13  ;;  %v885_v36 = vmax.f32 %v7552_v3, %v861_v31 }
 0x324   : > { %v866_v26 = vpop.f32.mrf.mxu1 }
 0x325   : > { %v867_v5 = vadd.f32 %v866_v26, %v7570_v19  ;;  %v886_v34 = vmax.f32 %v7552_v3, %v863_v47 }
 0x326   : > { %v868_v43 = vpop.f32.mrf.mxu1 }
 0x327   : > { %v869_v48 = vadd.f32 %v868_v43, %v7573_v23  ;;  %v887_v14 = vmax.f32 %v7552_v3, %v867_v5  ;;  %v896_v22 = vmin.f32 %v7558_v6, %v886_v34  ;;  %v895_v43 = vmin.f32 %v7558_v6, %v885_v36 }
 0x328   : > { %v872_v30 = vpop.f32.mrf.mxu1 }
 0x329   : > { %v873_v50 = vadd.f32 %v872_v30, %v7542_v61  ;;  %v888_v11 = vmax.f32 %v7552_v3, %v869_v48  ;;  %v897_v17 = vmin.f32 %v7558_v6, %v887_v14  ;;  %v7791_v34 = vsub.f32 %v863_v47, %v896_v22 }
 0x32a   : > { %v874_v49 = vpop.f32.mrf.mxu1 }
 0x32b   : > { %v875_v32 = vadd.f32 %v874_v49, %v7544_v62  ;;  %v889_v56 = vmax.f32 %v7552_v3, %v873_v50  ;;  %v898_v18 = vmin.f32 %v7558_v6, %v888_v11  ;;  %v894_v49 = vmin.f32 %v7558_v6, %v884_v10 }
 0x32c   : > { %v878_v33 = vpop.f32.mrf.mxu1 }
 0x32d   : > { %v890_v9 = vmax.f32 %v7552_v3, %v875_v32  ;;  %v879_v35 = vadd.f32 %v878_v33, %v7548_v1  ;;  %v899_v37 = vmin.f32 %v7558_v6, %v889_v56  ;;  %v7783_v11 = vsub.f32 %v869_v48, %v898_v18 }
 0x32e   : > { %v880_v39 = vpop.f32.mrf.mxu1  ;;  %v893_v33 = vmin.f32 %v7558_v6, %v883_v54  ;;  %v7799_v48 = vsub.f32 %v861_v31, %v895_v43  ;;  %v7803_v10 = vsub.f32 %v857_v51, %v894_v49  ;;  %v916_v18 = vsub.f32 %v7791_v34, %v7696_v24 }
 0x32f   : > { %v900_v20 = vmin.f32 %v7558_v6, %v890_v9  ;;  %v891_v40 = vmax.f32 %v7552_v3, %v879_v35  ;;  %v881_v41 = vadd.f32 %v880_v39, %v7554_v4  ;;  %v7780_v30 = vsub.f32 %v873_v50, %v899_v37 }
 0x330   : > { %v918_v47 = vsub.f32 %v7783_v11, %v7688_v7  ;;  %v7809_v37 = vsub.f32 %v855_v52, %v893_v33  ;;  %v914_v7 = vsub.f32 %v7803_v10, %v7708_v27  ;;  %v926_v24 = vmul.f32 0.43404278, %v916_v18 }
 0x331   : > { %v7775_v25 = vsub.f32 %v875_v32, %v900_v20  ;;  %v901_v53 = vmin.f32 %v7558_v6, %v891_v40  ;;  %v892_v26 = vmax.f32 %v7552_v3, %v881_v41  ;;  %v7789_v32 = vsub.f32 %v867_v5, %v897_v17 }
 0x332   : > { %v928_v20 = vmul.f32 0.43404278, %v918_v47  ;;  %v913_v52 = vsub.f32 %v7809_v37, %v7714_v29  ;;  %v924_v22 = vmul.f32 0.43404278, %v914_v7  ;;  %v936_v29 = vadd.f32 %v926_v24, %v7791_v34 }
 0x333   : > { %v7785_v56 = vsub.f32 %v879_v35, %v901_v53  ;;  %v902_v14 = vmin.f32 %v7558_v6, %v892_v26  ;;  %v920_v50 = vsub.f32 %v7775_v25, %v7680_v38  ;;  %v919_v35 = vsub.f32 %v7780_v30, %v7685_v44 }
 0x334   : > { %v915_v44 = vsub.f32 %v7799_v48, %v7704_v42  ;;  %v938_v17 = vadd.f32 %v928_v20, %v7783_v11  ;;  %v923_v53 = vmul.f32 0.43404278, %v913_v52  ;;  %v934_v43 = vadd.f32 %v924_v22, %v7803_v10 }
 0x335   : > { %v921_v9 = vsub.f32 %v7785_v56, %v7690_v21  ;;  %v7795_v36 = vsub.f32 %v881_v41, %v902_v14  ;;  %v917_v21 = vsub.f32 %v7789_v32, %v7694_v12  ;;  %v930_v31 = vmul.f32 0.43404278, %v920_v50 }
 0x336   : > { %v929_v51 = vmul.f32 0.43404278, %v919_v35  ;;  %v925_v54 = vmul.f32 0.43404278, %v915_v44  ;;  %v933_v49 = vadd.f32 %v923_v53, %v7809_v37 }
 0x337   : > { %v922_v5 = vsub.f32 %v7795_v36, %v7700_v28  ;;  %v931_v39 = vmul.f32 0.43404278, %v921_v9  ;;  %v927_v12 = vmul.f32 0.43404278, %v917_v21  ;;  %v940_v41 = vadd.f32 %v930_v31, %v7775_v25 }
 0x338   : > { %v939_v42 = vadd.f32 %v929_v51, %v7780_v30  ;;  %v935_v26 = vadd.f32 %v925_v54, %v7799_v48 }
 0x339   : > { %v932_v38 = vmul.f32 0.43404278, %v922_v5  ;;  %v941_v40 = vadd.f32 %v931_v39, %v7785_v56  ;;  %v937_v27 = vadd.f32 %v927_v12, %v7789_v32 }
 0x33b   : > { %v942_v28 = vadd.f32 %v932_v38, %v7795_v36 }
 0x33d   : > { %965 = vmatprep.subr.mxu0 %v942_v28 }
 0x33e   : > { %966 = vmatpush1.msra.mxu0 %v941_v40 }
 0x33f   : > { %967 = vmatprep.subr.mxu0 %v940_v41 }
 0x340   : > { %968 = vmatpush1.msra.mxu0 %v939_v42 }
 0x341   : > { %969 = vmatprep.subr.mxu0 %v938_v17 }
 0x342   : > { %970 = vmatpush1.msra.mxu0 %v937_v27 }
 0x343   : > { %971 = vmatprep.subr.mxu0 %v936_v29 }
 0x344   : > { %972 = vmatpush1.msra.mxu0 %v935_v26 }
 0x345   : > { %973 = vmatprep.subr.mxu0 %v934_v43 }
 0x346   : > { %974 = vmatpush1.msra.mxu0 %v933_v49 }
 0x347   : > { %6885 = vmatmul.mubr.msk.f32.vlgmr.msra.gmra.mxu0 %vm469_vm8, %v7494_v55 }
 0x348   : > { %1013 = vmatprep.mubr.f32.mxu0 %v11445_v0 }
 0x34b   : > { %6886 = vmatmul.mubr.msk.f32.gmra.mxu0 %vm469_vm8, %v7508_v57 }
 0x34c   : > { %1019 = vmatprep.mubr.f32.mxu0 %v11445_v0 }
 0x34f   : > { %6887 = vmatmul.mubr.msk.f32.gmra.mxu0 %vm469_vm8, %v7519_v58 }
 0x350   : > { %1025 = vmatprep.mubr.f32.mxu0 %v11445_v0 }
 0x353   : > { %6888 = vmatmul.mubr.msk.f32.gmra.mxu0 %vm469_vm8, %v7528_v59 }
 0x354   : > { %1031 = vmatprep.mubr.f32.mxu0 %v11445_v0 }
 0x357   : > { %6889 = vmatmul.mubr.msk.f32.gmra.mxu0 %vm469_vm8, %v7537_v60 }
 0x358   : > { %1317 = vmatprep.mubr.f32.mxu0 %v11445_v0 }
 0x407   : > { %v1009_v14 = vpop.f32.mrf.mxu0 }
 0x408   : > { %v1010_v7 = vadd.f32 %v1009_v14, %v7546_v63 }
 0x409   : > { %v1011_v33 = vpop.f32.mrf.mxu0 }
 0x40a   : > { %v1012_v31 = vadd.f32 %v1011_v33, %v7550_v2  ;;  %v1038_v49 = vmax.f32 %v7552_v3, %v1010_v7 }
 0x40b   : > { %v1015_v9 = vpop.f32.mrf.mxu0 }
 0x40c   : > { %v1016_v18 = vadd.f32 %v1015_v9, %v7560_v8  ;;  %v1039_v42 = vmax.f32 %v7552_v3, %v1012_v31 }
 0x40d   : > { %v1017_v50 = vpop.f32.mrf.mxu0 }
 0x40e   : > { %v1018_v38 = vadd.f32 %v1017_v50, %v7566_v13  ;;  %v1040_v17 = vmax.f32 %v7552_v3, %v1016_v18 }
 0x40f   : > { %v1021_v35 = vpop.f32.mrf.mxu0 }
 0x410   : > { %v1022_v21 = vadd.f32 %v1021_v35, %v7570_v19  ;;  %v1041_v41 = vmax.f32 %v7552_v3, %v1018_v38 }
 0x411   : > { %v1023_v5 = vpop.f32.mrf.mxu0 }
 0x412   : > { %v1024_v47 = vadd.f32 %v1023_v5, %v7573_v23  ;;  %v1042_v52 = vmax.f32 %v7552_v3, %v1022_v21  ;;  %v1051_v33 = vmin.f32 %v7558_v6, %v1041_v41  ;;  %v1050_v5 = vmin.f32 %v7558_v6, %v1040_v17 }
 0x413   : > { %v1027_v39 = vpop.f32.mrf.mxu0 }
 0x414   : > { %v1028_v44 = vadd.f32 %v1027_v39, %v7542_v61  ;;  %v1043_v28 = vmax.f32 %v7552_v3, %v1024_v47  ;;  %v1052_v14 = vmin.f32 %v7558_v6, %v1042_v52  ;;  %v7886_v41 = vsub.f32 %v1018_v38, %v1051_v33 }
 0x415   : > { %v1029_v51 = vpop.f32.mrf.mxu0 }
 0x416   : > { %v1030_v20 = vadd.f32 %v1029_v51, %v7544_v62  ;;  %v1044_v12 = vmax.f32 %v7552_v3, %v1028_v44  ;;  %v1053_v27 = vmin.f32 %v7558_v6, %v1043_v28  ;;  %v1049_v51 = vmin.f32 %v7558_v6, %v1039_v42 }
 0x417   : > { %v1033_v40 = vpop.f32.mrf.mxu0 }
 0x418   : > { %v1045_v24 = vmax.f32 %v7552_v3, %v1030_v20  ;;  %v1034_v54 = vadd.f32 %v1033_v40, %v7548_v1  ;;  %v1054_v22 = vmin.f32 %v7558_v6, %v1044_v12  ;;  %v7878_v28 = vsub.f32 %v1024_v47, %v1053_v27 }
 0x419   : > { %v1035_v53 = vpop.f32.mrf.mxu0  ;;  %v1048_v40 = vmin.f32 %v7558_v6, %v1038_v49  ;;  %v7894_v47 = vsub.f32 %v1016_v18, %v1050_v5  ;;  %v7898_v42 = vsub.f32 %v1012_v31, %v1049_v51  ;;  %v1071_v27 = vsub.f32 %v7886_v41, %v7791_v34 }
 0x41a   : > { %v1055_v29 = vmin.f32 %v7558_v6, %v1045_v24  ;;  %v1046_v26 = vmax.f32 %v7552_v3, %v1034_v54  ;;  %v1036_v43 = vadd.f32 %v1035_v53, %v7554_v4  ;;  %v7875_v39 = vsub.f32 %v1028_v44, %v1054_v22 }
 0x41b   : > { %v1073_v38 = vsub.f32 %v7878_v28, %v7783_v11  ;;  %v7904_v22 = vsub.f32 %v1010_v7, %v1048_v40  ;;  %v1069_v11 = vsub.f32 %v7898_v42, %v7803_v10  ;;  %v1081_v34 = vmul.f32 0.5310638, %v1071_v27 }
 0x41c   : > { %v7870_v9 = vsub.f32 %v1030_v20, %v1055_v29  ;;  %v1056_v50 = vmin.f32 %v7558_v6, %v1046_v26  ;;  %v1047_v35 = vmax.f32 %v7552_v3, %v1036_v43  ;;  %v7884_v20 = vsub.f32 %v1022_v21, %v1052_v14 }
 0x41d   : > { %v1083_v29 = vmul.f32 0.5310638, %v1073_v38  ;;  %v1068_v7 = vsub.f32 %v7904_v22, %v7809_v37  ;;  %v1079_v33 = vmul.f32 0.5310638, %v1069_v11  ;;  %v1091_v37 = vadd.f32 %v1081_v34, %v7886_v41 }
 0x41e   : > { %v7880_v12 = vsub.f32 %v1034_v54, %v1056_v50  ;;  %v1057_v52 = vmin.f32 %v7558_v6, %v1047_v35  ;;  %v1075_v44 = vsub.f32 %v7870_v9, %v7775_v25  ;;  %v1074_v54 = vsub.f32 %v7875_v39, %v7780_v30 }
 0x41f   : > { %v1070_v30 = vsub.f32 %v7894_v47, %v7799_v48  ;;  %v1093_v14 = vadd.f32 %v1083_v29, %v7878_v28  ;;  %v1078_v50 = vmul.f32 0.5310638, %v1068_v7  ;;  %v1089_v5 = vadd.f32 %v1079_v33, %v7898_v42 }
 0x420   : > { %v1076_v24 = vsub.f32 %v7880_v12, %v7785_v56  ;;  %v7890_v17 = vsub.f32 %v1036_v43, %v1057_v52  ;;  %v1072_v56 = vsub.f32 %v7884_v20, %v7789_v32  ;;  %v1085_v18 = vmul.f32 0.5310638, %v1075_v44 }
 0x421   : > { %v1084_v31 = vmul.f32 0.5310638, %v1074_v54  ;;  %v1080_v49 = vmul.f32 0.5310638, %v1070_v30  ;;  %v1088_v51 = vadd.f32 %v1078_v50, %v7904_v22 }
 0x422   : > { %v1077_v21 = vsub.f32 %v7890_v17, %v7795_v36  ;;  %v1086_v53 = vmul.f32 0.5310638, %v1076_v24  ;;  %v1082_v32 = vmul.f32 0.5310638, %v1072_v56  ;;  %v1095_v43 = vadd.f32 %v1085_v18, %v7870_v9 }
 0x423   : > { %v1094_v48 = vadd.f32 %v1084_v31, %v7875_v39  ;;  %v1090_v35 = vadd.f32 %v1080_v49, %v7894_v47 }
 0x424   : > { %v1087_v25 = vmul.f32 0.5310638, %v1077_v21  ;;  %v1096_v26 = vadd.f32 %v1086_v53, %v7880_v12  ;;  %v1092_v10 = vadd.f32 %v1082_v32, %v7884_v20 }
 0x426   : > { %v1097_v36 = vadd.f32 %v1087_v25, %v7890_v17 }
 0x428   : > { %1120 = vmatprep.subr.mxu1 %v1097_v36 }
 0x429   : > { %1121 = vmatpush1.msra.mxu1 %v1096_v26 }
 0x42a   : > { %1122 = vmatprep.subr.mxu1 %v1095_v43 }
 0x42b   : > { %1123 = vmatpush1.msra.mxu1 %v1094_v48 }
 0x42c   : > { %1124 = vmatprep.subr.mxu1 %v1093_v14 }
 0x42d   : > { %1125 = vmatpush1.msra.mxu1 %v1092_v10 }
 0x42e   : > { %1126 = vmatprep.subr.mxu1 %v1091_v37 }
 0x42f   : > { %1127 = vmatpush1.msra.mxu1 %v1090_v35 }
 0x430   : > { %1128 = vmatprep.subr.mxu1 %v1089_v5 }
 0x431   : > { %1129 = vmatpush1.msra.mxu1 %v1088_v51 }
 0x432   : > { %6890 = vmatmul.mubr.msk.f32.vlgmr.msra.gmra.mxu1 %vm469_vm8, %v7494_v55 }
 0x433   : > { %1168 = vmatprep.mubr.f32.mxu1 %v11445_v0 }
 0x436   : > { %6891 = vmatmul.mubr.msk.f32.gmra.mxu1 %vm469_vm8, %v7508_v57 }
 0x437   : > { %1174 = vmatprep.mubr.f32.mxu1 %v11445_v0 }
 0x43a   : > { %6892 = vmatmul.mubr.msk.f32.gmra.mxu1 %vm469_vm8, %v7519_v58 }
 0x43b   : > { %1180 = vmatprep.mubr.f32.mxu1 %v11445_v0 }
 0x43e   : > { %6893 = vmatmul.mubr.msk.f32.gmra.mxu1 %vm469_vm8, %v7528_v59 }
 0x43f   : > { %1186 = vmatprep.mubr.f32.mxu1 %v11445_v0 }
 0x442   : > { %6894 = vmatmul.mubr.msk.f32.gmra.mxu1 %vm469_vm8, %v7537_v60 }
 0x443   : > { %1472 = vmatprep.mubr.f32.mxu1 %v11445_v0 }
 0x4f2   : > { %v1164_v52 = vpop.f32.mrf.mxu1 }
 0x4f3   : > { %v1165_v11 = vadd.f32 %v1164_v52, %v7546_v63 }
 0x4f4   : > { %v1166_v40 = vpop.f32.mrf.mxu1 }
 0x4f5   : > { %v1167_v18 = vadd.f32 %v1166_v40, %v7550_v2  ;;  %v1193_v51 = vmax.f32 %v7552_v3, %v1165_v11 }
 0x4f6   : > { %v1170_v24 = vpop.f32.mrf.mxu1 }
 0x4f7   : > { %v1171_v27 = vadd.f32 %v1170_v24, %v7560_v8  ;;  %v1194_v48 = vmax.f32 %v7552_v3, %v1167_v18 }
 0x4f8   : > { %v1172_v44 = vpop.f32.mrf.mxu1 }
 0x4f9   : > { %v1173_v25 = vadd.f32 %v1172_v44, %v7566_v13  ;;  %v1195_v14 = vmax.f32 %v7552_v3, %v1171_v27 }
 0x4fa   : > { %v1176_v54 = vpop.f32.mrf.mxu1 }
 0x4fb   : > { %v1177_v56 = vadd.f32 %v1176_v54, %v7570_v19  ;;  %v1196_v43 = vmax.f32 %v7552_v3, %v1173_v25 }
 0x4fc   : > { %v1178_v21 = vpop.f32.mrf.mxu1 }
 0x4fd   : > { %v1179_v38 = vadd.f32 %v1178_v21, %v7573_v23  ;;  %v1197_v7 = vmax.f32 %v7552_v3, %v1177_v56  ;;  %v1206_v40 = vmin.f32 %v7558_v6, %v1196_v43  ;;  %v1205_v21 = vmin.f32 %v7558_v6, %v1195_v14 }
 0x4fe   : > { %v1182_v53 = vpop.f32.mrf.mxu1 }
 0x4ff   : > { %v1183_v30 = vadd.f32 %v1182_v53, %v7542_v61  ;;  %v1198_v36 = vmax.f32 %v7552_v3, %v1179_v38  ;;  %v1207_v52 = vmin.f32 %v7558_v6, %v1197_v7  ;;  %v7981_v43 = vsub.f32 %v1173_v25, %v1206_v40 }
 0x500   : > { %v1184_v31 = vpop.f32.mrf.mxu1 }
 0x501   : > { %v1185_v29 = vadd.f32 %v1184_v31, %v7544_v62  ;;  %v1199_v32 = vmax.f32 %v7552_v3, %v1183_v30  ;;  %v1208_v10 = vmin.f32 %v7558_v6, %v1198_v36  ;;  %v1204_v31 = vmin.f32 %v7558_v6, %v1194_v48 }
 0x502   : > { %v1188_v26 = vpop.f32.mrf.mxu1 }
 0x503   : > { %v1200_v34 = vmax.f32 %v7552_v3, %v1185_v29  ;;  %v1189_v49 = vadd.f32 %v1188_v26, %v7548_v1  ;;  %v1209_v33 = vmin.f32 %v7558_v6, %v1199_v32  ;;  %v7973_v36 = vsub.f32 %v1179_v38, %v1208_v10 }
 0x504   : > { %v1190_v50 = vpop.f32.mrf.mxu1  ;;  %v1203_v26 = vmin.f32 %v7558_v6, %v1193_v51  ;;  %v7989_v38 = vsub.f32 %v1171_v27, %v1205_v21  ;;  %v7993_v48 = vsub.f32 %v1167_v18, %v1204_v31  ;;  %v1226_v10 = vsub.f32 %v7981_v43, %v7886_v41 }
 0x505   : > { %v1210_v37 = vmin.f32 %v7558_v6, %v1200_v34  ;;  %v1201_v35 = vmax.f32 %v7552_v3, %v1189_v49  ;;  %v1191_v5 = vadd.f32 %v1190_v50, %v7554_v4  ;;  %v7970_v53 = vsub.f32 %v1183_v30, %v1209_v33 }
 0x506   : > { %v1228_v25 = vsub.f32 %v7973_v36, %v7878_v28  ;;  %v7999_v33 = vsub.f32 %v1165_v11, %v1203_v26  ;;  %v1224_v28 = vsub.f32 %v7993_v48, %v7898_v42  ;;  %v1236_v41 = vmul.f32 0.5987786, %v1226_v10 }
 0x507   : > { %v7965_v24 = vsub.f32 %v1185_v29, %v1210_v37  ;;  %v1211_v44 = vmin.f32 %v7558_v6, %v1201_v35  ;;  %v1202_v54 = vmax.f32 %v7552_v3, %v1191_v5  ;;  %v7979_v29 = vsub.f32 %v1177_v56, %v1207_v52 }
 0x508   : > { %v1238_v37 = vmul.f32 0.5987786, %v1228_v25  ;;  %v1223_v11 = vsub.f32 %v7999_v33, %v7904_v22  ;;  %v1234_v40 = vmul.f32 0.5987786, %v1224_v28  ;;  %v1246_v22 = vadd.f32 %v1236_v41, %v7981_v43 }
 0x509   : > { %v7975_v32 = vsub.f32 %v1189_v49, %v1211_v44  ;;  %v1212_v7 = vmin.f32 %v7558_v6, %v1202_v54  ;;  %v1230_v30 = vsub.f32 %v7965_v24, %v7870_v9  ;;  %v1229_v49 = vsub.f32 %v7970_v53, %v7875_v39 }
 0x50a   : > { %v1225_v39 = vsub.f32 %v7989_v38, %v7894_v47  ;;  %v1248_v52 = vadd.f32 %v1238_v37, %v7973_v36  ;;  %v1233_v44 = vmul.f32 0.5987786, %v1223_v11  ;;  %v1244_v21 = vadd.f32 %v1234_v40, %v7993_v48 }
 0x50b   : > { %v1231_v34 = vsub.f32 %v7975_v32, %v7880_v12  ;;  %v7985_v14 = vsub.f32 %v1191_v5, %v1212_v7  ;;  %v1227_v12 = vsub.f32 %v7979_v29, %v7884_v20  ;;  %v1240_v27 = vmul.f32 0.5987786, %v1230_v30 }
 0x50c   : > { %v1239_v18 = vmul.f32 0.5987786, %v1229_v49  ;;  %v1235_v51 = vmul.f32 0.5987786, %v1225_v39  ;;  %v1243_v31 = vadd.f32 %v1233_v44, %v7999_v33 }
 0x50d   : > { %v1232_v56 = vsub.f32 %v7985_v14, %v7890_v17  ;;  %v1241_v50 = vmul.f32 0.5987786, %v1231_v34  ;;  %v1237_v20 = vmul.f32 0.5987786, %v1227_v12  ;;  %v1250_v5 = vadd.f32 %v1240_v27, %v7965_v24 }
 0x50e   : > { %v1249_v47 = vadd.f32 %v1239_v18, %v7970_v53  ;;  %v1245_v54 = vadd.f32 %v1235_v51, %v7989_v38 }
 0x50f   : > { %v1242_v9 = vmul.f32 0.5987786, %v1232_v56  ;;  %v1251_v35 = vadd.f32 %v1241_v50, %v7975_v32  ;;  %v1247_v42 = vadd.f32 %v1237_v20, %v7979_v29 }
 0x511   : > { %v1252_v17 = vadd.f32 %v1242_v9, %v7985_v14 }
 0x513   : > { %1275 = vmatprep.subr.mxu0 %v1252_v17 }
 0x514   : > { %1276 = vmatpush1.msra.mxu0 %v1251_v35 }
 0x515   : > { %1277 = vmatprep.subr.mxu0 %v1250_v5 }
 0x516   : > { %1278 = vmatpush1.msra.mxu0 %v1249_v47 }
 0x517   : > { %1279 = vmatprep.subr.mxu0 %v1248_v52 }
 0x518   : > { %1280 = vmatpush1.msra.mxu0 %v1247_v42 }
 0x519   : > { %1281 = vmatprep.subr.mxu0 %v1246_v22 }
 0x51a   : > { %1282 = vmatpush1.msra.mxu0 %v1245_v54 }
 0x51b   : > { %1283 = vmatprep.subr.mxu0 %v1244_v21 }
 0x51c   : > { %1284 = vmatpush1.msra.mxu0 %v1243_v31 }
 0x51d   : > { %6895 = vmatmul.mubr.msk.f32.vlgmr.msra.gmra.mxu0 %vm469_vm8, %v7494_v55 }
 0x51e   : > { %1323 = vmatprep.mubr.f32.mxu0 %v11445_v0 }
 0x521   : > { %6896 = vmatmul.mubr.msk.f32.gmra.mxu0 %vm469_vm8, %v7508_v57 }
 0x522   : > { %1329 = vmatprep.mubr.f32.mxu0 %v11445_v0 }
 0x525   : > { %6897 = vmatmul.mubr.msk.f32.gmra.mxu0 %vm469_vm8, %v7519_v58 }
 0x526   : > { %1335 = vmatprep.mubr.f32.mxu0 %v11445_v0 }
 0x529   : > { %6898 = vmatmul.mubr.msk.f32.gmra.mxu0 %vm469_vm8, %v7528_v59 }
 0x52a   : > { %1341 = vmatprep.mubr.f32.mxu0 %v11445_v0 }
 0x52d   : > { %6899 = vmatmul.mubr.msk.f32.gmra.mxu0 %vm469_vm8, %v7537_v60 }
 0x52e   : > { %1627 = vmatprep.mubr.f32.mxu0 %v11445_v0 }
 0x5dd   : > { %v1319_v55 = vpop.f32.mrf.mxu0 }
 0x5de   : > { %v1320_v10 = vadd.f32 %v1319_v55, %v7546_v63 }
 0x5df   : > { %v1321_v7 = vpop.f32.mrf.mxu0 }
 0x5e0   : > { %v1322_v25 = vadd.f32 %v1321_v7, %v7550_v2  ;;  %v1348_v44 = vmax.f32 %v7552_v3, %v1320_v10 }
 0x5e1   : > { %v1325_v57 = vpop.f32.mrf.mxu0 }
 0x5e2   : > { %v1326_v12 = vadd.f32 %v1325_v57, %v7560_v8  ;;  %v1349_v20 = vmax.f32 %v7552_v3, %v1322_v25 }
 0x5e3   : > { %v1327_v26 = vpop.f32.mrf.mxu0 }
 0x5e4   : > { %v1328_v59 = vadd.f32 %v1327_v26, %v7566_v13  ;;  %v1350_v35 = vmax.f32 %v7552_v3, %v1326_v12  ;;  %v1359_v57 = vmin.f32 %v7558_v6, %v1349_v20 }
 0x5e5   : > { %v1331_v34 = vpop.f32.mrf.mxu0 }
 0x5e6   : > { %v1332_v49 = vadd.f32 %v1331_v34, %v7570_v19  ;;  %v1351_v37 = vmax.f32 %v7552_v3, %v1328_v59  ;;  %v1360_v55 = vmin.f32 %v7558_v6, %v1350_v35 }
 0x5e7   : > { %v1333_v30 = vpop.f32.mrf.mxu0 }
 0x5e8   : > { %v1334_v58 = vadd.f32 %v1333_v30, %v7573_v23  ;;  %v1352_v39 = vmax.f32 %v7552_v3, %v1332_v49  ;;  %v1361_v22 = vmin.f32 %v7558_v6, %v1351_v37 }
 0x5e9   : > { %v1337_v56 = vpop.f32.mrf.mxu0 }
 0x5ea   : > { %v1338_v60 = vadd.f32 %v1337_v56, %v7542_v61  ;;  %v1353_v9 = vmax.f32 %v7552_v3, %v1334_v58  ;;  %v1362_v42 = vmin.f32 %v7558_v6, %v1352_v39  ;;  %v1358_v56 = vmin.f32 %v7558_v6, %v1348_v44 }
 0x5eb   : > { %v1339_v50 = vpop.f32.mrf.mxu0 }
 0x5ec   : > { %v1340_v27 = vadd.f32 %v1339_v50, %v7544_v62  ;;  %v1354_v18 = vmax.f32 %v7552_v3, %v1338_v60  ;;  %v1363_v51 = vmin.f32 %v7558_v6, %v1353_v9  ;;  %v8074_v50 = vsub.f32 %v1332_v49, %v1362_v42 }
 0x5ed   : > { %v1343_v17 = vpop.f32.mrf.mxu0  ;;  %v8076_v9 = vsub.f32 %v1328_v59, %v1361_v22  ;;  %v8094_v37 = vsub.f32 %v1320_v10, %v1358_v56  ;;  %v8119_v22 = vld [vmem:[%s11440_s1] sm:$0xff] }
 0x5ee   : > { %v1355_v28 = vmax.f32 %v7552_v3, %v1340_v27  ;;  %v1344_v11 = vadd.f32 %v1343_v17, %v7548_v1  ;;  %v1364_v5 = vmin.f32 %v7558_v6, %v1354_v18  ;;  %v8068_v26 = vsub.f32 %v1334_v58, %v1363_v51 }
 0x5ef   : > { %v1345_v41 = vpop.f32.mrf.mxu0  ;;  %v8084_v58 = vsub.f32 %v1326_v12, %v1360_v55  ;;  %v8088_v17 = vsub.f32 %v1322_v25, %v1359_v57  ;;  %v1378_v10 = vsub.f32 %v8094_v37, %v7999_v33  ;;  %v8143_v55 = vld [vmem:[%s11440_s1 + $0x18] sm:$0xff]  ;;  %v8151_v57 = vld [vmem:[%s11440_s1 + $0x20] sm:$0xff] }
 0x5f0   : > { %v1365_v47 = vmin.f32 %v7558_v6, %v1355_v28  ;;  %v1356_v52 = vmax.f32 %v7552_v3, %v1344_v11  ;;  %v1346_v40 = vadd.f32 %v1345_v41, %v7554_v4  ;;  %v8065_v7 = vsub.f32 %v1338_v60, %v1364_v5 }
 0x5f1   : > { %v1383_v59 = vsub.f32 %v8068_v26, %v7973_v36  ;;  %v1379_v36 = vsub.f32 %v8088_v17, %v7993_v48 }
 0x5f2   : > { %v8060_v54 = vsub.f32 %v1340_v27, %v1365_v47  ;;  %v1366_v21 = vmin.f32 %v7558_v6, %v1356_v52  ;;  %v1357_v31 = vmax.f32 %v7552_v3, %v1346_v40  ;;  %v1384_v18 = vsub.f32 %v8065_v7, %v7970_v53 }
 0x5f3   : > { %v1380_v53 = vsub.f32 %v8084_v58, %v7989_v38  ;;  %v1393_v20 = vmul.f32 0.64892334, %v1383_v59  ;;  %v1389_v47 = vmul.f32 0.64892334, %v1379_v36  ;;  %v1388_v52 = vmul.f32 0.64892334, %v1378_v10 }
 0x5f4   : > { %v8070_v34 = vsub.f32 %v1344_v11, %v1366_v21  ;;  %v1367_v30 = vmin.f32 %v7558_v6, %v1357_v31  ;;  %v1385_v60 = vsub.f32 %v8060_v54, %v7965_v24  ;;  %v1381_v11 = vsub.f32 %v8076_v9, %v7981_v43  ;;  %v8127_v21 = vld [vmem:[%s11440_s1 + $0x8] sm:$0xff]  ;;  %v8135_v31 = vld [vmem:[%s11440_s1 + $0x10] sm:$0xff] }
 0x5f5   : > { %v1394_v25 = vmul.f32 0.64892334, %v1384_v18  ;;  %v1390_v41 = vmul.f32 0.64892334, %v1380_v53  ;;  %v1403_v51 = vadd.f32 %v1393_v20, %v8068_v26  ;;  %v1399_v44 = vadd.f32 %v1389_v47, %v8088_v17 }
 0x5f6   : > { %v1386_v27 = vsub.f32 %v8070_v34, %v7975_v32  ;;  %v8080_v39 = vsub.f32 %v1346_v40, %v1367_v30  ;;  %v1382_v32 = vsub.f32 %v8074_v50, %v7979_v29  ;;  %v1395_v12 = vmul.f32 0.64892334, %v1385_v60 }
 0x5f7   : > { %v1391_v43 = vmul.f32 0.64892334, %v1381_v11  ;;  %v1404_v38 = vadd.f32 %v1394_v25, %v8065_v7  ;;  %v1400_v40 = vadd.f32 %v1390_v41, %v8084_v58  ;;  %v1398_v42 = vadd.f32 %v1388_v52, %v8094_v37 }
 0x5f8   : > { %v1387_v49 = vsub.f32 %v8080_v39, %v7985_v14  ;;  %v1396_v28 = vmul.f32 0.64892334, %v1386_v27  ;;  %v1392_v29 = vmul.f32 0.64892334, %v1382_v32  ;;  %v1405_v5 = vadd.f32 %v1395_v12, %v8060_v54 }
 0x5f9   : > { %v1401_v33 = vadd.f32 %v1391_v43, %v8076_v9 }
 0x5fa   : > { %v1397_v24 = vmul.f32 0.64892334, %v1387_v49  ;;  %v1406_v35 = vadd.f32 %v1396_v28, %v8070_v34  ;;  %v1402_v48 = vadd.f32 %v1392_v29, %v8074_v50 }
 0x5fc   : > { %v1407_v14 = vadd.f32 %v1397_v24, %v8080_v39 }
 0x5fe   : > { %1430 = vmatprep.subr.mxu1 %v1407_v14 }
 0x5ff   : > { %1431 = vmatpush1.msra.mxu1 %v1406_v35 }
 0x600   : > { %1432 = vmatprep.subr.mxu1 %v1405_v5 }
 0x601   : > { %1433 = vmatpush1.msra.mxu1 %v1404_v38 }
 0x602   : > { %1434 = vmatprep.subr.mxu1 %v1403_v51 }
 0x603   : > { %1435 = vmatpush1.msra.mxu1 %v1402_v48 }
 0x604   : > { %1436 = vmatprep.subr.mxu1 %v1401_v33 }
 0x605   : > { %1437 = vmatpush1.msra.mxu1 %v1400_v40 }
 0x606   : > { %1438 = vmatprep.subr.mxu1 %v1399_v44 }
 0x607   : > { %1439 = vmatpush1.msra.mxu1 %v1398_v42 }
 0x608   : > { %6900 = vmatmul.mubr.msk.f32.vlgmr.msra.gmra.mxu1 %vm469_vm8, %v8119_v22 }
 0x609   : > { %1478 = vmatprep.mubr.f32.mxu1 %v11445_v0 }
 0x60c   : > { %6901 = vmatmul.mubr.msk.f32.gmra.mxu1 %vm469_vm8, %v8127_v21 }
 0x60d   : > { %1484 = vmatprep.mubr.f32.mxu1 %v11445_v0 }
 0x610   : > { %6902 = vmatmul.mubr.msk.f32.gmra.mxu1 %vm469_vm8, %v8135_v31 }
 0x611   : > { %1490 = vmatprep.mubr.f32.mxu1 %v11445_v0 }
 0x614   : > { %6903 = vmatmul.mubr.msk.f32.gmra.mxu1 %vm469_vm8, %v8143_v55 }
 0x615   : > { %1496 = vmatprep.mubr.f32.mxu1 %v11445_v0 }
 0x618   : > { %6904 = vmatmul.mubr.msk.f32.gmra.mxu1 %vm469_vm8, %v8151_v57 }
 0x619   : > { %1782 = vmatprep.mubr.f32.mxu1 %v11445_v0 }
 0x6c8   : > { %v1474_v30 = vpop.f32.mrf.mxu1 }
 0x6c9   : > { %v1475_v36 = vadd.f32 %v1474_v30, %v7546_v63 }
 0x6ca   : > { %v1476_v56 = vpop.f32.mrf.mxu1 }
 0x6cb   : > { %v1477_v12 = vadd.f32 %v1476_v56, %v7550_v2  ;;  %v1503_v42 = vmax.f32 %v7552_v3, %v1475_v36 }
 0x6cc   : > { %v1480_v27 = vpop.f32.mrf.mxu1 }
 0x6cd   : > { %v1481_v11 = vadd.f32 %v1480_v27, %v7560_v8  ;;  %v1504_v38 = vmax.f32 %v7552_v3, %v1477_v12 }
 0x6ce   : > { %v1482_v60 = vpop.f32.mrf.mxu1 }
 0x6cf   : > { %v1483_v24 = vadd.f32 %v1482_v60, %v7566_v13  ;;  %v1505_v51 = vmax.f32 %v7552_v3, %v1481_v11 }
 0x6d0   : > { %v1486_v18 = vpop.f32.mrf.mxu1 }
 0x6d1   : > { %v1487_v32 = vadd.f32 %v1486_v18, %v7570_v19  ;;  %v1506_v5 = vmax.f32 %v7552_v3, %v1483_v24 }
 0x6d2   : > { %v1488_v49 = vpop.f32.mrf.mxu1 }
 0x6d3   : > { %v1489_v59 = vadd.f32 %v1488_v49, %v7573_v23  ;;  %v1507_v10 = vmax.f32 %v7552_v3, %v1487_v32  ;;  %v1516_v56 = vmin.f32 %v7558_v6, %v1506_v5  ;;  %v1515_v49 = vmin.f32 %v7558_v6, %v1505_v51 }
 0x6d4   : > { %v1492_v28 = vpop.f32.mrf.mxu1 }
 0x6d5   : > { %v1493_v53 = vadd.f32 %v1492_v28, %v7542_v61  ;;  %v1508_v14 = vmax.f32 %v7552_v3, %v1489_v59  ;;  %v1517_v30 = vmin.f32 %v7558_v6, %v1507_v10  ;;  %v8196_v5 = vsub.f32 %v1483_v24, %v1516_v56 }
 0x6d6   : > { %v1494_v25 = vpop.f32.mrf.mxu1 }
 0x6d7   : > { %v1495_v20 = vadd.f32 %v1494_v25, %v7544_v62  ;;  %v1509_v29 = vmax.f32 %v7552_v3, %v1493_v53  ;;  %v1518_v48 = vmin.f32 %v7558_v6, %v1508_v14  ;;  %v1514_v25 = vmin.f32 %v7558_v6, %v1504_v38 }
 0x6d8   : > { %v1498_v35 = vpop.f32.mrf.mxu1 }
 0x6d9   : > { %v1510_v43 = vmax.f32 %v7552_v3, %v1495_v20  ;;  %v1499_v41 = vadd.f32 %v1498_v35, %v7548_v1  ;;  %v1519_v47 = vmin.f32 %v7558_v6, %v1509_v29  ;;  %v8188_v14 = vsub.f32 %v1489_v59, %v1518_v48 }
 0x6da   : > { %v1500_v52 = vpop.f32.mrf.mxu1  ;;  %v1513_v35 = vmin.f32 %v7558_v6, %v1503_v42  ;;  %v8204_v59 = vsub.f32 %v1481_v11, %v1515_v49  ;;  %v8208_v38 = vsub.f32 %v1477_v12, %v1514_v25  ;;  %v1536_v48 = vsub.f32 %v8196_v5, %v8076_v9 }
 0x6db   : > { %v1520_v33 = vmin.f32 %v7558_v6, %v1510_v43  ;;  %v1511_v40 = vmax.f32 %v7552_v3, %v1499_v41  ;;  %v1501_v44 = vadd.f32 %v1500_v52, %v7554_v4  ;;  %v8185_v28 = vsub.f32 %v1493_v53, %v1519_v47 }
 0x6dc   : > { %v1538_v24 = vsub.f32 %v8188_v14, %v8068_v26  ;;  %v8214_v47 = vsub.f32 %v1475_v36, %v1513_v35  ;;  %v1534_v26 = vsub.f32 %v8208_v38, %v8088_v17  ;;  %v1546_v9 = vmul.f32 0.68764585, %v1536_v48 }
 0x6dd   : > { %v8180_v27 = vsub.f32 %v1495_v20, %v1520_v33  ;;  %v1521_v60 = vmin.f32 %v7558_v6, %v1511_v40  ;;  %v1512_v18 = vmax.f32 %v7552_v3, %v1501_v44  ;;  %v8194_v20 = vsub.f32 %v1487_v32, %v1517_v30 }
 0x6de   : > { %v1548_v33 = vmul.f32 0.68764585, %v1538_v24  ;;  %v1533_v36 = vsub.f32 %v8214_v47, %v8094_v37  ;;  %v1544_v56 = vmul.f32 0.68764585, %v1534_v26  ;;  %v1556_v37 = vadd.f32 %v1546_v9, %v8196_v5 }
 0x6df   : > { %v8190_v29 = vsub.f32 %v1499_v41, %v1521_v60  ;;  %v1522_v10 = vmin.f32 %v7558_v6, %v1512_v18  ;;  %v1540_v53 = vsub.f32 %v8180_v27, %v8060_v54  ;;  %v1539_v41 = vsub.f32 %v8185_v28, %v8065_v7 }
 0x6e0   : > { %v1535_v7 = vsub.f32 %v8204_v59, %v8084_v58  ;;  %v1558_v30 = vadd.f32 %v1548_v33, %v8188_v14  ;;  %v1543_v60 = vmul.f32 0.68764585, %v1533_v36  ;;  %v1554_v49 = vadd.f32 %v1544_v56, %v8208_v38 }
 0x6e1   : > { %v1541_v43 = vsub.f32 %v8190_v29, %v8070_v34  ;;  %v8200_v51 = vsub.f32 %v1501_v44, %v1522_v10  ;;  %v1537_v34 = vsub.f32 %v8194_v20, %v8074_v50  ;;  %v1550_v11 = vmul.f32 0.68764585, %v1540_v53 }
 0x6e2   : > { %v1549_v12 = vmul.f32 0.68764585, %v1539_v41  ;;  %v1545_v42 = vmul.f32 0.68764585, %v1535_v7  ;;  %v1553_v25 = vadd.f32 %v1543_v60, %v8214_v47 }
 0x6e3   : > { %v1542_v32 = vsub.f32 %v8200_v51, %v8080_v39  ;;  %v1551_v52 = vmul.f32 0.68764585, %v1541_v43  ;;  %v1547_v50 = vmul.f32 0.68764585, %v1537_v34  ;;  %v1560_v44 = vadd.f32 %v1550_v11, %v8180_v27 }
 0x6e4   : > { %v1559_v58 = vadd.f32 %v1549_v12, %v8185_v28  ;;  %v1555_v18 = vadd.f32 %v1545_v42, %v8204_v59 }
 0x6e5   : > { %v1552_v54 = vmul.f32 0.68764585, %v1542_v32  ;;  %v1561_v40 = vadd.f32 %v1551_v52, %v8190_v29  ;;  %v1557_v17 = vadd.f32 %v1547_v50, %v8194_v20 }
 0x6e7   : > { %v1562_v39 = vadd.f32 %v1552_v54, %v8200_v51 }
 0x6e9   : > { %1585 = vmatprep.subr.mxu0 %v1562_v39 }
 0x6ea   : > { %1586 = vmatpush1.msra.mxu0 %v1561_v40 }
 0x6eb   : > { %1587 = vmatprep.subr.mxu0 %v1560_v44 }
 0x6ec   : > { %1588 = vmatpush1.msra.mxu0 %v1559_v58 }
 0x6ed   : > { %1589 = vmatprep.subr.mxu0 %v1558_v30 }
 0x6ee   : > { %1590 = vmatpush1.msra.mxu0 %v1557_v17 }
 0x6ef   : > { %1591 = vmatprep.subr.mxu0 %v1556_v37 }
 0x6f0   : > { %1592 = vmatpush1.msra.mxu0 %v1555_v18 }
 0x6f1   : > { %1593 = vmatprep.subr.mxu0 %v1554_v49 }
 0x6f2   : > { %1594 = vmatpush1.msra.mxu0 %v1553_v25 }
 0x6f3   : > { %6905 = vmatmul.mubr.msk.f32.vlgmr.msra.gmra.mxu0 %vm469_vm8, %v8119_v22 }
 0x6f4   : > { %1633 = vmatprep.mubr.f32.mxu0 %v11445_v0 }
 0x6f7   : > { %6906 = vmatmul.mubr.msk.f32.gmra.mxu0 %vm469_vm8, %v8127_v21 }
 0x6f8   : > { %1639 = vmatprep.mubr.f32.mxu0 %v11445_v0 }
 0x6fb   : > { %6907 = vmatmul.mubr.msk.f32.gmra.mxu0 %vm469_vm8, %v8135_v31 }
 0x6fc   : > { %1645 = vmatprep.mubr.f32.mxu0 %v11445_v0 }
 0x6ff   : > { %6908 = vmatmul.mubr.msk.f32.gmra.mxu0 %vm469_vm8, %v8143_v55 }
 0x700   : > { %1651 = vmatprep.mubr.f32.mxu0 %v11445_v0 }
 0x703   : > { %6909 = vmatmul.mubr.msk.f32.gmra.mxu0 %vm469_vm8, %v8151_v57 }
 0x704   : > { %1937 = vmatprep.mubr.f32.mxu0 %v11445_v0 }
 0x7b3   : > { %v1629_v10 = vpop.f32.mrf.mxu0 }
 0x7b4   : > { %v1630_v26 = vadd.f32 %v1629_v10, %v7546_v63 }
 0x7b5   : > { %v1631_v35 = vpop.f32.mrf.mxu0 }
 0x7b6   : > { %v1632_v11 = vadd.f32 %v1631_v35, %v7550_v2  ;;  %v1658_v25 = vmax.f32 %v7552_v3, %v1630_v26 }
 0x7b7   : > { %v1635_v43 = vpop.f32.mrf.mxu0 }
 0x7b8   : > { %v1636_v48 = vadd.f32 %v1635_v43, %v7560_v8  ;;  %v1659_v58 = vmax.f32 %v7552_v3, %v1632_v11 }
 0x7b9   : > { %v1637_v53 = vpop.f32.mrf.mxu0 }
 0x7ba   : > { %v1638_v54 = vadd.f32 %v1637_v53, %v7566_v13  ;;  %v1660_v30 = vmax.f32 %v7552_v3, %v1636_v48 }
 0x7bb   : > { %v1641_v41 = vpop.f32.mrf.mxu0 }
 0x7bc   : > { %v1642_v34 = vadd.f32 %v1641_v41, %v7570_v19  ;;  %v1661_v44 = vmax.f32 %v7552_v3, %v1638_v54 }
 0x7bd   : > { %v1643_v32 = vpop.f32.mrf.mxu0 }
 0x7be   : > { %v1644_v24 = vadd.f32 %v1643_v32, %v7573_v23  ;;  %v1662_v36 = vmax.f32 %v7552_v3, %v1642_v34  ;;  %v1671_v35 = vmin.f32 %v7558_v6, %v1661_v44  ;;  %v1670_v32 = vmin.f32 %v7558_v6, %v1660_v30 }
 0x7bf   : > { %v1647_v52 = vpop.f32.mrf.mxu0 }
 0x7c0   : > { %v1648_v7 = vadd.f32 %v1647_v52, %v7542_v61  ;;  %v1663_v39 = vmax.f32 %v7552_v3, %v1644_v24  ;;  %v1672_v10 = vmin.f32 %v7558_v6, %v1662_v36  ;;  %v8291_v44 = vsub.f32 %v1638_v54, %v1671_v35 }
 0x7c1   : > { %v1649_v12 = vpop.f32.mrf.mxu0 }
 0x7c2   : > { %v1650_v33 = vadd.f32 %v1649_v12, %v7544_v62  ;;  %v1664_v50 = vmax.f32 %v7552_v3, %v1648_v7  ;;  %v1673_v17 = vmin.f32 %v7558_v6, %v1663_v39  ;;  %v1669_v12 = vmin.f32 %v7558_v6, %v1659_v58 }
 0x7c3   : > { %v1653_v40 = vpop.f32.mrf.mxu0 }
 0x7c4   : > { %v1665_v9 = vmax.f32 %v7552_v3, %v1650_v33  ;;  %v1654_v42 = vadd.f32 %v1653_v40, %v7548_v1  ;;  %v1674_v56 = vmin.f32 %v7558_v6, %v1664_v50  ;;  %v8283_v39 = vsub.f32 %v1644_v24, %v1673_v17 }
 0x7c5   : > { %v1655_v60 = vpop.f32.mrf.mxu0  ;;  %v1668_v40 = vmin.f32 %v7558_v6, %v1658_v25  ;;  %v8299_v24 = vsub.f32 %v1636_v48, %v1670_v32  ;;  %v8303_v58 = vsub.f32 %v1632_v11, %v1669_v12  ;;  %v1691_v17 = vsub.f32 %v8291_v44, %v8196_v5 }
 0x7c6   : > { %v1675_v37 = vmin.f32 %v7558_v6, %v1665_v9  ;;  %v1666_v18 = vmax.f32 %v7552_v3, %v1654_v42  ;;  %v1656_v49 = vadd.f32 %v1655_v60, %v7554_v4  ;;  %v8280_v52 = vsub.f32 %v1648_v7, %v1674_v56 }
 0x7c7   : > { %v1693_v54 = vsub.f32 %v8283_v39, %v8188_v14  ;;  %v8309_v56 = vsub.f32 %v1630_v26, %v1668_v40  ;;  %v1689_v14 = vsub.f32 %v8303_v58, %v8208_v38  ;;  %v1701_v5 = vmul.f32 0.71849984, %v1691_v17 }
 0x7c8   : > { %v8275_v43 = vsub.f32 %v1650_v33, %v1675_v37  ;;  %v1676_v53 = vmin.f32 %v7558_v6, %v1666_v18  ;;  %v1667_v41 = vmax.f32 %v7552_v3, %v1656_v49  ;;  %v8289_v33 = vsub.f32 %v1642_v34, %v1672_v10 }
 0x7c9   : > { %v1703_v37 = vmul.f32 0.71849984, %v1693_v54  ;;  %v1688_v26 = vsub.f32 %v8309_v56, %v8214_v47  ;;  %v1699_v35 = vmul.f32 0.71849984, %v1689_v14  ;;  %v1711_v47 = vadd.f32 %v1701_v5, %v8291_v44 }
 0x7ca   : > { %v8285_v50 = vsub.f32 %v1654_v42, %v1676_v53  ;;  %v1677_v36 = vmin.f32 %v7558_v6, %v1667_v41  ;;  %v1695_v7 = vsub.f32 %v8275_v43, %v8180_v27  ;;  %v1694_v42 = vsub.f32 %v8280_v52, %v8185_v28 }
 0x7cb   : > { %v1690_v28 = vsub.f32 %v8299_v24, %v8204_v59  ;;  %v1713_v10 = vadd.f32 %v1703_v37, %v8283_v39  ;;  %v1698_v53 = vmul.f32 0.71849984, %v1688_v26  ;;  %v1709_v32 = vadd.f32 %v1699_v35, %v8303_v58 }
 0x7cc   : > { %v1696_v9 = vsub.f32 %v8285_v50, %v8190_v29  ;;  %v8295_v30 = vsub.f32 %v1656_v49, %v1677_v36  ;;  %v1692_v29 = vsub.f32 %v8289_v33, %v8194_v20  ;;  %v1705_v48 = vmul.f32 0.71849984, %v1695_v7 }
 0x7cd   : > { %v1704_v11 = vmul.f32 0.71849984, %v1694_v42  ;;  %v1700_v25 = vmul.f32 0.71849984, %v1690_v28  ;;  %v1708_v12 = vadd.f32 %v1698_v53, %v8309_v56 }
 0x7ce   : > { %v1697_v34 = vsub.f32 %v8295_v30, %v8200_v51  ;;  %v1706_v60 = vmul.f32 0.71849984, %v1696_v9  ;;  %v1702_v20 = vmul.f32 0.71849984, %v1692_v29  ;;  %v1715_v49 = vadd.f32 %v1705_v48, %v8275_v43 }
 0x7cf   : > { %v1714_v59 = vadd.f32 %v1704_v11, %v8280_v52  ;;  %v1710_v41 = vadd.f32 %v1700_v25, %v8299_v24 }
 0x7d0   : > { %v1707_v27 = vmul.f32 0.71849984, %v1697_v34  ;;  %v1716_v18 = vadd.f32 %v1706_v60, %v8285_v50  ;;  %v1712_v38 = vadd.f32 %v1702_v20, %v8289_v33 }
 0x7d2   : > { %v1717_v51 = vadd.f32 %v1707_v27, %v8295_v30 }
 0x7d4   : > { %1740 = vmatprep.subr.mxu1 %v1717_v51 }
 0x7d5   : > { %1741 = vmatpush1.msra.mxu1 %v1716_v18 }
 0x7d6   : > { %1742 = vmatprep.subr.mxu1 %v1715_v49 }
 0x7d7   : > { %1743 = vmatpush1.msra.mxu1 %v1714_v59 }
 0x7d8   : > { %1744 = vmatprep.subr.mxu1 %v1713_v10 }
 0x7d9   : > { %1745 = vmatpush1.msra.mxu1 %v1712_v38 }
 0x7da   : > { %1746 = vmatprep.subr.mxu1 %v1711_v47 }
 0x7db   : > { %1747 = vmatpush1.msra.mxu1 %v1710_v41 }
 0x7dc   : > { %1748 = vmatprep.subr.mxu1 %v1709_v32 }
 0x7dd   : > { %1749 = vmatpush1.msra.mxu1 %v1708_v12 }
 0x7de   : > { %6910 = vmatmul.mubr.msk.f32.vlgmr.msra.gmra.mxu1 %vm469_vm8, %v8119_v22 }
 0x7df   : > { %1788 = vmatprep.mubr.f32.mxu1 %v11445_v0 }
 0x7e2   : > { %6911 = vmatmul.mubr.msk.f32.gmra.mxu1 %vm469_vm8, %v8127_v21 }
 0x7e3   : > { %1794 = vmatprep.mubr.f32.mxu1 %v11445_v0 }
 0x7e6   : > { %6912 = vmatmul.mubr.msk.f32.gmra.mxu1 %vm469_vm8, %v8135_v31 }
 0x7e7   : > { %1800 = vmatprep.mubr.f32.mxu1 %v11445_v0 }
 0x7ea   : > { %6913 = vmatmul.mubr.msk.f32.gmra.mxu1 %vm469_vm8, %v8143_v55 }
 0x7eb   : > { %1806 = vmatprep.mubr.f32.mxu1 %v11445_v0 }
 0x7ee   : > { %6914 = vmatmul.mubr.msk.f32.gmra.mxu1 %vm469_vm8, %v8151_v57 }
 0x7ef   : > { %2092 = vmatprep.mubr.f32.mxu1 %v11445_v0 }
 0x89e   : > { %v1784_v36 = vpop.f32.mrf.mxu1 }
 0x89f   : > { %v1785_v14 = vadd.f32 %v1784_v36, %v7546_v63 }
 0x8a0   : > { %v1786_v40 = vpop.f32.mrf.mxu1 }
 0x8a1   : > { %v1787_v48 = vadd.f32 %v1786_v40, %v7550_v2  ;;  %v1813_v12 = vmax.f32 %v7552_v3, %v1785_v14 }
 0x8a2   : > { %v1790_v9 = vpop.f32.mrf.mxu1 }
 0x8a3   : > { %v1791_v17 = vadd.f32 %v1790_v9, %v7560_v8  ;;  %v1814_v59 = vmax.f32 %v7552_v3, %v1787_v48 }
 0x8a4   : > { %v1792_v7 = vpop.f32.mrf.mxu1 }
 0x8a5   : > { %v1793_v27 = vadd.f32 %v1792_v7, %v7566_v13  ;;  %v1815_v10 = vmax.f32 %v7552_v3, %v1791_v17 }
 0x8a6   : > { %v1796_v42 = vpop.f32.mrf.mxu1 }
 0x8a7   : > { %v1797_v29 = vadd.f32 %v1796_v42, %v7570_v19  ;;  %v1816_v49 = vmax.f32 %v7552_v3, %v1793_v27 }
 0x8a8   : > { %v1798_v34 = vpop.f32.mrf.mxu1 }
 0x8a9   : > { %v1799_v54 = vadd.f32 %v1798_v34, %v7573_v23  ;;  %v1817_v26 = vmax.f32 %v7552_v3, %v1797_v29  ;;  %v1826_v40 = vmin.f32 %v7558_v6, %v1816_v49  ;;  %v1825_v34 = vmin.f32 %v7558_v6, %v1815_v10 }
 0x8aa   : > { %v1802_v60 = vpop.f32.mrf.mxu1 }
 0x8ab   : > { %v1803_v28 = vadd.f32 %v1802_v60, %v7542_v61  ;;  %v1818_v51 = vmax.f32 %v7552_v3, %v1799_v54  ;;  %v1827_v36 = vmin.f32 %v7558_v6, %v1817_v26  ;;  %v8386_v49 = vsub.f32 %v1793_v27, %v1826_v40 }
 0x8ac   : > { %v1804_v11 = vpop.f32.mrf.mxu1 }
 0x8ad   : > { %v1805_v37 = vadd.f32 %v1804_v11, %v7544_v62  ;;  %v1819_v20 = vmax.f32 %v7552_v3, %v1803_v28  ;;  %v1828_v38 = vmin.f32 %v7558_v6, %v1818_v51  ;;  %v1824_v11 = vmin.f32 %v7558_v6, %v1814_v59 }
 0x8ae   : > { %v1808_v18 = vpop.f32.mrf.mxu1 }
 0x8af   : > { %v1820_v5 = vmax.f32 %v7552_v3, %v1805_v37  ;;  %v1809_v25 = vadd.f32 %v1808_v18, %v7548_v1  ;;  %v1829_v35 = vmin.f32 %v7558_v6, %v1819_v20  ;;  %v8378_v51 = vsub.f32 %v1799_v54, %v1828_v38 }
 0x8b0   : > { %v1810_v53 = vpop.f32.mrf.mxu1  ;;  %v1823_v18 = vmin.f32 %v7558_v6, %v1813_v12  ;;  %v8394_v54 = vsub.f32 %v1791_v17, %v1825_v34  ;;  %v8398_v59 = vsub.f32 %v1787_v48, %v1824_v11  ;;  %v1846_v38 = vsub.f32 %v8386_v49, %v8291_v44 }
 0x8b1   : > { %v1830_v47 = vmin.f32 %v7558_v6, %v1820_v5  ;;  %v1821_v41 = vmax.f32 %v7552_v3, %v1809_v25  ;;  %v1811_v32 = vadd.f32 %v1810_v53, %v7554_v4  ;;  %v8375_v60 = vsub.f32 %v1803_v28, %v1829_v35 }
 0x8b2   : > { %v1848_v27 = vsub.f32 %v8378_v51, %v8283_v39  ;;  %v8404_v35 = vsub.f32 %v1785_v14, %v1823_v18  ;;  %v1844_v39 = vsub.f32 %v8398_v59, %v8303_v58  ;;  %v1856_v44 = vmul.f32 0.743691, %v1846_v38 }
 0x8b3   : > { %v8370_v9 = vsub.f32 %v1805_v37, %v1830_v47  ;;  %v1831_v7 = vmin.f32 %v7558_v6, %v1821_v41  ;;  %v1822_v42 = vmax.f32 %v7552_v3, %v1811_v32  ;;  %v8384_v37 = vsub.f32 %v1797_v29, %v1827_v36 }
 0x8b4   : > { %v1858_v47 = vmul.f32 0.743691, %v1848_v27  ;;  %v1843_v14 = vsub.f32 %v8404_v35, %v8309_v56  ;;  %v1854_v40 = vmul.f32 0.743691, %v1844_v39  ;;  %v1866_v56 = vadd.f32 %v1856_v44, %v8386_v49 }
 0x8b5   : > { %v8380_v20 = vsub.f32 %v1809_v25, %v1831_v7  ;;  %v1832_v26 = vmin.f32 %v7558_v6, %v1822_v42  ;;  %v1850_v28 = vsub.f32 %v8370_v9, %v8275_v43  ;;  %v1849_v25 = vsub.f32 %v8375_v60, %v8280_v52 }
 0x8b6   : > { %v1845_v52 = vsub.f32 %v8394_v54, %v8299_v24  ;;  %v1868_v36 = vadd.f32 %v1858_v47, %v8378_v51  ;;  %v1853_v7 = vmul.f32 0.743691, %v1843_v14  ;;  %v1864_v34 = vadd.f32 %v1854_v40, %v8398_v59 }
 0x8b7   : > { %v1851_v5 = vsub.f32 %v8380_v20, %v8285_v50  ;;  %v8390_v10 = vsub.f32 %v1811_v32, %v1832_v26  ;;  %v1847_v50 = vsub.f32 %v8384_v37, %v8289_v33  ;;  %v1860_v17 = vmul.f32 0.743691, %v1850_v28 }
 0x8b8   : > { %v1859_v48 = vmul.f32 0.743691, %v1849_v25  ;;  %v1855_v12 = vmul.f32 0.743691, %v1845_v52  ;;  %v1863_v11 = vadd.f32 %v1853_v7, %v8404_v35 }
 0x8b9   : > { %v1852_v29 = vsub.f32 %v8390_v10, %v8295_v30  ;;  %v1861_v53 = vmul.f32 0.743691, %v1851_v5  ;;  %v1857_v33 = vmul.f32 0.743691, %v1847_v50  ;;  %v1870_v32 = vadd.f32 %v1860_v17, %v8370_v9 }
 0x8ba   : > { %v1869_v24 = vadd.f32 %v1859_v48, %v8375_v60  ;;  %v1865_v42 = vadd.f32 %v1855_v12, %v8394_v54 }
 0x8bb   : > { %v1862_v43 = vmul.f32 0.743691, %v1852_v29  ;;  %v1871_v41 = vadd.f32 %v1861_v53, %v8380_v20  ;;  %v1867_v58 = vadd.f32 %v1857_v33, %v8384_v37 }
 0x8bd   : > { %v1872_v30 = vadd.f32 %v1862_v43, %v8390_v10 }
 0x8bf   : > { %1895 = vmatprep.subr.mxu0 %v1872_v30 }
 0x8c0   : > { %1896 = vmatpush1.msra.mxu0 %v1871_v41 }
 0x8c1   : > { %1897 = vmatprep.subr.mxu0 %v1870_v32 }
 0x8c2   : > { %1898 = vmatpush1.msra.mxu0 %v1869_v24 }
 0x8c3   : > { %1899 = vmatprep.subr.mxu0 %v1868_v36 }
 0x8c4   : > { %1900 = vmatpush1.msra.mxu0 %v1867_v58 }
 0x8c5   : > { %1901 = vmatprep.subr.mxu0 %v1866_v56 }
 0x8c6   : > { %1902 = vmatpush1.msra.mxu0 %v1865_v42 }
 0x8c7   : > { %1903 = vmatprep.subr.mxu0 %v1864_v34 }
 0x8c8   : > { %1904 = vmatpush1.msra.mxu0 %v1863_v11 }
 0x8c9   : > { %6915 = vmatmul.mubr.msk.f32.vlgmr.msra.gmra.mxu0 %vm469_vm8, %v8119_v22 }
 0x8ca   : > { %1943 = vmatprep.mubr.f32.mxu0 %v11445_v0 }
 0x8cd   : > { %6916 = vmatmul.mubr.msk.f32.gmra.mxu0 %vm469_vm8, %v8127_v21 }
 0x8ce   : > { %1949 = vmatprep.mubr.f32.mxu0 %v11445_v0 }
 0x8d1   : > { %6917 = vmatmul.mubr.msk.f32.gmra.mxu0 %vm469_vm8, %v8135_v31 }
 0x8d2   : > { %1955 = vmatprep.mubr.f32.mxu0 %v11445_v0 }
 0x8d5   : > { %6918 = vmatmul.mubr.msk.f32.gmra.mxu0 %vm469_vm8, %v8143_v55 }
 0x8d6   : > { %1961 = vmatprep.mubr.f32.mxu0 %v11445_v0 }
 0x8d9   : > { %6919 = vmatmul.mubr.msk.f32.gmra.mxu0 %vm469_vm8, %v8151_v57 }
 0x8da   : > { %2247 = vmatprep.mubr.f32.mxu0 %v11445_v0 }
 0x989   : > { %v1939_v26 = vpop.f32.mrf.mxu0 }
 0x98a   : > { %v1940_v39 = vadd.f32 %v1939_v26, %v7546_v63 }
 0x98b   : > { %v1941_v18 = vpop.f32.mrf.mxu0 }
 0x98c   : > { %v1942_v17 = vadd.f32 %v1941_v18, %v7550_v2  ;;  %v1968_v11 = vmax.f32 %v7552_v3, %v1940_v39 }
 0x98d   : > { %v1945_v5 = vpop.f32.mrf.mxu0 }
 0x98e   : > { %v1946_v38 = vadd.f32 %v1945_v5, %v7560_v8  ;;  %v1969_v24 = vmax.f32 %v7552_v3, %v1942_v17 }
 0x98f   : > { %v1947_v28 = vpop.f32.mrf.mxu0 }
 0x990   : > { %v1948_v43 = vadd.f32 %v1947_v28, %v7566_v13  ;;  %v1970_v36 = vmax.f32 %v7552_v3, %v1946_v38 }
 0x991   : > { %v1951_v25 = vpop.f32.mrf.mxu0 }
 0x992   : > { %v1952_v50 = vadd.f32 %v1951_v25, %v7570_v19  ;;  %v1971_v32 = vmax.f32 %v7552_v3, %v1948_v43 }
 0x993   : > { %v1953_v29 = vpop.f32.mrf.mxu0 }
 0x994   : > { %v1954_v27 = vadd.f32 %v1953_v29, %v7573_v23  ;;  %v1972_v14 = vmax.f32 %v7552_v3, %v1952_v50  ;;  %v1981_v18 = vmin.f32 %v7558_v6, %v1971_v32  ;;  %v1980_v29 = vmin.f32 %v7558_v6, %v1970_v36 }
 0x995   : > { %v1957_v53 = vpop.f32.mrf.mxu0 }
 0x996   : > { %v1958_v52 = vadd.f32 %v1957_v53, %v7542_v61  ;;  %v1973_v30 = vmax.f32 %v7552_v3, %v1954_v27  ;;  %v1982_v26 = vmin.f32 %v7558_v6, %v1972_v14  ;;  %v8481_v32 = vsub.f32 %v1948_v43, %v1981_v18 }
 0x997   : > { %v1959_v48 = vpop.f32.mrf.mxu0 }
 0x998   : > { %v1960_v47 = vadd.f32 %v1959_v48, %v7544_v62  ;;  %v1974_v33 = vmax.f32 %v7552_v3, %v1958_v52  ;;  %v1983_v58 = vmin.f32 %v7558_v6, %v1973_v30  ;;  %v1979_v48 = vmin.f32 %v7558_v6, %v1969_v24 }
 0x999   : > { %v1963_v41 = vpop.f32.mrf.mxu0 }
 0x99a   : > { %v1975_v44 = vmax.f32 %v7552_v3, %v1960_v47  ;;  %v1964_v12 = vadd.f32 %v1963_v41, %v7548_v1  ;;  %v1984_v40 = vmin.f32 %v7558_v6, %v1974_v33  ;;  %v8473_v30 = vsub.f32 %v1954_v27, %v1983_v58 }
 0x99b   : > { %v1965_v7 = vpop.f32.mrf.mxu0  ;;  %v1978_v41 = vmin.f32 %v7558_v6, %v1968_v11  ;;  %v8489_v27 = vsub.f32 %v1946_v38, %v1980_v29  ;;  %v8493_v24 = vsub.f32 %v1942_v17, %v1979_v48  ;;  %v2001_v58 = vsub.f32 %v8481_v32, %v8386_v49 }
 0x99c   : > { %v1985_v56 = vmin.f32 %v7558_v6, %v1975_v44  ;;  %v1976_v42 = vmax.f32 %v7552_v3, %v1964_v12  ;;  %v1966_v34 = vadd.f32 %v1965_v7, %v7554_v4  ;;  %v8470_v53 = vsub.f32 %v1958_v52, %v1984_v40 }
 0x99d   : > { %v2003_v43 = vsub.f32 %v8473_v30, %v8378_v51  ;;  %v8499_v40 = vsub.f32 %v1940_v39, %v1978_v41  ;;  %v1999_v51 = vsub.f32 %v8493_v24, %v8398_v59  ;;  %v2011_v49 = vmul.f32 0.7646647, %v2001_v58 }
 0x99e   : > { %v8465_v5 = vsub.f32 %v1960_v47, %v1985_v56  ;;  %v1986_v28 = vmin.f32 %v7558_v6, %v1976_v42  ;;  %v1977_v25 = vmax.f32 %v7552_v3, %v1966_v34  ;;  %v8479_v47 = vsub.f32 %v1952_v50, %v1982_v26 }
 0x99f   : > { %v2013_v56 = vmul.f32 0.7646647, %v2003_v43  ;;  %v1998_v39 = vsub.f32 %v8499_v40, %v8404_v35  ;;  %v2009_v18 = vmul.f32 0.7646647, %v1999_v51  ;;  %v2021_v35 = vadd.f32 %v2011_v49, %v8481_v32 }
 0x9a0   : > { %v8475_v33 = vsub.f32 %v1964_v12, %v1986_v28  ;;  %v1987_v14 = vmin.f32 %v7558_v6, %v1977_v25  ;;  %v2005_v52 = vsub.f32 %v8465_v5, %v8370_v9  ;;  %v2004_v12 = vsub.f32 %v8470_v53, %v8375_v60 }
 0x9a1   : > { %v2000_v60 = vsub.f32 %v8489_v27, %v8394_v54  ;;  %v2023_v26 = vadd.f32 %v2013_v56, %v8473_v30  ;;  %v2008_v28 = vmul.f32 0.7646647, %v1998_v39  ;;  %v2019_v29 = vadd.f32 %v2009_v18, %v8493_v24 }
 0x9a2   : > { %v2006_v44 = vsub.f32 %v8475_v33, %v8380_v20  ;;  %v8485_v36 = vsub.f32 %v1966_v34, %v1987_v14  ;;  %v2002_v20 = vsub.f32 %v8479_v47, %v8384_v37  ;;  %v2015_v38 = vmul.f32 0.7646647, %v2005_v52 }
 0x9a3   : > { %v2014_v17 = vmul.f32 0.7646647, %v2004_v12  ;;  %v2010_v11 = vmul.f32 0.7646647, %v2000_v60  ;;  %v2018_v48 = vadd.f32 %v2008_v28, %v8499_v40 }
 0x9a4   : > { %v2007_v50 = vsub.f32 %v8485_v36, %v8390_v10  ;;  %v2016_v7 = vmul.f32 0.7646647, %v2006_v44  ;;  %v2012_v37 = vmul.f32 0.7646647, %v2002_v20  ;;  %v2025_v34 = vadd.f32 %v2015_v38, %v8465_v5 }
 0x9a5   : > { %v2024_v54 = vadd.f32 %v2014_v17, %v8470_v53  ;;  %v2020_v25 = vadd.f32 %v2010_v11, %v8489_v27 }
 0x9a6   : > { %v2017_v9 = vmul.f32 0.7646647, %v2007_v50  ;;  %v2026_v42 = vadd.f32 %v2016_v7, %v8475_v33  ;;  %v2022_v59 = vadd.f32 %v2012_v37, %v8479_v47 }
 0x9a8   : > { %v2027_v10 = vadd.f32 %v2017_v9, %v8485_v36 }
 0x9aa   : > { %2050 = vmatprep.subr.mxu1 %v2027_v10 }
 0x9ab   : > { %2051 = vmatpush1.msra.mxu1 %v2026_v42 }
 0x9ac   : > { %2052 = vmatprep.subr.mxu1 %v2025_v34 }
 0x9ad   : > { %2053 = vmatpush1.msra.mxu1 %v2024_v54 }
 0x9ae   : > { %2054 = vmatprep.subr.mxu1 %v2023_v26 }
 0x9af   : > { %2055 = vmatpush1.msra.mxu1 %v2022_v59 }
 0x9b0   : > { %2056 = vmatprep.subr.mxu1 %v2021_v35 }
 0x9b1   : > { %2057 = vmatpush1.msra.mxu1 %v2020_v25 }
 0x9b2   : > { %2058 = vmatprep.subr.mxu1 %v2019_v29 }
 0x9b3   : > { %2059 = vmatpush1.msra.mxu1 %v2018_v48 }
 0x9b4   : > { %6920 = vmatmul.mubr.msk.f32.vlgmr.msra.gmra.mxu1 %vm469_vm8, %v8119_v22 }
 0x9b5   : > { %2098 = vmatprep.mubr.f32.mxu1 %v11445_v0 }
 0x9b8   : > { %6921 = vmatmul.mubr.msk.f32.gmra.mxu1 %vm469_vm8, %v8127_v21 }
 0x9b9   : > { %2104 = vmatprep.mubr.f32.mxu1 %v11445_v0 }
 0x9bc   : > { %6922 = vmatmul.mubr.msk.f32.gmra.mxu1 %vm469_vm8, %v8135_v31 }
 0x9bd   : > { %2110 = vmatprep.mubr.f32.mxu1 %v11445_v0 }
 0x9c0   : > { %6923 = vmatmul.mubr.msk.f32.gmra.mxu1 %vm469_vm8, %v8143_v55 }
 0x9c1   : > { %2116 = vmatprep.mubr.f32.mxu1 %v11445_v0 }
 0x9c4   : > { %6924 = vmatmul.mubr.msk.f32.gmra.mxu1 %vm469_vm8, %v8151_v57 }
 0x9c5   : > { %2402 = vmatprep.mubr.f32.mxu1 %v11445_v0 }
 0xa74   : > { %v2094_v14 = vpop.f32.mrf.mxu1 }
 0xa75   : > { %v2095_v51 = vadd.f32 %v2094_v14, %v7546_v63 }
 0xa76   : > { %v2096_v41 = vpop.f32.mrf.mxu1 }
 0xa77   : > { %v2097_v38 = vadd.f32 %v2096_v41, %v7550_v2  ;;  %v2123_v48 = vmax.f32 %v7552_v3, %v2095_v51 }
 0xa78   : > { %v2100_v44 = vpop.f32.mrf.mxu1 }
 0xa79   : > { %v2101_v58 = vadd.f32 %v2100_v44, %v7560_v8  ;;  %v2124_v54 = vmax.f32 %v7552_v3, %v2097_v38 }
 0xa7a   : > { %v2102_v52 = vpop.f32.mrf.mxu1 }
 0xa7b   : > { %v2103_v9 = vadd.f32 %v2102_v52, %v7566_v13  ;;  %v2125_v26 = vmax.f32 %v7552_v3, %v2101_v58 }
 0xa7c   : > { %v2106_v12 = vpop.f32.mrf.mxu1 }
 0xa7d   : > { %v2107_v20 = vadd.f32 %v2106_v12, %v7570_v19  ;;  %v2126_v34 = vmax.f32 %v7552_v3, %v2103_v9 }
 0xa7e   : > { %v2108_v50 = vpop.f32.mrf.mxu1 }
 0xa7f   : > { %v2109_v43 = vadd.f32 %v2108_v50, %v7573_v23  ;;  %v2127_v39 = vmax.f32 %v7552_v3, %v2107_v20  ;;  %v2136_v41 = vmin.f32 %v7558_v6, %v2126_v34  ;;  %v2135_v50 = vmin.f32 %v7558_v6, %v2125_v26 }
 0xa80   : > { %v2112_v7 = vpop.f32.mrf.mxu1 }
 0xa81   : > { %v2113_v60 = vadd.f32 %v2112_v7, %v7542_v61  ;;  %v2128_v10 = vmax.f32 %v7552_v3, %v2109_v43  ;;  %v2137_v14 = vmin.f32 %v7558_v6, %v2127_v39  ;;  %v8576_v34 = vsub.f32 %v2103_v9, %v2136_v41 }
 0xa82   : > { %v2114_v17 = vpop.f32.mrf.mxu1 }
 0xa83   : > { %v2115_v56 = vadd.f32 %v2114_v17, %v7544_v62  ;;  %v2129_v37 = vmax.f32 %v7552_v3, %v2113_v60  ;;  %v2138_v59 = vmin.f32 %v7558_v6, %v2128_v10  ;;  %v2134_v17 = vmin.f32 %v7558_v6, %v2124_v54 }
 0xa84   : > { %v2118_v42 = vpop.f32.mrf.mxu1 }
 0xa85   : > { %v2130_v49 = vmax.f32 %v7552_v3, %v2115_v56  ;;  %v2119_v11 = vadd.f32 %v2118_v42, %v7548_v1  ;;  %v2139_v18 = vmin.f32 %v7558_v6, %v2129_v37  ;;  %v8568_v10 = vsub.f32 %v2109_v43, %v2138_v59 }
 0xa86   : > { %v2120_v28 = vpop.f32.mrf.mxu1  ;;  %v2133_v42 = vmin.f32 %v7558_v6, %v2123_v48  ;;  %v8584_v43 = vsub.f32 %v2101_v58, %v2135_v50  ;;  %v8588_v54 = vsub.f32 %v2097_v38, %v2134_v17  ;;  %v2156_v59 = vsub.f32 %v8576_v34, %v8481_v32 }
 0xa87   : > { %v2140_v35 = vmin.f32 %v7558_v6, %v2130_v49  ;;  %v2131_v25 = vmax.f32 %v7552_v3, %v2119_v11  ;;  %v2121_v29 = vadd.f32 %v2120_v28, %v7554_v4  ;;  %v8565_v7 = vsub.f32 %v2113_v60, %v2139_v18 }
 0xa88   : > { %v2158_v9 = vsub.f32 %v8568_v10, %v8473_v30  ;;  %v8594_v18 = vsub.f32 %v2095_v51, %v2133_v42  ;;  %v2154_v30 = vsub.f32 %v8588_v54, %v8493_v24  ;;  %v2166_v32 = vmul.f32 0.78240925, %v2156_v59 }
 0xa89   : > { %v8560_v44 = vsub.f32 %v2115_v56, %v2140_v35  ;;  %v2141_v52 = vmin.f32 %v7558_v6, %v2131_v25  ;;  %v2132_v12 = vmax.f32 %v7552_v3, %v2121_v29  ;;  %v8574_v56 = vsub.f32 %v2107_v20, %v2137_v14 }
 0xa8a   : > { %v2168_v35 = vmul.f32 0.78240925, %v2158_v9  ;;  %v2153_v51 = vsub.f32 %v8594_v18, %v8499_v40  ;;  %v2164_v41 = vmul.f32 0.78240925, %v2154_v30  ;;  %v2176_v40 = vadd.f32 %v2166_v32, %v8576_v34 }
 0xa8b   : > { %v8570_v37 = vsub.f32 %v2119_v11, %v2141_v52  ;;  %v2142_v39 = vmin.f32 %v7558_v6, %v2132_v12  ;;  %v2160_v60 = vsub.f32 %v8560_v44, %v8465_v5  ;;  %v2159_v11 = vsub.f32 %v8565_v7, %v8470_v53 }
 0xa8c   : > { %v2155_v53 = vsub.f32 %v8584_v43, %v8489_v27  ;;  %v2178_v14 = vadd.f32 %v2168_v35, %v8568_v10  ;;  %v2163_v52 = vmul.f32 0.78240925, %v2153_v51  ;;  %v2174_v50 = vadd.f32 %v2164_v41, %v8588_v54 }
 0xa8d   : > { %v2161_v49 = vsub.f32 %v8570_v37, %v8475_v33  ;;  %v8580_v26 = vsub.f32 %v2121_v29, %v2142_v39  ;;  %v2157_v33 = vsub.f32 %v8574_v56, %v8479_v47  ;;  %v2170_v58 = vmul.f32 0.78240925, %v2160_v60 }
 0xa8e   : > { %v2169_v38 = vmul.f32 0.78240925, %v2159_v11  ;;  %v2165_v48 = vmul.f32 0.78240925, %v2155_v53  ;;  %v2173_v17 = vadd.f32 %v2163_v52, %v8594_v18 }
 0xa8f   : > { %v2162_v20 = vsub.f32 %v8580_v26, %v8485_v36  ;;  %v2171_v28 = vmul.f32 0.78240925, %v2161_v49  ;;  %v2167_v47 = vmul.f32 0.78240925, %v2157_v33  ;;  %v2180_v29 = vadd.f32 %v2170_v58, %v8560_v44 }
 0xa90   : > { %v2179_v27 = vadd.f32 %v2169_v38, %v8565_v7  ;;  %v2175_v12 = vadd.f32 %v2165_v48, %v8584_v43 }
 0xa91   : > { %v2172_v5 = vmul.f32 0.78240925, %v2162_v20  ;;  %v2181_v25 = vadd.f32 %v2171_v28, %v8570_v37  ;;  %v2177_v24 = vadd.f32 %v2167_v47, %v8574_v56 }
 0xa93   : > { %v2182_v36 = vadd.f32 %v2172_v5, %v8580_v26 }
 0xa95   : > { %2205 = vmatprep.subr.mxu0 %v2182_v36 }
 0xa96   : > { %2206 = vmatpush1.msra.mxu0 %v2181_v25 }
 0xa97   : > { %2207 = vmatprep.subr.mxu0 %v2180_v29 }
 0xa98   : > { %2208 = vmatpush1.msra.mxu0 %v2179_v27 }
 0xa99   : > { %2209 = vmatprep.subr.mxu0 %v2178_v14 }
 0xa9a   : > { %2210 = vmatpush1.msra.mxu0 %v2177_v24 }
 0xa9b   : > { %2211 = vmatprep.subr.mxu0 %v2176_v40 }
 0xa9c   : > { %2212 = vmatpush1.msra.mxu0 %v2175_v12 }
 0xa9d   : > { %2213 = vmatprep.subr.mxu0 %v2174_v50 }
 0xa9e   : > { %2214 = vmatpush1.msra.mxu0 %v2173_v17 }
 0xa9f   : > { %6925 = vmatmul.mubr.msk.f32.vlgmr.msra.gmra.mxu0 %vm469_vm8, %v8119_v22 }
 0xaa0   : > { %2253 = vmatprep.mubr.f32.mxu0 %v11445_v0 }
 0xaa3   : > { %6926 = vmatmul.mubr.msk.f32.gmra.mxu0 %vm469_vm8, %v8127_v21 }
 0xaa4   : > { %2259 = vmatprep.mubr.f32.mxu0 %v11445_v0 }
 0xaa7   : > { %6927 = vmatmul.mubr.msk.f32.gmra.mxu0 %vm469_vm8, %v8135_v31 }
 0xaa8   : > { %2265 = vmatprep.mubr.f32.mxu0 %v11445_v0 }
 0xaab   : > { %6928 = vmatmul.mubr.msk.f32.gmra.mxu0 %vm469_vm8, %v8143_v55 }
 0xaac   : > { %2271 = vmatprep.mubr.f32.mxu0 %v11445_v0 }
 0xaaf   : > { %6929 = vmatmul.mubr.msk.f32.gmra.mxu0 %vm469_vm8, %v8151_v57 }
 0xab0   : > { %2557 = vmatprep.mubr.f32.mxu0 %v11445_v0 }
 0xb5f   : > { %v2249_v22 = vpop.f32.mrf.mxu0 }
 0xb60   : > { %v2250_v59 = vadd.f32 %v2249_v22, %v7546_v63 }
 0xb61   : > { %v2251_v39 = vpop.f32.mrf.mxu0 }
 0xb62   : > { %v2252_v9 = vadd.f32 %v2251_v39, %v7550_v2  ;;  %v2278_v52 = vmax.f32 %v7552_v3, %v2250_v59 }
 0xb63   : > { %v2255_v21 = vpop.f32.mrf.mxu0 }
 0xb64   : > { %v2256_v33 = vadd.f32 %v2255_v21, %v7560_v8  ;;  %v2279_v47 = vmax.f32 %v7552_v3, %v2252_v9 }
 0xb65   : > { %v2257_v42 = vpop.f32.mrf.mxu0 }
 0xb66   : > { %v2258_v55 = vadd.f32 %v2257_v42, %v7566_v13  ;;  %v2280_v25 = vmax.f32 %v7552_v3, %v2256_v33  ;;  %v2289_v21 = vmin.f32 %v7558_v6, %v2279_v47 }
 0xb67   : > { %v2261_v49 = vpop.f32.mrf.mxu0 }
 0xb68   : > { %v2262_v11 = vadd.f32 %v2261_v49, %v7570_v19  ;;  %v2281_v35 = vmax.f32 %v7552_v3, %v2258_v55  ;;  %v2290_v22 = vmin.f32 %v7558_v6, %v2280_v25 }
 0xb69   : > { %v2263_v60 = vpop.f32.mrf.mxu0 }
 0xb6a   : > { %v2264_v31 = vadd.f32 %v2263_v60, %v7573_v23  ;;  %v2282_v53 = vmax.f32 %v7552_v3, %v2262_v11  ;;  %v2291_v40 = vmin.f32 %v7558_v6, %v2281_v35 }
 0xb6b   : > { %v2267_v20 = vpop.f32.mrf.mxu0 }
 0xb6c   : > { %v2268_v57 = vadd.f32 %v2267_v20, %v7542_v61  ;;  %v2283_v5 = vmax.f32 %v7552_v3, %v2264_v31  ;;  %v2292_v24 = vmin.f32 %v7558_v6, %v2282_v53  ;;  %v2288_v20 = vmin.f32 %v7558_v6, %v2278_v52 }
 0xb6d   : > { %v2269_v28 = vpop.f32.mrf.mxu0 }
 0xb6e   : > { %v2270_v58 = vadd.f32 %v2269_v28, %v7544_v62  ;;  %v2284_v38 = vmax.f32 %v7552_v3, %v2268_v57  ;;  %v2293_v48 = vmin.f32 %v7558_v6, %v2283_v5  ;;  %v8669_v28 = vsub.f32 %v2262_v11, %v2292_v24 }
 0xb6f   : > { %v2273_v36 = vpop.f32.mrf.mxu0  ;;  %v8671_v5 = vsub.f32 %v2258_v55, %v2291_v40  ;;  %v8689_v35 = vsub.f32 %v2250_v59, %v2288_v20  ;;  %v8714_v40 = vld [vmem:[%s11440_s1] sm:$0xff] }
 0xb70   : > { %v2285_v30 = vmax.f32 %v7552_v3, %v2270_v58  ;;  %v2274_v51 = vadd.f32 %v2273_v36, %v7548_v1  ;;  %v2294_v29 = vmin.f32 %v7558_v6, %v2284_v38  ;;  %v8663_v42 = vsub.f32 %v2264_v31, %v2293_v48 }
 0xb71   : > { %v2275_v32 = vpop.f32.mrf.mxu0  ;;  %v8679_v31 = vsub.f32 %v2256_v33, %v2290_v22  ;;  %v8683_v36 = vsub.f32 %v2252_v9, %v2289_v21  ;;  %v2308_v59 = vsub.f32 %v8689_v35, %v8594_v18  ;;  %v8738_v22 = vld [vmem:[%s11440_s1 + $0x18] sm:$0xff]  ;;  %v8746_v21 = vld [vmem:[%s11440_s1 + $0x20] sm:$0xff] }
 0xb72   : > { %v2295_v27 = vmin.f32 %v7558_v6, %v2285_v30  ;;  %v2286_v14 = vmax.f32 %v7552_v3, %v2274_v51  ;;  %v2276_v41 = vadd.f32 %v2275_v32, %v7554_v4  ;;  %v8660_v39 = vsub.f32 %v2268_v57, %v2294_v29 }
 0xb73   : > { %v2313_v55 = vsub.f32 %v8663_v42, %v8568_v10  ;;  %v2309_v10 = vsub.f32 %v8683_v36, %v8588_v54 }
 0xb74   : > { %v8655_v12 = vsub.f32 %v2270_v58, %v2295_v27  ;;  %v2296_v50 = vmin.f32 %v7558_v6, %v2286_v14  ;;  %v2287_v17 = vmax.f32 %v7552_v3, %v2276_v41  ;;  %v2314_v38 = vsub.f32 %v8660_v39, %v8565_v7 }
 0xb75   : > { %v2310_v7 = vsub.f32 %v8679_v31, %v8584_v43  ;;  %v2323_v47 = vmul.f32 0.7976244, %v2313_v55  ;;  %v2319_v27 = vmul.f32 0.7976244, %v2309_v10  ;;  %v2318_v14 = vmul.f32 0.7976244, %v2308_v59 }
 0xb76   : > { %v8665_v49 = vsub.f32 %v2274_v51, %v2296_v50  ;;  %v2297_v60 = vmin.f32 %v7558_v6, %v2287_v17  ;;  %v2315_v57 = vsub.f32 %v8655_v12, %v8560_v44  ;;  %v2311_v51 = vsub.f32 %v8671_v5, %v8576_v34  ;;  %v8722_v50 = vld [vmem:[%s11440_s1 + $0x8] sm:$0xff]  ;;  %v8730_v17 = vld [vmem:[%s11440_s1 + $0x10] sm:$0xff] }
 0xb77   : > { %v2324_v9 = vmul.f32 0.7976244, %v2314_v38  ;;  %v2320_v32 = vmul.f32 0.7976244, %v2310_v7  ;;  %v2333_v48 = vadd.f32 %v2323_v47, %v8663_v42  ;;  %v2329_v52 = vadd.f32 %v2319_v27, %v8683_v36 }
 0xb78   : > { %v2316_v58 = vsub.f32 %v8665_v49, %v8570_v37  ;;  %v8675_v53 = vsub.f32 %v2276_v41, %v2297_v60  ;;  %v2312_v37 = vsub.f32 %v8669_v28, %v8574_v56  ;;  %v2325_v33 = vmul.f32 0.7976244, %v2315_v57 }
 0xb79   : > { %v2321_v34 = vmul.f32 0.7976244, %v2311_v51  ;;  %v2334_v43 = vadd.f32 %v2324_v9, %v8660_v39  ;;  %v2330_v41 = vadd.f32 %v2320_v32, %v8679_v31  ;;  %v2328_v24 = vadd.f32 %v2318_v14, %v8689_v35 }
 0xb7a   : > { %v2317_v11 = vsub.f32 %v8675_v53, %v8580_v26  ;;  %v2326_v30 = vmul.f32 0.7976244, %v2316_v58  ;;  %v2322_v56 = vmul.f32 0.7976244, %v2312_v37  ;;  %v2335_v29 = vadd.f32 %v2325_v33, %v8655_v12 }
 0xb7b   : > { %v2331_v18 = vadd.f32 %v2321_v34, %v8671_v5 }
 0xb7c   : > { %v2327_v44 = vmul.f32 0.7976244, %v2317_v11  ;;  %v2336_v25 = vadd.f32 %v2326_v30, %v8665_v49  ;;  %v2332_v54 = vadd.f32 %v2322_v56, %v8669_v28 }
 0xb7e   : > { %v2337_v26 = vadd.f32 %v2327_v44, %v8675_v53 }
 0xb80   : > { %2360 = vmatprep.subr.mxu1 %v2337_v26 }
 0xb81   : > { %2361 = vmatpush1.msra.mxu1 %v2336_v25 }
 0xb82   : > { %2362 = vmatprep.subr.mxu1 %v2335_v29 }
 0xb83   : > { %2363 = vmatpush1.msra.mxu1 %v2334_v43 }
 0xb84   : > { %2364 = vmatprep.subr.mxu1 %v2333_v48 }
 0xb85   : > { %2365 = vmatpush1.msra.mxu1 %v2332_v54 }
 0xb86   : > { %2366 = vmatprep.subr.mxu1 %v2331_v18 }
 0xb87   : > { %2367 = vmatpush1.msra.mxu1 %v2330_v41 }
 0xb88   : > { %2368 = vmatprep.subr.mxu1 %v2329_v52 }
 0xb89   : > { %2369 = vmatpush1.msra.mxu1 %v2328_v24 }
 0xb8a   : > { %6930 = vmatmul.mubr.msk.f32.vlgmr.msra.gmra.mxu1 %vm469_vm8, %v8714_v40 }
 0xb8b   : > { %2408 = vmatprep.mubr.f32.mxu1 %v11445_v0 }
 0xb8e   : > { %6931 = vmatmul.mubr.msk.f32.gmra.mxu1 %vm469_vm8, %v8722_v50 }
 0xb8f   : > { %2414 = vmatprep.mubr.f32.mxu1 %v11445_v0 }
 0xb92   : > { %6932 = vmatmul.mubr.msk.f32.gmra.mxu1 %vm469_vm8, %v8730_v17 }
 0xb93   : > { %2420 = vmatprep.mubr.f32.mxu1 %v11445_v0 }
 0xb96   : > { %6933 = vmatmul.mubr.msk.f32.gmra.mxu1 %vm469_vm8, %v8738_v22 }
 0xb97   : > { %2426 = vmatprep.mubr.f32.mxu1 %v11445_v0 }
 0xb9a   : > { %6934 = vmatmul.mubr.msk.f32.gmra.mxu1 %vm469_vm8, %v8746_v21 }
 0xb9b   : > { %2712 = vmatprep.mubr.f32.mxu1 %v11445_v0 }
 0xc4a   : > { %v2404_v60 = vpop.f32.mrf.mxu1 }
 0xc4b   : > { %v2405_v10 = vadd.f32 %v2404_v60, %v7546_v63 }
 0xc4c   : > { %v2406_v20 = vpop.f32.mrf.mxu1 }
 0xc4d   : > { %v2407_v33 = vadd.f32 %v2406_v20, %v7550_v2  ;;  %v2433_v24 = vmax.f32 %v7552_v3, %v2405_v10 }
 0xc4e   : > { %v2410_v58 = vpop.f32.mrf.mxu1 }
 0xc4f   : > { %v2411_v51 = vadd.f32 %v2410_v58, %v7560_v8  ;;  %v2434_v43 = vmax.f32 %v7552_v3, %v2407_v33 }
 0xc50   : > { %v2412_v57 = vpop.f32.mrf.mxu1 }
 0xc51   : > { %v2413_v44 = vadd.f32 %v2412_v57, %v7566_v13  ;;  %v2435_v48 = vmax.f32 %v7552_v3, %v2411_v51 }
 0xc52   : > { %v2416_v38 = vpop.f32.mrf.mxu1 }
 0xc53   : > { %v2417_v37 = vadd.f32 %v2416_v38, %v7570_v19  ;;  %v2436_v29 = vmax.f32 %v7552_v3, %v2413_v44 }
 0xc54   : > { %v2418_v11 = vpop.f32.mrf.mxu1 }
 0xc55   : > { %v2419_v55 = vadd.f32 %v2418_v11, %v7573_v23  ;;  %v2437_v59 = vmax.f32 %v7552_v3, %v2417_v37  ;;  %v2446_v20 = vmin.f32 %v7558_v6, %v2436_v29  ;;  %v2445_v11 = vmin.f32 %v7558_v6, %v2435_v48 }
 0xc56   : > { %v2422_v30 = vpop.f32.mrf.mxu1 }
 0xc57   : > { %v2423_v7 = vadd.f32 %v2422_v30, %v7542_v61  ;;  %v2438_v26 = vmax.f32 %v7552_v3, %v2419_v55  ;;  %v2447_v60 = vmin.f32 %v7558_v6, %v2437_v59  ;;  %v8791_v29 = vsub.f32 %v2413_v44, %v2446_v20 }
 0xc58   : > { %v2424_v9 = vpop.f32.mrf.mxu1 }
 0xc59   : > { %v2425_v47 = vadd.f32 %v2424_v9, %v7544_v62  ;;  %v2439_v56 = vmax.f32 %v7552_v3, %v2423_v7  ;;  %v2448_v54 = vmin.f32 %v7558_v6, %v2438_v26  ;;  %v2444_v9 = vmin.f32 %v7558_v6, %v2434_v43 }
 0xc5a   : > { %v2428_v25 = vpop.f32.mrf.mxu1 }
 0xc5b   : > { %v2440_v34 = vmax.f32 %v7552_v3, %v2425_v47  ;;  %v2429_v32 = vadd.f32 %v2428_v25, %v7548_v1  ;;  %v2449_v27 = vmin.f32 %v7558_v6, %v2439_v56  ;;  %v8783_v26 = vsub.f32 %v2419_v55, %v2448_v54 }
 0xc5c   : > { %v2430_v14 = vpop.f32.mrf.mxu1  ;;  %v2443_v25 = vmin.f32 %v7558_v6, %v2433_v24  ;;  %v8799_v55 = vsub.f32 %v2411_v51, %v2445_v11  ;;  %v8803_v43 = vsub.f32 %v2407_v33, %v2444_v9  ;;  %v2466_v54 = vsub.f32 %v8791_v29, %v8671_v5 }
 0xc5d   : > { %v2450_v18 = vmin.f32 %v7558_v6, %v2440_v34  ;;  %v2441_v41 = vmax.f32 %v7552_v3, %v2429_v32  ;;  %v2431_v52 = vadd.f32 %v2430_v14, %v7554_v4  ;;  %v8780_v30 = vsub.f32 %v2423_v7, %v2449_v27 }
 0xc5e   : > { %v2468_v44 = vsub.f32 %v8783_v26, %v8663_v42  ;;  %v8809_v27 = vsub.f32 %v2405_v10, %v2443_v25  ;;  %v2464_v42 = vsub.f32 %v8803_v43, %v8683_v36  ;;  %v2476_v5 = vmul.f32 0.81082, %v2466_v54 }
 0xc5f   : > { %v8775_v58 = vsub.f32 %v2425_v47, %v2450_v18  ;;  %v2451_v57 = vmin.f32 %v7558_v6, %v2441_v41  ;;  %v2442_v38 = vmax.f32 %v7552_v3, %v2431_v52  ;;  %v8789_v47 = vsub.f32 %v2417_v37, %v2447_v60 }
 0xc60   : > { %v2478_v18 = vmul.f32 0.81082, %v2468_v44  ;;  %v2463_v10 = vsub.f32 %v8809_v27, %v8689_v35  ;;  %v2474_v20 = vmul.f32 0.81082, %v2464_v42  ;;  %v2486_v35 = vadd.f32 %v2476_v5, %v8791_v29 }
 0xc61   : > { %v8785_v56 = vsub.f32 %v2429_v32, %v2451_v57  ;;  %v2452_v59 = vmin.f32 %v7558_v6, %v2442_v38  ;;  %v2470_v7 = vsub.f32 %v8775_v58, %v8655_v12  ;;  %v2469_v32 = vsub.f32 %v8780_v30, %v8660_v39 }
 0xc62   : > { %v2465_v39 = vsub.f32 %v8799_v55, %v8679_v31  ;;  %v2488_v60 = vadd.f32 %v2478_v18, %v8783_v26  ;;  %v2473_v57 = vmul.f32 0.81082, %v2463_v10  ;;  %v2484_v11 = vadd.f32 %v2474_v20, %v8803_v43 }
 0xc63   : > { %v2471_v34 = vsub.f32 %v8785_v56, %v8665_v49  ;;  %v8795_v48 = vsub.f32 %v2431_v52, %v2452_v59  ;;  %v2467_v49 = vsub.f32 %v8789_v47, %v8669_v28  ;;  %v2480_v51 = vmul.f32 0.81082, %v2470_v7 }
 0xc64   : > { %v2479_v33 = vmul.f32 0.81082, %v2469_v32  ;;  %v2475_v24 = vmul.f32 0.81082, %v2465_v39  ;;  %v2483_v9 = vadd.f32 %v2473_v57, %v8809_v27 }
 0xc65   : > { %v2472_v37 = vsub.f32 %v8795_v48, %v8675_v53  ;;  %v2481_v14 = vmul.f32 0.81082, %v2471_v34  ;;  %v2477_v28 = vmul.f32 0.81082, %v2467_v49  ;;  %v2490_v52 = vadd.f32 %v2480_v51, %v8775_v58 }
 0xc66   : > { %v2489_v31 = vadd.f32 %v2479_v33, %v8780_v30  ;;  %v2485_v38 = vadd.f32 %v2475_v24, %v8799_v55 }
 0xc67   : > { %v2482_v12 = vmul.f32 0.81082, %v2472_v37  ;;  %v2491_v41 = vadd.f32 %v2481_v14, %v8785_v56  ;;  %v2487_v36 = vadd.f32 %v2477_v28, %v8789_v47 }
 0xc69   : > { %v2492_v53 = vadd.f32 %v2482_v12, %v8795_v48 }
 0xc6b   : > { %2515 = vmatprep.subr.mxu0 %v2492_v53 }
 0xc6c   : > { %2516 = vmatpush1.msra.mxu0 %v2491_v41 }
 0xc6d   : > { %2517 = vmatprep.subr.mxu0 %v2490_v52 }
 0xc6e   : > { %2518 = vmatpush1.msra.mxu0 %v2489_v31 }
 0xc6f   : > { %2519 = vmatprep.subr.mxu0 %v2488_v60 }
 0xc70   : > { %2520 = vmatpush1.msra.mxu0 %v2487_v36 }
 0xc71   : > { %2521 = vmatprep.subr.mxu0 %v2486_v35 }
 0xc72   : > { %2522 = vmatpush1.msra.mxu0 %v2485_v38 }
 0xc73   : > { %2523 = vmatprep.subr.mxu0 %v2484_v11 }
 0xc74   : > { %2524 = vmatpush1.msra.mxu0 %v2483_v9 }
 0xc75   : > { %6935 = vmatmul.mubr.msk.f32.vlgmr.msra.gmra.mxu0 %vm469_vm8, %v8714_v40 }
 0xc76   : > { %2563 = vmatprep.mubr.f32.mxu0 %v11445_v0 }
 0xc79   : > { %6936 = vmatmul.mubr.msk.f32.gmra.mxu0 %vm469_vm8, %v8722_v50 }
 0xc7a   : > { %2569 = vmatprep.mubr.f32.mxu0 %v11445_v0 }
 0xc7d   : > { %6937 = vmatmul.mubr.msk.f32.gmra.mxu0 %vm469_vm8, %v8730_v17 }
 0xc7e   : > { %2575 = vmatprep.mubr.f32.mxu0 %v11445_v0 }
 0xc81   : > { %6938 = vmatmul.mubr.msk.f32.gmra.mxu0 %vm469_vm8, %v8738_v22 }
 0xc82   : > { %2581 = vmatprep.mubr.f32.mxu0 %v11445_v0 }
 0xc85   : > { %6939 = vmatmul.mubr.msk.f32.gmra.mxu0 %vm469_vm8, %v8746_v21 }
 0xc86   : > { %2867 = vmatprep.mubr.f32.mxu0 %v11445_v0 }
 0xd35   : > { %v2559_v59 = vpop.f32.mrf.mxu0 }
 0xd36   : > { %v2560_v42 = vadd.f32 %v2559_v59, %v7546_v63 }
 0xd37   : > { %v2561_v25 = vpop.f32.mrf.mxu0 }
 0xd38   : > { %v2562_v51 = vadd.f32 %v2561_v25, %v7550_v2  ;;  %v2588_v9 = vmax.f32 %v7552_v3, %v2560_v42 }
 0xd39   : > { %v2565_v34 = vpop.f32.mrf.mxu0 }
 0xd3a   : > { %v2566_v54 = vadd.f32 %v2565_v34, %v7560_v8  ;;  %v2589_v31 = vmax.f32 %v7552_v3, %v2562_v51 }
 0xd3b   : > { %v2567_v7 = vpop.f32.mrf.mxu0 }
 0xd3c   : > { %v2568_v12 = vadd.f32 %v2567_v7, %v7566_v13  ;;  %v2590_v60 = vmax.f32 %v7552_v3, %v2566_v54 }
 0xd3d   : > { %v2571_v32 = vpop.f32.mrf.mxu0 }
 0xd3e   : > { %v2572_v49 = vadd.f32 %v2571_v32, %v7570_v19  ;;  %v2591_v52 = vmax.f32 %v7552_v3, %v2568_v12 }
 0xd3f   : > { %v2573_v37 = vpop.f32.mrf.mxu0 }
 0xd40   : > { %v2574_v44 = vadd.f32 %v2573_v37, %v7573_v23  ;;  %v2592_v10 = vmax.f32 %v7552_v3, %v2572_v49  ;;  %v2601_v25 = vmin.f32 %v7558_v6, %v2591_v52  ;;  %v2600_v37 = vmin.f32 %v7558_v6, %v2590_v60 }
 0xd41   : > { %v2577_v14 = vpop.f32.mrf.mxu0 }
 0xd42   : > { %v2578_v39 = vadd.f32 %v2577_v14, %v7542_v61  ;;  %v2593_v53 = vmax.f32 %v7552_v3, %v2574_v44  ;;  %v2602_v59 = vmin.f32 %v7558_v6, %v2592_v10  ;;  %v8886_v52 = vsub.f32 %v2568_v12, %v2601_v25 }
 0xd43   : > { %v2579_v33 = vpop.f32.mrf.mxu0 }
 0xd44   : > { %v2580_v18 = vadd.f32 %v2579_v33, %v7544_v62  ;;  %v2594_v28 = vmax.f32 %v7552_v3, %v2578_v39  ;;  %v2603_v36 = vmin.f32 %v7558_v6, %v2593_v53  ;;  %v2599_v33 = vmin.f32 %v7558_v6, %v2589_v31 }
 0xd45   : > { %v2583_v41 = vpop.f32.mrf.mxu0 }
 0xd46   : > { %v2595_v5 = vmax.f32 %v7552_v3, %v2580_v18  ;;  %v2584_v24 = vadd.f32 %v2583_v41, %v7548_v1  ;;  %v2604_v20 = vmin.f32 %v7558_v6, %v2594_v28  ;;  %v8878_v53 = vsub.f32 %v2574_v44, %v2603_v36 }
 0xd47   : > { %v2585_v57 = vpop.f32.mrf.mxu0  ;;  %v2598_v41 = vmin.f32 %v7558_v6, %v2588_v9  ;;  %v8894_v44 = vsub.f32 %v2566_v54, %v2600_v37  ;;  %v8898_v31 = vsub.f32 %v2562_v51, %v2599_v33  ;;  %v2621_v36 = vsub.f32 %v8886_v52, %v8791_v29 }
 0xd48   : > { %v2605_v35 = vmin.f32 %v7558_v6, %v2595_v5  ;;  %v2596_v38 = vmax.f32 %v7552_v3, %v2584_v24  ;;  %v2586_v11 = vadd.f32 %v2585_v57, %v7554_v4  ;;  %v8875_v14 = vsub.f32 %v2578_v39, %v2604_v20 }
 0xd49   : > { %v2623_v12 = vsub.f32 %v8878_v53, %v8783_v26  ;;  %v8904_v20 = vsub.f32 %v2560_v42, %v2598_v41  ;;  %v2619_v26 = vsub.f32 %v8898_v31, %v8803_v43  ;;  %v2631_v29 = vmul.f32 0.82237667, %v2621_v36 }
 0xd4a   : > { %v8870_v34 = vsub.f32 %v2580_v18, %v2605_v35  ;;  %v2606_v7 = vmin.f32 %v7558_v6, %v2596_v38  ;;  %v2597_v32 = vmax.f32 %v7552_v3, %v2586_v11  ;;  %v8884_v18 = vsub.f32 %v2572_v49, %v2602_v59 }
 0xd4b   : > { %v2633_v35 = vmul.f32 0.82237667, %v2623_v12  ;;  %v2618_v42 = vsub.f32 %v8904_v20, %v8809_v27  ;;  %v2629_v25 = vmul.f32 0.82237667, %v2619_v26  ;;  %v2641_v27 = vadd.f32 %v2631_v29, %v8886_v52 }
 0xd4c   : > { %v8880_v28 = vsub.f32 %v2584_v24, %v2606_v7  ;;  %v2607_v10 = vmin.f32 %v7558_v6, %v2597_v32  ;;  %v2625_v39 = vsub.f32 %v8870_v34, %v8775_v58  ;;  %v2624_v24 = vsub.f32 %v8875_v14, %v8780_v30 }
 0xd4d   : > { %v2620_v30 = vsub.f32 %v8894_v44, %v8799_v55  ;;  %v2643_v59 = vadd.f32 %v2633_v35, %v8878_v53  ;;  %v2628_v7 = vmul.f32 0.82237667, %v2618_v42  ;;  %v2639_v37 = vadd.f32 %v2629_v25, %v8898_v31 }
 0xd4e   : > { %v2626_v5 = vsub.f32 %v8880_v28, %v8785_v56  ;;  %v8890_v60 = vsub.f32 %v2586_v11, %v2607_v10  ;;  %v2622_v56 = vsub.f32 %v8884_v18, %v8789_v47  ;;  %v2635_v54 = vmul.f32 0.82237667, %v2625_v39 }
 0xd4f   : > { %v2634_v51 = vmul.f32 0.82237667, %v2624_v24  ;;  %v2630_v9 = vmul.f32 0.82237667, %v2620_v30  ;;  %v2638_v33 = vadd.f32 %v2628_v7, %v8904_v20 }
 0xd50   : > { %v2627_v49 = vsub.f32 %v8890_v60, %v8795_v48  ;;  %v2636_v57 = vmul.f32 0.82237667, %v2626_v5  ;;  %v2632_v47 = vmul.f32 0.82237667, %v2622_v56  ;;  %v2645_v11 = vadd.f32 %v2635_v54, %v8870_v34 }
 0xd51   : > { %v2644_v55 = vadd.f32 %v2634_v51, %v8875_v14  ;;  %v2640_v32 = vadd.f32 %v2630_v9, %v8894_v44 }
 0xd52   : > { %v2637_v58 = vmul.f32 0.82237667, %v2627_v49  ;;  %v2646_v38 = vadd.f32 %v2636_v57, %v8880_v28  ;;  %v2642_v43 = vadd.f32 %v2632_v47, %v8884_v18 }
 0xd54   : > { %v2647_v48 = vadd.f32 %v2637_v58, %v8890_v60 }
 0xd56   : > { %2670 = vmatprep.subr.mxu1 %v2647_v48 }
 0xd57   : > { %2671 = vmatpush1.msra.mxu1 %v2646_v38 }
 0xd58   : > { %2672 = vmatprep.subr.mxu1 %v2645_v11 }
 0xd59   : > { %2673 = vmatpush1.msra.mxu1 %v2644_v55 }
 0xd5a   : > { %2674 = vmatprep.subr.mxu1 %v2643_v59 }
 0xd5b   : > { %2675 = vmatpush1.msra.mxu1 %v2642_v43 }
 0xd5c   : > { %2676 = vmatprep.subr.mxu1 %v2641_v27 }
 0xd5d   : > { %2677 = vmatpush1.msra.mxu1 %v2640_v32 }
 0xd5e   : > { %2678 = vmatprep.subr.mxu1 %v2639_v37 }
 0xd5f   : > { %2679 = vmatpush1.msra.mxu1 %v2638_v33 }
 0xd60   : > { %6940 = vmatmul.mubr.msk.f32.vlgmr.msra.gmra.mxu1 %vm469_vm8, %v8714_v40 }
 0xd61   : > { %2718 = vmatprep.mubr.f32.mxu1 %v11445_v0 }
 0xd64   : > { %6941 = vmatmul.mubr.msk.f32.gmra.mxu1 %vm469_vm8, %v8722_v50 }
 0xd65   : > { %2724 = vmatprep.mubr.f32.mxu1 %v11445_v0 }
 0xd68   : > { %6942 = vmatmul.mubr.msk.f32.gmra.mxu1 %vm469_vm8, %v8730_v17 }
 0xd69   : > { %2730 = vmatprep.mubr.f32.mxu1 %v11445_v0 }
 0xd6c   : > { %6943 = vmatmul.mubr.msk.f32.gmra.mxu1 %vm469_vm8, %v8738_v22 }
 0xd6d   : > { %2736 = vmatprep.mubr.f32.mxu1 %v11445_v0 }
 0xd70   : > { %6944 = vmatmul.mubr.msk.f32.gmra.mxu1 %vm469_vm8, %v8746_v21 }
 0xd71   : > { %3022 = vmatprep.mubr.f32.mxu1 %v11445_v0 }
 0xe20   : > { %v2714_v10 = vpop.f32.mrf.mxu1 }
 0xe21   : > { %v2715_v26 = vadd.f32 %v2714_v10, %v7546_v63 }
 0xe22   : > { %v2716_v41 = vpop.f32.mrf.mxu1 }
 0xe23   : > { %v2717_v54 = vadd.f32 %v2716_v41, %v7550_v2  ;;  %v2743_v33 = vmax.f32 %v7552_v3, %v2715_v26 }
 0xe24   : > { %v2720_v5 = vpop.f32.mrf.mxu1 }
 0xe25   : > { %v2721_v36 = vadd.f32 %v2720_v5, %v7560_v8  ;;  %v2744_v55 = vmax.f32 %v7552_v3, %v2717_v54 }
 0xe26   : > { %v2722_v39 = vpop.f32.mrf.mxu1 }
 0xe27   : > { %v2723_v58 = vadd.f32 %v2722_v39, %v7566_v13  ;;  %v2745_v59 = vmax.f32 %v7552_v3, %v2721_v36 }
 0xe28   : > { %v2726_v24 = vpop.f32.mrf.mxu1 }
 0xe29   : > { %v2727_v56 = vadd.f32 %v2726_v24, %v7570_v19  ;;  %v2746_v11 = vmax.f32 %v7552_v3, %v2723_v58 }
 0xe2a   : > { %v2728_v49 = vpop.f32.mrf.mxu1 }
 0xe2b   : > { %v2729_v12 = vadd.f32 %v2728_v49, %v7573_v23  ;;  %v2747_v42 = vmax.f32 %v7552_v3, %v2727_v56  ;;  %v2756_v41 = vmin.f32 %v7558_v6, %v2746_v11  ;;  %v2755_v49 = vmin.f32 %v7558_v6, %v2745_v59 }
 0xe2c   : > { %v2732_v57 = vpop.f32.mrf.mxu1 }
 0xe2d   : > { %v2733_v30 = vadd.f32 %v2732_v57, %v7542_v61  ;;  %v2748_v48 = vmax.f32 %v7552_v3, %v2729_v12  ;;  %v2757_v10 = vmin.f32 %v7558_v6, %v2747_v42  ;;  %v8981_v11 = vsub.f32 %v2723_v58, %v2756_v41 }
 0xe2e   : > { %v2734_v51 = vpop.f32.mrf.mxu1 }
 0xe2f   : > { %v2735_v35 = vadd.f32 %v2734_v51, %v7544_v62  ;;  %v2749_v47 = vmax.f32 %v7552_v3, %v2733_v30  ;;  %v2758_v43 = vmin.f32 %v7558_v6, %v2748_v48  ;;  %v2754_v51 = vmin.f32 %v7558_v6, %v2744_v55 }
 0xe30   : > { %v2738_v38 = vpop.f32.mrf.mxu1 }
 0xe31   : > { %v2750_v29 = vmax.f32 %v7552_v3, %v2735_v35  ;;  %v2739_v9 = vadd.f32 %v2738_v38, %v7548_v1  ;;  %v2759_v25 = vmin.f32 %v7558_v6, %v2749_v47  ;;  %v8973_v48 = vsub.f32 %v2729_v12, %v2758_v43 }
 0xe32   : > { %v2740_v7 = vpop.f32.mrf.mxu1  ;;  %v2753_v38 = vmin.f32 %v7558_v6, %v2743_v33  ;;  %v8989_v12 = vsub.f32 %v2721_v36, %v2755_v49  ;;  %v8993_v55 = vsub.f32 %v2717_v54, %v2754_v51  ;;  %v2776_v43 = vsub.f32 %v8981_v11, %v8886_v52 }
 0xe33   : > { %v2760_v27 = vmin.f32 %v7558_v6, %v2750_v29  ;;  %v2751_v32 = vmax.f32 %v7552_v3, %v2739_v9  ;;  %v2741_v37 = vadd.f32 %v2740_v7, %v7554_v4  ;;  %v8970_v57 = vsub.f32 %v2733_v30, %v2759_v25 }
 0xe34   : > { %v2778_v58 = vsub.f32 %v8973_v48, %v8878_v53  ;;  %v8999_v25 = vsub.f32 %v2715_v26, %v2753_v38  ;;  %v2774_v53 = vsub.f32 %v8993_v55, %v8898_v31  ;;  %v2786_v52 = vmul.f32 0.8325844, %v2776_v43 }
 0xe35   : > { %v8965_v5 = vsub.f32 %v2735_v35, %v2760_v27  ;;  %v2761_v39 = vmin.f32 %v7558_v6, %v2751_v32  ;;  %v2752_v24 = vmax.f32 %v7552_v3, %v2741_v37  ;;  %v8979_v35 = vsub.f32 %v2727_v56, %v2757_v10 }
 0xe36   : > { %v2788_v27 = vmul.f32 0.8325844, %v2778_v58  ;;  %v2773_v26 = vsub.f32 %v8999_v25, %v8904_v20  ;;  %v2784_v41 = vmul.f32 0.8325844, %v2774_v53  ;;  %v2796_v20 = vadd.f32 %v2786_v52, %v8981_v11 }
 0xe37   : > { %v8975_v47 = vsub.f32 %v2739_v9, %v2761_v39  ;;  %v2762_v42 = vmin.f32 %v7558_v6, %v2752_v24  ;;  %v2780_v30 = vsub.f32 %v8965_v5, %v8870_v34  ;;  %v2779_v9 = vsub.f32 %v8970_v57, %v8875_v14 }
 0xe38   : > { %v2775_v14 = vsub.f32 %v8989_v12, %v8894_v44  ;;  %v2798_v10 = vadd.f32 %v2788_v27, %v8973_v48  ;;  %v2783_v39 = vmul.f32 0.8325844, %v2773_v26  ;;  %v2794_v49 = vadd.f32 %v2784_v41, %v8993_v55 }
 0xe39   : > { %v2781_v29 = vsub.f32 %v8975_v47, %v8880_v28  ;;  %v8985_v59 = vsub.f32 %v2741_v37, %v2762_v42  ;;  %v2777_v28 = vsub.f32 %v8979_v35, %v8884_v18  ;;  %v2790_v36 = vmul.f32 0.8325844, %v2780_v30 }
 0xe3a   : > { %v2789_v54 = vmul.f32 0.8325844, %v2779_v9  ;;  %v2785_v33 = vmul.f32 0.8325844, %v2775_v14  ;;  %v2793_v51 = vadd.f32 %v2783_v39, %v8999_v25 }
 0xe3b   : > { %v2782_v56 = vsub.f32 %v8985_v59, %v8890_v60  ;;  %v2791_v7 = vmul.f32 0.8325844, %v2781_v29  ;;  %v2787_v18 = vmul.f32 0.8325844, %v2777_v28  ;;  %v2800_v37 = vadd.f32 %v2790_v36, %v8965_v5 }
 0xe3c   : > { %v2799_v44 = vadd.f32 %v2789_v54, %v8970_v57  ;;  %v2795_v24 = vadd.f32 %v2785_v33, %v8989_v12 }
 0xe3d   : > { %v2792_v34 = vmul.f32 0.8325844, %v2782_v56  ;;  %v2801_v32 = vadd.f32 %v2791_v7, %v8975_v47  ;;  %v2797_v31 = vadd.f32 %v2787_v18, %v8979_v35 }
 0xe3f   : > { %v2802_v60 = vadd.f32 %v2792_v34, %v8985_v59 }
 0xe41   : > { %2825 = vmatprep.subr.mxu0 %v2802_v60 }
 0xe42   : > { %2826 = vmatpush1.msra.mxu0 %v2801_v32 }
 0xe43   : > { %2827 = vmatprep.subr.mxu0 %v2800_v37 }
 0xe44   : > { %2828 = vmatpush1.msra.mxu0 %v2799_v44 }
 0xe45   : > { %2829 = vmatprep.subr.mxu0 %v2798_v10 }
 0xe46   : > { %2830 = vmatpush1.msra.mxu0 %v2797_v31 }
 0xe47   : > { %2831 = vmatprep.subr.mxu0 %v2796_v20 }
 0xe48   : > { %2832 = vmatpush1.msra.mxu0 %v2795_v24 }
 0xe49   : > { %2833 = vmatprep.subr.mxu0 %v2794_v49 }
 0xe4a   : > { %2834 = vmatpush1.msra.mxu0 %v2793_v51 }
 0xe4b   : > { %6945 = vmatmul.mubr.msk.f32.vlgmr.msra.gmra.mxu0 %vm469_vm8, %v8714_v40 }
 0xe4c   : > { %2873 = vmatprep.mubr.f32.mxu0 %v11445_v0 }
 0xe4f   : > { %6946 = vmatmul.mubr.msk.f32.gmra.mxu0 %vm469_vm8, %v8722_v50 }
 0xe50   : > { %2879 = vmatprep.mubr.f32.mxu0 %v11445_v0 }
 0xe53   : > { %6947 = vmatmul.mubr.msk.f32.gmra.mxu0 %vm469_vm8, %v8730_v17 }
 0xe54   : > { %2885 = vmatprep.mubr.f32.mxu0 %v11445_v0 }
 0xe57   : > { %6948 = vmatmul.mubr.msk.f32.gmra.mxu0 %vm469_vm8, %v8738_v22 }
 0xe58   : > { %2891 = vmatprep.mubr.f32.mxu0 %v11445_v0 }
 0xe5b   : > { %6949 = vmatmul.mubr.msk.f32.gmra.mxu0 %vm469_vm8, %v8746_v21 }
 0xe5c   : > { %3177 = vmatprep.mubr.f32.mxu0 %v11445_v0 }
 0xf0b   : > { %v2869_v42 = vpop.f32.mrf.mxu0 }
 0xf0c   : > { %v2870_v53 = vadd.f32 %v2869_v42, %v7546_v63 }
 0xf0d   : > { %v2871_v38 = vpop.f32.mrf.mxu0 }
 0xf0e   : > { %v2872_v36 = vadd.f32 %v2871_v38, %v7550_v2  ;;  %v2898_v51 = vmax.f32 %v7552_v3, %v2870_v53 }
 0xf0f   : > { %v2875_v29 = vpop.f32.mrf.mxu0 }
 0xf10   : > { %v2876_v43 = vadd.f32 %v2875_v29, %v7560_v8  ;;  %v2899_v44 = vmax.f32 %v7552_v3, %v2872_v36 }
 0xf11   : > { %v2877_v30 = vpop.f32.mrf.mxu0 }
 0xf12   : > { %v2878_v34 = vadd.f32 %v2877_v30, %v7566_v13  ;;  %v2900_v10 = vmax.f32 %v7552_v3, %v2876_v43 }
 0xf13   : > { %v2881_v9 = vpop.f32.mrf.mxu0 }
 0xf14   : > { %v2882_v28 = vadd.f32 %v2881_v9, %v7570_v19  ;;  %v2901_v37 = vmax.f32 %v7552_v3, %v2878_v34 }
 0xf15   : > { %v2883_v56 = vpop.f32.mrf.mxu0 }
 0xf16   : > { %v2884_v58 = vadd.f32 %v2883_v56, %v7573_v23  ;;  %v2902_v26 = vmax.f32 %v7552_v3, %v2882_v28  ;;  %v2911_v38 = vmin.f32 %v7558_v6, %v2901_v37  ;;  %v2910_v56 = vmin.f32 %v7558_v6, %v2900_v10 }
 0xf17   : > { %v2887_v7 = vpop.f32.mrf.mxu0 }
 0xf18   : > { %v2888_v14 = vadd.f32 %v2887_v7, %v7542_v61  ;;  %v2903_v60 = vmax.f32 %v7552_v3, %v2884_v58  ;;  %v2912_v42 = vmin.f32 %v7558_v6, %v2902_v26  ;;  %v9076_v37 = vsub.f32 %v2878_v34, %v2911_v38 }
 0xf19   : > { %v2889_v54 = vpop.f32.mrf.mxu0 }
 0xf1a   : > { %v2890_v27 = vadd.f32 %v2889_v54, %v7544_v62  ;;  %v2904_v18 = vmax.f32 %v7552_v3, %v2888_v14  ;;  %v2913_v31 = vmin.f32 %v7558_v6, %v2903_v60  ;;  %v2909_v54 = vmin.f32 %v7558_v6, %v2899_v44 }
 0xf1b   : > { %v2893_v32 = vpop.f32.mrf.mxu0 }
 0xf1c   : > { %v2905_v52 = vmax.f32 %v7552_v3, %v2890_v27  ;;  %v2894_v33 = vadd.f32 %v2893_v32, %v7548_v1  ;;  %v2914_v41 = vmin.f32 %v7558_v6, %v2904_v18  ;;  %v9068_v60 = vsub.f32 %v2884_v58, %v2913_v31 }
 0xf1d   : > { %v2895_v39 = vpop.f32.mrf.mxu0  ;;  %v2908_v32 = vmin.f32 %v7558_v6, %v2898_v51  ;;  %v9084_v58 = vsub.f32 %v2876_v43, %v2910_v56  ;;  %v9088_v44 = vsub.f32 %v2872_v36, %v2909_v54  ;;  %v2931_v31 = vsub.f32 %v9076_v37, %v8981_v11 }
 0xf1e   : > { %v2915_v20 = vmin.f32 %v7558_v6, %v2905_v52  ;;  %v2906_v24 = vmax.f32 %v7552_v3, %v2894_v33  ;;  %v2896_v49 = vadd.f32 %v2895_v39, %v7554_v4  ;;  %v9065_v7 = vsub.f32 %v2888_v14, %v2914_v41 }
 0xf1f   : > { %v2933_v34 = vsub.f32 %v9068_v60, %v8973_v48  ;;  %v9094_v41 = vsub.f32 %v2870_v53, %v2908_v32  ;;  %v2929_v48 = vsub.f32 %v9088_v44, %v8993_v55  ;;  %v2941_v11 = vmul.f32 0.84166825, %v2931_v31 }
 0xf20   : > { %v9060_v29 = vsub.f32 %v2890_v27, %v2915_v20  ;;  %v2916_v30 = vmin.f32 %v7558_v6, %v2906_v24  ;;  %v2907_v9 = vmax.f32 %v7552_v3, %v2896_v49  ;;  %v9074_v27 = vsub.f32 %v2882_v28, %v2912_v42 }
 0xf21   : > { %v2943_v20 = vmul.f32 0.84166825, %v2933_v34  ;;  %v2928_v53 = vsub.f32 %v9094_v41, %v8999_v25  ;;  %v2939_v38 = vmul.f32 0.84166825, %v2929_v48  ;;  %v2951_v25 = vadd.f32 %v2941_v11, %v9076_v37 }
 0xf22   : > { %v9070_v18 = vsub.f32 %v2894_v33, %v2916_v30  ;;  %v2917_v26 = vmin.f32 %v7558_v6, %v2907_v9  ;;  %v2935_v14 = vsub.f32 %v9060_v29, %v8965_v5  ;;  %v2934_v33 = vsub.f32 %v9065_v7, %v8970_v57 }
 0xf23   : > { %v2930_v57 = vsub.f32 %v9084_v58, %v8989_v12  ;;  %v2953_v42 = vadd.f32 %v2943_v20, %v9068_v60  ;;  %v2938_v30 = vmul.f32 0.84166825, %v2928_v53  ;;  %v2949_v56 = vadd.f32 %v2939_v38, %v9088_v44 }
 0xf24   : > { %v2936_v52 = vsub.f32 %v9070_v18, %v8975_v47  ;;  %v9080_v10 = vsub.f32 %v2896_v49, %v2917_v26  ;;  %v2932_v47 = vsub.f32 %v9074_v27, %v8979_v35  ;;  %v2945_v43 = vmul.f32 0.84166825, %v2935_v14 }
 0xf25   : > { %v2944_v36 = vmul.f32 0.84166825, %v2934_v33  ;;  %v2940_v51 = vmul.f32 0.84166825, %v2930_v57  ;;  %v2948_v54 = vadd.f32 %v2938_v30, %v9094_v41 }
 0xf26   : > { %v2937_v28 = vsub.f32 %v9080_v10, %v8985_v59  ;;  %v2946_v39 = vmul.f32 0.84166825, %v2936_v52  ;;  %v2942_v35 = vmul.f32 0.84166825, %v2932_v47  ;;  %v2955_v49 = vadd.f32 %v2945_v43, %v9060_v29 }
 0xf27   : > { %v2954_v12 = vadd.f32 %v2944_v36, %v9065_v7  ;;  %v2950_v9 = vadd.f32 %v2940_v51, %v9084_v58 }
 0xf28   : > { %v2947_v5 = vmul.f32 0.84166825, %v2937_v28  ;;  %v2956_v24 = vadd.f32 %v2946_v39, %v9070_v18  ;;  %v2952_v55 = vadd.f32 %v2942_v35, %v9074_v27 }
 0xf2a   : > { %v2957_v59 = vadd.f32 %v2947_v5, %v9080_v10 }
 0xf2c   : > { %2980 = vmatprep.subr.mxu1 %v2957_v59 }
 0xf2d   : > { %2981 = vmatpush1.msra.mxu1 %v2956_v24 }
 0xf2e   : > { %2982 = vmatprep.subr.mxu1 %v2955_v49 }
 0xf2f   : > { %2983 = vmatpush1.msra.mxu1 %v2954_v12 }
 0xf30   : > { %2984 = vmatprep.subr.mxu1 %v2953_v42 }
 0xf31   : > { %2985 = vmatpush1.msra.mxu1 %v2952_v55 }
 0xf32   : > { %2986 = vmatprep.subr.mxu1 %v2951_v25 }
 0xf33   : > { %2987 = vmatpush1.msra.mxu1 %v2950_v9 }
 0xf34   : > { %2988 = vmatprep.subr.mxu1 %v2949_v56 }
 0xf35   : > { %2989 = vmatpush1.msra.mxu1 %v2948_v54 }
 0xf36   : > { %6950 = vmatmul.mubr.msk.f32.vlgmr.msra.gmra.mxu1 %vm469_vm8, %v8714_v40 }
 0xf37   : > { %3028 = vmatprep.mubr.f32.mxu1 %v11445_v0 }
 0xf3a   : > { %6951 = vmatmul.mubr.msk.f32.gmra.mxu1 %vm469_vm8, %v8722_v50 }
 0xf3b   : > { %3034 = vmatprep.mubr.f32.mxu1 %v11445_v0 }
 0xf3e   : > { %6952 = vmatmul.mubr.msk.f32.gmra.mxu1 %vm469_vm8, %v8730_v17 }
 0xf3f   : > { %3040 = vmatprep.mubr.f32.mxu1 %v11445_v0 }
 0xf42   : > { %6953 = vmatmul.mubr.msk.f32.gmra.mxu1 %vm469_vm8, %v8738_v22 }
 0xf43   : > { %3046 = vmatprep.mubr.f32.mxu1 %v11445_v0 }
 0xf46   : > { %6954 = vmatmul.mubr.msk.f32.gmra.mxu1 %vm469_vm8, %v8746_v21 }
 0xf47   : > { %3332 = vmatprep.mubr.f32.mxu1 %v11445_v0 }
 0xff6   : > { %v3024_v26 = vpop.f32.mrf.mxu1 }
 0xff7   : > { %v3025_v48 = vadd.f32 %v3024_v26, %v7546_v63 }
 0xff8   : > { %v3026_v32 = vpop.f32.mrf.mxu1 }
 0xff9   : > { %v3027_v43 = vadd.f32 %v3026_v32, %v7550_v2  ;;  %v3053_v54 = vmax.f32 %v7552_v3, %v3025_v48 }
 0xffa   : > { %v3030_v52 = vpop.f32.mrf.mxu1 }
 0xffb   : > { %v3031_v31 = vadd.f32 %v3030_v52, %v7560_v8  ;;  %v3054_v12 = vmax.f32 %v7552_v3, %v3027_v43 }
 0xffc   : > { %v3032_v14 = vpop.f32.mrf.mxu1 }
 0xffd   : > { %v3033_v5 = vadd.f32 %v3032_v14, %v7566_v13  ;;  %v3055_v42 = vmax.f32 %v7552_v3, %v3031_v31 }
 0xffe   : > { %v3036_v33 = vpop.f32.mrf.mxu1 }
 0xfff   : > { %v3037_v47 = vadd.f32 %v3036_v33, %v7570_v19  ;;  %v3056_v49 = vmax.f32 %v7552_v3, %v3033_v5 }
0x1000   : > { %v3038_v28 = vpop.f32.mrf.mxu1 }
0x1001   : > { %v3039_v34 = vadd.f32 %v3038_v28, %v7573_v23  ;;  %v3057_v53 = vmax.f32 %v7552_v3, %v3037_v47  ;;  %v3066_v32 = vmin.f32 %v7558_v6, %v3056_v49  ;;  %v3065_v28 = vmin.f32 %v7558_v6, %v3055_v42 }
0x1002   : > { %v3042_v39 = vpop.f32.mrf.mxu1 }
0x1003   : > { %v3043_v57 = vadd.f32 %v3042_v39, %v7542_v61  ;;  %v3058_v59 = vmax.f32 %v7552_v3, %v3039_v34  ;;  %v3067_v26 = vmin.f32 %v7558_v6, %v3057_v53  ;;  %v9171_v49 = vsub.f32 %v3033_v5, %v3066_v32 }
0x1004   : > { %v3044_v36 = vpop.f32.mrf.mxu1 }
0x1005   : > { %v3045_v20 = vadd.f32 %v3044_v36, %v7544_v62  ;;  %v3059_v35 = vmax.f32 %v7552_v3, %v3043_v57  ;;  %v3068_v55 = vmin.f32 %v7558_v6, %v3058_v59  ;;  %v3064_v36 = vmin.f32 %v7558_v6, %v3054_v12 }
0x1006   : > { %v3048_v24 = vpop.f32.mrf.mxu1 }
0x1007   : > { %v3060_v11 = vmax.f32 %v7552_v3, %v3045_v20  ;;  %v3049_v51 = vadd.f32 %v3048_v24, %v7548_v1  ;;  %v3069_v38 = vmin.f32 %v7558_v6, %v3059_v35  ;;  %v9163_v59 = vsub.f32 %v3039_v34, %v3068_v55 }
0x1008   : > { %v3050_v30 = vpop.f32.mrf.mxu1  ;;  %v3063_v24 = vmin.f32 %v7558_v6, %v3053_v54  ;;  %v9179_v34 = vsub.f32 %v3031_v31, %v3065_v28  ;;  %v9183_v12 = vsub.f32 %v3027_v43, %v3064_v36  ;;  %v3086_v55 = vsub.f32 %v9171_v49, %v9076_v37 }
0x1009   : > { %v3070_v25 = vmin.f32 %v7558_v6, %v3060_v11  ;;  %v3061_v9 = vmax.f32 %v7552_v3, %v3049_v51  ;;  %v3051_v56 = vadd.f32 %v3050_v30, %v7554_v4  ;;  %v9160_v39 = vsub.f32 %v3043_v57, %v3069_v38 }
0x100a   : > { %v3088_v5 = vsub.f32 %v9163_v59, %v9068_v60  ;;  %v9189_v38 = vsub.f32 %v3025_v48, %v3063_v24  ;;  %v3084_v60 = vsub.f32 %v9183_v12, %v9088_v44  ;;  %v3096_v37 = vmul.f32 0.84980553, %v3086_v55 }
0x100b   : > { %v9155_v52 = vsub.f32 %v3045_v20, %v3070_v25  ;;  %v3071_v14 = vmin.f32 %v7558_v6, %v3061_v9  ;;  %v3062_v33 = vmax.f32 %v7552_v3, %v3051_v56  ;;  %v9169_v20 = vsub.f32 %v3037_v47, %v3067_v26 }
0x100c   : > { %v3098_v25 = vmul.f32 0.84980553, %v3088_v5  ;;  %v3083_v48 = vsub.f32 %v9189_v38, %v9094_v41  ;;  %v3094_v32 = vmul.f32 0.84980553, %v3084_v60  ;;  %v3106_v41 = vadd.f32 %v3096_v37, %v9171_v49 }
0x100d   : > { %v9165_v35 = vsub.f32 %v3049_v51, %v3071_v14  ;;  %v3072_v53 = vmin.f32 %v7558_v6, %v3062_v33  ;;  %v3090_v57 = vsub.f32 %v9155_v52, %v9060_v29  ;;  %v3089_v51 = vsub.f32 %v9160_v39, %v9065_v7 }
0x100e   : > { %v3085_v7 = vsub.f32 %v9179_v34, %v9084_v58  ;;  %v3108_v26 = vadd.f32 %v3098_v25, %v9163_v59  ;;  %v3093_v14 = vmul.f32 0.84980553, %v3083_v48  ;;  %v3104_v28 = vadd.f32 %v3094_v32, %v9183_v12 }
0x100f   : > { %v3091_v11 = vsub.f32 %v9165_v35, %v9070_v18  ;;  %v9175_v42 = vsub.f32 %v3051_v56, %v3072_v53  ;;  %v3087_v18 = vsub.f32 %v9169_v20, %v9074_v27  ;;  %v3100_v31 = vmul.f32 0.84980553, %v3090_v57 }
0x1010   : > { %v3099_v43 = vmul.f32 0.84980553, %v3089_v51  ;;  %v3095_v54 = vmul.f32 0.84980553, %v3085_v7  ;;  %v3103_v36 = vadd.f32 %v3093_v14, %v9189_v38 }
0x1011   : > { %v3092_v47 = vsub.f32 %v9175_v42, %v9080_v10  ;;  %v3101_v30 = vmul.f32 0.84980553, %v3091_v11  ;;  %v3097_v27 = vmul.f32 0.84980553, %v3087_v18  ;;  %v3110_v56 = vadd.f32 %v3100_v31, %v9155_v52 }
0x1012   : > { %v3109_v58 = vadd.f32 %v3099_v43, %v9160_v39  ;;  %v3105_v33 = vadd.f32 %v3095_v54, %v9179_v34 }
0x1013   : > { %v3102_v29 = vmul.f32 0.84980553, %v3092_v47  ;;  %v3111_v9 = vadd.f32 %v3101_v30, %v9165_v35  ;;  %v3107_v44 = vadd.f32 %v3097_v27, %v9169_v20 }
0x1015   : > { %v3112_v10 = vadd.f32 %v3102_v29, %v9175_v42 }
0x1017   : > { %3135 = vmatprep.subr.mxu0 %v3112_v10 }
0x1018   : > { %3136 = vmatpush1.msra.mxu0 %v3111_v9 }
0x1019   : > { %3137 = vmatprep.subr.mxu0 %v3110_v56 }
0x101a   : > { %3138 = vmatpush1.msra.mxu0 %v3109_v58 }
0x101b   : > { %3139 = vmatprep.subr.mxu0 %v3108_v26 }
0x101c   : > { %3140 = vmatpush1.msra.mxu0 %v3107_v44 }
0x101d   : > { %3141 = vmatprep.subr.mxu0 %v3106_v41 }
0x101e   : > { %3142 = vmatpush1.msra.mxu0 %v3105_v33 }
0x101f   : > { %3143 = vmatprep.subr.mxu0 %v3104_v28 }
0x1020   : > { %3144 = vmatpush1.msra.mxu0 %v3103_v36 }
0x1021   : > { %6955 = vmatmul.mubr.msk.f32.vlgmr.msra.gmra.mxu0 %vm469_vm8, %v8714_v40 }
0x1022   : > { %3183 = vmatprep.mubr.f32.mxu0 %v11445_v0 }
0x1025   : > { %6956 = vmatmul.mubr.msk.f32.gmra.mxu0 %vm469_vm8, %v8722_v50 }
0x1026   : > { %3189 = vmatprep.mubr.f32.mxu0 %v11445_v0 }
0x1029   : > { %6957 = vmatmul.mubr.msk.f32.gmra.mxu0 %vm469_vm8, %v8730_v17 }
0x102a   : > { %3195 = vmatprep.mubr.f32.mxu0 %v11445_v0 }
0x102d   : > { %6958 = vmatmul.mubr.msk.f32.gmra.mxu0 %vm469_vm8, %v8738_v22 }
0x102e   : > { %3201 = vmatprep.mubr.f32.mxu0 %v11445_v0 }
0x1031   : > { %6959 = vmatmul.mubr.msk.f32.gmra.mxu0 %vm469_vm8, %v8746_v21 }
0x1032   : > { %3487 = vmatprep.mubr.f32.mxu0 %v11445_v0 }
0x10e1   : > { %v3179_v40 = vpop.f32.mrf.mxu0 }
0x10e2   : > { %v3180_v55 = vadd.f32 %v3179_v40, %v7546_v63 }
0x10e3   : > { %v3181_v53 = vpop.f32.mrf.mxu0 }
0x10e4   : > { %v3182_v5 = vadd.f32 %v3181_v53, %v7550_v2  ;;  %v3208_v14 = vmax.f32 %v7552_v3, %v3180_v55 }
0x10e5   : > { %v3185_v50 = vpop.f32.mrf.mxu0 }
0x10e6   : > { %v3186_v18 = vadd.f32 %v3185_v50, %v7560_v8  ;;  %v3209_v27 = vmax.f32 %v7552_v3, %v3182_v5 }
0x10e7   : > { %v3187_v24 = vpop.f32.mrf.mxu0 }
0x10e8   : > { %v3188_v22 = vadd.f32 %v3187_v24, %v7566_v13  ;;  %v3210_v9 = vmax.f32 %v7552_v3, %v3186_v18  ;;  %v3219_v50 = vmin.f32 %v7558_v6, %v3209_v27 }
0x10e9   : > { %v3191_v11 = vpop.f32.mrf.mxu0 }
0x10ea   : > { %v3192_v51 = vadd.f32 %v3191_v11, %v7570_v19  ;;  %v3211_v25 = vmax.f32 %v7552_v3, %v3188_v22  ;;  %v3220_v40 = vmin.f32 %v7558_v6, %v3210_v9 }
0x10eb   : > { %v3193_v57 = vpop.f32.mrf.mxu0 }
0x10ec   : > { %v3194_v17 = vadd.f32 %v3193_v57, %v7573_v23  ;;  %v3212_v7 = vmax.f32 %v7552_v3, %v3192_v51  ;;  %v3221_v41 = vmin.f32 %v7558_v6, %v3211_v25 }
0x10ed   : > { %v3197_v47 = vpop.f32.mrf.mxu0 }
0x10ee   : > { %v3198_v21 = vadd.f32 %v3197_v47, %v7542_v61  ;;  %v3213_v29 = vmax.f32 %v7552_v3, %v3194_v17  ;;  %v3222_v44 = vmin.f32 %v7558_v6, %v3212_v7  ;;  %v3218_v47 = vmin.f32 %v7558_v6, %v3208_v14 }
0x10ef   : > { %v3199_v30 = vpop.f32.mrf.mxu0 }
0x10f0   : > { %v3200_v31 = vadd.f32 %v3199_v30, %v7544_v62  ;;  %v3214_v43 = vmax.f32 %v7552_v3, %v3198_v21  ;;  %v3223_v54 = vmin.f32 %v7558_v6, %v3213_v29  ;;  %v9264_v30 = vsub.f32 %v3192_v51, %v3222_v44 }
0x10f1   : > { %v3203_v10 = vpop.f32.mrf.mxu0  ;;  %v9266_v29 = vsub.f32 %v3188_v22, %v3221_v41  ;;  %v9284_v25 = vsub.f32 %v3180_v55, %v3218_v47  ;;  %v9309_v41 = vld [vmem:[%s11440_s1] sm:$0xff] }
0x10f2   : > { %v3215_v60 = vmax.f32 %v7552_v3, %v3200_v31  ;;  %v3204_v48 = vadd.f32 %v3203_v10, %v7548_v1  ;;  %v3224_v56 = vmin.f32 %v7558_v6, %v3214_v43  ;;  %v9258_v24 = vsub.f32 %v3194_v17, %v3223_v54 }
0x10f3   : > { %v3205_v37 = vpop.f32.mrf.mxu0  ;;  %v9274_v17 = vsub.f32 %v3186_v18, %v3220_v40  ;;  %v9278_v10 = vsub.f32 %v3182_v5, %v3219_v50  ;;  %v3238_v55 = vsub.f32 %v9284_v25, %v9189_v38  ;;  %v9333_v40 = vld [vmem:[%s11440_s1 + $0x18] sm:$0xff]  ;;  %v9341_v50 = vld [vmem:[%s11440_s1 + $0x20] sm:$0xff] }
0x10f4   : > { %v3225_v58 = vmin.f32 %v7558_v6, %v3215_v60  ;;  %v3216_v26 = vmax.f32 %v7552_v3, %v3204_v48  ;;  %v3206_v32 = vadd.f32 %v3205_v37, %v7554_v4  ;;  %v9255_v53 = vsub.f32 %v3198_v21, %v3224_v56 }
0x10f5   : > { %v3243_v22 = vsub.f32 %v9258_v24, %v9163_v59  ;;  %v3239_v59 = vsub.f32 %v9278_v10, %v9183_v12 }
0x10f6   : > { %v9250_v33 = vsub.f32 %v3200_v31, %v3225_v58  ;;  %v3226_v28 = vmin.f32 %v7558_v6, %v3216_v26  ;;  %v3217_v36 = vmax.f32 %v7552_v3, %v3206_v32  ;;  %v3244_v43 = vsub.f32 %v9255_v53, %v9160_v39 }
0x10f7   : > { %v3240_v39 = vsub.f32 %v9274_v17, %v9179_v34  ;;  %v3253_v27 = vmul.f32 0.8571379, %v3243_v22  ;;  %v3249_v58 = vmul.f32 0.8571379, %v3239_v59  ;;  %v3248_v26 = vmul.f32 0.8571379, %v3238_v55 }
0x10f8   : > { %v9260_v11 = vsub.f32 %v3204_v48, %v3226_v28  ;;  %v3227_v57 = vmin.f32 %v7558_v6, %v3217_v36  ;;  %v3245_v21 = vsub.f32 %v9250_v33, %v9155_v52  ;;  %v3241_v48 = vsub.f32 %v9266_v29, %v9171_v49  ;;  %v9317_v28 = vld [vmem:[%s11440_s1 + $0x8] sm:$0xff]  ;;  %v9325_v36 = vld [vmem:[%s11440_s1 + $0x10] sm:$0xff] }
0x10f9   : > { %v3254_v5 = vmul.f32 0.8571379, %v3244_v43  ;;  %v3250_v37 = vmul.f32 0.8571379, %v3240_v39  ;;  %v3263_v54 = vadd.f32 %v3253_v27, %v9258_v24  ;;  %v3259_v14 = vadd.f32 %v3249_v58, %v9278_v10 }
0x10fa   : > { %v3246_v31 = vsub.f32 %v9260_v11, %v9165_v35  ;;  %v9270_v7 = vsub.f32 %v3206_v32, %v3227_v57  ;;  %v3242_v35 = vsub.f32 %v9264_v30, %v9169_v20  ;;  %v3255_v18 = vmul.f32 0.8571379, %v3245_v21 }
0x10fb   : > { %v3251_v49 = vmul.f32 0.8571379, %v3241_v48  ;;  %v3264_v34 = vadd.f32 %v3254_v5, %v9255_v53  ;;  %v3260_v32 = vadd.f32 %v3250_v37, %v9274_v17  ;;  %v3258_v44 = vadd.f32 %v3248_v26, %v9284_v25 }
0x10fc   : > { %v3247_v51 = vsub.f32 %v9270_v7, %v9175_v42  ;;  %v3256_v60 = vmul.f32 0.8571379, %v3246_v31  ;;  %v3252_v20 = vmul.f32 0.8571379, %v3242_v35  ;;  %v3265_v56 = vadd.f32 %v3255_v18, %v9250_v33 }
0x10fd   : > { %v3261_v38 = vadd.f32 %v3251_v49, %v9266_v29 }
0x10fe   : > { %v3257_v52 = vmul.f32 0.8571379, %v3247_v51  ;;  %v3266_v9 = vadd.f32 %v3256_v60, %v9260_v11  ;;  %v3262_v12 = vadd.f32 %v3252_v20, %v9264_v30 }
0x1100   : > { %v3267_v42 = vadd.f32 %v3257_v52, %v9270_v7 }
0x1102   : > { %3290 = vmatprep.subr.mxu1 %v3267_v42 }
0x1103   : > { %3291 = vmatpush1.msra.mxu1 %v3266_v9 }
0x1104   : > { %3292 = vmatprep.subr.mxu1 %v3265_v56 }
0x1105   : > { %3293 = vmatpush1.msra.mxu1 %v3264_v34 }
0x1106   : > { %3294 = vmatprep.subr.mxu1 %v3263_v54 }
0x1107   : > { %3295 = vmatpush1.msra.mxu1 %v3262_v12 }
0x1108   : > { %3296 = vmatprep.subr.mxu1 %v3261_v38 }
0x1109   : > { %3297 = vmatpush1.msra.mxu1 %v3260_v32 }
0x110a   : > { %3298 = vmatprep.subr.mxu1 %v3259_v14 }
0x110b   : > { %3299 = vmatpush1.msra.mxu1 %v3258_v44 }
0x110c   : > { %6960 = vmatmul.mubr.msk.f32.vlgmr.msra.gmra.mxu1 %vm469_vm8, %v9309_v41 }
0x110d   : > { %3338 = vmatprep.mubr.f32.mxu1 %v11445_v0 }
0x1110   : > { %6961 = vmatmul.mubr.msk.f32.gmra.mxu1 %vm469_vm8, %v9317_v28 }
0x1111   : > { %3344 = vmatprep.mubr.f32.mxu1 %v11445_v0 }
0x1114   : > { %6962 = vmatmul.mubr.msk.f32.gmra.mxu1 %vm469_vm8, %v9325_v36 }
0x1115   : > { %3350 = vmatprep.mubr.f32.mxu1 %v11445_v0 }
0x1118   : > { %6963 = vmatmul.mubr.msk.f32.gmra.mxu1 %vm469_vm8, %v9333_v40 }
0x1119   : > { %3356 = vmatprep.mubr.f32.mxu1 %v11445_v0 }
0x111c   : > { %6964 = vmatmul.mubr.msk.f32.gmra.mxu1 %vm469_vm8, %v9341_v50 }
0x111d   : > { %3642 = vmatprep.mubr.f32.mxu1 %v11445_v0 }
0x11cc   : > { %v3334_v57 = vpop.f32.mrf.mxu1 }
0x11cd   : > { %v3335_v59 = vadd.f32 %v3334_v57, %v7546_v63 }
0x11ce   : > { %v3336_v47 = vpop.f32.mrf.mxu1 }
0x11cf   : > { %v3337_v18 = vadd.f32 %v3336_v47, %v7550_v2  ;;  %v3363_v44 = vmax.f32 %v7552_v3, %v3335_v59 }
0x11d0   : > { %v3340_v31 = vpop.f32.mrf.mxu1 }
0x11d1   : > { %v3341_v48 = vadd.f32 %v3340_v31, %v7560_v8  ;;  %v3364_v34 = vmax.f32 %v7552_v3, %v3337_v18 }
0x11d2   : > { %v3342_v21 = vpop.f32.mrf.mxu1 }
0x11d3   : > { %v3343_v52 = vadd.f32 %v3342_v21, %v7566_v13  ;;  %v3365_v54 = vmax.f32 %v7552_v3, %v3341_v48 }
0x11d4   : > { %v3346_v43 = vpop.f32.mrf.mxu1 }
0x11d5   : > { %v3347_v35 = vadd.f32 %v3346_v43, %v7570_v19  ;;  %v3366_v56 = vmax.f32 %v7552_v3, %v3343_v52 }
0x11d6   : > { %v3348_v51 = vpop.f32.mrf.mxu1 }
0x11d7   : > { %v3349_v22 = vadd.f32 %v3348_v51, %v7573_v23  ;;  %v3367_v55 = vmax.f32 %v7552_v3, %v3347_v35  ;;  %v3376_v47 = vmin.f32 %v7558_v6, %v3366_v56  ;;  %v3375_v51 = vmin.f32 %v7558_v6, %v3365_v54 }
0x11d8   : > { %v3352_v60 = vpop.f32.mrf.mxu1 }
0x11d9   : > { %v3353_v39 = vadd.f32 %v3352_v60, %v7542_v61  ;;  %v3368_v42 = vmax.f32 %v7552_v3, %v3349_v22  ;;  %v3377_v57 = vmin.f32 %v7558_v6, %v3367_v55  ;;  %v9386_v56 = vsub.f32 %v3343_v52, %v3376_v47 }
0x11da   : > { %v3354_v5 = vpop.f32.mrf.mxu1 }
0x11db   : > { %v3355_v27 = vadd.f32 %v3354_v5, %v7544_v62  ;;  %v3369_v20 = vmax.f32 %v7552_v3, %v3353_v39  ;;  %v3378_v12 = vmin.f32 %v7558_v6, %v3368_v42  ;;  %v3374_v5 = vmin.f32 %v7558_v6, %v3364_v34 }
0x11dc   : > { %v3358_v9 = vpop.f32.mrf.mxu1 }
0x11dd   : > { %v3370_v49 = vmax.f32 %v7552_v3, %v3355_v27  ;;  %v3359_v37 = vadd.f32 %v3358_v9, %v7548_v1  ;;  %v3379_v58 = vmin.f32 %v7558_v6, %v3369_v20  ;;  %v9378_v42 = vsub.f32 %v3349_v22, %v3378_v12 }
0x11de   : > { %v3360_v26 = vpop.f32.mrf.mxu1  ;;  %v3373_v9 = vmin.f32 %v7558_v6, %v3363_v44  ;;  %v9394_v22 = vsub.f32 %v3341_v48, %v3375_v51  ;;  %v9398_v34 = vsub.f32 %v3337_v18, %v3374_v5  ;;  %v3396_v12 = vsub.f32 %v9386_v56, %v9266_v29 }
0x11df   : > { %v3380_v38 = vmin.f32 %v7558_v6, %v3370_v49  ;;  %v3371_v32 = vmax.f32 %v7552_v3, %v3359_v37  ;;  %v3361_v14 = vadd.f32 %v3360_v26, %v7554_v4  ;;  %v9375_v60 = vsub.f32 %v3353_v39, %v3379_v58 }
0x11e0   : > { %v3398_v52 = vsub.f32 %v9378_v42, %v9258_v24  ;;  %v9404_v58 = vsub.f32 %v3335_v59, %v3373_v9  ;;  %v3394_v24 = vsub.f32 %v9398_v34, %v9278_v10  ;;  %v3406_v29 = vmul.f32 0.86378014, %v3396_v12 }
0x11e1   : > { %v9370_v31 = vsub.f32 %v3355_v27, %v3380_v38  ;;  %v3381_v21 = vmin.f32 %v7558_v6, %v3371_v32  ;;  %v3372_v43 = vmax.f32 %v7552_v3, %v3361_v14  ;;  %v9384_v27 = vsub.f32 %v3347_v35, %v3377_v57 }
0x11e2   : > { %v3408_v38 = vmul.f32 0.86378014, %v3398_v52  ;;  %v3393_v59 = vsub.f32 %v9404_v58, %v9284_v25  ;;  %v3404_v47 = vmul.f32 0.86378014, %v3394_v24  ;;  %v3416_v25 = vadd.f32 %v3406_v29, %v9386_v56 }
0x11e3   : > { %v9380_v20 = vsub.f32 %v3359_v37, %v3381_v21  ;;  %v3382_v55 = vmin.f32 %v7558_v6, %v3372_v43  ;;  %v3400_v39 = vsub.f32 %v9370_v31, %v9250_v33  ;;  %v3399_v37 = vsub.f32 %v9375_v60, %v9255_v53 }
0x11e4   : > { %v3395_v53 = vsub.f32 %v9394_v22, %v9274_v17  ;;  %v3418_v57 = vadd.f32 %v3408_v38, %v9378_v42  ;;  %v3403_v21 = vmul.f32 0.86378014, %v3393_v59  ;;  %v3414_v51 = vadd.f32 %v3404_v47, %v9398_v34 }
0x11e5   : > { %v3401_v49 = vsub.f32 %v9380_v20, %v9260_v11  ;;  %v9390_v54 = vsub.f32 %v3361_v14, %v3382_v55  ;;  %v3397_v11 = vsub.f32 %v9384_v27, %v9264_v30  ;;  %v3410_v48 = vmul.f32 0.86378014, %v3400_v39 }
0x11e6   : > { %v3409_v18 = vmul.f32 0.86378014, %v3399_v37  ;;  %v3405_v44 = vmul.f32 0.86378014, %v3395_v53  ;;  %v3413_v5 = vadd.f32 %v3403_v21, %v9404_v58 }
0x11e7   : > { %v3402_v35 = vsub.f32 %v9390_v54, %v9270_v7  ;;  %v3411_v26 = vmul.f32 0.86378014, %v3401_v49  ;;  %v3407_v30 = vmul.f32 0.86378014, %v3397_v11  ;;  %v3420_v14 = vadd.f32 %v3410_v48, %v9370_v31 }
0x11e8   : > { %v3419_v17 = vadd.f32 %v3409_v18, %v9375_v60  ;;  %v3415_v43 = vadd.f32 %v3405_v44, %v9394_v22 }
0x11e9   : > { %v3412_v33 = vmul.f32 0.86378014, %v3402_v35  ;;  %v3421_v32 = vadd.f32 %v3411_v26, %v9380_v20  ;;  %v3417_v10 = vadd.f32 %v3407_v30, %v9384_v27 }
0x11eb   : > { %v3422_v7 = vadd.f32 %v3412_v33, %v9390_v54 }
0x11ed   : > { %3445 = vmatprep.subr.mxu0 %v3422_v7 }
0x11ee   : > { %3446 = vmatpush1.msra.mxu0 %v3421_v32 }
0x11ef   : > { %3447 = vmatprep.subr.mxu0 %v3420_v14 }
0x11f0   : > { %3448 = vmatpush1.msra.mxu0 %v3419_v17 }
0x11f1   : > { %3449 = vmatprep.subr.mxu0 %v3418_v57 }
0x11f2   : > { %3450 = vmatpush1.msra.mxu0 %v3417_v10 }
0x11f3   : > { %3451 = vmatprep.subr.mxu0 %v3416_v25 }
0x11f4   : > { %3452 = vmatpush1.msra.mxu0 %v3415_v43 }
0x11f5   : > { %3453 = vmatprep.subr.mxu0 %v3414_v51 }
0x11f6   : > { %3454 = vmatpush1.msra.mxu0 %v3413_v5 }
0x11f7   : > { %6965 = vmatmul.mubr.msk.f32.vlgmr.msra.gmra.mxu0 %vm469_vm8, %v9309_v41 }
0x11f8   : > { %3493 = vmatprep.mubr.f32.mxu0 %v11445_v0 }
0x11fb   : > { %6966 = vmatmul.mubr.msk.f32.gmra.mxu0 %vm469_vm8, %v9317_v28 }
0x11fc   : > { %3499 = vmatprep.mubr.f32.mxu0 %v11445_v0 }
0x11ff   : > { %6967 = vmatmul.mubr.msk.f32.gmra.mxu0 %vm469_vm8, %v9325_v36 }
0x1200   : > { %3505 = vmatprep.mubr.f32.mxu0 %v11445_v0 }
0x1203   : > { %6968 = vmatmul.mubr.msk.f32.gmra.mxu0 %vm469_vm8, %v9333_v40 }
0x1204   : > { %3511 = vmatprep.mubr.f32.mxu0 %v11445_v0 }
0x1207   : > { %6969 = vmatmul.mubr.msk.f32.gmra.mxu0 %vm469_vm8, %v9341_v50 }
0x1208   : > { %3797 = vmatprep.mubr.f32.mxu0 %v11445_v0 }
0x12b7   : > { %v3489_v55 = vpop.f32.mrf.mxu0 }
0x12b8   : > { %v3490_v24 = vadd.f32 %v3489_v55, %v7546_v63 }
0x12b9   : > { %v3491_v9 = vpop.f32.mrf.mxu0 }
0x12ba   : > { %v3492_v48 = vadd.f32 %v3491_v9, %v7550_v2  ;;  %v3518_v5 = vmax.f32 %v7552_v3, %v3490_v24 }
0x12bb   : > { %v3495_v49 = vpop.f32.mrf.mxu0 }
0x12bc   : > { %v3496_v12 = vadd.f32 %v3495_v49, %v7560_v8  ;;  %v3519_v17 = vmax.f32 %v7552_v3, %v3492_v48 }
0x12bd   : > { %v3497_v39 = vpop.f32.mrf.mxu0 }
0x12be   : > { %v3498_v33 = vadd.f32 %v3497_v39, %v7566_v13  ;;  %v3520_v57 = vmax.f32 %v7552_v3, %v3496_v12 }
0x12bf   : > { %v3501_v37 = vpop.f32.mrf.mxu0 }
0x12c0   : > { %v3502_v11 = vadd.f32 %v3501_v37, %v7570_v19  ;;  %v3521_v14 = vmax.f32 %v7552_v3, %v3498_v33 }
0x12c1   : > { %v3503_v35 = vpop.f32.mrf.mxu0 }
0x12c2   : > { %v3504_v52 = vadd.f32 %v3503_v35, %v7573_v23  ;;  %v3522_v59 = vmax.f32 %v7552_v3, %v3502_v11  ;;  %v3531_v9 = vmin.f32 %v7558_v6, %v3521_v14  ;;  %v3530_v35 = vmin.f32 %v7558_v6, %v3520_v57 }
0x12c3   : > { %v3507_v26 = vpop.f32.mrf.mxu0 }
0x12c4   : > { %v3508_v53 = vadd.f32 %v3507_v26, %v7542_v61  ;;  %v3523_v7 = vmax.f32 %v7552_v3, %v3504_v52  ;;  %v3532_v55 = vmin.f32 %v7558_v6, %v3522_v59  ;;  %v9481_v14 = vsub.f32 %v3498_v33, %v3531_v9 }
0x12c5   : > { %v3509_v18 = vpop.f32.mrf.mxu0 }
0x12c6   : > { %v3510_v38 = vadd.f32 %v3509_v18, %v7544_v62  ;;  %v3524_v30 = vmax.f32 %v7552_v3, %v3508_v53  ;;  %v3533_v10 = vmin.f32 %v7558_v6, %v3523_v7  ;;  %v3529_v18 = vmin.f32 %v7558_v6, %v3519_v17 }
0x12c7   : > { %v3513_v32 = vpop.f32.mrf.mxu0 }
0x12c8   : > { %v3525_v29 = vmax.f32 %v7552_v3, %v3510_v38  ;;  %v3514_v44 = vadd.f32 %v3513_v32, %v7548_v1  ;;  %v3534_v47 = vmin.f32 %v7558_v6, %v3524_v30  ;;  %v9473_v7 = vsub.f32 %v3504_v52, %v3533_v10 }
0x12c9   : > { %v3515_v21 = vpop.f32.mrf.mxu0  ;;  %v3528_v32 = vmin.f32 %v7558_v6, %v3518_v5  ;;  %v9489_v52 = vsub.f32 %v3496_v12, %v3530_v35  ;;  %v9493_v17 = vsub.f32 %v3492_v48, %v3529_v18  ;;  %v3551_v10 = vsub.f32 %v9481_v14, %v9386_v56 }
0x12ca   : > { %v3535_v25 = vmin.f32 %v7558_v6, %v3525_v29  ;;  %v3526_v43 = vmax.f32 %v7552_v3, %v3514_v44  ;;  %v3516_v51 = vadd.f32 %v3515_v21, %v7554_v4  ;;  %v9470_v26 = vsub.f32 %v3508_v53, %v3534_v47 }
0x12cb   : > { %v3553_v33 = vsub.f32 %v9473_v7, %v9378_v42  ;;  %v9499_v47 = vsub.f32 %v3490_v24, %v3528_v32  ;;  %v3549_v42 = vsub.f32 %v9493_v17, %v9398_v34  ;;  %v3561_v56 = vmul.f32 0.8698258, %v3551_v10 }
0x12cc   : > { %v9465_v49 = vsub.f32 %v3510_v38, %v3535_v25  ;;  %v3536_v39 = vmin.f32 %v7558_v6, %v3526_v43  ;;  %v3527_v37 = vmax.f32 %v7552_v3, %v3516_v51  ;;  %v9479_v38 = vsub.f32 %v3502_v11, %v3532_v55 }
0x12cd   : > { %v3563_v25 = vmul.f32 0.8698258, %v3553_v33  ;;  %v3548_v24 = vsub.f32 %v9499_v47, %v9404_v58  ;;  %v3559_v9 = vmul.f32 0.8698258, %v3549_v42  ;;  %v3571_v58 = vadd.f32 %v3561_v56, %v9481_v14 }
0x12ce   : > { %v9475_v30 = vsub.f32 %v3514_v44, %v3536_v39  ;;  %v3537_v59 = vmin.f32 %v7558_v6, %v3527_v37  ;;  %v3555_v53 = vsub.f32 %v9465_v49, %v9370_v31  ;;  %v3554_v44 = vsub.f32 %v9470_v26, %v9375_v60 }
0x12cf   : > { %v3550_v60 = vsub.f32 %v9489_v52, %v9394_v22  ;;  %v3573_v55 = vadd.f32 %v3563_v25, %v9473_v7  ;;  %v3558_v39 = vmul.f32 0.8698258, %v3548_v24  ;;  %v3569_v35 = vadd.f32 %v3559_v9, %v9493_v17 }
0x12d0   : > { %v3556_v29 = vsub.f32 %v9475_v30, %v9380_v20  ;;  %v9485_v57 = vsub.f32 %v3516_v51, %v3537_v59  ;;  %v3552_v20 = vsub.f32 %v9479_v38, %v9384_v27  ;;  %v3565_v12 = vmul.f32 0.8698258, %v3555_v53 }
0x12d1   : > { %v3564_v48 = vmul.f32 0.8698258, %v3554_v44  ;;  %v3560_v5 = vmul.f32 0.8698258, %v3550_v60  ;;  %v3568_v18 = vadd.f32 %v3558_v39, %v9499_v47 }
0x12d2   : > { %v3557_v11 = vsub.f32 %v9485_v57, %v9390_v54  ;;  %v3566_v21 = vmul.f32 0.8698258, %v3556_v29  ;;  %v3562_v27 = vmul.f32 0.8698258, %v3552_v20  ;;  %v3575_v51 = vadd.f32 %v3565_v12, %v9465_v49 }
0x12d3   : > { %v3574_v22 = vadd.f32 %v3564_v48, %v9470_v26  ;;  %v3570_v37 = vadd.f32 %v3560_v5, %v9489_v52 }
0x12d4   : > { %v3567_v31 = vmul.f32 0.8698258, %v3557_v11  ;;  %v3576_v43 = vadd.f32 %v3566_v21, %v9475_v30  ;;  %v3572_v34 = vadd.f32 %v3562_v27, %v9479_v38 }
0x12d6   : > { %v3577_v54 = vadd.f32 %v3567_v31, %v9485_v57 }
0x12d8   : > { %3600 = vmatprep.subr.mxu1 %v3577_v54 }
0x12d9   : > { %3601 = vmatpush1.msra.mxu1 %v3576_v43 }
0x12da   : > { %3602 = vmatprep.subr.mxu1 %v3575_v51 }
0x12db   : > { %3603 = vmatpush1.msra.mxu1 %v3574_v22 }
0x12dc   : > { %3604 = vmatprep.subr.mxu1 %v3573_v55 }
0x12dd   : > { %3605 = vmatpush1.msra.mxu1 %v3572_v34 }
0x12de   : > { %3606 = vmatprep.subr.mxu1 %v3571_v58 }
0x12df   : > { %3607 = vmatpush1.msra.mxu1 %v3570_v37 }
0x12e0   : > { %3608 = vmatprep.subr.mxu1 %v3569_v35 }
0x12e1   : > { %3609 = vmatpush1.msra.mxu1 %v3568_v18 }
0x12e2   : > { %6970 = vmatmul.mubr.msk.f32.vlgmr.msra.gmra.mxu1 %vm469_vm8, %v9309_v41 }
0x12e3   : > { %3648 = vmatprep.mubr.f32.mxu1 %v11445_v0 }
0x12e6   : > { %6971 = vmatmul.mubr.msk.f32.gmra.mxu1 %vm469_vm8, %v9317_v28 }
0x12e7   : > { %3654 = vmatprep.mubr.f32.mxu1 %v11445_v0 }
0x12ea   : > { %6972 = vmatmul.mubr.msk.f32.gmra.mxu1 %vm469_vm8, %v9325_v36 }
0x12eb   : > { %3660 = vmatprep.mubr.f32.mxu1 %v11445_v0 }
0x12ee   : > { %6973 = vmatmul.mubr.msk.f32.gmra.mxu1 %vm469_vm8, %v9333_v40 }
0x12ef   : > { %3666 = vmatprep.mubr.f32.mxu1 %v11445_v0 }
0x12f2   : > { %6974 = vmatmul.mubr.msk.f32.gmra.mxu1 %vm469_vm8, %v9341_v50 }
0x12f3   : > { %3952 = vmatprep.mubr.f32.mxu1 %v11445_v0 }
0x13a2   : > { %v3644_v59 = vpop.f32.mrf.mxu1 }
0x13a3   : > { %v3645_v42 = vadd.f32 %v3644_v59, %v7546_v63 }
0x13a4   : > { %v3646_v32 = vpop.f32.mrf.mxu1 }
0x13a5   : > { %v3647_v12 = vadd.f32 %v3646_v32, %v7550_v2  ;;  %v3673_v18 = vmax.f32 %v7552_v3, %v3645_v42 }
0x13a6   : > { %v3650_v29 = vpop.f32.mrf.mxu1 }
0x13a7   : > { %v3651_v10 = vadd.f32 %v3650_v29, %v7560_v8  ;;  %v3674_v22 = vmax.f32 %v7552_v3, %v3647_v12 }
0x13a8   : > { %v3652_v53 = vpop.f32.mrf.mxu1 }
0x13a9   : > { %v3653_v31 = vadd.f32 %v3652_v53, %v7566_v13  ;;  %v3675_v55 = vmax.f32 %v7552_v3, %v3651_v10 }
0x13aa   : > { %v3656_v44 = vpop.f32.mrf.mxu1 }
0x13ab   : > { %v3657_v20 = vadd.f32 %v3656_v44, %v7570_v19  ;;  %v3676_v51 = vmax.f32 %v7552_v3, %v3653_v31 }
0x13ac   : > { %v3658_v11 = vpop.f32.mrf.mxu1 }
0x13ad   : > { %v3659_v33 = vadd.f32 %v3658_v11, %v7573_v23  ;;  %v3677_v24 = vmax.f32 %v7552_v3, %v3657_v20  ;;  %v3686_v32 = vmin.f32 %v7558_v6, %v3676_v51  ;;  %v3685_v11 = vmin.f32 %v7558_v6, %v3675_v55 }
0x13ae   : > { %v3662_v21 = vpop.f32.mrf.mxu1 }
0x13af   : > { %v3663_v60 = vadd.f32 %v3662_v21, %v7542_v61  ;;  %v3678_v54 = vmax.f32 %v7552_v3, %v3659_v33  ;;  %v3687_v59 = vmin.f32 %v7558_v6, %v3677_v24  ;;  %v9576_v51 = vsub.f32 %v3653_v31, %v3686_v32 }
0x13b0   : > { %v3664_v48 = vpop.f32.mrf.mxu1 }
0x13b1   : > { %v3665_v25 = vadd.f32 %v3664_v48, %v7544_v62  ;;  %v3679_v27 = vmax.f32 %v7552_v3, %v3663_v60  ;;  %v3688_v34 = vmin.f32 %v7558_v6, %v3678_v54  ;;  %v3684_v48 = vmin.f32 %v7558_v6, %v3674_v22 }
0x13b2   : > { %v3668_v43 = vpop.f32.mrf.mxu1 }
0x13b3   : > { %v3680_v56 = vmax.f32 %v7552_v3, %v3665_v25  ;;  %v3669_v5 = vadd.f32 %v3668_v43, %v7548_v1  ;;  %v3689_v9 = vmin.f32 %v7558_v6, %v3679_v27  ;;  %v9568_v54 = vsub.f32 %v3659_v33, %v3688_v34 }
0x13b4   : > { %v3670_v39 = vpop.f32.mrf.mxu1  ;;  %v3683_v43 = vmin.f32 %v7558_v6, %v3673_v18  ;;  %v9584_v33 = vsub.f32 %v3651_v10, %v3685_v11  ;;  %v9588_v22 = vsub.f32 %v3647_v12, %v3684_v48  ;;  %v3706_v34 = vsub.f32 %v9576_v51, %v9481_v14 }
0x13b5   : > { %v3690_v58 = vmin.f32 %v7558_v6, %v3680_v56  ;;  %v3681_v37 = vmax.f32 %v7552_v3, %v3669_v5  ;;  %v3671_v35 = vadd.f32 %v3670_v39, %v7554_v4  ;;  %v9565_v21 = vsub.f32 %v3663_v60, %v3689_v9 }
0x13b6   : > { %v3708_v31 = vsub.f32 %v9568_v54, %v9473_v7  ;;  %v9594_v9 = vsub.f32 %v3645_v42, %v3683_v43  ;;  %v3704_v7 = vsub.f32 %v9588_v22, %v9493_v17  ;;  %v3716_v14 = vmul.f32 0.8753523, %v3706_v34 }
0x13b7   : > { %v9560_v29 = vsub.f32 %v3665_v25, %v3690_v58  ;;  %v3691_v53 = vmin.f32 %v7558_v6, %v3681_v37  ;;  %v3682_v44 = vmax.f32 %v7552_v3, %v3671_v35  ;;  %v9574_v25 = vsub.f32 %v3657_v20, %v3687_v59 }
0x13b8   : > { %v3718_v58 = vmul.f32 0.8753523, %v3708_v31  ;;  %v3703_v42 = vsub.f32 %v9594_v9, %v9499_v47  ;;  %v3714_v32 = vmul.f32 0.8753523, %v3704_v7  ;;  %v3726_v47 = vadd.f32 %v3716_v14, %v9576_v51 }
0x13b9   : > { %v9570_v27 = vsub.f32 %v3669_v5, %v3691_v53  ;;  %v3692_v24 = vmin.f32 %v7558_v6, %v3682_v44  ;;  %v3710_v60 = vsub.f32 %v9560_v29, %v9465_v49  ;;  %v3709_v5 = vsub.f32 %v9565_v21, %v9470_v26 }
0x13ba   : > { %v3705_v26 = vsub.f32 %v9584_v33, %v9489_v52  ;;  %v3728_v59 = vadd.f32 %v3718_v58, %v9568_v54  ;;  %v3713_v53 = vmul.f32 0.8753523, %v3703_v42  ;;  %v3724_v11 = vadd.f32 %v3714_v32, %v9588_v22 }
0x13bb   : > { %v3711_v56 = vsub.f32 %v9570_v27, %v9475_v30  ;;  %v9580_v55 = vsub.f32 %v3671_v35, %v3692_v24  ;;  %v3707_v30 = vsub.f32 %v9574_v25, %v9479_v38  ;;  %v3720_v10 = vmul.f32 0.8753523, %v3710_v60 }
0x13bc   : > { %v3719_v12 = vmul.f32 0.8753523, %v3709_v5  ;;  %v3715_v18 = vmul.f32 0.8753523, %v3705_v26  ;;  %v3723_v48 = vadd.f32 %v3713_v53, %v9594_v9 }
0x13bd   : > { %v3712_v20 = vsub.f32 %v9580_v55, %v9485_v57  ;;  %v3721_v39 = vmul.f32 0.8753523, %v3711_v56  ;;  %v3717_v38 = vmul.f32 0.8753523, %v3707_v30  ;;  %v3730_v35 = vadd.f32 %v3720_v10, %v9560_v29 }
0x13be   : > { %v3729_v52 = vadd.f32 %v3719_v12, %v9565_v21  ;;  %v3725_v44 = vadd.f32 %v3715_v18, %v9584_v33 }
0x13bf   : > { %v3722_v49 = vmul.f32 0.8753523, %v3712_v20  ;;  %v3731_v37 = vadd.f32 %v3721_v39, %v9570_v27  ;;  %v3727_v17 = vadd.f32 %v3717_v38, %v9574_v25 }
0x13c1   : > { %v3732_v57 = vadd.f32 %v3722_v49, %v9580_v55 }
0x13c3   : > { %3755 = vmatprep.subr.mxu0 %v3732_v57 }
0x13c4   : > { %3756 = vmatpush1.msra.mxu0 %v3731_v37 }
0x13c5   : > { %3757 = vmatprep.subr.mxu0 %v3730_v35 }
0x13c6   : > { %3758 = vmatpush1.msra.mxu0 %v3729_v52 }
0x13c7   : > { %3759 = vmatprep.subr.mxu0 %v3728_v59 }
0x13c8   : > { %3760 = vmatpush1.msra.mxu0 %v3727_v17 }
0x13c9   : > { %3761 = vmatprep.subr.mxu0 %v3726_v47 }
0x13ca   : > { %3762 = vmatpush1.msra.mxu0 %v3725_v44 }
0x13cb   : > { %3763 = vmatprep.subr.mxu0 %v3724_v11 }
0x13cc   : > { %3764 = vmatpush1.msra.mxu0 %v3723_v48 }
0x13cd   : > { %6975 = vmatmul.mubr.msk.f32.vlgmr.msra.gmra.mxu0 %vm469_vm8, %v9309_v41 }
0x13ce   : > { %3803 = vmatprep.mubr.f32.mxu0 %v11445_v0 }
0x13d1   : > { %6976 = vmatmul.mubr.msk.f32.gmra.mxu0 %vm469_vm8, %v9317_v28 }
0x13d2   : > { %3809 = vmatprep.mubr.f32.mxu0 %v11445_v0 }
0x13d5   : > { %6977 = vmatmul.mubr.msk.f32.gmra.mxu0 %vm469_vm8, %v9325_v36 }
0x13d6   : > { %3815 = vmatprep.mubr.f32.mxu0 %v11445_v0 }
0x13d9   : > { %6978 = vmatmul.mubr.msk.f32.gmra.mxu0 %vm469_vm8, %v9333_v40 }
0x13da   : > { %3821 = vmatprep.mubr.f32.mxu0 %v11445_v0 }
0x13dd   : > { %6979 = vmatmul.mubr.msk.f32.gmra.mxu0 %vm469_vm8, %v9341_v50 }
0x13de   : > { %4107 = vmatprep.mubr.f32.mxu0 %v11445_v0 }
0x148d   : > { %v3799_v24 = vpop.f32.mrf.mxu0 }
0x148e   : > { %v3800_v7 = vadd.f32 %v3799_v24, %v7546_v63 }
0x148f   : > { %v3801_v43 = vpop.f32.mrf.mxu0 }
0x1490   : > { %v3802_v10 = vadd.f32 %v3801_v43, %v7550_v2  ;;  %v3828_v48 = vmax.f32 %v7552_v3, %v3800_v7 }
0x1491   : > { %v3805_v56 = vpop.f32.mrf.mxu0 }
0x1492   : > { %v3806_v34 = vadd.f32 %v3805_v56, %v7560_v8  ;;  %v3829_v52 = vmax.f32 %v7552_v3, %v3802_v10 }
0x1493   : > { %v3807_v60 = vpop.f32.mrf.mxu0 }
0x1494   : > { %v3808_v49 = vadd.f32 %v3807_v60, %v7566_v13  ;;  %v3830_v59 = vmax.f32 %v7552_v3, %v3806_v34 }
0x1495   : > { %v3811_v5 = vpop.f32.mrf.mxu0 }
0x1496   : > { %v3812_v30 = vadd.f32 %v3811_v5, %v7570_v19  ;;  %v3831_v35 = vmax.f32 %v7552_v3, %v3808_v49 }
0x1497   : > { %v3813_v20 = vpop.f32.mrf.mxu0 }
0x1498   : > { %v3814_v31 = vadd.f32 %v3813_v20, %v7573_v23  ;;  %v3832_v42 = vmax.f32 %v7552_v3, %v3812_v30  ;;  %v3841_v43 = vmin.f32 %v7558_v6, %v3831_v35  ;;  %v3840_v20 = vmin.f32 %v7558_v6, %v3830_v59 }
0x1499   : > { %v3817_v39 = vpop.f32.mrf.mxu0 }
0x149a   : > { %v3818_v26 = vadd.f32 %v3817_v39, %v7542_v61  ;;  %v3833_v57 = vmax.f32 %v7552_v3, %v3814_v31  ;;  %v3842_v24 = vmin.f32 %v7558_v6, %v3832_v42  ;;  %v9671_v35 = vsub.f32 %v3808_v49, %v3841_v43 }
0x149b   : > { %v3819_v12 = vpop.f32.mrf.mxu0 }
0x149c   : > { %v3820_v58 = vadd.f32 %v3819_v12, %v7544_v62  ;;  %v3834_v38 = vmax.f32 %v7552_v3, %v3818_v26  ;;  %v3843_v17 = vmin.f32 %v7558_v6, %v3833_v57  ;;  %v3839_v12 = vmin.f32 %v7558_v6, %v3829_v52 }
0x149d   : > { %v3823_v37 = vpop.f32.mrf.mxu0 }
0x149e   : > { %v3835_v14 = vmax.f32 %v7552_v3, %v3820_v58  ;;  %v3824_v18 = vadd.f32 %v3823_v37, %v7548_v1  ;;  %v3844_v32 = vmin.f32 %v7558_v6, %v3834_v38  ;;  %v9663_v57 = vsub.f32 %v3814_v31, %v3843_v17 }
0x149f   : > { %v3825_v53 = vpop.f32.mrf.mxu0  ;;  %v3838_v37 = vmin.f32 %v7558_v6, %v3828_v48  ;;  %v9679_v31 = vsub.f32 %v3806_v34, %v3840_v20  ;;  %v9683_v52 = vsub.f32 %v3802_v10, %v3839_v12  ;;  %v3861_v17 = vsub.f32 %v9671_v35, %v9576_v51 }
0x14a0   : > { %v3845_v47 = vmin.f32 %v7558_v6, %v3835_v14  ;;  %v3836_v44 = vmax.f32 %v7552_v3, %v3824_v18  ;;  %v3826_v11 = vadd.f32 %v3825_v53, %v7554_v4  ;;  %v9660_v39 = vsub.f32 %v3818_v26, %v3844_v32 }
0x14a1   : > { %v3863_v49 = vsub.f32 %v9663_v57, %v9568_v54  ;;  %v9689_v32 = vsub.f32 %v3800_v7, %v3838_v37  ;;  %v3859_v54 = vsub.f32 %v9683_v52, %v9588_v22  ;;  %v3871_v51 = vmul.f32 0.8804243, %v3861_v17 }
0x14a2   : > { %v9655_v56 = vsub.f32 %v3820_v58, %v3845_v47  ;;  %v3846_v60 = vmin.f32 %v7558_v6, %v3836_v44  ;;  %v3837_v5 = vmax.f32 %v7552_v3, %v3826_v11  ;;  %v9669_v58 = vsub.f32 %v3812_v30, %v3842_v24 }
0x14a3   : > { %v3873_v47 = vmul.f32 0.8804243, %v3863_v49  ;;  %v3858_v7 = vsub.f32 %v9689_v32, %v9594_v9  ;;  %v3869_v43 = vmul.f32 0.8804243, %v3859_v54  ;;  %v3881_v9 = vadd.f32 %v3871_v51, %v9671_v35 }
0x14a4   : > { %v9665_v38 = vsub.f32 %v3824_v18, %v3846_v60  ;;  %v3847_v42 = vmin.f32 %v7558_v6, %v3837_v5  ;;  %v3865_v26 = vsub.f32 %v9655_v56, %v9560_v29  ;;  %v3864_v18 = vsub.f32 %v9660_v39, %v9565_v21 }
0x14a5   : > { %v3860_v21 = vsub.f32 %v9679_v31, %v9584_v33  ;;  %v3883_v24 = vadd.f32 %v3873_v47, %v9663_v57  ;;  %v3868_v60 = vmul.f32 0.8804243, %v3858_v7  ;;  %v3879_v20 = vadd.f32 %v3869_v43, %v9683_v52 }
0x14a6   : > { %v3866_v14 = vsub.f32 %v9665_v38, %v9570_v27  ;;  %v9675_v59 = vsub.f32 %v3826_v11, %v3847_v42  ;;  %v3862_v27 = vsub.f32 %v9669_v58, %v9574_v25  ;;  %v3875_v34 = vmul.f32 0.8804243, %v3865_v26 }
0x14a7   : > { %v3874_v10 = vmul.f32 0.8804243, %v3864_v18  ;;  %v3870_v48 = vmul.f32 0.8804243, %v3860_v21  ;;  %v3878_v12 = vadd.f32 %v3868_v60, %v9689_v32 }
0x14a8   : > { %v3867_v30 = vsub.f32 %v9675_v59, %v9580_v55  ;;  %v3876_v53 = vmul.f32 0.8804243, %v3866_v14  ;;  %v3872_v25 = vmul.f32 0.8804243, %v3862_v27  ;;  %v3885_v11 = vadd.f32 %v3875_v34, %v9655_v56 }
0x14a9   : > { %v3884_v33 = vadd.f32 %v3874_v10, %v9660_v39  ;;  %v3880_v5 = vadd.f32 %v3870_v48, %v9679_v31 }
0x14aa   : > { %v3877_v29 = vmul.f32 0.8804243, %v3867_v30  ;;  %v3886_v44 = vadd.f32 %v3876_v53, %v9665_v38  ;;  %v3882_v22 = vadd.f32 %v3872_v25, %v9669_v58 }
0x14ac   : > { %v3887_v55 = vadd.f32 %v3877_v29, %v9675_v59 }
0x14ae   : > { %3910 = vmatprep.subr.mxu1 %v3887_v55 }
0x14af   : > { %3911 = vmatpush1.msra.mxu1 %v3886_v44 }
0x14b0   : > { %3912 = vmatprep.subr.mxu1 %v3885_v11 }
0x14b1   : > { %3913 = vmatpush1.msra.mxu1 %v3884_v33 }
0x14b2   : > { %3914 = vmatprep.subr.mxu1 %v3883_v24 }
0x14b3   : > { %3915 = vmatpush1.msra.mxu1 %v3882_v22 }
0x14b4   : > { %3916 = vmatprep.subr.mxu1 %v3881_v9 }
0x14b5   : > { %3917 = vmatpush1.msra.mxu1 %v3880_v5 }
0x14b6   : > { %3918 = vmatprep.subr.mxu1 %v3879_v20 }
0x14b7   : > { %3919 = vmatpush1.msra.mxu1 %v3878_v12 }
0x14b8   : > { %6980 = vmatmul.mubr.msk.f32.vlgmr.msra.gmra.mxu1 %vm469_vm8, %v9309_v41 }
0x14b9   : > { %3958 = vmatprep.mubr.f32.mxu1 %v11445_v0 }
0x14bc   : > { %6981 = vmatmul.mubr.msk.f32.gmra.mxu1 %vm469_vm8, %v9317_v28 }
0x14bd   : > { %3964 = vmatprep.mubr.f32.mxu1 %v11445_v0 }
0x14c0   : > { %6982 = vmatmul.mubr.msk.f32.gmra.mxu1 %vm469_vm8, %v9325_v36 }
0x14c1   : > { %3970 = vmatprep.mubr.f32.mxu1 %v11445_v0 }
0x14c4   : > { %6983 = vmatmul.mubr.msk.f32.gmra.mxu1 %vm469_vm8, %v9333_v40 }
0x14c5   : > { %3976 = vmatprep.mubr.f32.mxu1 %v11445_v0 }
0x14c8   : > { %6984 = vmatmul.mubr.msk.f32.gmra.mxu1 %vm469_vm8, %v9341_v50 }
0x14c9   : > { %4262 = vmatprep.mubr.f32.mxu1 %v11445_v0 }
0x1578   : > { %v3954_v42 = vpop.f32.mrf.mxu1 }
0x1579   : > { %v3955_v54 = vadd.f32 %v3954_v42, %v7546_v63 }
0x157a   : > { %v3956_v37 = vpop.f32.mrf.mxu1 }
0x157b   : > { %v3957_v34 = vadd.f32 %v3956_v37, %v7550_v2  ;;  %v3983_v12 = vmax.f32 %v7552_v3, %v3955_v54 }
0x157c   : > { %v3960_v14 = vpop.f32.mrf.mxu1 }
0x157d   : > { %v3961_v17 = vadd.f32 %v3960_v14, %v7560_v8  ;;  %v3984_v33 = vmax.f32 %v7552_v3, %v3957_v34 }
0x157e   : > { %v3962_v26 = vpop.f32.mrf.mxu1 }
0x157f   : > { %v3963_v29 = vadd.f32 %v3962_v26, %v7566_v13  ;;  %v3985_v24 = vmax.f32 %v7552_v3, %v3961_v17 }
0x1580   : > { %v3966_v18 = vpop.f32.mrf.mxu1 }
0x1581   : > { %v3967_v27 = vadd.f32 %v3966_v18, %v7570_v19  ;;  %v3986_v11 = vmax.f32 %v7552_v3, %v3963_v29 }
0x1582   : > { %v3968_v30 = vpop.f32.mrf.mxu1 }
0x1583   : > { %v3969_v49 = vadd.f32 %v3968_v30, %v7573_v23  ;;  %v3987_v7 = vmax.f32 %v7552_v3, %v3967_v27  ;;  %v3996_v37 = vmin.f32 %v7558_v6, %v3986_v11  ;;  %v3995_v30 = vmin.f32 %v7558_v6, %v3985_v24 }
0x1584   : > { %v3972_v53 = vpop.f32.mrf.mxu1 }
0x1585   : > { %v3973_v21 = vadd.f32 %v3972_v53, %v7542_v61  ;;  %v3988_v55 = vmax.f32 %v7552_v3, %v3969_v49  ;;  %v3997_v42 = vmin.f32 %v7558_v6, %v3987_v7  ;;  %v9766_v11 = vsub.f32 %v3963_v29, %v3996_v37 }
0x1586   : > { %v3974_v10 = vpop.f32.mrf.mxu1 }
0x1587   : > { %v3975_v47 = vadd.f32 %v3974_v10, %v7544_v62  ;;  %v3989_v25 = vmax.f32 %v7552_v3, %v3973_v21  ;;  %v3998_v22 = vmin.f32 %v7558_v6, %v3988_v55  ;;  %v3994_v10 = vmin.f32 %v7558_v6, %v3984_v33 }
0x1588   : > { %v3978_v44 = vpop.f32.mrf.mxu1 }
0x1589   : > { %v3990_v51 = vmax.f32 %v7552_v3, %v3975_v47  ;;  %v3979_v48 = vadd.f32 %v3978_v44, %v7548_v1  ;;  %v3999_v43 = vmin.f32 %v7558_v6, %v3989_v25  ;;  %v9758_v55 = vsub.f32 %v3969_v49, %v3998_v22 }
0x158a   : > { %v3980_v60 = vpop.f32.mrf.mxu1  ;;  %v3993_v44 = vmin.f32 %v7558_v6, %v3983_v12  ;;  %v9774_v49 = vsub.f32 %v3961_v17, %v3995_v30  ;;  %v9778_v33 = vsub.f32 %v3957_v34, %v3994_v10  ;;  %v4016_v22 = vsub.f32 %v9766_v11, %v9671_v35 }
0x158b   : > { %v4000_v9 = vmin.f32 %v7558_v6, %v3990_v51  ;;  %v3991_v5 = vmax.f32 %v7552_v3, %v3979_v48  ;;  %v3981_v20 = vadd.f32 %v3980_v60, %v7554_v4  ;;  %v9755_v53 = vsub.f32 %v3973_v21, %v3999_v43 }
0x158c   : > { %v4018_v29 = vsub.f32 %v9758_v55, %v9663_v57  ;;  %v9784_v43 = vsub.f32 %v3955_v54, %v3993_v44  ;;  %v4014_v57 = vsub.f32 %v9778_v33, %v9683_v52  ;;  %v4026_v35 = vmul.f32 0.8850959, %v4016_v22 }
0x158d   : > { %v9750_v14 = vsub.f32 %v3975_v47, %v4000_v9  ;;  %v4001_v26 = vmin.f32 %v7558_v6, %v3991_v5  ;;  %v3992_v18 = vmax.f32 %v7552_v3, %v3981_v20  ;;  %v9764_v47 = vsub.f32 %v3967_v27, %v3997_v42 }
0x158e   : > { %v4028_v9 = vmul.f32 0.8850959, %v4018_v29  ;;  %v4013_v54 = vsub.f32 %v9784_v43, %v9689_v32  ;;  %v4024_v37 = vmul.f32 0.8850959, %v4014_v57  ;;  %v4036_v32 = vadd.f32 %v4026_v35, %v9766_v11 }
0x158f   : > { %v9760_v25 = vsub.f32 %v3979_v48, %v4001_v26  ;;  %v4002_v7 = vmin.f32 %v7558_v6, %v3992_v18  ;;  %v4020_v21 = vsub.f32 %v9750_v14, %v9655_v56  ;;  %v4019_v48 = vsub.f32 %v9755_v53, %v9660_v39 }
0x1590   : > { %v4015_v39 = vsub.f32 %v9774_v49, %v9679_v31  ;;  %v4038_v42 = vadd.f32 %v4028_v9, %v9758_v55  ;;  %v4023_v26 = vmul.f32 0.8850959, %v4013_v54  ;;  %v4034_v30 = vadd.f32 %v4024_v37, %v9778_v33 }
0x1591   : > { %v4021_v51 = vsub.f32 %v9760_v25, %v9665_v38  ;;  %v9770_v24 = vsub.f32 %v3981_v20, %v4002_v7  ;;  %v4017_v38 = vsub.f32 %v9764_v47, %v9669_v58  ;;  %v4030_v17 = vmul.f32 0.8850959, %v4020_v21 }
0x1592   : > { %v4029_v34 = vmul.f32 0.8850959, %v4019_v48  ;;  %v4025_v12 = vmul.f32 0.8850959, %v4015_v39  ;;  %v4033_v10 = vadd.f32 %v4023_v26, %v9784_v43 }
0x1593   : > { %v4022_v27 = vsub.f32 %v9770_v24, %v9675_v59  ;;  %v4031_v60 = vmul.f32 0.8850959, %v4021_v51  ;;  %v4027_v58 = vmul.f32 0.8850959, %v4017_v38  ;;  %v4040_v20 = vadd.f32 %v4030_v17, %v9750_v14 }
0x1594   : > { %v4039_v31 = vadd.f32 %v4029_v34, %v9755_v53  ;;  %v4035_v18 = vadd.f32 %v4025_v12, %v9774_v49 }
0x1595   : > { %v4032_v56 = vmul.f32 0.8850959, %v4022_v27  ;;  %v4041_v5 = vadd.f32 %v4031_v60, %v9760_v25  ;;  %v4037_v52 = vadd.f32 %v4027_v58, %v9764_v47 }
0x1597   : > { %v4042_v59 = vadd.f32 %v4032_v56, %v9770_v24 }
0x1599   : > { %4065 = vmatprep.subr.mxu0 %v4042_v59 }
0x159a   : > { %4066 = vmatpush1.msra.mxu0 %v4041_v5 }
0x159b   : > { %4067 = vmatprep.subr.mxu0 %v4040_v20 }
0x159c   : > { %4068 = vmatpush1.msra.mxu0 %v4039_v31 }
0x159d   : > { %4069 = vmatprep.subr.mxu0 %v4038_v42 }
0x159e   : > { %4070 = vmatpush1.msra.mxu0 %v4037_v52 }
0x159f   : > { %4071 = vmatprep.subr.mxu0 %v4036_v32 }
0x15a0   : > { %4072 = vmatpush1.msra.mxu0 %v4035_v18 }
0x15a1   : > { %4073 = vmatprep.subr.mxu0 %v4034_v30 }
0x15a2   : > { %4074 = vmatpush1.msra.mxu0 %v4033_v10 }
0x15a3   : > { %6985 = vmatmul.mubr.msk.f32.vlgmr.msra.gmra.mxu0 %vm469_vm8, %v9309_v41 }
0x15a4   : > { %4113 = vmatprep.mubr.f32.mxu0 %v11445_v0 }
0x15a7   : > { %6986 = vmatmul.mubr.msk.f32.gmra.mxu0 %vm469_vm8, %v9317_v28 }
0x15a8   : > { %4119 = vmatprep.mubr.f32.mxu0 %v11445_v0 }
0x15ab   : > { %6987 = vmatmul.mubr.msk.f32.gmra.mxu0 %vm469_vm8, %v9325_v36 }
0x15ac   : > { %4125 = vmatprep.mubr.f32.mxu0 %v11445_v0 }
0x15af   : > { %6988 = vmatmul.mubr.msk.f32.gmra.mxu0 %vm469_vm8, %v9333_v40 }
0x15b0   : > { %4131 = vmatprep.mubr.f32.mxu0 %v11445_v0 }
0x15b3   : > { %6989 = vmatmul.mubr.msk.f32.gmra.mxu0 %vm469_vm8, %v9341_v50 }
0x15b4   : > { %4417 = vmatprep.mubr.f32.mxu0 %v11445_v0 }
0x1663   : > { %v4109_v41 = vpop.f32.mrf.mxu0 }
0x1664   : > { %v4110_v22 = vadd.f32 %v4109_v41, %v7546_v63 }
0x1665   : > { %v4111_v7 = vpop.f32.mrf.mxu0 }
0x1666   : > { %v4112_v29 = vadd.f32 %v4111_v7, %v7550_v2  ;;  %v4138_v26 = vmax.f32 %v7552_v3, %v4110_v22 }
0x1667   : > { %v4115_v28 = vpop.f32.mrf.mxu0 }
0x1668   : > { %v4116_v38 = vadd.f32 %v4115_v28, %v7560_v8  ;;  %v4139_v58 = vmax.f32 %v7552_v3, %v4112_v29 }
0x1669   : > { %v4117_v44 = vpop.f32.mrf.mxu0 }
0x166a   : > { %v4118_v40 = vadd.f32 %v4117_v44, %v7566_v13  ;;  %v4140_v5 = vmax.f32 %v7552_v3, %v4116_v38  ;;  %v4149_v28 = vmin.f32 %v7558_v6, %v4139_v58 }
0x166b   : > { %v4121_v51 = vpop.f32.mrf.mxu0 }
0x166c   : > { %v4122_v48 = vadd.f32 %v4121_v51, %v7570_v19  ;;  %v4141_v9 = vmax.f32 %v7552_v3, %v4118_v40  ;;  %v4150_v41 = vmin.f32 %v7558_v6, %v4140_v5 }
0x166d   : > { %v4123_v21 = vpop.f32.mrf.mxu0 }
0x166e   : > { %v4124_v36 = vadd.f32 %v4123_v21, %v7573_v23  ;;  %v4142_v39 = vmax.f32 %v7552_v3, %v4122_v48  ;;  %v4151_v32 = vmin.f32 %v7558_v6, %v4141_v9 }
0x166f   : > { %v4127_v27 = vpop.f32.mrf.mxu0 }
0x1670   : > { %v4128_v50 = vadd.f32 %v4127_v27, %v7542_v61  ;;  %v4143_v56 = vmax.f32 %v7552_v3, %v4124_v36  ;;  %v4152_v52 = vmin.f32 %v7558_v6, %v4142_v39  ;;  %v4148_v27 = vmin.f32 %v7558_v6, %v4138_v26 }
0x1671   : > { %v4129_v60 = vpop.f32.mrf.mxu0 }
0x1672   : > { %v4130_v17 = vadd.f32 %v4129_v60, %v7544_v62  ;;  %v4144_v34 = vmax.f32 %v7552_v3, %v4128_v50  ;;  %v4153_v12 = vmin.f32 %v7558_v6, %v4143_v56  ;;  %v9859_v60 = vsub.f32 %v4122_v48, %v4152_v52 }
0x1673   : > { %v4133_v59 = vpop.f32.mrf.mxu0  ;;  %v9861_v56 = vsub.f32 %v4118_v40, %v4151_v32  ;;  %v9879_v9 = vsub.f32 %v4110_v22, %v4148_v27  ;;  %v9904_v32 = vld [vmem:[%s11440_s1] sm:$0xff] }
0x1674   : > { %v4145_v57 = vmax.f32 %v7552_v3, %v4130_v17  ;;  %v4134_v54 = vadd.f32 %v4133_v59, %v7548_v1  ;;  %v4154_v20 = vmin.f32 %v7558_v6, %v4144_v34  ;;  %v9853_v44 = vsub.f32 %v4124_v36, %v4153_v12 }
0x1675   : > { %v4135_v35 = vpop.f32.mrf.mxu0  ;;  %v9869_v36 = vsub.f32 %v4116_v38, %v4150_v41  ;;  %v9873_v59 = vsub.f32 %v4112_v29, %v4149_v28  ;;  %v4168_v22 = vsub.f32 %v9879_v9, %v9784_v43  ;;  %v9928_v41 = vld [vmem:[%s11440_s1 + $0x18] sm:$0xff]  ;;  %v9936_v28 = vld [vmem:[%s11440_s1 + $0x20] sm:$0xff] }
0x1676   : > { %v4155_v31 = vmin.f32 %v7558_v6, %v4145_v57  ;;  %v4146_v42 = vmax.f32 %v7552_v3, %v4134_v54  ;;  %v4136_v37 = vadd.f32 %v4135_v35, %v7554_v4  ;;  %v9850_v7 = vsub.f32 %v4128_v50, %v4154_v20 }
0x1677   : > { %v4173_v40 = vsub.f32 %v9853_v44, %v9758_v55  ;;  %v4169_v55 = vsub.f32 %v9873_v59, %v9778_v33 }
0x1678   : > { %v9845_v18 = vsub.f32 %v4130_v17, %v4155_v31  ;;  %v4156_v30 = vmin.f32 %v7558_v6, %v4146_v42  ;;  %v4147_v10 = vmax.f32 %v7552_v3, %v4136_v37  ;;  %v4174_v34 = vsub.f32 %v9850_v7, %v9755_v53 }
0x1679   : > { %v4170_v53 = vsub.f32 %v9869_v36, %v9774_v49  ;;  %v4183_v58 = vmul.f32 0.889413, %v4173_v40  ;;  %v4179_v31 = vmul.f32 0.889413, %v4169_v55  ;;  %v4178_v42 = vmul.f32 0.889413, %v4168_v22 }
0x167a   : > { %v9855_v51 = vsub.f32 %v4134_v54, %v4156_v30  ;;  %v4157_v21 = vmin.f32 %v7558_v6, %v4147_v10  ;;  %v4175_v50 = vsub.f32 %v9845_v18, %v9750_v14  ;;  %v4171_v54 = vsub.f32 %v9861_v56, %v9766_v11  ;;  %v9912_v30 = vld [vmem:[%s11440_s1 + $0x8] sm:$0xff]  ;;  %v9920_v10 = vld [vmem:[%s11440_s1 + $0x10] sm:$0xff] }
0x167b   : > { %v4184_v29 = vmul.f32 0.889413, %v4174_v34  ;;  %v4180_v35 = vmul.f32 0.889413, %v4170_v53  ;;  %v4193_v12 = vadd.f32 %v4183_v58, %v9853_v44  ;;  %v4189_v26 = vadd.f32 %v4179_v31, %v9873_v59 }
0x167c   : > { %v4176_v17 = vsub.f32 %v9855_v51, %v9760_v25  ;;  %v9865_v39 = vsub.f32 %v4136_v37, %v4157_v21  ;;  %v4172_v25 = vsub.f32 %v9859_v60, %v9764_v47  ;;  %v4185_v38 = vmul.f32 0.889413, %v4175_v50 }
0x167d   : > { %v4181_v11 = vmul.f32 0.889413, %v4171_v54  ;;  %v4194_v49 = vadd.f32 %v4184_v29, %v9850_v7  ;;  %v4190_v37 = vadd.f32 %v4180_v35, %v9869_v36  ;;  %v4188_v52 = vadd.f32 %v4178_v42, %v9879_v9 }
0x167e   : > { %v4177_v48 = vsub.f32 %v9865_v39, %v9770_v24  ;;  %v4186_v57 = vmul.f32 0.889413, %v4176_v17  ;;  %v4182_v47 = vmul.f32 0.889413, %v4172_v25  ;;  %v4195_v20 = vadd.f32 %v4185_v38, %v9845_v18 }
0x167f   : > { %v4191_v43 = vadd.f32 %v4181_v11, %v9861_v56 }
0x1680   : > { %v4187_v14 = vmul.f32 0.889413, %v4177_v48  ;;  %v4196_v5 = vadd.f32 %v4186_v57, %v9855_v51  ;;  %v4192_v33 = vadd.f32 %v4182_v47, %v9859_v60 }
0x1682   : > { %v4197_v24 = vadd.f32 %v4187_v14, %v9865_v39 }
0x1684   : > { %4220 = vmatprep.subr.mxu1 %v4197_v24 }
0x1685   : > { %4221 = vmatpush1.msra.mxu1 %v4196_v5 }
0x1686   : > { %4222 = vmatprep.subr.mxu1 %v4195_v20 }
0x1687   : > { %4223 = vmatpush1.msra.mxu1 %v4194_v49 }
0x1688   : > { %4224 = vmatprep.subr.mxu1 %v4193_v12 }
0x1689   : > { %4225 = vmatpush1.msra.mxu1 %v4192_v33 }
0x168a   : > { %4226 = vmatprep.subr.mxu1 %v4191_v43 }
0x168b   : > { %4227 = vmatpush1.msra.mxu1 %v4190_v37 }
0x168c   : > { %4228 = vmatprep.subr.mxu1 %v4189_v26 }
0x168d   : > { %4229 = vmatpush1.msra.mxu1 %v4188_v52 }
0x168e   : > { %6990 = vmatmul.mubr.msk.f32.vlgmr.msra.gmra.mxu1 %vm469_vm8, %v9904_v32 }
0x168f   : > { %4268 = vmatprep.mubr.f32.mxu1 %v11445_v0 }
0x1692   : > { %6991 = vmatmul.mubr.msk.f32.gmra.mxu1 %vm469_vm8, %v9912_v30 }
0x1693   : > { %4274 = vmatprep.mubr.f32.mxu1 %v11445_v0 }
0x1696   : > { %6992 = vmatmul.mubr.msk.f32.gmra.mxu1 %vm469_vm8, %v9920_v10 }
0x1697   : > { %4280 = vmatprep.mubr.f32.mxu1 %v11445_v0 }
0x169a   : > { %6993 = vmatmul.mubr.msk.f32.gmra.mxu1 %vm469_vm8, %v9928_v41 }
0x169b   : > { %4286 = vmatprep.mubr.f32.mxu1 %v11445_v0 }
0x169e   : > { %6994 = vmatmul.mubr.msk.f32.gmra.mxu1 %vm469_vm8, %v9936_v28 }
0x169f   : > { %4572 = vmatprep.mubr.f32.mxu1 %v11445_v0 }
0x174e   : > { %v4264_v21 = vpop.f32.mrf.mxu1 }
0x174f   : > { %v4265_v55 = vadd.f32 %v4264_v21, %v7546_v63 }
0x1750   : > { %v4266_v27 = vpop.f32.mrf.mxu1 }
0x1751   : > { %v4267_v38 = vadd.f32 %v4266_v27, %v7550_v2  ;;  %v4293_v52 = vmax.f32 %v7552_v3, %v4265_v55 }
0x1752   : > { %v4270_v17 = vpop.f32.mrf.mxu1 }
0x1753   : > { %v4271_v54 = vadd.f32 %v4270_v17, %v7560_v8  ;;  %v4294_v49 = vmax.f32 %v7552_v3, %v4267_v38 }
0x1754   : > { %v4272_v50 = vpop.f32.mrf.mxu1 }
0x1755   : > { %v4273_v14 = vadd.f32 %v4272_v50, %v7566_v13  ;;  %v4295_v12 = vmax.f32 %v7552_v3, %v4271_v54 }
0x1756   : > { %v4276_v34 = vpop.f32.mrf.mxu1 }
0x1757   : > { %v4277_v25 = vadd.f32 %v4276_v34, %v7570_v19  ;;  %v4296_v20 = vmax.f32 %v7552_v3, %v4273_v14 }
0x1758   : > { %v4278_v48 = vpop.f32.mrf.mxu1 }
0x1759   : > { %v4279_v40 = vadd.f32 %v4278_v48, %v7573_v23  ;;  %v4297_v22 = vmax.f32 %v7552_v3, %v4277_v25  ;;  %v4306_v27 = vmin.f32 %v7558_v6, %v4296_v20  ;;  %v4305_v48 = vmin.f32 %v7558_v6, %v4295_v12 }
0x175a   : > { %v4282_v57 = vpop.f32.mrf.mxu1 }
0x175b   : > { %v4283_v53 = vadd.f32 %v4282_v57, %v7542_v61  ;;  %v4298_v24 = vmax.f32 %v7552_v3, %v4279_v40  ;;  %v4307_v21 = vmin.f32 %v7558_v6, %v4297_v22  ;;  %v9981_v20 = vsub.f32 %v4273_v14, %v4306_v27 }
0x175c   : > { %v4284_v29 = vpop.f32.mrf.mxu1 }
0x175d   : > { %v4285_v58 = vadd.f32 %v4284_v29, %v7544_v62  ;;  %v4299_v47 = vmax.f32 %v7552_v3, %v4283_v53  ;;  %v4308_v33 = vmin.f32 %v7558_v6, %v4298_v24  ;;  %v4304_v29 = vmin.f32 %v7558_v6, %v4294_v49 }
0x175e   : > { %v4288_v5 = vpop.f32.mrf.mxu1 }
0x175f   : > { %v4300_v11 = vmax.f32 %v7552_v3, %v4285_v58  ;;  %v4289_v35 = vadd.f32 %v4288_v5, %v7548_v1  ;;  %v4309_v31 = vmin.f32 %v7558_v6, %v4299_v47  ;;  %v9973_v24 = vsub.f32 %v4279_v40, %v4308_v33 }
0x1760   : > { %v4290_v42 = vpop.f32.mrf.mxu1  ;;  %v4303_v5 = vmin.f32 %v7558_v6, %v4293_v52  ;;  %v9989_v40 = vsub.f32 %v4271_v54, %v4305_v48  ;;  %v9993_v49 = vsub.f32 %v4267_v38, %v4304_v29  ;;  %v4326_v33 = vsub.f32 %v9981_v20, %v9861_v56 }
0x1761   : > { %v4310_v43 = vmin.f32 %v7558_v6, %v4300_v11  ;;  %v4301_v37 = vmax.f32 %v7552_v3, %v4289_v35  ;;  %v4291_v26 = vadd.f32 %v4290_v42, %v7554_v4  ;;  %v9970_v57 = vsub.f32 %v4283_v53, %v4309_v31 }
0x1762   : > { %v4328_v14 = vsub.f32 %v9973_v24, %v9853_v44  ;;  %v9999_v31 = vsub.f32 %v4265_v55, %v4303_v5  ;;  %v4324_v44 = vsub.f32 %v9993_v49, %v9873_v59  ;;  %v4336_v56 = vmul.f32 0.89341474, %v4326_v33 }
0x1763   : > { %v9965_v17 = vsub.f32 %v4285_v58, %v4310_v43  ;;  %v4311_v50 = vmin.f32 %v7558_v6, %v4301_v37  ;;  %v4302_v34 = vmax.f32 %v7552_v3, %v4291_v26  ;;  %v9979_v58 = vsub.f32 %v4277_v25, %v4307_v21 }
0x1764   : > { %v4338_v43 = vmul.f32 0.89341474, %v4328_v14  ;;  %v4323_v55 = vsub.f32 %v9999_v31, %v9879_v9  ;;  %v4334_v27 = vmul.f32 0.89341474, %v4324_v44  ;;  %v4346_v9 = vadd.f32 %v4336_v56, %v9981_v20 }
0x1765   : > { %v9975_v47 = vsub.f32 %v4289_v35, %v4311_v50  ;;  %v4312_v22 = vmin.f32 %v7558_v6, %v4302_v34  ;;  %v4330_v53 = vsub.f32 %v9965_v17, %v9845_v18  ;;  %v4329_v35 = vsub.f32 %v9970_v57, %v9850_v7 }
0x1766   : > { %v4325_v7 = vsub.f32 %v9989_v40, %v9869_v36  ;;  %v4348_v21 = vadd.f32 %v4338_v43, %v9973_v24  ;;  %v4333_v50 = vmul.f32 0.89341474, %v4323_v55  ;;  %v4344_v48 = vadd.f32 %v4334_v27, %v9993_v49 }
0x1767   : > { %v4331_v11 = vsub.f32 %v9975_v47, %v9855_v51  ;;  %v9985_v12 = vsub.f32 %v4291_v26, %v4312_v22  ;;  %v4327_v51 = vsub.f32 %v9979_v58, %v9859_v60  ;;  %v4340_v54 = vmul.f32 0.89341474, %v4330_v53 }
0x1768   : > { %v4339_v38 = vmul.f32 0.89341474, %v4329_v35  ;;  %v4335_v52 = vmul.f32 0.89341474, %v4325_v7  ;;  %v4343_v29 = vadd.f32 %v4333_v50, %v9999_v31 }
0x1769   : > { %v4332_v25 = vsub.f32 %v9985_v12, %v9865_v39  ;;  %v4341_v42 = vmul.f32 0.89341474, %v4331_v11  ;;  %v4337_v60 = vmul.f32 0.89341474, %v4327_v51  ;;  %v4350_v26 = vadd.f32 %v4340_v54, %v9965_v17 }
0x176a   : > { %v4349_v36 = vadd.f32 %v4339_v38, %v9970_v57  ;;  %v4345_v34 = vadd.f32 %v4335_v52, %v9989_v40 }
0x176b   : > { %v4342_v18 = vmul.f32 0.89341474, %v4332_v25  ;;  %v4351_v37 = vadd.f32 %v4341_v42, %v9975_v47  ;;  %v4347_v59 = vadd.f32 %v4337_v60, %v9979_v58 }
0x176d   : > { %v4352_v39 = vadd.f32 %v4342_v18, %v9985_v12 }
0x176f   : > { %4375 = vmatprep.subr.mxu0 %v4352_v39 }
0x1770   : > { %4376 = vmatpush1.msra.mxu0 %v4351_v37 }
0x1771   : > { %4377 = vmatprep.subr.mxu0 %v4350_v26 }
0x1772   : > { %4378 = vmatpush1.msra.mxu0 %v4349_v36 }
0x1773   : > { %4379 = vmatprep.subr.mxu0 %v4348_v21 }
0x1774   : > { %4380 = vmatpush1.msra.mxu0 %v4347_v59 }
0x1775   : > { %4381 = vmatprep.subr.mxu0 %v4346_v9 }
0x1776   : > { %4382 = vmatpush1.msra.mxu0 %v4345_v34 }
0x1777   : > { %4383 = vmatprep.subr.mxu0 %v4344_v48 }
0x1778   : > { %4384 = vmatpush1.msra.mxu0 %v4343_v29 }
0x1779   : > { %6995 = vmatmul.mubr.msk.f32.vlgmr.msra.gmra.mxu0 %vm469_vm8, %v9904_v32 }
0x177a   : > { %4423 = vmatprep.mubr.f32.mxu0 %v11445_v0 }
0x177d   : > { %6996 = vmatmul.mubr.msk.f32.gmra.mxu0 %vm469_vm8, %v9912_v30 }
0x177e   : > { %4429 = vmatprep.mubr.f32.mxu0 %v11445_v0 }
0x1781   : > { %6997 = vmatmul.mubr.msk.f32.gmra.mxu0 %vm469_vm8, %v9920_v10 }
0x1782   : > { %4435 = vmatprep.mubr.f32.mxu0 %v11445_v0 }
0x1785   : > { %6998 = vmatmul.mubr.msk.f32.gmra.mxu0 %vm469_vm8, %v9928_v41 }
0x1786   : > { %4441 = vmatprep.mubr.f32.mxu0 %v11445_v0 }
0x1789   : > { %6999 = vmatmul.mubr.msk.f32.gmra.mxu0 %vm469_vm8, %v9936_v28 }
0x178a   : > { %4727 = vmatprep.mubr.f32.mxu0 %v11445_v0 }
0x1839   : > { %v4419_v22 = vpop.f32.mrf.mxu0 }
0x183a   : > { %v4420_v44 = vadd.f32 %v4419_v22, %v7546_v63 }
0x183b   : > { %v4421_v5 = vpop.f32.mrf.mxu0 }
0x183c   : > { %v4422_v54 = vadd.f32 %v4421_v5, %v7550_v2  ;;  %v4448_v29 = vmax.f32 %v7552_v3, %v4420_v44 }
0x183d   : > { %v4425_v11 = vpop.f32.mrf.mxu0 }
0x183e   : > { %v4426_v33 = vadd.f32 %v4425_v11, %v7560_v8  ;;  %v4449_v36 = vmax.f32 %v7552_v3, %v4422_v54 }
0x183f   : > { %v4427_v53 = vpop.f32.mrf.mxu0 }
0x1840   : > { %v4428_v18 = vadd.f32 %v4427_v53, %v7566_v13  ;;  %v4450_v21 = vmax.f32 %v7552_v3, %v4426_v33 }
0x1841   : > { %v4431_v35 = vpop.f32.mrf.mxu0 }
0x1842   : > { %v4432_v51 = vadd.f32 %v4431_v35, %v7570_v19  ;;  %v4451_v26 = vmax.f32 %v7552_v3, %v4428_v18 }
0x1843   : > { %v4433_v25 = vpop.f32.mrf.mxu0 }
0x1844   : > { %v4434_v14 = vadd.f32 %v4433_v25, %v7573_v23  ;;  %v4452_v55 = vmax.f32 %v7552_v3, %v4432_v51  ;;  %v4461_v5 = vmin.f32 %v7558_v6, %v4451_v26  ;;  %v4460_v25 = vmin.f32 %v7558_v6, %v4450_v21 }
0x1845   : > { %v4437_v42 = vpop.f32.mrf.mxu0 }
0x1846   : > { %v4438_v7 = vadd.f32 %v4437_v42, %v7542_v61  ;;  %v4453_v39 = vmax.f32 %v7552_v3, %v4434_v14  ;;  %v4462_v22 = vmin.f32 %v7558_v6, %v4452_v55  ;;  %v10076_v26 = vsub.f32 %v4428_v18, %v4461_v5 }
0x1847   : > { %v4439_v38 = vpop.f32.mrf.mxu0 }
0x1848   : > { %v4440_v43 = vadd.f32 %v4439_v38, %v7544_v62  ;;  %v4454_v60 = vmax.f32 %v7552_v3, %v4438_v7  ;;  %v4463_v59 = vmin.f32 %v7558_v6, %v4453_v39  ;;  %v4459_v38 = vmin.f32 %v7558_v6, %v4449_v36 }
0x1849   : > { %v4443_v37 = vpop.f32.mrf.mxu0 }
0x184a   : > { %v4455_v56 = vmax.f32 %v7552_v3, %v4440_v43  ;;  %v4444_v52 = vadd.f32 %v4443_v37, %v7548_v1  ;;  %v4464_v27 = vmin.f32 %v7558_v6, %v4454_v60  ;;  %v10068_v39 = vsub.f32 %v4434_v14, %v4463_v59 }
0x184b   : > { %v4445_v50 = vpop.f32.mrf.mxu0  ;;  %v4458_v37 = vmin.f32 %v7558_v6, %v4448_v29  ;;  %v10084_v14 = vsub.f32 %v4426_v33, %v4460_v25  ;;  %v10088_v36 = vsub.f32 %v4422_v54, %v4459_v38  ;;  %v4481_v59 = vsub.f32 %v10076_v26, %v9981_v20 }
0x184c   : > { %v4465_v9 = vmin.f32 %v7558_v6, %v4455_v56  ;;  %v4456_v34 = vmax.f32 %v7552_v3, %v4444_v52  ;;  %v4446_v48 = vadd.f32 %v4445_v50, %v7554_v4  ;;  %v10065_v42 = vsub.f32 %v4438_v7, %v4464_v27 }
0x184d   : > { %v4483_v18 = vsub.f32 %v10068_v39, %v9973_v24  ;;  %v10094_v27 = vsub.f32 %v4420_v44, %v4458_v37  ;;  %v4479_v24 = vsub.f32 %v10088_v36, %v9993_v49  ;;  %v4491_v20 = vmul.f32 0.89713454, %v4481_v59 }
0x184e   : > { %v10060_v11 = vsub.f32 %v4440_v43, %v4465_v9  ;;  %v4466_v53 = vmin.f32 %v7558_v6, %v4456_v34  ;;  %v4457_v35 = vmax.f32 %v7552_v3, %v4446_v48  ;;  %v10074_v43 = vsub.f32 %v4432_v51, %v4462_v22 }
0x184f   : > { %v4493_v9 = vmul.f32 0.89713454, %v4483_v18  ;;  %v4478_v44 = vsub.f32 %v10094_v27, %v9999_v31  ;;  %v4489_v5 = vmul.f32 0.89713454, %v4479_v24  ;;  %v4501_v31 = vadd.f32 %v4491_v20, %v10076_v26 }
0x1850   : > { %v10070_v60 = vsub.f32 %v4444_v52, %v4466_v53  ;;  %v4467_v55 = vmin.f32 %v7558_v6, %v4457_v35  ;;  %v4485_v7 = vsub.f32 %v10060_v11, %v9965_v17  ;;  %v4484_v52 = vsub.f32 %v10065_v42, %v9970_v57 }
0x1851   : > { %v4480_v57 = vsub.f32 %v10084_v14, %v9989_v40  ;;  %v4503_v22 = vadd.f32 %v4493_v9, %v10068_v39  ;;  %v4488_v53 = vmul.f32 0.89713454, %v4478_v44  ;;  %v4499_v25 = vadd.f32 %v4489_v5, %v10088_v36 }
0x1852   : > { %v4486_v56 = vsub.f32 %v10070_v60, %v9975_v47  ;;  %v10080_v21 = vsub.f32 %v4446_v48, %v4467_v55  ;;  %v4482_v47 = vsub.f32 %v10074_v43, %v9979_v58  ;;  %v4495_v33 = vmul.f32 0.89713454, %v4485_v7 }
0x1853   : > { %v4494_v54 = vmul.f32 0.89713454, %v4484_v52  ;;  %v4490_v29 = vmul.f32 0.89713454, %v4480_v57  ;;  %v4498_v38 = vadd.f32 %v4488_v53, %v10094_v27 }
0x1854   : > { %v4487_v51 = vsub.f32 %v10080_v21, %v9985_v12  ;;  %v4496_v50 = vmul.f32 0.89713454, %v4486_v56  ;;  %v4492_v58 = vmul.f32 0.89713454, %v4482_v47  ;;  %v4505_v48 = vadd.f32 %v4495_v33, %v10060_v11 }
0x1855   : > { %v4504_v40 = vadd.f32 %v4494_v54, %v10065_v42  ;;  %v4500_v35 = vadd.f32 %v4490_v29, %v10084_v14 }
0x1856   : > { %v4497_v17 = vmul.f32 0.89713454, %v4487_v51  ;;  %v4506_v34 = vadd.f32 %v4496_v50, %v10070_v60  ;;  %v4502_v49 = vadd.f32 %v4492_v58, %v10074_v43 }
0x1858   : > { %v4507_v12 = vadd.f32 %v4497_v17, %v10080_v21 }
0x185a   : > { %4530 = vmatprep.subr.mxu1 %v4507_v12 }
0x185b   : > { %4531 = vmatpush1.msra.mxu1 %v4506_v34 }
0x185c   : > { %4532 = vmatprep.subr.mxu1 %v4505_v48 }
0x185d   : > { %4533 = vmatpush1.msra.mxu1 %v4504_v40 }
0x185e   : > { %4534 = vmatprep.subr.mxu1 %v4503_v22 }
0x185f   : > { %4535 = vmatpush1.msra.mxu1 %v4502_v49 }
0x1860   : > { %4536 = vmatprep.subr.mxu1 %v4501_v31 }
0x1861   : > { %4537 = vmatpush1.msra.mxu1 %v4500_v35 }
0x1862   : > { %4538 = vmatprep.subr.mxu1 %v4499_v25 }
0x1863   : > { %4539 = vmatpush1.msra.mxu1 %v4498_v38 }
0x1864   : > { %7000 = vmatmul.mubr.msk.f32.vlgmr.msra.gmra.mxu1 %vm469_vm8, %v9904_v32 }
0x1865   : > { %4578 = vmatprep.mubr.f32.mxu1 %v11445_v0 }
0x1868   : > { %7001 = vmatmul.mubr.msk.f32.gmra.mxu1 %vm469_vm8, %v9912_v30 }
0x1869   : > { %4584 = vmatprep.mubr.f32.mxu1 %v11445_v0 }
0x186c   : > { %7002 = vmatmul.mubr.msk.f32.gmra.mxu1 %vm469_vm8, %v9920_v10 }
0x186d   : > { %4590 = vmatprep.mubr.f32.mxu1 %v11445_v0 }
0x1870   : > { %7003 = vmatmul.mubr.msk.f32.gmra.mxu1 %vm469_vm8, %v9928_v41 }
0x1871   : > { %4596 = vmatprep.mubr.f32.mxu1 %v11445_v0 }
0x1874   : > { %7004 = vmatmul.mubr.msk.f32.gmra.mxu1 %vm469_vm8, %v9936_v28 }
0x1875   : > { %4882 = vmatprep.mubr.f32.mxu1 %v11445_v0 }
0x1924   : > { %v4574_v55 = vpop.f32.mrf.mxu1 }
0x1925   : > { %v4575_v24 = vadd.f32 %v4574_v55, %v7546_v63 }
0x1926   : > { %v4576_v37 = vpop.f32.mrf.mxu1 }
0x1927   : > { %v4577_v33 = vadd.f32 %v4576_v37, %v7550_v2  ;;  %v4603_v38 = vmax.f32 %v7552_v3, %v4575_v24 }
0x1928   : > { %v4580_v56 = vpop.f32.mrf.mxu1 }
0x1929   : > { %v4581_v59 = vadd.f32 %v4580_v56, %v7560_v8  ;;  %v4604_v40 = vmax.f32 %v7552_v3, %v4577_v33 }
0x192a   : > { %v4582_v7 = vpop.f32.mrf.mxu1 }
0x192b   : > { %v4583_v17 = vadd.f32 %v4582_v7, %v7566_v13  ;;  %v4605_v22 = vmax.f32 %v7552_v3, %v4581_v59 }
0x192c   : > { %v4586_v52 = vpop.f32.mrf.mxu1 }
0x192d   : > { %v4587_v47 = vadd.f32 %v4586_v52, %v7570_v19  ;;  %v4606_v48 = vmax.f32 %v7552_v3, %v4583_v17 }
0x192e   : > { %v4588_v51 = vpop.f32.mrf.mxu1 }
0x192f   : > { %v4589_v18 = vadd.f32 %v4588_v51, %v7573_v23  ;;  %v4607_v44 = vmax.f32 %v7552_v3, %v4587_v47  ;;  %v4616_v37 = vmin.f32 %v7558_v6, %v4606_v48  ;;  %v4615_v51 = vmin.f32 %v7558_v6, %v4605_v22 }
0x1930   : > { %v4592_v50 = vpop.f32.mrf.mxu1 }
0x1931   : > { %v4593_v57 = vadd.f32 %v4592_v50, %v7542_v61  ;;  %v4608_v12 = vmax.f32 %v7552_v3, %v4589_v18  ;;  %v4617_v55 = vmin.f32 %v7558_v6, %v4607_v44  ;;  %v10171_v48 = vsub.f32 %v4583_v17, %v4616_v37 }
0x1932   : > { %v4594_v54 = vpop.f32.mrf.mxu1 }
0x1933   : > { %v4595_v9 = vadd.f32 %v4594_v54, %v7544_v62  ;;  %v4609_v58 = vmax.f32 %v7552_v3, %v4593_v57  ;;  %v4618_v49 = vmin.f32 %v7558_v6, %v4608_v12  ;;  %v4614_v54 = vmin.f32 %v7558_v6, %v4604_v40 }
0x1934   : > { %v4598_v34 = vpop.f32.mrf.mxu1 }
0x1935   : > { %v4610_v20 = vmax.f32 %v7552_v3, %v4595_v9  ;;  %v4599_v29 = vadd.f32 %v4598_v34, %v7548_v1  ;;  %v4619_v5 = vmin.f32 %v7558_v6, %v4609_v58  ;;  %v10163_v12 = vsub.f32 %v4589_v18, %v4618_v49 }
0x1936   : > { %v4600_v53 = vpop.f32.mrf.mxu1  ;;  %v4613_v34 = vmin.f32 %v7558_v6, %v4603_v38  ;;  %v10179_v18 = vsub.f32 %v4581_v59, %v4615_v51  ;;  %v10183_v40 = vsub.f32 %v4577_v33, %v4614_v54  ;;  %v4636_v49 = vsub.f32 %v10171_v48, %v10076_v26 }
0x1937   : > { %v4620_v31 = vmin.f32 %v7558_v6, %v4610_v20  ;;  %v4611_v35 = vmax.f32 %v7552_v3, %v4599_v29  ;;  %v4601_v25 = vadd.f32 %v4600_v53, %v7554_v4  ;;  %v10160_v50 = vsub.f32 %v4593_v57, %v4619_v5 }
0x1938   : > { %v4638_v17 = vsub.f32 %v10163_v12, %v10068_v39  ;;  %v10189_v5 = vsub.f32 %v4575_v24, %v4613_v34  ;;  %v4634_v39 = vsub.f32 %v10183_v40, %v10088_v36  ;;  %v4646_v26 = vmul.f32 0.90060145, %v4636_v49 }
0x1939   : > { %v10155_v56 = vsub.f32 %v4595_v9, %v4620_v31  ;;  %v4621_v7 = vmin.f32 %v7558_v6, %v4611_v35  ;;  %v4612_v52 = vmax.f32 %v7552_v3, %v4601_v25  ;;  %v10169_v9 = vsub.f32 %v4587_v47, %v4617_v55 }
0x193a   : > { %v4648_v31 = vmul.f32 0.90060145, %v4638_v17  ;;  %v4633_v24 = vsub.f32 %v10189_v5, %v10094_v27  ;;  %v4644_v37 = vmul.f32 0.90060145, %v4634_v39  ;;  %v4656_v27 = vadd.f32 %v4646_v26, %v10171_v48 }
0x193b   : > { %v10165_v58 = vsub.f32 %v4599_v29, %v4621_v7  ;;  %v4622_v44 = vmin.f32 %v7558_v6, %v4612_v52  ;;  %v4640_v57 = vsub.f32 %v10155_v56, %v10060_v11  ;;  %v4639_v29 = vsub.f32 %v10160_v50, %v10065_v42 }
0x193c   : > { %v4635_v42 = vsub.f32 %v10179_v18, %v10084_v14  ;;  %v4658_v55 = vadd.f32 %v4648_v31, %v10163_v12  ;;  %v4643_v7 = vmul.f32 0.90060145, %v4633_v24  ;;  %v4654_v51 = vadd.f32 %v4644_v37, %v10183_v40 }
0x193d   : > { %v4641_v20 = vsub.f32 %v10165_v58, %v10070_v60  ;;  %v10175_v22 = vsub.f32 %v4601_v25, %v4622_v44  ;;  %v4637_v60 = vsub.f32 %v10169_v9, %v10074_v43  ;;  %v4650_v59 = vmul.f32 0.90060145, %v4640_v57 }
0x193e   : > { %v4649_v33 = vmul.f32 0.90060145, %v4639_v29  ;;  %v4645_v38 = vmul.f32 0.90060145, %v4635_v42  ;;  %v4653_v54 = vadd.f32 %v4643_v7, %v10189_v5 }
0x193f   : > { %v4642_v47 = vsub.f32 %v10175_v22, %v10080_v21  ;;  %v4651_v53 = vmul.f32 0.90060145, %v4641_v20  ;;  %v4647_v43 = vmul.f32 0.90060145, %v4637_v60  ;;  %v4660_v25 = vadd.f32 %v4650_v59, %v10155_v56 }
0x1940   : > { %v4659_v14 = vadd.f32 %v4649_v33, %v10160_v50  ;;  %v4655_v52 = vadd.f32 %v4645_v38, %v10179_v18 }
0x1941   : > { %v4652_v11 = vmul.f32 0.90060145, %v4642_v47  ;;  %v4661_v35 = vadd.f32 %v4651_v53, %v10165_v58  ;;  %v4657_v36 = vadd.f32 %v4647_v43, %v10169_v9 }
0x1943   : > { %v4662_v21 = vadd.f32 %v4652_v11, %v10175_v22 }
0x1945   : > { %4685 = vmatprep.subr.mxu0 %v4662_v21 }
0x1946   : > { %4686 = vmatpush1.msra.mxu0 %v4661_v35 }
0x1947   : > { %4687 = vmatprep.subr.mxu0 %v4660_v25 }
0x1948   : > { %4688 = vmatpush1.msra.mxu0 %v4659_v14 }
0x1949   : > { %4689 = vmatprep.subr.mxu0 %v4658_v55 }
0x194a   : > { %4690 = vmatpush1.msra.mxu0 %v4657_v36 }
0x194b   : > { %4691 = vmatprep.subr.mxu0 %v4656_v27 }
0x194c   : > { %4692 = vmatpush1.msra.mxu0 %v4655_v52 }
0x194d   : > { %4693 = vmatprep.subr.mxu0 %v4654_v51 }
0x194e   : > { %4694 = vmatpush1.msra.mxu0 %v4653_v54 }
0x194f   : > { %7005 = vmatmul.mubr.msk.f32.vlgmr.msra.gmra.mxu0 %vm469_vm8, %v9904_v32 }
0x1950   : > { %4733 = vmatprep.mubr.f32.mxu0 %v11445_v0 }
0x1953   : > { %7006 = vmatmul.mubr.msk.f32.gmra.mxu0 %vm469_vm8, %v9912_v30 }
0x1954   : > { %4739 = vmatprep.mubr.f32.mxu0 %v11445_v0 }
0x1957   : > { %7007 = vmatmul.mubr.msk.f32.gmra.mxu0 %vm469_vm8, %v9920_v10 }
0x1958   : > { %4745 = vmatprep.mubr.f32.mxu0 %v11445_v0 }
0x195b   : > { %7008 = vmatmul.mubr.msk.f32.gmra.mxu0 %vm469_vm8, %v9928_v41 }
0x195c   : > { %4751 = vmatprep.mubr.f32.mxu0 %v11445_v0 }
0x195f   : > { %7009 = vmatmul.mubr.msk.f32.gmra.mxu0 %vm469_vm8, %v9936_v28 }
0x1960   : > { %5037 = vmatprep.mubr.f32.mxu0 %v11445_v0 }
0x1a0f   : > { %v4729_v44 = vpop.f32.mrf.mxu0 }
0x1a10   : > { %v4730_v39 = vadd.f32 %v4729_v44, %v7546_v63 }
0x1a11   : > { %v4731_v34 = vpop.f32.mrf.mxu0 }
0x1a12   : > { %v4732_v59 = vadd.f32 %v4731_v34, %v7550_v2  ;;  %v4758_v54 = vmax.f32 %v7552_v3, %v4730_v39 }
0x1a13   : > { %v4735_v20 = vpop.f32.mrf.mxu0 }
0x1a14   : > { %v4736_v49 = vadd.f32 %v4735_v20, %v7560_v8  ;;  %v4759_v14 = vmax.f32 %v7552_v3, %v4732_v59 }
0x1a15   : > { %v4737_v57 = vpop.f32.mrf.mxu0 }
0x1a16   : > { %v4738_v11 = vadd.f32 %v4737_v57, %v7566_v13  ;;  %v4760_v55 = vmax.f32 %v7552_v3, %v4736_v49 }
0x1a17   : > { %v4741_v29 = vpop.f32.mrf.mxu0 }
0x1a18   : > { %v4742_v60 = vadd.f32 %v4741_v29, %v7570_v19  ;;  %v4761_v25 = vmax.f32 %v7552_v3, %v4738_v11 }
0x1a19   : > { %v4743_v47 = vpop.f32.mrf.mxu0 }
0x1a1a   : > { %v4744_v17 = vadd.f32 %v4743_v47, %v7573_v23  ;;  %v4762_v24 = vmax.f32 %v7552_v3, %v4742_v60  ;;  %v4771_v34 = vmin.f32 %v7558_v6, %v4761_v25  ;;  %v4770_v47 = vmin.f32 %v7558_v6, %v4760_v55 }
0x1a1b   : > { %v4747_v53 = vpop.f32.mrf.mxu0 }
0x1a1c   : > { %v4748_v42 = vadd.f32 %v4747_v53, %v7542_v61  ;;  %v4763_v21 = vmax.f32 %v7552_v3, %v4744_v17  ;;  %v4772_v44 = vmin.f32 %v7558_v6, %v4762_v24  ;;  %v10266_v25 = vsub.f32 %v4738_v11, %v4771_v34 }
0x1a1d   : > { %v4749_v33 = vpop.f32.mrf.mxu0 }
0x1a1e   : > { %v4750_v31 = vadd.f32 %v4749_v33, %v7544_v62  ;;  %v4764_v43 = vmax.f32 %v7552_v3, %v4748_v42  ;;  %v4773_v36 = vmin.f32 %v7558_v6, %v4763_v21  ;;  %v4769_v33 = vmin.f32 %v7558_v6, %v4759_v14 }
0x1a1f   : > { %v4753_v35 = vpop.f32.mrf.mxu0 }
0x1a20   : > { %v4765_v26 = vmax.f32 %v7552_v3, %v4750_v31  ;;  %v4754_v38 = vadd.f32 %v4753_v35, %v7548_v1  ;;  %v4774_v37 = vmin.f32 %v7558_v6, %v4764_v43  ;;  %v10258_v21 = vsub.f32 %v4744_v17, %v4773_v36 }
0x1a21   : > { %v4755_v7 = vpop.f32.mrf.mxu0  ;;  %v4768_v35 = vmin.f32 %v7558_v6, %v4758_v54  ;;  %v10274_v17 = vsub.f32 %v4736_v49, %v4770_v47  ;;  %v10278_v14 = vsub.f32 %v4732_v59, %v4769_v33  ;;  %v4791_v36 = vsub.f32 %v10266_v25, %v10171_v48 }
0x1a22   : > { %v4775_v27 = vmin.f32 %v7558_v6, %v4765_v26  ;;  %v4766_v52 = vmax.f32 %v7552_v3, %v4754_v38  ;;  %v4756_v51 = vadd.f32 %v4755_v7, %v7554_v4  ;;  %v10255_v53 = vsub.f32 %v4748_v42, %v4774_v37 }
0x1a23   : > { %v4793_v11 = vsub.f32 %v10258_v21, %v10163_v12  ;;  %v10284_v37 = vsub.f32 %v4730_v39, %v4768_v35  ;;  %v4789_v12 = vsub.f32 %v10278_v14, %v10183_v40  ;;  %v4801_v48 = vmul.f32 0.9038404, %v4791_v36 }
0x1a24   : > { %v10250_v20 = vsub.f32 %v4750_v31, %v4775_v27  ;;  %v4776_v57 = vmin.f32 %v7558_v6, %v4766_v52  ;;  %v4767_v29 = vmax.f32 %v7552_v3, %v4756_v51  ;;  %v10264_v31 = vsub.f32 %v4742_v60, %v4772_v44 }
0x1a25   : > { %v4803_v27 = vmul.f32 0.9038404, %v4793_v11  ;;  %v4788_v39 = vsub.f32 %v10284_v37, %v10189_v5  ;;  %v4799_v34 = vmul.f32 0.9038404, %v4789_v12  ;;  %v4811_v5 = vadd.f32 %v4801_v48, %v10266_v25 }
0x1a26   : > { %v10260_v43 = vsub.f32 %v4754_v38, %v4776_v57  ;;  %v4777_v24 = vmin.f32 %v7558_v6, %v4767_v29  ;;  %v4795_v42 = vsub.f32 %v10250_v20, %v10155_v56  ;;  %v4794_v38 = vsub.f32 %v10255_v53, %v10160_v50 }
0x1a27   : > { %v4790_v50 = vsub.f32 %v10274_v17, %v10179_v18  ;;  %v4813_v44 = vadd.f32 %v4803_v27, %v10258_v21  ;;  %v4798_v57 = vmul.f32 0.9038404, %v4788_v39  ;;  %v4809_v47 = vadd.f32 %v4799_v34, %v10278_v14 }
0x1a28   : > { %v4796_v26 = vsub.f32 %v10260_v43, %v10165_v58  ;;  %v10270_v55 = vsub.f32 %v4756_v51, %v4777_v24  ;;  %v4792_v58 = vsub.f32 %v10264_v31, %v10169_v9  ;;  %v4805_v49 = vmul.f32 0.9038404, %v4795_v42 }
0x1a29   : > { %v4804_v59 = vmul.f32 0.9038404, %v4794_v38  ;;  %v4800_v54 = vmul.f32 0.9038404, %v4790_v50  ;;  %v4808_v33 = vadd.f32 %v4798_v57, %v10284_v37 }
0x1a2a   : > { %v4797_v60 = vsub.f32 %v10270_v55, %v10175_v22  ;;  %v4806_v7 = vmul.f32 0.9038404, %v4796_v26  ;;  %v4802_v9 = vmul.f32 0.9038404, %v4792_v58  ;;  %v4815_v51 = vadd.f32 %v4805_v49, %v10250_v20 }
0x1a2b   : > { %v4814_v18 = vadd.f32 %v4804_v59, %v10255_v53  ;;  %v4810_v29 = vadd.f32 %v4800_v54, %v10274_v17 }
0x1a2c   : > { %v4807_v56 = vmul.f32 0.9038404, %v4797_v60  ;;  %v4816_v52 = vadd.f32 %v4806_v7, %v10260_v43  ;;  %v4812_v40 = vadd.f32 %v4802_v9, %v10264_v31 }
0x1a2e   : > { %v4817_v22 = vadd.f32 %v4807_v56, %v10270_v55 }
0x1a30   : > { %4840 = vmatprep.subr.mxu1 %v4817_v22 }
0x1a31   : > { %4841 = vmatpush1.msra.mxu1 %v4816_v52 }
0x1a32   : > { %4842 = vmatprep.subr.mxu1 %v4815_v51 }
0x1a33   : > { %4843 = vmatpush1.msra.mxu1 %v4814_v18 }
0x1a34   : > { %4844 = vmatprep.subr.mxu1 %v4813_v44 }
0x1a35   : > { %4845 = vmatpush1.msra.mxu1 %v4812_v40 }
0x1a36   : > { %4846 = vmatprep.subr.mxu1 %v4811_v5 }
0x1a37   : > { %4847 = vmatpush1.msra.mxu1 %v4810_v29 }
0x1a38   : > { %4848 = vmatprep.subr.mxu1 %v4809_v47 }
0x1a39   : > { %4849 = vmatpush1.msra.mxu1 %v4808_v33 }
0x1a3a   : > { %7010 = vmatmul.mubr.msk.f32.vlgmr.msra.gmra.mxu1 %vm469_vm8, %v9904_v32 }
0x1a3b   : > { %4888 = vmatprep.mubr.f32.mxu1 %v11445_v0 }
0x1a3e   : > { %7011 = vmatmul.mubr.msk.f32.gmra.mxu1 %vm469_vm8, %v9912_v30 }
0x1a3f   : > { %4894 = vmatprep.mubr.f32.mxu1 %v11445_v0 }
0x1a42   : > { %7012 = vmatmul.mubr.msk.f32.gmra.mxu1 %vm469_vm8, %v9920_v10 }
0x1a43   : > { %4900 = vmatprep.mubr.f32.mxu1 %v11445_v0 }
0x1a46   : > { %7013 = vmatmul.mubr.msk.f32.gmra.mxu1 %vm469_vm8, %v9928_v41 }
0x1a47   : > { %4906 = vmatprep.mubr.f32.mxu1 %v11445_v0 }
0x1a4a   : > { %7014 = vmatmul.mubr.msk.f32.gmra.mxu1 %vm469_vm8, %v9936_v28 }
0x1a4b   : > { %5192 = vmatprep.mubr.f32.mxu1 %v11445_v0 }
0x1afa   : > { %v4884_v24 = vpop.f32.mrf.mxu1 }
0x1afb   : > { %v4885_v12 = vadd.f32 %v4884_v24, %v7546_v63 }
0x1afc   : > { %v4886_v35 = vpop.f32.mrf.mxu1 }
0x1afd   : > { %v4887_v49 = vadd.f32 %v4886_v35, %v7550_v2  ;;  %v4913_v33 = vmax.f32 %v7552_v3, %v4885_v12 }
0x1afe   : > { %v4890_v26 = vpop.f32.mrf.mxu1 }
0x1aff   : > { %v4891_v36 = vadd.f32 %v4890_v26, %v7560_v8  ;;  %v4914_v18 = vmax.f32 %v7552_v3, %v4887_v49 }
0x1b00   : > { %v4892_v42 = vpop.f32.mrf.mxu1 }
0x1b01   : > { %v4893_v56 = vadd.f32 %v4892_v42, %v7566_v13  ;;  %v4915_v44 = vmax.f32 %v7552_v3, %v4891_v36 }
0x1b02   : > { %v4896_v38 = vpop.f32.mrf.mxu1 }
0x1b03   : > { %v4897_v58 = vadd.f32 %v4896_v38, %v7570_v19  ;;  %v4916_v51 = vmax.f32 %v7552_v3, %v4893_v56 }
0x1b04   : > { %v4898_v60 = vpop.f32.mrf.mxu1 }
0x1b05   : > { %v4899_v11 = vadd.f32 %v4898_v60, %v7573_v23  ;;  %v4917_v39 = vmax.f32 %v7552_v3, %v4897_v58  ;;  %v4926_v35 = vmin.f32 %v7558_v6, %v4916_v51  ;;  %v4925_v60 = vmin.f32 %v7558_v6, %v4915_v44 }
0x1b06   : > { %v4902_v7 = vpop.f32.mrf.mxu1 }
0x1b07   : > { %v4903_v50 = vadd.f32 %v4902_v7, %v7542_v61  ;;  %v4918_v22 = vmax.f32 %v7552_v3, %v4899_v11  ;;  %v4927_v24 = vmin.f32 %v7558_v6, %v4917_v39  ;;  %v10361_v51 = vsub.f32 %v4893_v56, %v4926_v35 }
0x1b08   : > { %v4904_v59 = vpop.f32.mrf.mxu1 }
0x1b09   : > { %v4905_v27 = vadd.f32 %v4904_v59, %v7544_v62  ;;  %v4919_v9 = vmax.f32 %v7552_v3, %v4903_v50  ;;  %v4928_v40 = vmin.f32 %v7558_v6, %v4918_v22  ;;  %v4924_v59 = vmin.f32 %v7558_v6, %v4914_v18 }
0x1b0a   : > { %v4908_v52 = vpop.f32.mrf.mxu1 }
0x1b0b   : > { %v4920_v48 = vmax.f32 %v7552_v3, %v4905_v27  ;;  %v4909_v54 = vadd.f32 %v4908_v52, %v7548_v1  ;;  %v4929_v34 = vmin.f32 %v7558_v6, %v4919_v9  ;;  %v10353_v22 = vsub.f32 %v4899_v11, %v4928_v40 }
0x1b0c   : > { %v4910_v57 = vpop.f32.mrf.mxu1  ;;  %v4923_v52 = vmin.f32 %v7558_v6, %v4913_v33  ;;  %v10369_v11 = vsub.f32 %v4891_v36, %v4925_v60  ;;  %v10373_v18 = vsub.f32 %v4887_v49, %v4924_v59  ;;  %v4946_v40 = vsub.f32 %v10361_v51, %v10266_v25 }
0x1b0d   : > { %v4930_v5 = vmin.f32 %v7558_v6, %v4920_v48  ;;  %v4921_v29 = vmax.f32 %v7552_v3, %v4909_v54  ;;  %v4911_v47 = vadd.f32 %v4910_v57, %v7554_v4  ;;  %v10350_v7 = vsub.f32 %v4903_v50, %v4929_v34 }
0x1b0e   : > { %v4948_v56 = vsub.f32 %v10353_v22, %v10258_v21  ;;  %v10379_v34 = vsub.f32 %v4885_v12, %v4923_v52  ;;  %v4944_v21 = vsub.f32 %v10373_v18, %v10278_v14  ;;  %v4956_v25 = vmul.f32 0.90687346, %v4946_v40 }
0x1b0f   : > { %v10345_v26 = vsub.f32 %v4905_v27, %v4930_v5  ;;  %v4931_v42 = vmin.f32 %v7558_v6, %v4921_v29  ;;  %v4922_v38 = vmax.f32 %v7552_v3, %v4911_v47  ;;  %v10359_v27 = vsub.f32 %v4897_v58, %v4927_v24 }
0x1b10   : > { %v4958_v5 = vmul.f32 0.90687346, %v4948_v56  ;;  %v4943_v12 = vsub.f32 %v10379_v34, %v10284_v37  ;;  %v4954_v35 = vmul.f32 0.90687346, %v4944_v21  ;;  %v4966_v37 = vadd.f32 %v4956_v25, %v10361_v51 }
0x1b11   : > { %v10355_v9 = vsub.f32 %v4909_v54, %v4931_v42  ;;  %v4932_v39 = vmin.f32 %v7558_v6, %v4922_v38  ;;  %v4950_v50 = vsub.f32 %v10345_v26, %v10250_v20  ;;  %v4949_v54 = vsub.f32 %v10350_v7, %v10255_v53 }
0x1b12   : > { %v4945_v53 = vsub.f32 %v10369_v11, %v10274_v17  ;;  %v4968_v24 = vadd.f32 %v4958_v5, %v10353_v22  ;;  %v4953_v42 = vmul.f32 0.90687346, %v4943_v12  ;;  %v4964_v60 = vadd.f32 %v4954_v35, %v10373_v18 }
0x1b13   : > { %v4951_v48 = vsub.f32 %v10355_v9, %v10260_v43  ;;  %v10365_v44 = vsub.f32 %v4911_v47, %v4932_v39  ;;  %v4947_v43 = vsub.f32 %v10359_v27, %v10264_v31  ;;  %v4960_v36 = vmul.f32 0.90687346, %v4950_v50 }
0x1b14   : > { %v4959_v49 = vmul.f32 0.90687346, %v4949_v54  ;;  %v4955_v33 = vmul.f32 0.90687346, %v4945_v53  ;;  %v4963_v59 = vadd.f32 %v4953_v42, %v10379_v34 }
0x1b15   : > { %v4952_v58 = vsub.f32 %v10365_v44, %v10270_v55  ;;  %v4961_v57 = vmul.f32 0.90687346, %v4951_v48  ;;  %v4957_v31 = vmul.f32 0.90687346, %v4947_v43  ;;  %v4970_v47 = vadd.f32 %v4960_v36, %v10345_v26 }
0x1b16   : > { %v4969_v17 = vadd.f32 %v4959_v49, %v10350_v7  ;;  %v4965_v38 = vadd.f32 %v4955_v33, %v10369_v11 }
0x1b17   : > { %v4962_v20 = vmul.f32 0.90687346, %v4952_v58  ;;  %v4971_v29 = vadd.f32 %v4961_v57, %v10355_v9  ;;  %v4967_v14 = vadd.f32 %v4957_v31, %v10359_v27 }
0x1b19   : > { %v4972_v55 = vadd.f32 %v4962_v20, %v10365_v44 }
0x1b1b   : > { %4995 = vmatprep.subr.mxu0 %v4972_v55 }
0x1b1c   : > { %4996 = vmatpush1.msra.mxu0 %v4971_v29 }
0x1b1d   : > { %4997 = vmatprep.subr.mxu0 %v4970_v47 }
0x1b1e   : > { %4998 = vmatpush1.msra.mxu0 %v4969_v17 }
0x1b1f   : > { %4999 = vmatprep.subr.mxu0 %v4968_v24 }
0x1b20   : > { %5000 = vmatpush1.msra.mxu0 %v4967_v14 }
0x1b21   : > { %5001 = vmatprep.subr.mxu0 %v4966_v37 }
0x1b22   : > { %5002 = vmatpush1.msra.mxu0 %v4965_v38 }
0x1b23   : > { %5003 = vmatprep.subr.mxu0 %v4964_v60 }
0x1b24   : > { %5004 = vmatpush1.msra.mxu0 %v4963_v59 }
0x1b25   : > { %7015 = vmatmul.mubr.msk.f32.vlgmr.msra.gmra.mxu0 %vm469_vm8, %v9904_v32 }
0x1b26   : > { %5043 = vmatprep.mubr.f32.mxu0 %v11445_v0 }
0x1b29   : > { %7016 = vmatmul.mubr.msk.f32.gmra.mxu0 %vm469_vm8, %v9912_v30 }
0x1b2a   : > { %5049 = vmatprep.mubr.f32.mxu0 %v11445_v0 }
0x1b2d   : > { %7017 = vmatmul.mubr.msk.f32.gmra.mxu0 %vm469_vm8, %v9920_v10 }
0x1b2e   : > { %5055 = vmatprep.mubr.f32.mxu0 %v11445_v0 }
0x1b31   : > { %7018 = vmatmul.mubr.msk.f32.gmra.mxu0 %vm469_vm8, %v9928_v41 }
0x1b32   : > { %5061 = vmatprep.mubr.f32.mxu0 %v11445_v0 }
0x1b35   : > { %7019 = vmatmul.mubr.msk.f32.gmra.mxu0 %vm469_vm8, %v9936_v28 }
0x1b36   : > { %5347 = vmatprep.mubr.f32.mxu0 %v11445_v0 }
0x1be5   : > { %v5039_v32 = vpop.f32.mrf.mxu0 }
0x1be6   : > { %v5040_v40 = vadd.f32 %v5039_v32, %v7546_v63 }
0x1be7   : > { %v5041_v39 = vpop.f32.mrf.mxu0 }
0x1be8   : > { %v5042_v56 = vadd.f32 %v5041_v39, %v7550_v2  ;;  %v5068_v42 = vmax.f32 %v7552_v3, %v5040_v40 }
0x1be9   : > { %v5045_v30 = vpop.f32.mrf.mxu0 }
0x1bea   : > { %v5046_v43 = vadd.f32 %v5045_v30, %v7560_v8  ;;  %v5069_v31 = vmax.f32 %v7552_v3, %v5042_v56 }
0x1beb   : > { %v5047_v52 = vpop.f32.mrf.mxu0 }
0x1bec   : > { %v5048_v41 = vadd.f32 %v5047_v52, %v7566_v13  ;;  %v5070_v29 = vmax.f32 %v7552_v3, %v5046_v43  ;;  %v5079_v30 = vmin.f32 %v7558_v6, %v5069_v31 }
0x1bed   : > { %v5051_v48 = vpop.f32.mrf.mxu0 }
0x1bee   : > { %v5052_v54 = vadd.f32 %v5051_v48, %v7570_v19  ;;  %v5071_v5 = vmax.f32 %v7552_v3, %v5048_v41  ;;  %v5080_v32 = vmin.f32 %v7558_v6, %v5070_v29 }
0x1bef   : > { %v5053_v50 = vpop.f32.mrf.mxu0 }
0x1bf0   : > { %v5054_v10 = vadd.f32 %v5053_v50, %v7573_v23  ;;  %v5072_v53 = vmax.f32 %v7552_v3, %v5052_v54  ;;  %v5081_v37 = vmin.f32 %v7558_v6, %v5071_v5 }
0x1bf1   : > { %v5057_v58 = vpop.f32.mrf.mxu0 }
0x1bf2   : > { %v5058_v28 = vadd.f32 %v5057_v58, %v7542_v61  ;;  %v5073_v20 = vmax.f32 %v7552_v3, %v5054_v10  ;;  %v5082_v14 = vmin.f32 %v7558_v6, %v5072_v53  ;;  %v5078_v58 = vmin.f32 %v7558_v6, %v5068_v42 }
0x1bf3   : > { %v5059_v57 = vpop.f32.mrf.mxu0 }
0x1bf4   : > { %v5060_v36 = vadd.f32 %v5059_v57, %v7544_v62  ;;  %v5074_v49 = vmax.f32 %v7552_v3, %v5058_v28  ;;  %v5083_v33 = vmin.f32 %v7558_v6, %v5073_v20  ;;  %v10454_v57 = vsub.f32 %v5052_v54, %v5082_v14 }
0x1bf5   : > { %v5063_v55 = vpop.f32.mrf.mxu0  ;;  %v10456_v20 = vsub.f32 %v5048_v41, %v5081_v37  ;;  %v10474_v5 = vsub.f32 %v5040_v40, %v5078_v58  ;;  %v10499_v37 = vld [vmem:[%s11440_s1] sm:$0xff] }
0x1bf6   : > { %v5075_v21 = vmax.f32 %v7552_v3, %v5060_v36  ;;  %v5064_v12 = vadd.f32 %v5063_v55, %v7548_v1  ;;  %v5084_v47 = vmin.f32 %v7558_v6, %v5074_v49  ;;  %v10448_v52 = vsub.f32 %v5054_v10, %v5083_v33 }
0x1bf7   : > { %v5065_v25 = vpop.f32.mrf.mxu0  ;;  %v10464_v10 = vsub.f32 %v5046_v43, %v5080_v32  ;;  %v10468_v55 = vsub.f32 %v5042_v56, %v5079_v30  ;;  %v5098_v40 = vsub.f32 %v10474_v5, %v10379_v34  ;;  %v10523_v32 = vld [vmem:[%s11440_s1 + $0x18] sm:$0xff]  ;;  %v10531_v30 = vld [vmem:[%s11440_s1 + $0x20] sm:$0xff] }
0x1bf8   : > { %v5085_v17 = vmin.f32 %v7558_v6, %v5075_v21  ;;  %v5076_v24 = vmax.f32 %v7552_v3, %v5064_v12  ;;  %v5066_v35 = vadd.f32 %v5065_v25, %v7554_v4  ;;  %v10445_v39 = vsub.f32 %v5058_v28, %v5084_v47 }
0x1bf9   : > { %v5103_v41 = vsub.f32 %v10448_v52, %v10353_v22  ;;  %v5099_v22 = vsub.f32 %v10468_v55, %v10373_v18 }
0x1bfa   : > { %v10440_v38 = vsub.f32 %v5060_v36, %v5085_v17  ;;  %v5086_v60 = vmin.f32 %v7558_v6, %v5076_v24  ;;  %v5077_v59 = vmax.f32 %v7552_v3, %v5066_v35  ;;  %v5104_v49 = vsub.f32 %v10445_v39, %v10350_v7 }
0x1bfb   : > { %v5100_v7 = vsub.f32 %v10464_v10, %v10369_v11  ;;  %v5113_v31 = vmul.f32 0.9097196, %v5103_v41  ;;  %v5109_v17 = vmul.f32 0.9097196, %v5099_v22  ;;  %v5108_v24 = vmul.f32 0.9097196, %v5098_v40 }
0x1bfc   : > { %v10450_v48 = vsub.f32 %v5064_v12, %v5086_v60  ;;  %v5087_v50 = vmin.f32 %v7558_v6, %v5077_v59  ;;  %v5105_v28 = vsub.f32 %v10440_v38, %v10345_v26  ;;  %v5101_v12 = vsub.f32 %v10456_v20, %v10361_v51  ;;  %v10507_v60 = vld [vmem:[%s11440_s1 + $0x8] sm:$0xff]  ;;  %v10515_v59 = vld [vmem:[%s11440_s1 + $0x10] sm:$0xff] }
0x1bfd   : > { %v5114_v56 = vmul.f32 0.9097196, %v5104_v49  ;;  %v5110_v25 = vmul.f32 0.9097196, %v5100_v7  ;;  %v5123_v33 = vadd.f32 %v5113_v31, %v10448_v52  ;;  %v5119_v42 = vadd.f32 %v5109_v17, %v10468_v55 }
0x1bfe   : > { %v5106_v36 = vsub.f32 %v10450_v48, %v10355_v9  ;;  %v10460_v53 = vsub.f32 %v5066_v35, %v5087_v50  ;;  %v5102_v9 = vsub.f32 %v10454_v57, %v10359_v27  ;;  %v5115_v43 = vmul.f32 0.9097196, %v5105_v28 }
0x1bff   : > { %v5111_v51 = vmul.f32 0.9097196, %v5101_v12  ;;  %v5124_v11 = vadd.f32 %v5114_v56, %v10445_v39  ;;  %v5120_v35 = vadd.f32 %v5110_v25, %v10464_v10  ;;  %v5118_v14 = vadd.f32 %v5108_v24, %v10474_v5 }
0x1c00   : > { %v5107_v54 = vsub.f32 %v10460_v53, %v10365_v44  ;;  %v5116_v21 = vmul.f32 0.9097196, %v5106_v36  ;;  %v5112_v27 = vmul.f32 0.9097196, %v5102_v9  ;;  %v5125_v47 = vadd.f32 %v5115_v43, %v10440_v38 }
0x1c01   : > { %v5121_v34 = vadd.f32 %v5111_v51, %v10456_v20 }
0x1c02   : > { %v5117_v26 = vmul.f32 0.9097196, %v5107_v54  ;;  %v5126_v29 = vadd.f32 %v5116_v21, %v10450_v48  ;;  %v5122_v18 = vadd.f32 %v5112_v27, %v10454_v57 }
0x1c04   : > { %v5127_v44 = vadd.f32 %v5117_v26, %v10460_v53 }
0x1c06   : > { %5150 = vmatprep.subr.mxu1 %v5127_v44 }
0x1c07   : > { %5151 = vmatpush1.msra.mxu1 %v5126_v29 }
0x1c08   : > { %5152 = vmatprep.subr.mxu1 %v5125_v47 }
0x1c09   : > { %5153 = vmatpush1.msra.mxu1 %v5124_v11 }
0x1c0a   : > { %5154 = vmatprep.subr.mxu1 %v5123_v33 }
0x1c0b   : > { %5155 = vmatpush1.msra.mxu1 %v5122_v18 }
0x1c0c   : > { %5156 = vmatprep.subr.mxu1 %v5121_v34 }
0x1c0d   : > { %5157 = vmatpush1.msra.mxu1 %v5120_v35 }
0x1c0e   : > { %5158 = vmatprep.subr.mxu1 %v5119_v42 }
0x1c0f   : > { %5159 = vmatpush1.msra.mxu1 %v5118_v14 }
0x1c10   : > { %7020 = vmatmul.mubr.msk.f32.vlgmr.msra.gmra.mxu1 %vm469_vm8, %v10499_v37 }
0x1c11   : > { %5198 = vmatprep.mubr.f32.mxu1 %v11445_v0 }
0x1c14   : > { %7021 = vmatmul.mubr.msk.f32.gmra.mxu1 %vm469_vm8, %v10507_v60 }
0x1c15   : > { %5204 = vmatprep.mubr.f32.mxu1 %v11445_v0 }
0x1c18   : > { %7022 = vmatmul.mubr.msk.f32.gmra.mxu1 %vm469_vm8, %v10515_v59 }
0x1c19   : > { %5210 = vmatprep.mubr.f32.mxu1 %v11445_v0 }
0x1c1c   : > { %7023 = vmatmul.mubr.msk.f32.gmra.mxu1 %vm469_vm8, %v10523_v32 }
0x1c1d   : > { %5216 = vmatprep.mubr.f32.mxu1 %v11445_v0 }
0x1c20   : > { %7024 = vmatmul.mubr.msk.f32.gmra.mxu1 %vm469_vm8, %v10531_v30 }
0x1c21   : > { %5502 = vmatprep.mubr.f32.mxu1 %v11445_v0 }
0x1cd0   : > { %v5194_v50 = vpop.f32.mrf.mxu1 }
0x1cd1   : > { %v5195_v22 = vadd.f32 %v5194_v50, %v7546_v63 }
0x1cd2   : > { %v5196_v58 = vpop.f32.mrf.mxu1 }
0x1cd3   : > { %v5197_v43 = vadd.f32 %v5196_v58, %v7550_v2  ;;  %v5223_v14 = vmax.f32 %v7552_v3, %v5195_v22 }
0x1cd4   : > { %v5200_v36 = vpop.f32.mrf.mxu1 }
0x1cd5   : > { %v5201_v12 = vadd.f32 %v5200_v36, %v7560_v8  ;;  %v5224_v11 = vmax.f32 %v7552_v3, %v5197_v43 }
0x1cd6   : > { %v5202_v28 = vpop.f32.mrf.mxu1 }
0x1cd7   : > { %v5203_v26 = vadd.f32 %v5202_v28, %v7566_v13  ;;  %v5225_v33 = vmax.f32 %v7552_v3, %v5201_v12 }
0x1cd8   : > { %v5206_v49 = vpop.f32.mrf.mxu1 }
0x1cd9   : > { %v5207_v9 = vadd.f32 %v5206_v49, %v7570_v19  ;;  %v5226_v47 = vmax.f32 %v7552_v3, %v5203_v26 }
0x1cda   : > { %v5208_v54 = vpop.f32.mrf.mxu1 }
0x1cdb   : > { %v5209_v41 = vadd.f32 %v5208_v54, %v7573_v23  ;;  %v5227_v40 = vmax.f32 %v7552_v3, %v5207_v9  ;;  %v5236_v58 = vmin.f32 %v7558_v6, %v5226_v47  ;;  %v5235_v54 = vmin.f32 %v7558_v6, %v5225_v33 }
0x1cdc   : > { %v5212_v21 = vpop.f32.mrf.mxu1 }
0x1cdd   : > { %v5213_v7 = vadd.f32 %v5212_v21, %v7542_v61  ;;  %v5228_v44 = vmax.f32 %v7552_v3, %v5209_v41  ;;  %v5237_v50 = vmin.f32 %v7558_v6, %v5227_v40  ;;  %v10576_v47 = vsub.f32 %v5203_v26, %v5236_v58 }
0x1cde   : > { %v5214_v56 = vpop.f32.mrf.mxu1 }
0x1cdf   : > { %v5215_v31 = vadd.f32 %v5214_v56, %v7544_v62  ;;  %v5229_v27 = vmax.f32 %v7552_v3, %v5213_v7  ;;  %v5238_v18 = vmin.f32 %v7558_v6, %v5228_v44  ;;  %v5234_v56 = vmin.f32 %v7558_v6, %v5224_v11 }
0x1ce0   : > { %v5218_v29 = vpop.f32.mrf.mxu1 }
0x1ce1   : > { %v5230_v51 = vmax.f32 %v7552_v3, %v5215_v31  ;;  %v5219_v25 = vadd.f32 %v5218_v29, %v7548_v1  ;;  %v5239_v17 = vmin.f32 %v7558_v6, %v5229_v27  ;;  %v10568_v44 = vsub.f32 %v5209_v41, %v5238_v18 }
0x1ce2   : > { %v5220_v24 = vpop.f32.mrf.mxu1  ;;  %v5233_v29 = vmin.f32 %v7558_v6, %v5223_v14  ;;  %v10584_v41 = vsub.f32 %v5201_v12, %v5235_v54  ;;  %v10588_v11 = vsub.f32 %v5197_v43, %v5234_v56  ;;  %v5256_v18 = vsub.f32 %v10576_v47, %v10456_v20 }
0x1ce3   : > { %v5240_v34 = vmin.f32 %v7558_v6, %v5230_v51  ;;  %v5231_v35 = vmax.f32 %v7552_v3, %v5219_v25  ;;  %v5221_v42 = vadd.f32 %v5220_v24, %v7554_v4  ;;  %v10565_v21 = vsub.f32 %v5213_v7, %v5239_v17 }
0x1ce4   : > { %v5258_v26 = vsub.f32 %v10568_v44, %v10448_v52  ;;  %v10594_v17 = vsub.f32 %v5195_v22, %v5233_v29  ;;  %v5254_v52 = vsub.f32 %v10588_v11, %v10468_v55  ;;  %v5266_v20 = vmul.f32 0.9123957, %v5256_v18 }
0x1ce5   : > { %v10560_v36 = vsub.f32 %v5215_v31, %v5240_v34  ;;  %v5241_v28 = vmin.f32 %v7558_v6, %v5231_v35  ;;  %v5232_v49 = vmax.f32 %v7552_v3, %v5221_v42  ;;  %v10574_v31 = vsub.f32 %v5207_v9, %v5237_v50 }
0x1ce6   : > { %v5268_v34 = vmul.f32 0.9123957, %v5258_v26  ;;  %v5253_v22 = vsub.f32 %v10594_v17, %v10474_v5  ;;  %v5264_v58 = vmul.f32 0.9123957, %v5254_v52  ;;  %v5276_v5 = vadd.f32 %v5266_v20, %v10576_v47 }
0x1ce7   : > { %v10570_v27 = vsub.f32 %v5219_v25, %v5241_v28  ;;  %v5242_v40 = vmin.f32 %v7558_v6, %v5232_v49  ;;  %v5260_v7 = vsub.f32 %v10560_v36, %v10440_v38  ;;  %v5259_v25 = vsub.f32 %v10565_v21, %v10445_v39 }
0x1ce8   : > { %v5255_v39 = vsub.f32 %v10584_v41, %v10464_v10  ;;  %v5278_v50 = vadd.f32 %v5268_v34, %v10568_v44  ;;  %v5263_v28 = vmul.f32 0.9123957, %v5253_v22  ;;  %v5274_v54 = vadd.f32 %v5264_v58, %v10588_v11 }
0x1ce9   : > { %v5261_v51 = vsub.f32 %v10570_v27, %v10450_v48  ;;  %v10580_v33 = vsub.f32 %v5221_v42, %v5242_v40  ;;  %v5257_v48 = vsub.f32 %v10574_v31, %v10454_v57  ;;  %v5270_v12 = vmul.f32 0.9123957, %v5260_v7 }
0x1cea   : > { %v5269_v43 = vmul.f32 0.9123957, %v5259_v25  ;;  %v5265_v14 = vmul.f32 0.9123957, %v5255_v39  ;;  %v5273_v56 = vadd.f32 %v5263_v28, %v10594_v17 }
0x1ceb   : > { %v5262_v9 = vsub.f32 %v10580_v33, %v10460_v53  ;;  %v5271_v24 = vmul.f32 0.9123957, %v5261_v51  ;;  %v5267_v57 = vmul.f32 0.9123957, %v5257_v48  ;;  %v5280_v42 = vadd.f32 %v5270_v12, %v10560_v36 }
0x1cec   : > { %v5279_v10 = vadd.f32 %v5269_v43, %v10565_v21  ;;  %v5275_v49 = vadd.f32 %v5265_v14, %v10584_v41 }
0x1ced   : > { %v5272_v38 = vmul.f32 0.9123957, %v5262_v9  ;;  %v5281_v35 = vadd.f32 %v5271_v24, %v10570_v27  ;;  %v5277_v55 = vadd.f32 %v5267_v57, %v10574_v31 }
0x1cef   : > { %v5282_v53 = vadd.f32 %v5272_v38, %v10580_v33 }
0x1cf1   : > { %5305 = vmatprep.subr.mxu0 %v5282_v53 }
0x1cf2   : > { %5306 = vmatpush1.msra.mxu0 %v5281_v35 }
0x1cf3   : > { %5307 = vmatprep.subr.mxu0 %v5280_v42 }
0x1cf4   : > { %5308 = vmatpush1.msra.mxu0 %v5279_v10 }
0x1cf5   : > { %5309 = vmatprep.subr.mxu0 %v5278_v50 }
0x1cf6   : > { %5310 = vmatpush1.msra.mxu0 %v5277_v55 }
0x1cf7   : > { %5311 = vmatprep.subr.mxu0 %v5276_v5 }
0x1cf8   : > { %5312 = vmatpush1.msra.mxu0 %v5275_v49 }
0x1cf9   : > { %5313 = vmatprep.subr.mxu0 %v5274_v54 }
0x1cfa   : > { %5314 = vmatpush1.msra.mxu0 %v5273_v56 }
0x1cfb   : > { %7025 = vmatmul.mubr.msk.f32.vlgmr.msra.gmra.mxu0 %vm469_vm8, %v10499_v37 }
0x1cfc   : > { %5353 = vmatprep.mubr.f32.mxu0 %v11445_v0 }
0x1cff   : > { %7026 = vmatmul.mubr.msk.f32.gmra.mxu0 %vm469_vm8, %v10507_v60 }
0x1d00   : > { %5359 = vmatprep.mubr.f32.mxu0 %v11445_v0 }
0x1d03   : > { %7027 = vmatmul.mubr.msk.f32.gmra.mxu0 %vm469_vm8, %v10515_v59 }
0x1d04   : > { %5365 = vmatprep.mubr.f32.mxu0 %v11445_v0 }
0x1d07   : > { %7028 = vmatmul.mubr.msk.f32.gmra.mxu0 %vm469_vm8, %v10523_v32 }
0x1d08   : > { %5371 = vmatprep.mubr.f32.mxu0 %v11445_v0 }
0x1d0b   : > { %7029 = vmatmul.mubr.msk.f32.gmra.mxu0 %vm469_vm8, %v10531_v30 }
0x1d0c   : > { %5657 = vmatprep.mubr.f32.mxu0 %v11445_v0 }
0x1dbb   : > { %v5349_v40 = vpop.f32.mrf.mxu0 }
0x1dbc   : > { %v5350_v52 = vadd.f32 %v5349_v40, %v7546_v63 }
0x1dbd   : > { %v5351_v29 = vpop.f32.mrf.mxu0 }
0x1dbe   : > { %v5352_v12 = vadd.f32 %v5351_v29, %v7550_v2  ;;  %v5378_v56 = vmax.f32 %v7552_v3, %v5350_v52 }
0x1dbf   : > { %v5355_v51 = vpop.f32.mrf.mxu0 }
0x1dc0   : > { %v5356_v18 = vadd.f32 %v5355_v51, %v7560_v8  ;;  %v5379_v10 = vmax.f32 %v7552_v3, %v5352_v12 }
0x1dc1   : > { %v5357_v7 = vpop.f32.mrf.mxu0 }
0x1dc2   : > { %v5358_v38 = vadd.f32 %v5357_v7, %v7566_v13  ;;  %v5380_v50 = vmax.f32 %v7552_v3, %v5356_v18 }
0x1dc3   : > { %v5361_v25 = vpop.f32.mrf.mxu0 }
0x1dc4   : > { %v5362_v48 = vadd.f32 %v5361_v25, %v7570_v19  ;;  %v5381_v42 = vmax.f32 %v7552_v3, %v5358_v38 }
0x1dc5   : > { %v5363_v9 = vpop.f32.mrf.mxu0 }
0x1dc6   : > { %v5364_v26 = vadd.f32 %v5363_v9, %v7573_v23  ;;  %v5382_v22 = vmax.f32 %v7552_v3, %v5362_v48  ;;  %v5391_v29 = vmin.f32 %v7558_v6, %v5381_v42  ;;  %v5390_v9 = vmin.f32 %v7558_v6, %v5380_v50 }
0x1dc7   : > { %v5367_v24 = vpop.f32.mrf.mxu0 }
0x1dc8   : > { %v5368_v39 = vadd.f32 %v5367_v24, %v7542_v61  ;;  %v5383_v53 = vmax.f32 %v7552_v3, %v5364_v26  ;;  %v5392_v40 = vmin.f32 %v7558_v6, %v5382_v22  ;;  %v10671_v42 = vsub.f32 %v5358_v38, %v5391_v29 }
0x1dc9   : > { %v5369_v43 = vpop.f32.mrf.mxu0 }
0x1dca   : > { %v5370_v34 = vadd.f32 %v5369_v43, %v7544_v62  ;;  %v5384_v57 = vmax.f32 %v7552_v3, %v5368_v39  ;;  %v5393_v55 = vmin.f32 %v7558_v6, %v5383_v53  ;;  %v5389_v43 = vmin.f32 %v7558_v6, %v5379_v10 }
0x1dcb   : > { %v5373_v35 = vpop.f32.mrf.mxu0 }
0x1dcc   : > { %v5385_v20 = vmax.f32 %v7552_v3, %v5370_v34  ;;  %v5374_v14 = vadd.f32 %v5373_v35, %v7548_v1  ;;  %v5394_v58 = vmin.f32 %v7558_v6, %v5384_v57  ;;  %v10663_v53 = vsub.f32 %v5364_v26, %v5393_v55 }
0x1dcd   : > { %v5375_v28 = vpop.f32.mrf.mxu0  ;;  %v5388_v35 = vmin.f32 %v7558_v6, %v5378_v56  ;;  %v10679_v26 = vsub.f32 %v5356_v18, %v5390_v9  ;;  %v10683_v10 = vsub.f32 %v5352_v12, %v5389_v43  ;;  %v5411_v55 = vsub.f32 %v10671_v42, %v10576_v47 }
0x1dce   : > { %v5395_v5 = vmin.f32 %v7558_v6, %v5385_v20  ;;  %v5386_v49 = vmax.f32 %v7552_v3, %v5374_v14  ;;  %v5376_v54 = vadd.f32 %v5375_v28, %v7554_v4  ;;  %v10660_v24 = vsub.f32 %v5368_v39, %v5394_v58 }
0x1dcf   : > { %v5413_v38 = vsub.f32 %v10663_v53, %v10568_v44  ;;  %v10689_v58 = vsub.f32 %v5350_v52, %v5388_v35  ;;  %v5409_v44 = vsub.f32 %v10683_v10, %v10588_v11  ;;  %v5421_v47 = vmul.f32 0.9149167, %v5411_v55 }
0x1dd0   : > { %v10655_v51 = vsub.f32 %v5370_v34, %v5395_v5  ;;  %v5396_v7 = vmin.f32 %v7558_v6, %v5386_v49  ;;  %v5387_v25 = vmax.f32 %v7552_v3, %v5376_v54  ;;  %v10669_v34 = vsub.f32 %v5362_v48, %v5392_v40 }
0x1dd1   : > { %v5423_v5 = vmul.f32 0.9149167, %v5413_v38  ;;  %v5408_v52 = vsub.f32 %v10689_v58, %v10594_v17  ;;  %v5419_v29 = vmul.f32 0.9149167, %v5409_v44  ;;  %v5431_v17 = vadd.f32 %v5421_v47, %v10671_v42 }
0x1dd2   : > { %v10665_v57 = vsub.f32 %v5374_v14, %v5396_v7  ;;  %v5397_v22 = vmin.f32 %v7558_v6, %v5387_v25  ;;  %v5415_v39 = vsub.f32 %v10655_v51, %v10560_v36  ;;  %v5414_v14 = vsub.f32 %v10660_v24, %v10565_v21 }
0x1dd3   : > { %v5410_v21 = vsub.f32 %v10679_v26, %v10584_v41  ;;  %v5433_v40 = vadd.f32 %v5423_v5, %v10663_v53  ;;  %v5418_v7 = vmul.f32 0.9149167, %v5408_v52  ;;  %v5429_v9 = vadd.f32 %v5419_v29, %v10683_v10 }
0x1dd4   : > { %v5416_v20 = vsub.f32 %v10665_v57, %v10570_v27  ;;  %v10675_v50 = vsub.f32 %v5376_v54, %v5397_v22  ;;  %v5412_v27 = vsub.f32 %v10669_v34, %v10574_v31  ;;  %v5425_v18 = vmul.f32 0.9149167, %v5415_v39 }
0x1dd5   : > { %v5424_v12 = vmul.f32 0.9149167, %v5414_v14  ;;  %v5420_v56 = vmul.f32 0.9149167, %v5410_v21  ;;  %v5428_v43 = vadd.f32 %v5418_v7, %v10689_v58 }
0x1dd6   : > { %v5417_v48 = vsub.f32 %v10675_v50, %v10580_v33  ;;  %v5426_v28 = vmul.f32 0.9149167, %v5416_v20  ;;  %v5422_v31 = vmul.f32 0.9149167, %v5412_v27  ;;  %v5435_v54 = vadd.f32 %v5425_v18, %v10655_v51 }
0x1dd7   : > { %v5434_v41 = vadd.f32 %v5424_v12, %v10660_v24  ;;  %v5430_v25 = vadd.f32 %v5420_v56, %v10679_v26 }
0x1dd8   : > { %v5427_v36 = vmul.f32 0.9149167, %v5417_v48  ;;  %v5436_v49 = vadd.f32 %v5426_v28, %v10665_v57  ;;  %v5432_v11 = vadd.f32 %v5422_v31, %v10669_v34 }
0x1dda   : > { %v5437_v33 = vadd.f32 %v5427_v36, %v10675_v50 }
0x1ddc   : > { %5460 = vmatprep.subr.mxu1 %v5437_v33 }
0x1ddd   : > { %5461 = vmatpush1.msra.mxu1 %v5436_v49 }
0x1dde   : > { %5462 = vmatprep.subr.mxu1 %v5435_v54 }
0x1ddf   : > { %5463 = vmatpush1.msra.mxu1 %v5434_v41 }
0x1de0   : > { %5464 = vmatprep.subr.mxu1 %v5433_v40 }
0x1de1   : > { %5465 = vmatpush1.msra.mxu1 %v5432_v11 }
0x1de2   : > { %5466 = vmatprep.subr.mxu1 %v5431_v17 }
0x1de3   : > { %5467 = vmatpush1.msra.mxu1 %v5430_v25 }
0x1de4   : > { %5468 = vmatprep.subr.mxu1 %v5429_v9 }
0x1de5   : > { %5469 = vmatpush1.msra.mxu1 %v5428_v43 }
0x1de6   : > { %7030 = vmatmul.mubr.msk.f32.vlgmr.msra.gmra.mxu1 %vm469_vm8, %v10499_v37 }
0x1de7   : > { %5508 = vmatprep.mubr.f32.mxu1 %v11445_v0 }
0x1dea   : > { %7031 = vmatmul.mubr.msk.f32.gmra.mxu1 %vm469_vm8, %v10507_v60 }
0x1deb   : > { %5514 = vmatprep.mubr.f32.mxu1 %v11445_v0 }
0x1dee   : > { %7032 = vmatmul.mubr.msk.f32.gmra.mxu1 %vm469_vm8, %v10515_v59 }
0x1def   : > { %5520 = vmatprep.mubr.f32.mxu1 %v11445_v0 }
0x1df2   : > { %7033 = vmatmul.mubr.msk.f32.gmra.mxu1 %vm469_vm8, %v10523_v32 }
0x1df3   : > { %5526 = vmatprep.mubr.f32.mxu1 %v11445_v0 }
0x1df6   : > { %7034 = vmatmul.mubr.msk.f32.gmra.mxu1 %vm469_vm8, %v10531_v30 }
0x1df7   : > { %5812 = vmatprep.mubr.f32.mxu1 %v11445_v0 }
0x1ea6   : > { %v5504_v22 = vpop.f32.mrf.mxu1 }
0x1ea7   : > { %v5505_v44 = vadd.f32 %v5504_v22, %v7546_v63 }
0x1ea8   : > { %v5506_v35 = vpop.f32.mrf.mxu1 }
0x1ea9   : > { %v5507_v18 = vadd.f32 %v5506_v35, %v7550_v2  ;;  %v5533_v43 = vmax.f32 %v7552_v3, %v5505_v44 }
0x1eaa   : > { %v5510_v20 = vpop.f32.mrf.mxu1 }
0x1eab   : > { %v5511_v55 = vadd.f32 %v5510_v20, %v7560_v8  ;;  %v5534_v41 = vmax.f32 %v7552_v3, %v5507_v18 }
0x1eac   : > { %v5512_v39 = vpop.f32.mrf.mxu1 }
0x1ead   : > { %v5513_v36 = vadd.f32 %v5512_v39, %v7566_v13  ;;  %v5535_v40 = vmax.f32 %v7552_v3, %v5511_v55 }
0x1eae   : > { %v5516_v14 = vpop.f32.mrf.mxu1 }
0x1eaf   : > { %v5517_v27 = vadd.f32 %v5516_v14, %v7570_v19  ;;  %v5536_v54 = vmax.f32 %v7552_v3, %v5513_v36 }
0x1eb0   : > { %v5518_v48 = vpop.f32.mrf.mxu1 }
0x1eb1   : > { %v5519_v38 = vadd.f32 %v5518_v48, %v7573_v23  ;;  %v5537_v52 = vmax.f32 %v7552_v3, %v5517_v27  ;;  %v5546_v35 = vmin.f32 %v7558_v6, %v5536_v54  ;;  %v5545_v48 = vmin.f32 %v7558_v6, %v5535_v40 }
0x1eb2   : > { %v5522_v28 = vpop.f32.mrf.mxu1 }
0x1eb3   : > { %v5523_v21 = vadd.f32 %v5522_v28, %v7542_v61  ;;  %v5538_v33 = vmax.f32 %v7552_v3, %v5519_v38  ;;  %v5547_v22 = vmin.f32 %v7558_v6, %v5537_v52  ;;  %v10766_v54 = vsub.f32 %v5513_v36, %v5546_v35 }
0x1eb4   : > { %v5524_v12 = vpop.f32.mrf.mxu1 }
0x1eb5   : > { %v5525_v5 = vadd.f32 %v5524_v12, %v7544_v62  ;;  %v5539_v31 = vmax.f32 %v7552_v3, %v5523_v21  ;;  %v5548_v11 = vmin.f32 %v7558_v6, %v5538_v33  ;;  %v5544_v12 = vmin.f32 %v7558_v6, %v5534_v41 }
0x1eb6   : > { %v5528_v49 = vpop.f32.mrf.mxu1 }
0x1eb7   : > { %v5540_v47 = vmax.f32 %v7552_v3, %v5525_v5  ;;  %v5529_v56 = vadd.f32 %v5528_v49, %v7548_v1  ;;  %v5549_v29 = vmin.f32 %v7558_v6, %v5539_v31  ;;  %v10758_v33 = vsub.f32 %v5519_v38, %v5548_v11 }
0x1eb8   : > { %v5530_v7 = vpop.f32.mrf.mxu1  ;;  %v5543_v49 = vmin.f32 %v7558_v6, %v5533_v43  ;;  %v10774_v38 = vsub.f32 %v5511_v55, %v5545_v48  ;;  %v10778_v41 = vsub.f32 %v5507_v18, %v5544_v12  ;;  %v5566_v11 = vsub.f32 %v10766_v54, %v10671_v42 }
0x1eb9   : > { %v5550_v17 = vmin.f32 %v7558_v6, %v5540_v47  ;;  %v5541_v25 = vmax.f32 %v7552_v3, %v5529_v56  ;;  %v5531_v9 = vadd.f32 %v5530_v7, %v7554_v4  ;;  %v10755_v28 = vsub.f32 %v5523_v21, %v5549_v29 }
0x1eba   : > { %v5568_v36 = vsub.f32 %v10758_v33, %v10663_v53  ;;  %v10784_v29 = vsub.f32 %v5505_v44, %v5543_v49  ;;  %v5564_v53 = vsub.f32 %v10778_v41, %v10683_v10  ;;  %v5576_v42 = vmul.f32 0.91729563, %v5566_v11 }
0x1ebb   : > { %v10750_v20 = vsub.f32 %v5525_v5, %v5550_v17  ;;  %v5551_v39 = vmin.f32 %v7558_v6, %v5541_v25  ;;  %v5542_v14 = vmax.f32 %v7552_v3, %v5531_v9  ;;  %v10764_v5 = vsub.f32 %v5517_v27, %v5547_v22 }
0x1ebc   : > { %v5578_v17 = vmul.f32 0.91729563, %v5568_v36  ;;  %v5563_v44 = vsub.f32 %v10784_v29, %v10689_v58  ;;  %v5574_v35 = vmul.f32 0.91729563, %v5564_v53  ;;  %v5586_v58 = vadd.f32 %v5576_v42, %v10766_v54 }
0x1ebd   : > { %v10760_v31 = vsub.f32 %v5529_v56, %v5551_v39  ;;  %v5552_v52 = vmin.f32 %v7558_v6, %v5542_v14  ;;  %v5570_v21 = vsub.f32 %v10750_v20, %v10655_v51  ;;  %v5569_v56 = vsub.f32 %v10755_v28, %v10660_v24 }
0x1ebe   : > { %v5565_v24 = vsub.f32 %v10774_v38, %v10679_v26  ;;  %v5588_v22 = vadd.f32 %v5578_v17, %v10758_v33  ;;  %v5573_v39 = vmul.f32 0.91729563, %v5563_v44  ;;  %v5584_v48 = vadd.f32 %v5574_v35, %v10778_v41 }
0x1ebf   : > { %v5571_v47 = vsub.f32 %v10760_v31, %v10665_v57  ;;  %v10770_v40 = vsub.f32 %v5531_v9, %v5552_v52  ;;  %v5567_v57 = vsub.f32 %v10764_v5, %v10669_v34  ;;  %v5580_v55 = vmul.f32 0.91729563, %v5570_v21 }
0x1ec0   : > { %v5579_v18 = vmul.f32 0.91729563, %v5569_v56  ;;  %v5575_v43 = vmul.f32 0.91729563, %v5565_v24  ;;  %v5583_v12 = vadd.f32 %v5573_v39, %v10784_v29 }
0x1ec1   : > { %v5572_v27 = vsub.f32 %v10770_v40, %v10675_v50  ;;  %v5581_v7 = vmul.f32 0.91729563, %v5571_v47  ;;  %v5577_v34 = vmul.f32 0.91729563, %v5567_v57  ;;  %v5590_v9 = vadd.f32 %v5580_v55, %v10750_v20 }
0x1ec2   : > { %v5589_v26 = vadd.f32 %v5579_v18, %v10755_v28  ;;  %v5585_v14 = vadd.f32 %v5575_v43, %v10774_v38 }
0x1ec3   : > { %v5582_v51 = vmul.f32 0.91729563, %v5572_v27  ;;  %v5591_v25 = vadd.f32 %v5581_v7, %v10760_v31  ;;  %v5587_v10 = vadd.f32 %v5577_v34, %v10764_v5 }
0x1ec5   : > { %v5592_v50 = vadd.f32 %v5582_v51, %v10770_v40 }
0x1ec7   : > { %5615 = vmatprep.subr.mxu0 %v5592_v50 }
0x1ec8   : > { %5616 = vmatpush1.msra.mxu0 %v5591_v25 }
0x1ec9   : > { %5617 = vmatprep.subr.mxu0 %v5590_v9 }
0x1eca   : > { %5618 = vmatpush1.msra.mxu0 %v5589_v26 }
0x1ecb   : > { %5619 = vmatprep.subr.mxu0 %v5588_v22 }
0x1ecc   : > { %5620 = vmatpush1.msra.mxu0 %v5587_v10 }
0x1ecd   : > { %5621 = vmatprep.subr.mxu0 %v5586_v58 }
0x1ece   : > { %5622 = vmatpush1.msra.mxu0 %v5585_v14 }
0x1ecf   : > { %5623 = vmatprep.subr.mxu0 %v5584_v48 }
0x1ed0   : > { %5624 = vmatpush1.msra.mxu0 %v5583_v12 }
0x1ed1   : > { %7035 = vmatmul.mubr.msk.f32.vlgmr.msra.gmra.mxu0 %vm469_vm8, %v10499_v37 }
0x1ed2   : > { %5663 = vmatprep.mubr.f32.mxu0 %v11445_v0 }
0x1ed5   : > { %7036 = vmatmul.mubr.msk.f32.gmra.mxu0 %vm469_vm8, %v10507_v60 }
0x1ed6   : > { %5669 = vmatprep.mubr.f32.mxu0 %v11445_v0 }
0x1ed9   : > { %7037 = vmatmul.mubr.msk.f32.gmra.mxu0 %vm469_vm8, %v10515_v59 }
0x1eda   : > { %5675 = vmatprep.mubr.f32.mxu0 %v11445_v0 }
0x1edd   : > { %7038 = vmatmul.mubr.msk.f32.gmra.mxu0 %vm469_vm8, %v10523_v32 }
0x1ede   : > { %5681 = vmatprep.mubr.f32.mxu0 %v11445_v0 }
0x1ee1   : > { %7039 = vmatmul.mubr.msk.f32.gmra.mxu0 %vm469_vm8, %v10531_v30 }
0x1ee2   : > { %5967 = vmatprep.mubr.f32.mxu0 %v11445_v0 }
0x1f91   : > { %v5659_v52 = vpop.f32.mrf.mxu0 }
0x1f92   : > { %v5660_v53 = vadd.f32 %v5659_v52, %v7546_v63 }
0x1f93   : > { %v5661_v49 = vpop.f32.mrf.mxu0 }
0x1f94   : > { %v5662_v55 = vadd.f32 %v5661_v49, %v7550_v2  ;;  %v5688_v12 = vmax.f32 %v7552_v3, %v5660_v53 }
0x1f95   : > { %v5665_v47 = vpop.f32.mrf.mxu0 }
0x1f96   : > { %v5666_v11 = vadd.f32 %v5665_v47, %v7560_v8  ;;  %v5689_v26 = vmax.f32 %v7552_v3, %v5662_v55 }
0x1f97   : > { %v5667_v21 = vpop.f32.mrf.mxu0 }
0x1f98   : > { %v5668_v51 = vadd.f32 %v5667_v21, %v7566_v13  ;;  %v5690_v22 = vmax.f32 %v7552_v3, %v5666_v11 }
0x1f99   : > { %v5671_v56 = vpop.f32.mrf.mxu0 }
0x1f9a   : > { %v5672_v57 = vadd.f32 %v5671_v56, %v7570_v19  ;;  %v5691_v9 = vmax.f32 %v7552_v3, %v5668_v51 }
0x1f9b   : > { %v5673_v27 = vpop.f32.mrf.mxu0 }
0x1f9c   : > { %v5674_v36 = vadd.f32 %v5673_v27, %v7573_v23  ;;  %v5692_v44 = vmax.f32 %v7552_v3, %v5672_v57  ;;  %v5701_v49 = vmin.f32 %v7558_v6, %v5691_v9  ;;  %v5700_v27 = vmin.f32 %v7558_v6, %v5690_v22 }
0x1f9d   : > { %v5677_v7 = vpop.f32.mrf.mxu0 }
0x1f9e   : > { %v5678_v24 = vadd.f32 %v5677_v7, %v7542_v61  ;;  %v5693_v50 = vmax.f32 %v7552_v3, %v5674_v36  ;;  %v5702_v52 = vmin.f32 %v7558_v6, %v5692_v44  ;;  %v10861_v9 = vsub.f32 %v5668_v51, %v5701_v49 }
0x1f9f   : > { %v5679_v18 = vpop.f32.mrf.mxu0 }
0x1fa0   : > { %v5680_v17 = vadd.f32 %v5679_v18, %v7544_v62  ;;  %v5694_v34 = vmax.f32 %v7552_v3, %v5678_v24  ;;  %v5703_v10 = vmin.f32 %v7558_v6, %v5693_v50  ;;  %v5699_v18 = vmin.f32 %v7558_v6, %v5689_v26 }
0x1fa1   : > { %v5683_v25 = vpop.f32.mrf.mxu0 }
0x1fa2   : > { %v5695_v42 = vmax.f32 %v7552_v3, %v5680_v17  ;;  %v5684_v43 = vadd.f32 %v5683_v25, %v7548_v1  ;;  %v5704_v35 = vmin.f32 %v7558_v6, %v5694_v34  ;;  %v10853_v50 = vsub.f32 %v5674_v36, %v5703_v10 }
0x1fa3   : > { %v5685_v39 = vpop.f32.mrf.mxu0  ;;  %v5698_v25 = vmin.f32 %v7558_v6, %v5688_v12  ;;  %v10869_v36 = vsub.f32 %v5666_v11, %v5700_v27  ;;  %v10873_v26 = vsub.f32 %v5662_v55, %v5699_v18  ;;  %v5721_v10 = vsub.f32 %v10861_v9, %v10766_v54 }
0x1fa4   : > { %v5705_v58 = vmin.f32 %v7558_v6, %v5695_v42  ;;  %v5696_v14 = vmax.f32 %v7552_v3, %v5684_v43  ;;  %v5686_v48 = vadd.f32 %v5685_v39, %v7554_v4  ;;  %v10850_v7 = vsub.f32 %v5678_v24, %v5704_v35 }
0x1fa5   : > { %v5723_v51 = vsub.f32 %v10853_v50, %v10758_v33  ;;  %v10879_v35 = vsub.f32 %v5660_v53, %v5698_v25  ;;  %v5719_v33 = vsub.f32 %v10873_v26, %v10778_v41  ;;  %v5731_v54 = vmul.f32 0.91954434, %v5721_v10 }
0x1fa6   : > { %v10845_v47 = vsub.f32 %v5680_v17, %v5705_v58  ;;  %v5706_v21 = vmin.f32 %v7558_v6, %v5696_v14  ;;  %v5697_v56 = vmax.f32 %v7552_v3, %v5686_v48  ;;  %v10859_v17 = vsub.f32 %v5672_v57, %v5702_v52 }
0x1fa7   : > { %v5733_v58 = vmul.f32 0.91954434, %v5723_v51  ;;  %v5718_v53 = vsub.f32 %v10879_v35, %v10784_v29  ;;  %v5729_v49 = vmul.f32 0.91954434, %v5719_v33  ;;  %v5741_v29 = vadd.f32 %v5731_v54, %v10861_v9 }
0x1fa8   : > { %v10855_v34 = vsub.f32 %v5684_v43, %v5706_v21  ;;  %v5707_v44 = vmin.f32 %v7558_v6, %v5697_v56  ;;  %v5725_v24 = vsub.f32 %v10845_v47, %v10750_v20  ;;  %v5724_v43 = vsub.f32 %v10850_v7, %v10755_v28 }
0x1fa9   : > { %v5720_v28 = vsub.f32 %v10869_v36, %v10774_v38  ;;  %v5743_v52 = vadd.f32 %v5733_v58, %v10853_v50  ;;  %v5728_v21 = vmul.f32 0.91954434, %v5718_v53  ;;  %v5739_v27 = vadd.f32 %v5729_v49, %v10873_v26 }
0x1faa   : > { %v5726_v42 = vsub.f32 %v10855_v34, %v10760_v31  ;;  %v10865_v22 = vsub.f32 %v5686_v48, %v5707_v44  ;;  %v5722_v31 = vsub.f32 %v10859_v17, %v10764_v5  ;;  %v5735_v11 = vmul.f32 0.91954434, %v5725_v24 }
0x1fab   : > { %v5734_v55 = vmul.f32 0.91954434, %v5724_v43  ;;  %v5730_v12 = vmul.f32 0.91954434, %v5720_v28  ;;  %v5738_v18 = vadd.f32 %v5728_v21, %v10879_v35 }
0x1fac   : > { %v5727_v57 = vsub.f32 %v10865_v22, %v10770_v40  ;;  %v5736_v39 = vmul.f32 0.91954434, %v5726_v42  ;;  %v5732_v5 = vmul.f32 0.91954434, %v5722_v31  ;;  %v5745_v48 = vadd.f32 %v5735_v11, %v10845_v47 }
0x1fad   : > { %v5744_v38 = vadd.f32 %v5734_v55, %v10850_v7  ;;  %v5740_v56 = vadd.f32 %v5730_v12, %v10869_v36 }
0x1fae   : > { %v5737_v20 = vmul.f32 0.91954434, %v5727_v57  ;;  %v5746_v14 = vadd.f32 %v5736_v39, %v10855_v34  ;;  %v5742_v41 = vadd.f32 %v5732_v5, %v10859_v17 }
0x1fb0   : > { %v5747_v40 = vadd.f32 %v5737_v20, %v10865_v22 }
0x1fb2   : > { %5770 = vmatprep.subr.mxu1 %v5747_v40 }
0x1fb3   : > { %5771 = vmatpush1.msra.mxu1 %v5746_v14 }
0x1fb4   : > { %5772 = vmatprep.subr.mxu1 %v5745_v48 }
0x1fb5   : > { %5773 = vmatpush1.msra.mxu1 %v5744_v38 }
0x1fb6   : > { %5774 = vmatprep.subr.mxu1 %v5743_v52 }
0x1fb7   : > { %5775 = vmatpush1.msra.mxu1 %v5742_v41 }
0x1fb8   : > { %5776 = vmatprep.subr.mxu1 %v5741_v29 }
0x1fb9   : > { %5777 = vmatpush1.msra.mxu1 %v5740_v56 }
0x1fba   : > { %5778 = vmatprep.subr.mxu1 %v5739_v27 }
0x1fbb   : > { %5779 = vmatpush1.msra.mxu1 %v5738_v18 }
0x1fbc   : > { %7040 = vmatmul.mubr.msk.f32.vlgmr.msra.gmra.mxu1 %vm469_vm8, %v10499_v37 }
0x1fbd   : > { %5818 = vmatprep.mubr.f32.mxu1 %v11445_v0 }
0x1fc0   : > { %7041 = vmatmul.mubr.msk.f32.gmra.mxu1 %vm469_vm8, %v10507_v60 }
0x1fc1   : > { %5824 = vmatprep.mubr.f32.mxu1 %v11445_v0 }
0x1fc4   : > { %7042 = vmatmul.mubr.msk.f32.gmra.mxu1 %vm469_vm8, %v10515_v59 }
0x1fc5   : > { %5830 = vmatprep.mubr.f32.mxu1 %v11445_v0 }
0x1fc8   : > { %7043 = vmatmul.mubr.msk.f32.gmra.mxu1 %vm469_vm8, %v10523_v32 }
0x1fc9   : > { %5836 = vmatprep.mubr.f32.mxu1 %v11445_v0 }
0x1fcc   : > { %7044 = vmatmul.mubr.msk.f32.gmra.mxu1 %vm469_vm8, %v10531_v30 }
0x1fcd   : > { %6122 = vmatprep.mubr.f32.mxu1 %v11445_v0 }
0x207c   : > { %v5814_v44 = vpop.f32.mrf.mxu1 }
0x207d   : > { %v5815_v33 = vadd.f32 %v5814_v44, %v7546_v63 }
0x207e   : > { %v5816_v25 = vpop.f32.mrf.mxu1 }
0x207f   : > { %v5817_v11 = vadd.f32 %v5816_v25, %v7550_v2  ;;  %v5843_v18 = vmax.f32 %v7552_v3, %v5815_v33 }
0x2080   : > { %v5820_v42 = vpop.f32.mrf.mxu1 }
0x2081   : > { %v5821_v10 = vadd.f32 %v5820_v42, %v7560_v8  ;;  %v5844_v38 = vmax.f32 %v7552_v3, %v5817_v11 }
0x2082   : > { %v5822_v24 = vpop.f32.mrf.mxu1 }
0x2083   : > { %v5823_v20 = vadd.f32 %v5822_v24, %v7566_v13  ;;  %v5845_v52 = vmax.f32 %v7552_v3, %v5821_v10 }
0x2084   : > { %v5826_v43 = vpop.f32.mrf.mxu1 }
0x2085   : > { %v5827_v31 = vadd.f32 %v5826_v43, %v7570_v19  ;;  %v5846_v48 = vmax.f32 %v7552_v3, %v5823_v20 }
0x2086   : > { %v5828_v57 = vpop.f32.mrf.mxu1 }
0x2087   : > { %v5829_v51 = vadd.f32 %v5828_v57, %v7573_v23  ;;  %v5847_v53 = vmax.f32 %v7552_v3, %v5827_v31  ;;  %v5856_v25 = vmin.f32 %v7558_v6, %v5846_v48  ;;  %v5855_v57 = vmin.f32 %v7558_v6, %v5845_v52 }
0x2088   : > { %v5832_v39 = vpop.f32.mrf.mxu1 }
0x2089   : > { %v5833_v28 = vadd.f32 %v5832_v39, %v7542_v61  ;;  %v5848_v40 = vmax.f32 %v7552_v3, %v5829_v51  ;;  %v5857_v44 = vmin.f32 %v7558_v6, %v5847_v53  ;;  %v10956_v48 = vsub.f32 %v5823_v20, %v5856_v25 }
0x208a   : > { %v5834_v55 = vpop.f32.mrf.mxu1 }
0x208b   : > { %v5835_v58 = vadd.f32 %v5834_v55, %v7544_v62  ;;  %v5849_v5 = vmax.f32 %v7552_v3, %v5833_v28  ;;  %v5858_v41 = vmin.f32 %v7558_v6, %v5848_v40  ;;  %v5854_v55 = vmin.f32 %v7558_v6, %v5844_v38 }
0x208c   : > { %v5838_v14 = vpop.f32.mrf.mxu1 }
0x208d   : > { %v5850_v54 = vmax.f32 %v7552_v3, %v5835_v58  ;;  %v5839_v12 = vadd.f32 %v5838_v14, %v7548_v1  ;;  %v5859_v49 = vmin.f32 %v7558_v6, %v5849_v5  ;;  %v10948_v40 = vsub.f32 %v5829_v51, %v5858_v41 }
0x208e   : > { %v5840_v21 = vpop.f32.mrf.mxu1  ;;  %v5853_v14 = vmin.f32 %v7558_v6, %v5843_v18  ;;  %v10964_v51 = vsub.f32 %v5821_v10, %v5855_v57  ;;  %v10968_v38 = vsub.f32 %v5817_v11, %v5854_v55  ;;  %v5876_v41 = vsub.f32 %v10956_v48, %v10861_v9 }
0x208f   : > { %v5860_v29 = vmin.f32 %v7558_v6, %v5850_v54  ;;  %v5851_v56 = vmax.f32 %v7552_v3, %v5839_v12  ;;  %v5841_v27 = vadd.f32 %v5840_v21, %v7554_v4  ;;  %v10945_v39 = vsub.f32 %v5833_v28, %v5859_v49 }
0x2090   : > { %v5878_v20 = vsub.f32 %v10948_v40, %v10853_v50  ;;  %v10974_v49 = vsub.f32 %v5815_v33, %v5853_v14  ;;  %v5874_v50 = vsub.f32 %v10968_v38, %v10873_v26  ;;  %v5886_v9 = vmul.f32 0.9216732, %v5876_v41 }
0x2091   : > { %v10940_v42 = vsub.f32 %v5835_v58, %v5860_v29  ;;  %v5861_v24 = vmin.f32 %v7558_v6, %v5851_v56  ;;  %v5852_v43 = vmax.f32 %v7552_v3, %v5841_v27  ;;  %v10954_v58 = vsub.f32 %v5827_v31, %v5857_v44 }
0x2092   : > { %v5888_v29 = vmul.f32 0.9216732, %v5878_v20  ;;  %v5873_v33 = vsub.f32 %v10974_v49, %v10879_v35  ;;  %v5884_v25 = vmul.f32 0.9216732, %v5874_v50  ;;  %v5896_v35 = vadd.f32 %v5886_v9, %v10956_v48 }
0x2093   : > { %v10950_v5 = vsub.f32 %v5839_v12, %v5861_v24  ;;  %v5862_v53 = vmin.f32 %v7558_v6, %v5852_v43  ;;  %v5880_v28 = vsub.f32 %v10940_v42, %v10845_v47  ;;  %v5879_v12 = vsub.f32 %v10945_v39, %v10850_v7 }
0x2094   : > { %v5875_v7 = vsub.f32 %v10964_v51, %v10869_v36  ;;  %v5898_v44 = vadd.f32 %v5888_v29, %v10948_v40  ;;  %v5883_v24 = vmul.f32 0.9216732, %v5873_v33  ;;  %v5894_v57 = vadd.f32 %v5884_v25, %v10968_v38 }
0x2095   : > { %v5881_v54 = vsub.f32 %v10950_v5, %v10855_v34  ;;  %v10960_v52 = vsub.f32 %v5841_v27, %v5862_v53  ;;  %v5877_v34 = vsub.f32 %v10954_v58, %v10859_v17  ;;  %v5890_v10 = vmul.f32 0.9216732, %v5880_v28 }
0x2096   : > { %v5889_v11 = vmul.f32 0.9216732, %v5879_v12  ;;  %v5885_v18 = vmul.f32 0.9216732, %v5875_v7  ;;  %v5893_v55 = vadd.f32 %v5883_v24, %v10974_v49 }
0x2097   : > { %v5882_v31 = vsub.f32 %v10960_v52, %v10865_v22  ;;  %v5891_v21 = vmul.f32 0.9216732, %v5881_v54  ;;  %v5887_v17 = vmul.f32 0.9216732, %v5877_v34  ;;  %v5900_v27 = vadd.f32 %v5890_v10, %v10940_v42 }
0x2098   : > { %v5899_v36 = vadd.f32 %v5889_v11, %v10945_v39  ;;  %v5895_v43 = vadd.f32 %v5885_v18, %v10964_v51 }
0x2099   : > { %v5892_v47 = vmul.f32 0.9216732, %v5882_v31  ;;  %v5901_v56 = vadd.f32 %v5891_v21, %v10950_v5  ;;  %v5897_v26 = vadd.f32 %v5887_v17, %v10954_v58 }
0x209b   : > { %v5902_v22 = vadd.f32 %v5892_v47, %v10960_v52 }
0x209d   : > { %5925 = vmatprep.subr.mxu0 %v5902_v22 }
0x209e   : > { %5926 = vmatpush1.msra.mxu0 %v5901_v56 }
0x209f   : > { %5927 = vmatprep.subr.mxu0 %v5900_v27 }
0x20a0   : > { %5928 = vmatpush1.msra.mxu0 %v5899_v36 }
0x20a1   : > { %5929 = vmatprep.subr.mxu0 %v5898_v44 }
0x20a2   : > { %5930 = vmatpush1.msra.mxu0 %v5897_v26 }
0x20a3   : > { %5931 = vmatprep.subr.mxu0 %v5896_v35 }
0x20a4   : > { %5932 = vmatpush1.msra.mxu0 %v5895_v43 }
0x20a5   : > { %5933 = vmatprep.subr.mxu0 %v5894_v57 }
0x20a6   : > { %5934 = vmatpush1.msra.mxu0 %v5893_v55 }
0x20a7   : > { %7045 = vmatmul.mubr.msk.f32.vlgmr.msra.gmra.mxu0 %vm469_vm8, %v10499_v37 }
0x20a8   : > { %5973 = vmatprep.mubr.f32.mxu0 %v11445_v0 }
0x20ab   : > { %7046 = vmatmul.mubr.msk.f32.gmra.mxu0 %vm469_vm8, %v10507_v60 }
0x20ac   : > { %5979 = vmatprep.mubr.f32.mxu0 %v11445_v0 }
0x20af   : > { %7047 = vmatmul.mubr.msk.f32.gmra.mxu0 %vm469_vm8, %v10515_v59 }
0x20b0   : > { %5985 = vmatprep.mubr.f32.mxu0 %v11445_v0 }
0x20b3   : > { %7048 = vmatmul.mubr.msk.f32.gmra.mxu0 %vm469_vm8, %v10523_v32 }
0x20b4   : > { %5991 = vmatprep.mubr.f32.mxu0 %v11445_v0 }
0x20b7   : > { %7049 = vmatmul.mubr.msk.f32.gmra.mxu0 %vm469_vm8, %v10531_v30 }
0x20b8   : > { %6277 = vmatprep.mubr.f32.mxu0 %v11445_v0 }
0x2167   : > { %v5969_v37 = vpop.f32.mrf.mxu0 }
0x2168   : > { %v5970_v41 = vadd.f32 %v5969_v37, %v7546_v63 }
0x2169   : > { %v5971_v53 = vpop.f32.mrf.mxu0 }
0x216a   : > { %v5972_v20 = vadd.f32 %v5971_v53, %v7550_v2  ;;  %v5998_v24 = vmax.f32 %v7552_v3, %v5970_v41 }
0x216b   : > { %v5975_v60 = vpop.f32.mrf.mxu0 }
0x216c   : > { %v5976_v34 = vadd.f32 %v5975_v60, %v7560_v8  ;;  %v5999_v17 = vmax.f32 %v7552_v3, %v5972_v20 }
0x216d   : > { %v5977_v14 = vpop.f32.mrf.mxu0 }
0x216e   : > { %v5978_v32 = vadd.f32 %v5977_v14, %v7566_v13  ;;  %v6000_v56 = vmax.f32 %v7552_v3, %v5976_v34  ;;  %v6009_v60 = vmin.f32 %v7558_v6, %v5999_v17 }
0x216f   : > { %v5981_v54 = vpop.f32.mrf.mxu0 }
0x2170   : > { %v5982_v12 = vadd.f32 %v5981_v54, %v7570_v19  ;;  %v6001_v29 = vmax.f32 %v7552_v3, %v5978_v32  ;;  %v6010_v37 = vmin.f32 %v7558_v6, %v6000_v56 }
0x2171   : > { %v5983_v28 = vpop.f32.mrf.mxu0 }
0x2172   : > { %v5984_v59 = vadd.f32 %v5983_v28, %v7573_v23  ;;  %v6002_v7 = vmax.f32 %v7552_v3, %v5982_v12  ;;  %v6011_v35 = vmin.f32 %v7558_v6, %v6001_v29 }
0x2173   : > { %v5987_v31 = vpop.f32.mrf.mxu0 }
0x2174   : > { %v5988_v30 = vadd.f32 %v5987_v31, %v7542_v61  ;;  %v6003_v47 = vmax.f32 %v7552_v3, %v5984_v59  ;;  %v6012_v26 = vmin.f32 %v7558_v6, %v6002_v7  ;;  %v6008_v31 = vmin.f32 %v7558_v6, %v5998_v24 }
0x2175   : > { %v5989_v21 = vpop.f32.mrf.mxu0 }
0x2176   : > { %v5990_v10 = vadd.f32 %v5989_v21, %v7544_v62  ;;  %v6004_v11 = vmax.f32 %v7552_v3, %v5988_v30  ;;  %v6013_v18 = vmin.f32 %v7558_v6, %v6003_v47  ;;  %v11049_v21 = vsub.f32 %v5982_v12, %v6012_v26 }
0x2177   : > { %v5993_v22 = vpop.f32.mrf.mxu0  ;;  %v11051_v47 = vsub.f32 %v5978_v32, %v6011_v35  ;;  %v11069_v29 = vsub.f32 %v5970_v41, %v6008_v31  ;;  %v11094_v35 = vld [vmem:[%s11440_s1] sm:$0xff] }
0x2178   : > { %v6005_v50 = vmax.f32 %v7552_v3, %v5990_v10  ;;  %v5994_v33 = vadd.f32 %v5993_v22, %v7548_v1  ;;  %v6014_v27 = vmin.f32 %v7558_v6, %v6004_v11  ;;  %v11043_v14 = vsub.f32 %v5984_v59, %v6013_v18 }
0x2179   : > { %v5995_v9 = vpop.f32.mrf.mxu0  ;;  %v11059_v59 = vsub.f32 %v5976_v34, %v6010_v37  ;;  %v11063_v22 = vsub.f32 %v5972_v20, %v6009_v60  ;;  %v6028_v41 = vsub.f32 %v11069_v29, %v10974_v49  ;;  %v11118_v37 = vld [vmem:[%s11440_s1 + $0x18] sm:$0xff]  ;;  %v11126_v60 = vld [vmem:[%s11440_s1 + $0x20] sm:$0xff] }
0x217a   : > { %v6015_v36 = vmin.f32 %v7558_v6, %v6005_v50  ;;  %v6006_v44 = vmax.f32 %v7552_v3, %v5994_v33  ;;  %v5996_v25 = vadd.f32 %v5995_v9, %v7554_v4  ;;  %v11040_v53 = vsub.f32 %v5988_v30, %v6014_v27 }
0x217b   : > { %v6033_v32 = vsub.f32 %v11043_v14, %v10948_v40  ;;  %v6029_v40 = vsub.f32 %v11063_v22, %v10968_v38 }
0x217c   : > { %v11035_v43 = vsub.f32 %v5990_v10, %v6015_v36  ;;  %v6016_v57 = vmin.f32 %v7558_v6, %v6006_v44  ;;  %v6007_v55 = vmax.f32 %v7552_v3, %v5996_v25  ;;  %v6034_v11 = vsub.f32 %v11040_v53, %v10945_v39 }
0x217d   : > { %v6030_v39 = vsub.f32 %v11059_v59, %v10964_v51  ;;  %v6043_v17 = vmul.f32 0.9236916, %v6033_v32  ;;  %v6039_v36 = vmul.f32 0.9236916, %v6029_v40  ;;  %v6038_v44 = vmul.f32 0.9236916, %v6028_v41 }
0x217e   : > { %v11045_v54 = vsub.f32 %v5994_v33, %v6016_v57  ;;  %v6017_v28 = vmin.f32 %v7558_v6, %v6007_v55  ;;  %v6035_v30 = vsub.f32 %v11035_v43, %v10940_v42  ;;  %v6031_v33 = vsub.f32 %v11051_v47, %v10956_v48  ;;  %v11102_v57 = vld [vmem:[%s11440_s1 + $0x8] sm:$0xff]  ;;  %v11110_v55 = vld [vmem:[%s11440_s1 + $0x10] sm:$0xff] }
0x217f   : > { %v6044_v20 = vmul.f32 0.9236916, %v6034_v11  ;;  %v6040_v9 = vmul.f32 0.9236916, %v6030_v39  ;;  %v6053_v18 = vadd.f32 %v6043_v17, %v11043_v14  ;;  %v6049_v24 = vadd.f32 %v6039_v36, %v11063_v22 }
0x2180   : > { %v6036_v10 = vsub.f32 %v11045_v54, %v10950_v5  ;;  %v11055_v7 = vsub.f32 %v5996_v25, %v6017_v28  ;;  %v6032_v5 = vsub.f32 %v11049_v21, %v10954_v58  ;;  %v6045_v34 = vmul.f32 0.9236916, %v6035_v30 }
0x2181   : > { %v6041_v48 = vmul.f32 0.9236916, %v6031_v33  ;;  %v6054_v51 = vadd.f32 %v6044_v20, %v11040_v53  ;;  %v6050_v25 = vadd.f32 %v6040_v9, %v11059_v59  ;;  %v6048_v26 = vadd.f32 %v6038_v44, %v11069_v29 }
0x2182   : > { %v6037_v12 = vsub.f32 %v11055_v7, %v10960_v52  ;;  %v6046_v50 = vmul.f32 0.9236916, %v6036_v10  ;;  %v6042_v58 = vmul.f32 0.9236916, %v6032_v5  ;;  %v6055_v27 = vadd.f32 %v6045_v34, %v11035_v43 }
0x2183   : > { %v6051_v49 = vadd.f32 %v6041_v48, %v11051_v47 }
0x2184   : > { %v6047_v42 = vmul.f32 0.9236916, %v6037_v12  ;;  %v6056_v56 = vadd.f32 %v6046_v50, %v11045_v54  ;;  %v6052_v38 = vadd.f32 %v6042_v58, %v11049_v21 }
0x2186   : > { %v6057_v52 = vadd.f32 %v6047_v42, %v11055_v7 }
0x2188   : > { %6080 = vmatprep.subr.mxu1 %v6057_v52 }
0x2189   : > { %6081 = vmatpush1.msra.mxu1 %v6056_v56 }
0x218a   : > { %6082 = vmatprep.subr.mxu1 %v6055_v27 }
0x218b   : > { %6083 = vmatpush1.msra.mxu1 %v6054_v51 }
0x218c   : > { %6084 = vmatprep.subr.mxu1 %v6053_v18 }
0x218d   : > { %6085 = vmatpush1.msra.mxu1 %v6052_v38 }
0x218e   : > { %6086 = vmatprep.subr.mxu1 %v6051_v49 }
0x218f   : > { %6087 = vmatpush1.msra.mxu1 %v6050_v25 }
0x2190   : > { %6088 = vmatprep.subr.mxu1 %v6049_v24 }
0x2191   : > { %6089 = vmatpush1.msra.mxu1 %v6048_v26 }
0x2192   : > { %7050 = vmatmul.mubr.msk.f32.vlgmr.msra.gmra.mxu1 %vm469_vm8, %v11094_v35 }
0x2193   : > { %6128 = vmatprep.mubr.f32.mxu1 %v11445_v0 }
0x2196   : > { %7051 = vmatmul.mubr.msk.f32.gmra.mxu1 %vm469_vm8, %v11102_v57 }
0x2197   : > { %6134 = vmatprep.mubr.f32.mxu1 %v11445_v0 }
0x219a   : > { %7052 = vmatmul.mubr.msk.f32.gmra.mxu1 %vm469_vm8, %v11110_v55 }
0x219b   : > { %6140 = vmatprep.mubr.f32.mxu1 %v11445_v0 }
0x219e   : > { %7053 = vmatmul.mubr.msk.f32.gmra.mxu1 %vm469_vm8, %v11118_v37 }
0x219f   : > { %6146 = vmatprep.mubr.f32.mxu1 %v11445_v0 }
0x21a2   : > { %7054 = vmatmul.mubr.msk.f32.gmra.mxu1 %vm469_vm8, %v11126_v60 }
0x21a3   : > { %6432 = vmatprep.mubr.f32.mxu1 %v11445_v0 }
0x2252   : > { %v6124_v28 = vpop.f32.mrf.mxu1 }
0x2253   : > { %v6125_v40 = vadd.f32 %v6124_v28, %v7546_v63 }
0x2254   : > { %v6126_v31 = vpop.f32.mrf.mxu1 }
0x2255   : > { %v6127_v34 = vadd.f32 %v6126_v31, %v7550_v2  ;;  %v6153_v26 = vmax.f32 %v7552_v3, %v6125_v40 }
0x2256   : > { %v6130_v10 = vpop.f32.mrf.mxu1 }
0x2257   : > { %v6131_v33 = vadd.f32 %v6130_v10, %v7560_v8  ;;  %v6154_v51 = vmax.f32 %v7552_v3, %v6127_v34 }
0x2258   : > { %v6132_v30 = vpop.f32.mrf.mxu1 }
0x2259   : > { %v6133_v42 = vadd.f32 %v6132_v30, %v7566_v13  ;;  %v6155_v18 = vmax.f32 %v7552_v3, %v6131_v33 }
0x225a   : > { %v6136_v11 = vpop.f32.mrf.mxu1 }
0x225b   : > { %v6137_v5 = vadd.f32 %v6136_v11, %v7570_v19  ;;  %v6156_v27 = vmax.f32 %v7552_v3, %v6133_v42 }
0x225c   : > { %v6138_v12 = vpop.f32.mrf.mxu1 }
0x225d   : > { %v6139_v32 = vadd.f32 %v6138_v12, %v7573_v23  ;;  %v6157_v41 = vmax.f32 %v7552_v3, %v6137_v5  ;;  %v6166_v31 = vmin.f32 %v7558_v6, %v6156_v27  ;;  %v6165_v12 = vmin.f32 %v7558_v6, %v6155_v18 }
0x225e   : > { %v6142_v50 = vpop.f32.mrf.mxu1 }
0x225f   : > { %v6143_v39 = vadd.f32 %v6142_v50, %v7542_v61  ;;  %v6158_v52 = vmax.f32 %v7552_v3, %v6139_v32  ;;  %v6167_v28 = vmin.f32 %v7558_v6, %v6157_v41  ;;  %v11171_v27 = vsub.f32 %v6133_v42, %v6166_v31 }
0x2260   : > { %v6144_v20 = vpop.f32.mrf.mxu1 }
0x2261   : > { %v6145_v17 = vadd.f32 %v6144_v20, %v7544_v62  ;;  %v6159_v58 = vmax.f32 %v7552_v3, %v6143_v39  ;;  %v6168_v38 = vmin.f32 %v7558_v6, %v6158_v52  ;;  %v6164_v20 = vmin.f32 %v7558_v6, %v6154_v51 }
0x2262   : > { %v6148_v56 = vpop.f32.mrf.mxu1 }
0x2263   : > { %v6160_v48 = vmax.f32 %v7552_v3, %v6145_v17  ;;  %v6149_v9 = vadd.f32 %v6148_v56, %v7548_v1  ;;  %v6169_v36 = vmin.f32 %v7558_v6, %v6159_v58  ;;  %v11163_v52 = vsub.f32 %v6139_v32, %v6168_v38 }
0x2264   : > { %v6150_v44 = vpop.f32.mrf.mxu1  ;;  %v6163_v56 = vmin.f32 %v7558_v6, %v6153_v26  ;;  %v11179_v32 = vsub.f32 %v6131_v33, %v6165_v12  ;;  %v11183_v51 = vsub.f32 %v6127_v34, %v6164_v20  ;;  %v6186_v38 = vsub.f32 %v11171_v27, %v11051_v47 }
0x2265   : > { %v6170_v49 = vmin.f32 %v7558_v6, %v6160_v48  ;;  %v6161_v25 = vmax.f32 %v7552_v3, %v6149_v9  ;;  %v6151_v24 = vadd.f32 %v6150_v44, %v7554_v4  ;;  %v11160_v50 = vsub.f32 %v6143_v39, %v6169_v36 }
0x2266   : > { %v6188_v42 = vsub.f32 %v11163_v52, %v11043_v14  ;;  %v11189_v36 = vsub.f32 %v6125_v40, %v6163_v56  ;;  %v6184_v14 = vsub.f32 %v11183_v51, %v11063_v22  ;;  %v6196_v47 = vmul.f32 0.925608, %v6186_v38 }
0x2267   : > { %v11155_v10 = vsub.f32 %v6145_v17, %v6170_v49  ;;  %v6171_v30 = vmin.f32 %v7558_v6, %v6161_v25  ;;  %v6162_v11 = vmax.f32 %v7552_v3, %v6151_v24  ;;  %v11169_v17 = vsub.f32 %v6137_v5, %v6167_v28 }
0x2268   : > { %v6198_v49 = vmul.f32 0.925608, %v6188_v42  ;;  %v6183_v40 = vsub.f32 %v11189_v36, %v11069_v29  ;;  %v6194_v31 = vmul.f32 0.925608, %v6184_v14  ;;  %v6206_v29 = vadd.f32 %v6196_v47, %v11171_v27 }
0x2269   : > { %v11165_v58 = vsub.f32 %v6149_v9, %v6171_v30  ;;  %v6172_v41 = vmin.f32 %v7558_v6, %v6162_v11  ;;  %v6190_v39 = vsub.f32 %v11155_v10, %v11035_v43  ;;  %v6189_v9 = vsub.f32 %v11160_v50, %v11040_v53 }
0x226a   : > { %v6185_v53 = vsub.f32 %v11179_v32, %v11059_v59  ;;  %v6208_v28 = vadd.f32 %v6198_v49, %v11163_v52  ;;  %v6193_v30 = vmul.f32 0.925608, %v6183_v40  ;;  %v6204_v12 = vadd.f32 %v6194_v31, %v11183_v51 }
0x226b   : > { %v6191_v48 = vsub.f32 %v11165_v58, %v11045_v54  ;;  %v11175_v18 = vsub.f32 %v6151_v24, %v6172_v41  ;;  %v6187_v54 = vsub.f32 %v11169_v17, %v11049_v21  ;;  %v6200_v33 = vmul.f32 0.925608, %v6190_v39 }
0x226c   : > { %v6199_v34 = vmul.f32 0.925608, %v6189_v9  ;;  %v6195_v26 = vmul.f32 0.925608, %v6185_v53  ;;  %v6203_v20 = vadd.f32 %v6193_v30, %v11189_v36 }
0x226d   : > { %v6192_v5 = vsub.f32 %v11175_v18, %v11055_v7  ;;  %v6201_v44 = vmul.f32 0.925608, %v6191_v48  ;;  %v6197_v21 = vmul.f32 0.925608, %v6187_v54  ;;  %v6210_v24 = vadd.f32 %v6200_v33, %v11155_v10 }
0x226e   : > { %v6209_v59 = vadd.f32 %v6199_v34, %v11160_v50  ;;  %v6205_v11 = vadd.f32 %v6195_v26, %v11179_v32 }
0x226f   : > { %v6202_v43 = vmul.f32 0.925608, %v6192_v5  ;;  %v6211_v25 = vadd.f32 %v6201_v44, %v11165_v58  ;;  %v6207_v22 = vadd.f32 %v6197_v21, %v11169_v17 }
0x2271   : > { %v6212_v7 = vadd.f32 %v6202_v43, %v11175_v18 }
0x2273   : > { %6235 = vmatprep.subr.mxu0 %v6212_v7 }
0x2274   : > { %6236 = vmatpush1.msra.mxu0 %v6211_v25 }
0x2275   : > { %6237 = vmatprep.subr.mxu0 %v6210_v24 }
0x2276   : > { %6238 = vmatpush1.msra.mxu0 %v6209_v59 }
0x2277   : > { %6239 = vmatprep.subr.mxu0 %v6208_v28 }
0x2278   : > { %6240 = vmatpush1.msra.mxu0 %v6207_v22 }
0x2279   : > { %6241 = vmatprep.subr.mxu0 %v6206_v29 }
0x227a   : > { %6242 = vmatpush1.msra.mxu0 %v6205_v11 }
0x227b   : > { %6243 = vmatprep.subr.mxu0 %v6204_v12 }
0x227c   : > { %6244 = vmatpush1.msra.mxu0 %v6203_v20 }
0x227d   : > { %7055 = vmatmul.mubr.msk.f32.vlgmr.msra.gmra.mxu0 %vm469_vm8, %v11094_v35 }
0x227e   : > { %6283 = vmatprep.mubr.f32.mxu0 %v11445_v0 }
0x2281   : > { %7056 = vmatmul.mubr.msk.f32.gmra.mxu0 %vm469_vm8, %v11102_v57 }
0x2282   : > { %6289 = vmatprep.mubr.f32.mxu0 %v11445_v0 }
0x2285   : > { %7057 = vmatmul.mubr.msk.f32.gmra.mxu0 %vm469_vm8, %v11110_v55 }
0x2286   : > { %6295 = vmatprep.mubr.f32.mxu0 %v11445_v0 }
0x2289   : > { %7058 = vmatmul.mubr.msk.f32.gmra.mxu0 %vm469_vm8, %v11118_v37 }
0x228a   : > { %6301 = vmatprep.mubr.f32.mxu0 %v11445_v0 }
0x228d   : > { %7059 = vmatmul.mubr.msk.f32.gmra.mxu0 %vm469_vm8, %v11126_v60 }
0x228e   : > { %6587 = vmatprep.mubr.f32.mxu0 %v11445_v0 }
0x233d   : > { %v6279_v41 = vpop.f32.mrf.mxu0 }
0x233e   : > { %v6280_v14 = vadd.f32 %v6279_v41, %v7546_v63 }
0x233f   : > { %v6281_v56 = vpop.f32.mrf.mxu0 }
0x2340   : > { %v6282_v33 = vadd.f32 %v6281_v56, %v7550_v2  ;;  %v6308_v20 = vmax.f32 %v7552_v3, %v6280_v14 }
0x2341   : > { %v6285_v48 = vpop.f32.mrf.mxu0 }
0x2342   : > { %v6286_v38 = vadd.f32 %v6285_v48, %v7560_v8  ;;  %v6309_v59 = vmax.f32 %v7552_v3, %v6282_v33 }
0x2343   : > { %v6287_v39 = vpop.f32.mrf.mxu0 }
0x2344   : > { %v6288_v43 = vadd.f32 %v6287_v39, %v7566_v13  ;;  %v6310_v28 = vmax.f32 %v7552_v3, %v6286_v38 }
0x2345   : > { %v6291_v9 = vpop.f32.mrf.mxu0 }
0x2346   : > { %v6292_v54 = vadd.f32 %v6291_v9, %v7570_v19  ;;  %v6311_v24 = vmax.f32 %v7552_v3, %v6288_v43 }
0x2347   : > { %v6293_v5 = vpop.f32.mrf.mxu0 }
0x2348   : > { %v6294_v42 = vadd.f32 %v6293_v5, %v7573_v23  ;;  %v6312_v40 = vmax.f32 %v7552_v3, %v6292_v54  ;;  %v6321_v56 = vmin.f32 %v7558_v6, %v6311_v24  ;;  %v6320_v5 = vmin.f32 %v7558_v6, %v6310_v28 }
0x2349   : > { %v6297_v44 = vpop.f32.mrf.mxu0 }
0x234a   : > { %v6298_v53 = vadd.f32 %v6297_v44, %v7542_v61  ;;  %v6313_v7 = vmax.f32 %v7552_v3, %v6294_v42  ;;  %v6322_v41 = vmin.f32 %v7558_v6, %v6312_v40  ;;  %v11266_v24 = vsub.f32 %v6288_v43, %v6321_v56 }
0x234b   : > { %v6299_v34 = vpop.f32.mrf.mxu0 }
0x234c   : > { %v6300_v49 = vadd.f32 %v6299_v34, %v7544_v62  ;;  %v6314_v21 = vmax.f32 %v7552_v3, %v6298_v53  ;;  %v6323_v22 = vmin.f32 %v7558_v6, %v6313_v7  ;;  %v6319_v34 = vmin.f32 %v7558_v6, %v6309_v59 }
0x234d   : > { %v6303_v25 = vpop.f32.mrf.mxu0 }
0x234e   : > { %v6315_v47 = vmax.f32 %v7552_v3, %v6300_v49  ;;  %v6304_v26 = vadd.f32 %v6303_v25, %v7548_v1  ;;  %v6324_v31 = vmin.f32 %v7558_v6, %v6314_v21  ;;  %v11258_v7 = vsub.f32 %v6294_v42, %v6323_v22 }
0x234f   : > { %v6305_v30 = vpop.f32.mrf.mxu0  ;;  %v6318_v25 = vmin.f32 %v7558_v6, %v6308_v20  ;;  %v11274_v42 = vsub.f32 %v6286_v38, %v6320_v5  ;;  %v11278_v59 = vsub.f32 %v6282_v33, %v6319_v34  ;;  %v6341_v22 = vsub.f32 %v11266_v24, %v11171_v27 }
0x2350   : > { %v6325_v29 = vmin.f32 %v7558_v6, %v6315_v47  ;;  %v6316_v11 = vmax.f32 %v7552_v3, %v6304_v26  ;;  %v6306_v12 = vadd.f32 %v6305_v30, %v7554_v4  ;;  %v11255_v44 = vsub.f32 %v6298_v53, %v6324_v31 }
0x2351   : > { %v6343_v43 = vsub.f32 %v11258_v7, %v11163_v52  ;;  %v11284_v31 = vsub.f32 %v6280_v14, %v6318_v25  ;;  %v6339_v52 = vsub.f32 %v11278_v59, %v11183_v51  ;;  %v6351_v27 = vmul.f32 0.9274299, %v6341_v22 }
0x2352   : > { %v11250_v48 = vsub.f32 %v6300_v49, %v6325_v29  ;;  %v6326_v39 = vmin.f32 %v7558_v6, %v6316_v11  ;;  %v6317_v9 = vmax.f32 %v7552_v3, %v6306_v12  ;;  %v11264_v49 = vsub.f32 %v6292_v54, %v6322_v41 }
0x2353   : > { %v6353_v29 = vmul.f32 0.9274299, %v6343_v43  ;;  %v6338_v14 = vsub.f32 %v11284_v31, %v11189_v36  ;;  %v6349_v56 = vmul.f32 0.9274299, %v6339_v52  ;;  %v6361_v36 = vadd.f32 %v6351_v27, %v11266_v24 }
0x2354   : > { %v11260_v21 = vsub.f32 %v6304_v26, %v6326_v39  ;;  %v6327_v40 = vmin.f32 %v7558_v6, %v6317_v9  ;;  %v6345_v53 = vsub.f32 %v11250_v48, %v11155_v10  ;;  %v6344_v26 = vsub.f32 %v11255_v44, %v11160_v50 }
0x2355   : > { %v6340_v50 = vsub.f32 %v11274_v42, %v11179_v32  ;;  %v6363_v41 = vadd.f32 %v6353_v29, %v11258_v7  ;;  %v6348_v39 = vmul.f32 0.9274299, %v6338_v14  ;;  %v6359_v5 = vadd.f32 %v6349_v56, %v11278_v59 }
0x2356   : > { %v6346_v47 = vsub.f32 %v11260_v21, %v11165_v58  ;;  %v11270_v28 = vsub.f32 %v6306_v12, %v6327_v40  ;;  %v6342_v58 = vsub.f32 %v11264_v49, %v11169_v17  ;;  %v6355_v38 = vmul.f32 0.9274299, %v6345_v53 }
0x2357   : > { %v6354_v33 = vmul.f32 0.9274299, %v6344_v26  ;;  %v6350_v20 = vmul.f32 0.9274299, %v6340_v50  ;;  %v6358_v34 = vadd.f32 %v6348_v39, %v11284_v31 }
0x2358   : > { %v6347_v54 = vsub.f32 %v11270_v28, %v11175_v18  ;;  %v6356_v30 = vmul.f32 0.9274299, %v6346_v47  ;;  %v6352_v17 = vmul.f32 0.9274299, %v6342_v58  ;;  %v6365_v12 = vadd.f32 %v6355_v38, %v11250_v48 }
0x2359   : > { %v6364_v32 = vadd.f32 %v6354_v33, %v11255_v44  ;;  %v6360_v9 = vadd.f32 %v6350_v20, %v11274_v42 }
0x235a   : > { %v6357_v10 = vmul.f32 0.9274299, %v6347_v54  ;;  %v6366_v11 = vadd.f32 %v6356_v30, %v11260_v21  ;;  %v6362_v51 = vadd.f32 %v6352_v17, %v11264_v49 }
0x235c   : > { %v6367_v18 = vadd.f32 %v6357_v10, %v11270_v28 }
0x235e   : > { %6390 = vmatprep.subr.mxu1 %v6367_v18 }
0x235f   : > { %6391 = vmatpush1.msra.mxu1 %v6366_v11 }
0x2360   : > { %6392 = vmatprep.subr.mxu1 %v6365_v12 }
0x2361   : > { %6393 = vmatpush1.msra.mxu1 %v6364_v32 }
0x2362   : > { %6394 = vmatprep.subr.mxu1 %v6363_v41 }
0x2363   : > { %6395 = vmatpush1.msra.mxu1 %v6362_v51 }
0x2364   : > { %6396 = vmatprep.subr.mxu1 %v6361_v36 }
0x2365   : > { %6397 = vmatpush1.msra.mxu1 %v6360_v9 }
0x2366   : > { %6398 = vmatprep.subr.mxu1 %v6359_v5 }
0x2367   : > { %6399 = vmatpush1.msra.mxu1 %v6358_v34 }
0x2368   : > { %7060 = vmatmul.mubr.msk.f32.vlgmr.msra.gmra.mxu1 %vm469_vm8, %v11094_v35 }
0x2369   : > { %6438 = vmatprep.mubr.f32.mxu1 %v11445_v0 }
0x236c   : > { %7061 = vmatmul.mubr.msk.f32.gmra.mxu1 %vm469_vm8, %v11102_v57 }
0x236d   : > { %6444 = vmatprep.mubr.f32.mxu1 %v11445_v0 }
0x2370   : > { %7062 = vmatmul.mubr.msk.f32.gmra.mxu1 %vm469_vm8, %v11110_v55 }
0x2371   : > { %6450 = vmatprep.mubr.f32.mxu1 %v11445_v0 }
0x2374   : > { %7063 = vmatmul.mubr.msk.f32.gmra.mxu1 %vm469_vm8, %v11118_v37 }
0x2375   : > { %6456 = vmatprep.mubr.f32.mxu1 %v11445_v0 }
0x2378   : > { %7064 = vmatmul.mubr.msk.f32.gmra.mxu1 %vm469_vm8, %v11126_v60 }
0x2379   : > { %6720 = vmatprep.mubr.f32.mxu1 %v11445_v0 }
0x2428   : > { %v6434_v40 = vpop.f32.mrf.mxu1 }
0x2429   : > { %v6435_v52 = vadd.f32 %v6434_v40, %v7546_v63 }
0x242a   : > { %v6436_v25 = vpop.f32.mrf.mxu1 }
0x242b   : > { %v6437_v38 = vadd.f32 %v6436_v25, %v7550_v2  ;;  %v6463_v34 = vmax.f32 %v7552_v3, %v6435_v52 }
0x242c   : > { %v6440_v47 = vpop.f32.mrf.mxu1 }
0x242d   : > { %v6441_v22 = vadd.f32 %v6440_v47, %v7560_v8  ;;  %v6464_v32 = vmax.f32 %v7552_v3, %v6437_v38 }
0x242e   : > { %v6442_v53 = vpop.f32.mrf.mxu1 }
0x242f   : > { %v6443_v10 = vadd.f32 %v6442_v53, %v7566_v13  ;;  %v6465_v41 = vmax.f32 %v7552_v3, %v6441_v22 }
0x2430   : > { %v6446_v26 = vpop.f32.mrf.mxu1 }
0x2431   : > { %v6447_v43 = vadd.f32 %v6446_v26, %v7570_v19  ;;  %v6466_v12 = vmax.f32 %v7552_v3, %v6443_v10 }
0x2432   : > { %v6448_v54 = vpop.f32.mrf.mxu1 }
0x2433   : > { %v6449_v58 = vadd.f32 %v6448_v54, %v7573_v23  ;;  %v6467_v14 = vmax.f32 %v7552_v3, %v6447_v43  ;;  %v6476_v25 = vmin.f32 %v7558_v6, %v6466_v12  ;;  %v6475_v54 = vmin.f32 %v7558_v6, %v6465_v41 }
0x2434   : > { %v6452_v30 = vpop.f32.mrf.mxu1 }
0x2435   : > { %v6453_v50 = vadd.f32 %v6452_v30, %v7542_v61  ;;  %v6468_v18 = vmax.f32 %v7552_v3, %v6449_v58  ;;  %v6477_v40 = vmin.f32 %v7558_v6, %v6467_v14  ;;  %v6486_v14 = vsub.f32 %v6443_v10, %v6476_v25 }
0x2436   : > { %v6454_v33 = vpop.f32.mrf.mxu1 }
0x2437   : > { %v6455_v29 = vadd.f32 %v6454_v33, %v7544_v62  ;;  %v6469_v17 = vmax.f32 %v7552_v3, %v6453_v50  ;;  %v6478_v51 = vmin.f32 %v7558_v6, %v6468_v18  ;;  %v6474_v33 = vmin.f32 %v7558_v6, %v6464_v32 }
0x2438   : > { %v6458_v11 = vpop.f32.mrf.mxu1 }
0x2439   : > { %v6470_v27 = vmax.f32 %v7552_v3, %v6455_v29  ;;  %v6459_v20 = vadd.f32 %v6458_v11, %v7548_v1  ;;  %v6479_v56 = vmin.f32 %v7558_v6, %v6469_v17  ;;  %v6488_v18 = vsub.f32 %v6449_v58, %v6478_v51 }
0x243a   : > { %v6460_v39 = vpop.f32.mrf.mxu1  ;;  %v6484_v41 = vsub.f32 %v6437_v38, %v6474_v33 }
0x243b   : > { %v6480_v36 = vmin.f32 %v7558_v6, %v6470_v27  ;;  %v6471_v9 = vmax.f32 %v7552_v3, %v6459_v20  ;;  %v6461_v5 = vadd.f32 %v6460_v39, %v7554_v4  ;;  %v6489_v30 = vsub.f32 %v6453_v50, %v6479_v56 }
0x243c   : > { %v6473_v27 = vmin.f32 %v7558_v6, %v6463_v34  ;;  %v6487_v39 = vsub.f32 %v6447_v43, %v6477_v40  ;;  %v6498_v50 = vsub.f32 %v6488_v18, %v11258_v7  ;;  %v6496_v43 = vsub.f32 %v6486_v14, %v11266_v24 }
0x243d   : > { %v6490_v47 = vsub.f32 %v6455_v29, %v6480_v36  ;;  %v6481_v53 = vmin.f32 %v7558_v6, %v6471_v9  ;;  %v6472_v26 = vmax.f32 %v7552_v3, %v6461_v5  ;;  %v6485_v9 = vsub.f32 %v6441_v22, %v6475_v54 }
0x243e   : > { %v6499_v0 = vsub.f32 %v6489_v30, %v11255_v44  ;;  %v6497_v32 = vsub.f32 %v6487_v39, %v11264_v49  ;;  %v6494_v22 = vsub.f32 %v6484_v41, %v11278_v59 }
0x243f   : > { %v6491_v17 = vsub.f32 %v6459_v20, %v6481_v53  ;;  %v6482_v11 = vmin.f32 %v7558_v6, %v6472_v26  ;;  %v6500_v12 = vsub.f32 %v6490_v47, %v11250_v48  ;;  %v6483_v20 = vsub.f32 %v6435_v52, %v6473_v27 }
0x2440   : > { %v6495_v48 = vsub.f32 %v6485_v9, %v11274_v42  ;;  %v6507_v7 = vmul.f32 0.9291642, %v6497_v32  ;;  %v6504_v24 = vmul.f32 0.9291642, %v6494_v22 }
0x2441   : > { %v6501_v29 = vsub.f32 %v6491_v17, %v11260_v21  ;;  %v6492_v36 = vsub.f32 %v6461_v5, %v6482_v11  ;;  %v6510_v10 = vmul.f32 0.9291642, %v6500_v12  ;;  %v6509_v21 = vmul.f32 0.9291642, %v6499_v0 }
0x2442   : > { %v6508_v5 = vmul.f32 0.9291642, %v6498_v50  ;;  %v6493_v38 = vsub.f32 %v6483_v20, %v11284_v31  ;;  %v6505_v49 = vmul.f32 0.9291642, %v6495_v48  ;;  %v6517_v42 = vadd.f32 %v6507_v7, %v6487_v39 }
0x2443   : > { %v6502_v58 = vsub.f32 %v6492_v36, %v11270_v28  ;;  %v6511_v56 = vmul.f32 0.9291642, %v6501_v29  ;;  %v6506_v28 = vmul.f32 0.9291642, %v6496_v43  ;;  %v6520_v52 = vadd.f32 %v6510_v10, %v6490_v47 }
0x2444   : > { %v6519_v40 = vadd.f32 %v6509_v21, %v6489_v30  ;;  %v6518_v25 = vadd.f32 %v6508_v5, %v6488_v18  ;;  %v6503_v53 = vmul.f32 0.9291642, %v6493_v38  ;;  %v6515_v59 = vadd.f32 %v6505_v49, %v6485_v9 }
0x2445   : > { %v6512_v51 = vmul.f32 0.9291642, %v6502_v58  ;;  %v6521_v34 = vadd.f32 %v6511_v56, %v6491_v17  ;;  %v6516_v0 = vadd.f32 %v6506_v28, %v6486_v14  ;;  %v6514_v31 = vadd.f32 %v6504_v24, %v6484_v41  ;;  %v6648_v24 = vld [vmem:[#allocation3] sm:$0xff] }
0x2446   : > { %v6513_v26 = vadd.f32 %v6503_v53, %v6483_v20  ;;  %v11452_v47 = vmov 0.0  }
0x2447   : > { %v6522_v44 = vadd.f32 %v6512_v51, %v6492_v36 }
0x2449   : > { %6545 = vmatprep.subr.mxu0 %v6522_v44 }
0x244a   : > { %6546 = vmatpush1.msra.mxu0 %v6521_v34 }
0x244b   : > { %6547 = vmatprep.subr.mxu0 %v6520_v52 }
0x244c   : > { %6548 = vmatpush1.msra.mxu0 %v6519_v40 }
0x244d   : > { %6549 = vmatprep.subr.mxu0 %v6518_v25 }
0x244e   : > { %6550 = vmatpush1.msra.mxu0 %v6517_v42 }
0x244f   : > { %6551 = vmatprep.subr.mxu0 %v6516_v0 }
0x2450   : > { %6552 = vmatpush1.msra.mxu0 %v6515_v59 }
0x2451   : > { %6553 = vmatprep.subr.mxu0 %v6514_v31 }
0x2452   : > { %6554 = vmatpush1.msra.mxu0 %v6513_v26 }
0x2453   : > { %7065 = vmatmul.mubr.msk.f32.vlgmr.msra.gmra.mxu0 %vm469_vm8, %v11094_v35 }
0x2454   : > { %6593 = vmatprep.mubr.f32.mxu0 %v11452_v47 }
0x2457   : > { %7066 = vmatmul.mubr.msk.f32.gmra.mxu0 %vm469_vm8, %v11102_v57 }
0x2458   : > { %6599 = vmatprep.mubr.f32.mxu0 %v11452_v47 }
0x245b   : > { %7067 = vmatmul.mubr.msk.f32.gmra.mxu0 %vm469_vm8, %v11110_v55 }
0x245c   : > { %6605 = vmatprep.mubr.f32.mxu0 %v11452_v47 }
0x245f   : > { %7068 = vmatmul.mubr.msk.f32.gmra.mxu0 %vm469_vm8, %v11118_v37 }
0x2460   : > { %6611 = vmatprep.mubr.f32.mxu0 %v11452_v47 }
0x2463   : > { %7069 = vmatmul.mubr.msk.f32.gmra.mxu0 %vm469_vm8, %v11126_v60 }
0x2513   : > { %v6589_v35 = vpop.f32.mrf.mxu0 }
0x2515   : > { %v6591_v54 = vpop.f32.mrf.mxu0 }
0x2516   : > { %v6592_v50 = vadd.f32 %v6591_v54, %v7550_v2 }
0x2517   : > { %v6595_v30 = vpop.f32.mrf.mxu0 }
0x2518   : > { %v6619_v56 = vmax.f32 %v7552_v3, %v6592_v50 }
0x2519   : > { %v6597_v33 = vpop.f32.mrf.mxu0 }
0x251a   : > { %v6598_v29 = vadd.f32 %v6597_v33, %v7566_v13  ;;  %v6629_v38 = vmin.f32 %v7558_v6, %v6619_v56 }
0x251b   : > { %v6601_v57 = vpop.f32.mrf.mxu0 }
0x251c   : > { %v6602_v12 = vadd.f32 %v6601_v57, %v7570_v19  ;;  %v6590_v19 = vadd.f32 %v6589_v35, %v7546_v63  ;;  %v6621_v20 = vmax.f32 %v7552_v3, %v6598_v29  ;;  %v6639_v49 = vsub.f32 %v6592_v50, %v6629_v38 }
0x251d   : > { %v6603_v18 = vpop.f32.mrf.mxu0 }
0x251e   : > { %v6604_v37 = vadd.f32 %v6603_v18, %v7573_v23  ;;  %v6622_v13 = vmax.f32 %v7552_v3, %v6602_v12  ;;  %v6618_v63 = vmax.f32 %v7552_v3, %v6590_v19  ;;  %v6631_v21 = vmin.f32 %v7558_v6, %v6621_v20 }
0x251f   : > { %v6607_v17 = vpop.f32.mrf.mxu0 }
0x2520   : > { %v6608_v27 = vadd.f32 %v6607_v17, %v7542_v61  ;;  %v6623_v23 = vmax.f32 %v7552_v3, %v6604_v37  ;;  %v6632_v51 = vmin.f32 %v7558_v6, %v6622_v13  ;;  %v6628_v34 = vmin.f32 %v7558_v6, %v6618_v63 }
0x2521   : > { %v6609_v11 = vpop.f32.mrf.mxu0 }
0x2522   : > { %v6610_v55 = vadd.f32 %v6609_v11, %v7544_v62  ;;  %v6596_v62 = vadd.f32 %v6595_v30, %v7560_v8  ;;  %v6624_v61 = vmax.f32 %v7552_v3, %v6608_v27  ;;  %v6633_v43 = vmin.f32 %v7558_v6, %v6623_v23 }
0x2523   : > { %v6613_v39 = vpop.f32.mrf.mxu0  ;;  %v6642_v28 = vsub.f32 %v6602_v12, %v6632_v51  ;;  %v6638_v40 = vsub.f32 %v6590_v19, %v6628_v34 }
0x2524   : > { %v6614_v14 = vadd.f32 %v6613_v39, %v7548_v1  ;;  %v6625_v36 = vmax.f32 %v7552_v3, %v6610_v55  ;;  %v6620_v32 = vmax.f32 %v7552_v3, %v6596_v62  ;;  %v6634_v2 = vmin.f32 %v7558_v6, %v6624_v61 }
0x2525   : > { %v6615_v60 = vpop.f32.mrf.mxu0  ;;  %v6643_v7 = vsub.f32 %v6604_v37, %v6633_v43 }
0x2526   : > { %v6626_v9 = vmax.f32 %v7552_v3, %v6614_v14  ;;  %v6616_v41 = vadd.f32 %v6615_v60, %v7554_v4  ;;  %v6635_v4 = vmin.f32 %v7558_v6, %v6625_v36  ;;  %v6630_v5 = vmin.f32 %v7558_v6, %v6620_v32 }
0x2527   : > { %v6644_v44 = vsub.f32 %v6608_v27, %v6634_v2 }
0x2528   : > { %v6627_v1 = vmax.f32 %v7552_v3, %v6616_v41  ;;  %v6636_v58 = vmin.f32 %v7558_v6, %v6626_v9  ;;  %v6645_v22 = vsub.f32 %v6610_v55, %v6635_v4  ;;  %v6641_v3 = vsub.f32 %v6598_v29, %v6631_v21 }
0x2529   : > { %v6640_v52 = vsub.f32 %v6596_v62, %v6630_v5 }
0x252a   : > { %v6637_v8 = vmin.f32 %v7558_v6, %v6627_v1  ;;  %v6646_v48 = vsub.f32 %v6614_v14, %v6636_v58  ;;  %v6649_v6 = vld [vmem:[#allocation3 + $0x8] sm:$0x3] }
0x252c   : > { %v6647_v10 = vsub.f32 %v6616_v41, %v6637_v8 }
0x252e   : > { %6678 = vmatprep.subr.mxu1 %v6647_v10 }
0x252f   : > { %6679 = vmatpush1.msra.mxu1 %v6646_v48 }
0x2530   : > { %6680 = vmatprep.subr.mxu1 %v6645_v22 }
0x2531   : > { %6681 = vmatpush1.msra.mxu1 %v6644_v44 }
0x2532   : > { %6682 = vmatprep.subr.mxu1 %v6643_v7 }
0x2533   : > { %6683 = vmatpush1.msra.mxu1 %v6642_v28 }
0x2534   : > { %6684 = vmatprep.subr.mxu1 %v6641_v3 }
0x2535   : > { %6685 = vmatpush1.msra.mxu1 %v6640_v52 }
0x2536   : > { %6686 = vmatprep.subr.mxu1 %v6639_v49 }
0x2537   : > { %6687 = vmatpush1.msra.mxu1 %v6638_v40 }
0x2538   : > { %7070 = vmatmul.mubr.msk.f32.vlgmr.msra.gmra.mxu1 %vm469_vm8, %v6648_v24 }
0x2539   : > { %6726 = vmatprep.mubr.f32.mxu1 %v11452_v47 }
0x253c   : > { %7071 = vmatmul.mubr.msk.f32.gmra.mxu1 %vm469_vm8, %v6649_v6 }
0x25f8   : > { %v6722_v25 = vpop.f32.mrf.mxu1 }
0x25f9   : > { %v6733_v53 = vmul.f32 %v6722_v25, %v7467_v46 }
0x25fa   : > { %v6724_v42 = vpop.f32.mrf.mxu1 }
0x25fb   : > { %v6737_v0 = vadd.f32 %v6733_v53, %v7460_v16  ;;  %v6734_v59 = vmul.f32 %v6724_v42, %v7464_v45 }
0x25fc   : > { %v6728_v31 = vpop.f32.mrf.mxu1 }
0x25fd   : > { %6741 = vst [vmem:[%s285_s6] sm:$0xff] %v6737_v0  ;;  %v6738_v26 = vadd.f32 %v6734_v59, %v7458_v15  ;;  %v6735_v47 = vmul.f32 %v6728_v31, %v7467_v46 }
0x25fe   : > { %v6730_v35 = vpop.f32.mrf.mxu1 }
0x25ff   : > { %6742 = vst [vmem:[%s285_s6 + $0x8] sm:$0xff] %v6738_v26  ;;  %v6739_v54 = vadd.f32 %v6735_v47, %v7460_v16  ;;  %v6736_v30 = vmul.f32 %v6730_v35, %v7464_v45 }
0x2601   : > { %6743 = vst [vmem:[%s285_s6 + $0x10] sm:$0x3] %v6739_v54  ;;  %v6740_v33 = vadd.f32 %v6736_v30, %v7458_v15 }
0x2603   : > { %6744 = vst [vmem:[%s285_s6 + $0x18] sm:$0x3] %v6740_v33 }
0x2604 PF: > { %s20_s25 = sadd.s32 1, %s7317_s25   ;;  %s11453_s20 = smov %s7301_s21 }
0x2605   : > { %p17_p4 = scmp.ge.s32.totalorder %s20_s25, 4   ;;  %s11454_s21 = smov %s7305_s22 }
0x2606   : > { %s11455_s22 = smov %s7432_s18  ;;  %s11456_s23 = smov %s7313_s24 }
0x2607   : > { %s11457_s24 = smov %s11459_s7  ;;  %19 = sbr.rel (!%p17_p4) target bundleno = 7 (0x7), region = 85 }
0x260c   :  { %6775 = vsyncpa [#allocation4], 1 }
0x260d   :  { %6777 = vsyncpa [#allocation4 + $0x1], 1 }
0x260e   :  { %6778 = vsyncpa [#allocation6], 1 }
0x260f   :  { %6780 = vsyncpa [#allocation6 + $0x1], 1 }

</bundles_post_ra>
